<compile_context>
chip_gen: v7x
topology: tpu7x:2x2x1
jax: 0.10.0
libtpu: 0.0.40
codegen_flags: <defaults>
</compile_context>

<pallas_src>
import functools

import jax
import jax.numpy as jnp
from jax import lax
from jax.experimental import pallas as pl
from jax.experimental.pallas import tpu as pltpu


# ----------------------------------------------------------------------------
# Sub-pixel decomposition of ConvTranspose2d(4x4, stride=2, padding=1):
# for output parity p, list of (offset into the 1-padded coarse input, tap).
# ----------------------------------------------------------------------------
_SUBPIXEL_TAPS = (((0, 3), (1, 1)),   # even output rows / cols
                  ((1, 2), (2, 0)))   # odd  output rows / cols


def _tap_table():
    taps = []
    for py in range(2):
        for px in range(2):
            for dy, ky in _SUBPIXEL_TAPS[py]:
                for dx, kx in _SUBPIXEL_TAPS[px]:
                    taps.append((py, px, dy, ky, dx, kx))
    return tuple(taps)


_TAPS16 = _tap_table()


# ----------------------------------------------------------------------------
# K1: ConvTranspose2d(Cin, Cout, 4, stride=2, padding=1) as 16 in-VMEM
#     sub-pixel GEMMs per batch.  Outputs the parity-interleaved image
#     (B, H, 2, W, 2*Cout) (free-view reshape to (B, 2H, 2W, Cout)) plus the
#     spatial pooled sum (B, 1, Cout) for the downstream attention.
# ----------------------------------------------------------------------------
def _upconv_kernel(xp_ref, w_ref, b_ref, o_ref, pool_ref, *, h, w):
    cin = xp_ref.shape[-1]
    cout = b_ref.shape[-1]
    xp = xp_ref[...]                                        # (h+2, w+2, cin) bf16
    # 3 W-shifted copies, flattened so row r is coarse pixel (r//w, r%w) of the
    # dx-shifted padded input (keeps the 16 window gathers as free row slices).
    xw = [xp[:, dx:dx + w, :].reshape((h + 2) * w, cin) for dx in range(3)]
    bias = b_ref[...]                                       # (1, cout) f32
    pooled = jnp.zeros((1, cout), jnp.float32)
    for pidx in range(4):
        py, px = pidx // 2, pidx % 2
        acc = jnp.zeros((h * w, cout), jnp.float32)
        for tsub in range(4):
            t = pidx * 4 + tsub
            _, _, dy, _, dx, _ = _TAPS16[t]
            win = xw[dx][dy * w:dy * w + h * w, :]          # (h*w, cin) bf16
            acc = acc + jnp.dot(win, w_ref[t],
                                preferred_element_type=jnp.float32)
        acc = acc + bias
        pooled = pooled + jnp.sum(acc, axis=0, keepdims=True)
        o_ref[:, py, :, px * cout:(px + 1) * cout] = (
            acc.reshape(h, w, cout).astype(o_ref.dtype))
    pool_ref[...] = pooled


def conv_transpose_4x4_s2_p1(x, w, b):
    """x: (B, H, W, Cin) f32/bf16; w: (Cin, Cout, 4, 4) PyTorch layout; b: (Cout,).
    Returns (up (B, 2H, 2W, Cout) bf16, pooled spatial sum (B, Cout) f32)."""
    B, H, W, Cin = x.shape
    Cout = w.shape[1]
    assert W % 8 == 0, "coarse width must be a multiple of 8"
    xp = jnp.pad(x.astype(jnp.bfloat16), ((0, 0), (1, 1), (1, 1), (0, 0)))
    w_stack = jnp.stack([w[:, :, ky, kx] for (_, _, _, ky, _, kx) in _TAPS16],
                        axis=0).astype(jnp.bfloat16)        # (16, Cin, Cout)
    bias = b.reshape(1, Cout).astype(jnp.float32)

    up_packed, pool = pl.pallas_call(
        functools.partial(_upconv_kernel, h=H, w=W),
        out_shape=(
            jax.ShapeDtypeStruct((B, H, 2, W, 2 * Cout), jnp.bfloat16),
            jax.ShapeDtypeStruct((B, 1, Cout), jnp.float32),
        ),
        grid=(B,),
        in_specs=[
            pl.BlockSpec((None, H + 2, W + 2, Cin), lambda bq: (bq, 0, 0, 0)),
            pl.BlockSpec((16, Cin, Cout), lambda bq: (0, 0, 0)),
            pl.BlockSpec((1, Cout), lambda bq: (0, 0)),
        ],
        out_specs=(
            pl.BlockSpec((None, H, 2, W, 2 * Cout), lambda bq: (bq, 0, 0, 0, 0)),
            pl.BlockSpec((None, 1, Cout), lambda bq: (bq, 0, 0)),
        ),
        compiler_params=pltpu.CompilerParams(
            dimension_semantics=("parallel",),
            vmem_limit_bytes=64 * 1024 * 1024),
    )(xp, w_stack, bias)

    up = up_packed.reshape(B, 2 * H, 2 * W, Cout)   # interleave == plain reshape
    return up, pool[:, 0, :]


# ----------------------------------------------------------------------------
# K2: attention2d reduced to its tiny MLP (pooled means come from producer
#     kernels): fc1 -> ReLU -> fc2 -> softmax(x/T) -> att @ flattened experts.
# ----------------------------------------------------------------------------
def _attn_mlp_kernel(pooled_ref, w1_ref, w2_ref, ex_ref, agg_ref, *, temperature):
    pooled = pooled_ref[...]                                # (B, C) f32
    h = jnp.maximum(jnp.dot(pooled, w1_ref[...],
                            preferred_element_type=jnp.float32), 0.0)
    logits = jnp.dot(h, w2_ref[...],
                     preferred_element_type=jnp.float32) * (1.0 / temperature)
    m = jnp.max(logits, axis=-1, keepdims=True)
    e = jnp.exp(logits - m)
    att = e / jnp.sum(e, axis=-1, keepdims=True)            # (B, K)
    agg_ref[...] = jnp.dot(att, ex_ref[...],
                           preferred_element_type=jnp.float32)   # (B, 9*C)


def attention_aggregate(pooled, w1, w2, experts_flat, temperature):
    """pooled: (B, C) mean-pooled input; experts_flat: (K, 9*C).
    Returns the per-sample aggregated depthwise taps (B, 9, C) f32."""
    B, C = pooled.shape
    n9c = experts_flat.shape[1]
    agg = pl.pallas_call(
        functools.partial(_attn_mlp_kernel, temperature=float(temperature)),
        out_shape=jax.ShapeDtypeStruct((B, n9c), jnp.float32),
    )(pooled.astype(jnp.float32), w1.astype(jnp.float32),
      w2.astype(jnp.float32), experts_flat.astype(jnp.float32))
    return agg.reshape(B, 9, C)


# ----------------------------------------------------------------------------
# K3: dynamic depthwise 3x3 (per-sample aggregated taps, padding=1) fused with
#     the 1x1 conv_1 (+ bias + ReLU), optionally the folded sSE gate, and an
#     optional pooled-sum side output.  Supports 1 or 2 channel-split inputs
#     (so concat([up, skip]) is never materialized).  Grid over batch.
# ----------------------------------------------------------------------------
def _dw_conv1_kernel(*refs, num_parts, fuse_se, emit_pool, hf, wf):
    x_refs = refs[:num_parts]
    agg_ref = refs[num_parts]
    w_refs = refs[num_parts + 1:2 * num_parts + 1]
    b_ref = refs[2 * num_parts + 1]
    pos = 2 * num_parts + 2
    if fuse_se:
        sev_ref, sec_ref = refs[pos], refs[pos + 1]
        pos += 2
    o_ref = refs[pos]
    pos += 1
    pool_ref = refs[pos] if emit_pool else None

    cout = o_ref.shape[-1]
    agg = agg_ref[...]                                      # (9, sum_cin) f32

    y = None
    coff = 0
    for part in range(num_parts):
        xp = x_refs[part][...]                              # (hf+2, wf+2, cin) bf16
        cin = xp.shape[-1]
        # 3 W-shifted f32 copies (instead of 9 shifted views).
        xw = [xp[:, dx:dx + wf, :].astype(jnp.float32) for dx in range(3)]
        dw = jnp.zeros((hf, wf, cin), jnp.float32)
        for kh in range(3):
            for kw in range(3):
                t = kh * 3 + kw
                wt = agg[t:t + 1, coff:coff + cin].reshape(1, 1, cin)
                dw = dw + xw[kw][kh:kh + hf, :, :] * wt
        part_y = jnp.dot(dw.reshape(hf * wf, cin).astype(jnp.bfloat16),
                         w_refs[part][...], preferred_element_type=jnp.float32)
        y = part_y if y is None else y + part_y
        coff += cin

    y = jnp.maximum(y + b_ref[...], 0.0)                    # conv_1 bias + ReLU

    if fuse_se:
        # sSE folded to a single per-channel vector + scalar: VPU lane
        # reduction (no tiny-N MXU dot) -> sigmoid -> gate.
        z = jnp.sum(y * sev_ref[...], axis=-1, keepdims=True) + sec_ref[...]
        y = y * jax.nn.sigmoid(z)

    if emit_pool:
        pool_ref[...] = jnp.sum(y, axis=0, keepdims=True)   # (1, cout) f32

    o_ref[...] = y.reshape(hf, wf, cout).astype(o_ref.dtype)


def dyn_dw_conv1(x_pads, agg, w1_parts, conv1_b, se=None, emit_pool=False,
                 out_dtype=jnp.bfloat16):
    """x_pads: list of zero-padded (B, Hf+2, Wf+2, Ci) bf16 activations (channel
    split of the logical concat); agg: (B, 9, sum Ci) aggregated taps;
    w1_parts: matching list of (Ci, Cout) conv_1 weight slices."""
    num_parts = len(x_pads)
    B, Hp, Wp, _ = x_pads[0].shape
    Hf, Wf = Hp - 2, Wp - 2
    assert Wf % 8 == 0, "fine width must be a multiple of 8"
    Cout = w1_parts[0].shape[1]
    totC = agg.shape[2]
    fuse_se = se is not None

    in_specs, args = [], []
    for xpd in x_pads:
        ci = xpd.shape[-1]
        in_specs.append(pl.BlockSpec((None, Hp, Wp, ci), lambda b: (b, 0, 0, 0)))
        args.append(xpd)
    in_specs.append(pl.BlockSpec((None, 9, totC), lambda b: (b, 0, 0)))
    args.append(agg)
    for wp_ in w1_parts:
        ci = wp_.shape[0]
        in_specs.append(pl.BlockSpec((ci, Cout), lambda b: (0, 0)))
        args.append(wp_.astype(jnp.bfloat16))
    in_specs.append(pl.BlockSpec((1, Cout), lambda b: (0, 0)))
    args.append(conv1_b.reshape(1, Cout).astype(jnp.float32))
    if fuse_se:
        sev, sec = se
        in_specs.append(pl.BlockSpec((1, Cout), lambda b: (0, 0)))
        args.append(sev.reshape(1, Cout).astype(jnp.float32))
        in_specs.append(pl.BlockSpec((1, 1), lambda b: (0, 0)))
        args.append(jnp.asarray(sec, jnp.float32).reshape(1, 1))

    out_shapes = [jax.ShapeDtypeStruct((B, Hf, Wf, Cout), out_dtype)]
    out_specs = [pl.BlockSpec((None, Hf, Wf, Cout), lambda b: (b, 0, 0, 0))]
    if emit_pool:
        out_shapes.append(jax.ShapeDtypeStruct((B, 1, Cout), jnp.float32))
        out_specs.append(pl.BlockSpec((None, 1, Cout), lambda b: (b, 0, 0)))

    return pl.pallas_call(
        functools.partial(_dw_conv1_kernel, num_parts=num_parts,
                          fuse_se=fuse_se, emit_pool=emit_pool, hf=Hf, wf=Wf),
        out_shape=tuple(out_shapes) if emit_pool else out_shapes[0],
        grid=(B,),
        in_specs=in_specs,
        out_specs=tuple(out_specs) if emit_pool else out_specs[0],
        compiler_params=pltpu.CompilerParams(
            dimension_semantics=("parallel",),
            vmem_limit_bytes=64 * 1024 * 1024),
    )(*args)


# ----------------------------------------------------------------------------
# Forward pass glue (plain JAX = layout plumbing + tiny folds only).
# ----------------------------------------------------------------------------
def unet_up_origin_forward(inputs0_nchw, input1_nchw, params, temperature=30.0):
    """unetUp_origin.forward(inputs0, input1) with is_deconv=True, n_concat=2."""
    x0 = jnp.transpose(inputs0_nchw, (0, 2, 3, 1)).astype(jnp.float32)
    skip = jnp.transpose(input1_nchw, (0, 2, 3, 1)).astype(jnp.float32)
    B, H, W, _ = x0.shape
    Cout = params["up_b"].shape[0]
    Hf, Wf = 2 * H, 2 * W
    inv_hw = 1.0 / float(Hf * Wf)

    # K1: up-convolution -> bf16 interleaved image + pooled sum (no im2col,
    # no output transpose).
    up, up_pool_sum = conv_transpose_4x4_s2_p1(x0, params["up_w"], params["up_b"])

    # dc1 attention: pooled mean of the (never materialized) concat([up, skip]).
    skip_pool_sum = jnp.sum(skip, axis=(1, 2))                        # (B, Cout)
    pooled1 = jnp.concatenate([up_pool_sum, skip_pool_sum], axis=-1) * inv_hw
    p1 = params["dc1"]
    K = p1["dw_weight"].shape[0]
    ex1 = jnp.transpose(p1["dw_weight"], (0, 2, 3, 1)).reshape(K, -1)  # (K, 9*2C)
    agg1 = attention_aggregate(pooled1, p1["att_fc1_w"], p1["att_fc2_w"],
                               ex1, temperature)

    # dc1: split-channel depthwise + conv_1 + ReLU; pooled side output for dc2.
    up_pad = jnp.pad(up, ((0, 0), (1, 1), (1, 1), (0, 0)))
    skip_pad = jnp.pad(skip.astype(jnp.bfloat16), ((0, 0), (1, 1), (1, 1), (0, 0)))
    w1c = p1["conv1_w"]
    x1, x1_pool = dyn_dw_conv1([up_pad, skip_pad], agg1,
                               [w1c[:Cout], w1c[Cout:]], p1["conv1_b"],
                               emit_pool=True, out_dtype=jnp.bfloat16)

    # dc2 attention (pooled sum came straight out of dc1's kernel epilogue).
    p2 = params["dc2"]
    pooled2 = x1_pool[:, 0, :] * inv_hw
    ex2 = jnp.transpose(p2["dw_weight"], (0, 2, 3, 1)).reshape(K, -1)
    agg2 = attention_aggregate(pooled2, p2["att_fc1_w"], p2["att_fc2_w"],
                               ex2, temperature)

    # Fold the sSE chain (1x1 conv -> 1x1 conv -> eval BN -> sigmoid) to one
    # per-channel vector + scalar, fused into dc2's epilogue.
    se = params["se"]
    eps = 1e-5
    scale = se["bn_gamma"] / jnp.sqrt(se["bn_var"] + eps)              # (1,)
    shift = se["bn_beta"] - se["bn_mean"] * scale                      # (1,)
    w2s = se["w2"][:, 0] * scale[0]                                    # (C//16,)
    se_v = se["w1"] @ w2s                                              # (Cout,)
    se_c = se["b1"] @ w2s + se["b2"][0] * scale[0] + shift[0]          # scalar

    # dc2: depthwise + conv_1 + ReLU + fused sSE -> final f32 output.
    # TODO(synk): Dropout2d(0.2) is training-mode only; identity in eval.
    x1_pad = jnp.pad(x1, ((0, 0), (1, 1), (1, 1), (0, 0)))
    y = dyn_dw_conv1([x1_pad], agg2, [p2["conv1_w"]], p2["conv1_b"],
                     se=(se_v, se_c), emit_pool=False, out_dtype=jnp.float32)
    return jnp.transpose(y, (0, 3, 1, 2))                              # NHWC -> NCHW


# ----------------------------------------------------------------------------
# Pure-JAX reference (XLA convs) for correctness validation.
# ----------------------------------------------------------------------------
def _reference_forward(inputs0_nchw, input1_nchw, params, temperature=30.0):
    x0 = jnp.transpose(inputs0_nchw, (0, 2, 3, 1)).astype(jnp.float32)
    skip = jnp.transpose(input1_nchw, (0, 2, 3, 1)).astype(jnp.float32)

    w = params["up_w"]
    wf = jnp.transpose(jnp.flip(w, (2, 3)), (2, 3, 0, 1))              # (4,4,Cin,Cout)
    up = lax.conv_general_dilated(
        x0, wf, window_strides=(1, 1), padding=((2, 2), (2, 2)),
        lhs_dilation=(2, 2),
        dimension_numbers=("NHWC", "HWIO", "NHWC")) + params["up_b"]
    x = jnp.concatenate([up, skip], axis=-1)

    def dyn(x, p):
        B, H, W, C = x.shape
        pooled = jnp.mean(x, axis=(1, 2))
        h = jax.nn.relu(pooled @ p["att_fc1_w"])
        att = jax.nn.softmax((h @ p["att_fc2_w"]) / temperature, axis=-1)
        aggw = jnp.einsum("bk,kchw->bchw", att, p["dw_weight"])        # (B,C,3,3)
        kern = jnp.transpose(aggw, (0, 2, 3, 1))[:, :, :, None, :]     # (B,3,3,1,C)

        def one(xb, kb):
            return lax.conv_general_dilated(
                xb[None], kb, (1, 1), ((1, 1), (1, 1)),
                dimension_numbers=("NHWC", "HWIO", "NHWC"),
                feature_group_count=C)[0]

        y = jax.vmap(one)(x, kern)
        y = y.reshape(B * H * W, C) @ p["conv1_w"] + p["conv1_b"]
        return jax.nn.relu(y).reshape(B, H, W, -1)

    x = dyn(x, params["dc1"])
    x = dyn(x, params["dc2"])

    se = params["se"]
    B, H, W, C = x.shape
    z1 = x.reshape(-1, C) @ se["w1"] + se["b1"]
    z2 = z1 @ se["w2"] + se["b2"]
    z2 = (z2 - se["bn_mean"]) / jnp.sqrt(se["bn_var"] + 1e-5) * se["bn_gamma"] \
        + se["bn_beta"]
    y = x * jax.nn.sigmoid(z2).reshape(B, H, W, 1)
    return jnp.transpose(y, (0, 3, 1, 2))


# ----------------------------------------------------------------------------
# Deterministic synthetic parameters (shapes from the module __init__).
# 1x1 conv weights are stored as (Cin, Cout) matrices; the ConvTranspose2d
# weight keeps the PyTorch (Cin, Cout, kH, kW) layout.
# ----------------------------------------------------------------------------
def init_params(key, in_size, out_size, K=4, ratio=0.25):
    keys = iter(jax.random.split(key, 32))

    def nrm(shape, scale=0.1):
        return scale * jax.random.normal(next(keys), shape, jnp.float32)

    c1 = in_size                              # conv1 input channels (after concat)
    hid1 = int(c1 * ratio) + 1                # attention2d hidden (in_planes != 3)
    hid2 = int(out_size * ratio) + 1
    c16 = max(out_size // 16, 1)
    return {
        "up_w": nrm((in_size, out_size, 4, 4)),
        "up_b": nrm((out_size,)),
        "dc1": {
            "att_fc1_w": nrm((c1, hid1)),
            "att_fc2_w": nrm((hid1, K)),
            "dw_weight": nrm((K, c1, 3, 3)),       # (K, C, C//groups=1, 3, 3)
            "conv1_w": nrm((c1, out_size)),
            "conv1_b": nrm((out_size,)),
        },
        "dc2": {
            "att_fc1_w": nrm((out_size, hid2)),
            "att_fc2_w": nrm((hid2, K)),
            "dw_weight": nrm((K, out_size, 3, 3)),
            "conv1_w": nrm((out_size, out_size)),
            "conv1_b": nrm((out_size,)),
        },
        "se": {
            "w1": nrm((out_size, c16)),
            "b1": nrm((c16,)),
            "w2": nrm((c16, 1)),
            "b2": nrm((1,)),
            "bn_gamma": 1.0 + nrm((1,), 0.05),
            "bn_beta": nrm((1,), 0.05),
            "bn_mean": nrm((1,), 0.05),
            "bn_var": 1.0 + jnp.abs(nrm((1,), 0.1)),
        },
    }


if __name__ == "__main__":
    key = jax.random.PRNGKey(0)
    B, in_size, out_size = 2, 64, 32          # in_size = 2 * out_size
    H = W = 8                                  # coarse input; skip is 2H x 2W
    k0, k1, kp = jax.random.split(key, 3)

    inputs0 = jax.random.normal(k0, (B, in_size, H, W), jnp.float32)            # NCHW
    input1 = jax.random.normal(k1, (B, out_size, 2 * H, 2 * W), jnp.float32)    # skip
    params = init_params(kp, in_size, out_size)

    fwd = jax.jit(unet_up_origin_forward)
    out = jax.block_until_ready(fwd(inputs0, input1, params))

    assert out.shape == (B, out_size, 2 * H, 2 * W), out.shape
    assert bool(jnp.all(jnp.isfinite(out)))

    ref = jax.block_until_ready(jax.jit(_reference_forward)(inputs0, input1, params))
    max_err = float(jnp.max(jnp.abs(out - ref)))
    assert max_err < 5e-2, f"max abs err vs reference: {max_err}"

    print("KERNEL_OK")
</pallas_src>

<mosaic_0001>
module attributes {stable_mosaic.version = 11 : i64} {
  func.func @_upconv_kernel(%arg0: i32, %arg1: memref<1x10x10x64xbf16, #tpu.memory_space<vmem>>, %arg2: memref<16x64x32xbf16, #tpu.memory_space<vmem>>, %arg3: memref<1x32xf32, #tpu.memory_space<vmem>>, %arg4: memref<1x8x2x8x64xbf16, #tpu.memory_space<vmem>>, %arg5: memref<1x1x32xf32, #tpu.memory_space<vmem>>) attributes {dimension_semantics = [#tpu.dimension_semantics<parallel>], iteration_bounds = array<i64: 2>, scalar_prefetch = 0 : i64, scratch_operands = 0 : i64, tpu.core_type = #tpu.core_type<tc>, window_params = [{transform_indices = @transform_0, window_bounds = array<i64: 1, 10, 10, 64>}, {pipeline_mode = #tpu.pipeline_mode<synchronous>, transform_indices = @transform_1, window_bounds = array<i64: 16, 64, 32>}, {pipeline_mode = #tpu.pipeline_mode<synchronous>, transform_indices = @transform_2, window_bounds = array<i64: 1, 32>}, {transform_indices = @transform_3, window_bounds = array<i64: 1, 8, 2, 8, 64>}, {transform_indices = @transform_4, window_bounds = array<i64: 1, 1, 32>}]} {
    %c0 = arith.constant 0 : index
    %c0_0 = arith.constant 0 : index
    %c0_1 = arith.constant 0 : index
    %c0_2 = arith.constant 0 : index
    %0 = vector.load %arg1[%c0, %c0_0, %c0_1, %c0_2] : memref<1x10x10x64xbf16, #tpu.memory_space<vmem>>, vector<1x10x10x64xbf16>
    %1 = vector.shape_cast %0 : vector<1x10x10x64xbf16> to vector<10x10x64xbf16>
    %2 = vector.extract_strided_slice %1 {offsets = [0, 0, 0], sizes = [10, 8, 64], strides = [1, 1, 1]} : vector<10x10x64xbf16> to vector<10x8x64xbf16>
    %3 = vector.shape_cast %2 : vector<10x8x64xbf16> to vector<80x64xbf16>
    %4 = vector.extract_strided_slice %1 {offsets = [0, 1, 0], sizes = [10, 8, 64], strides = [1, 1, 1]} : vector<10x10x64xbf16> to vector<10x8x64xbf16>
    %5 = vector.shape_cast %4 : vector<10x8x64xbf16> to vector<80x64xbf16>
    %6 = vector.extract_strided_slice %1 {offsets = [0, 2, 0], sizes = [10, 8, 64], strides = [1, 1, 1]} : vector<10x10x64xbf16> to vector<10x8x64xbf16>
    %7 = vector.shape_cast %6 : vector<10x8x64xbf16> to vector<80x64xbf16>
    %c0_3 = arith.constant 0 : index
    %c0_4 = arith.constant 0 : index
    %8 = vector.load %arg3[%c0_3, %c0_4] : memref<1x32xf32, #tpu.memory_space<vmem>>, vector<1x32xf32>
    %cst = arith.constant 0.000000e+00 : f32
    %9 = vector.broadcast %cst : f32 to vector<1x32xf32>
    %cst_5 = arith.constant 0.000000e+00 : f32
    %10 = vector.broadcast %cst_5 : f32 to vector<64x32xf32>
    %11 = vector.extract_strided_slice %3 {offsets = [0, 0], sizes = [64, 64], strides = [1, 1]} : vector<80x64xbf16> to vector<64x64xbf16>
    %c0_6 = arith.constant 0 : index
    %c0_7 = arith.constant 0 : index
    %c0_8 = arith.constant 0 : index
    %12 = vector.load %arg2[%c0_6, %c0_7, %c0_8] : memref<16x64x32xbf16, #tpu.memory_space<vmem>>, vector<1x64x32xbf16>
    %13 = vector.shape_cast %12 : vector<1x64x32xbf16> to vector<64x32xbf16>
    %cst_9 = arith.constant dense<0.000000e+00> : vector<64x32xf32>
    %14 = tpu.matmul %11, %13, %cst_9 {dimension_numbers = #tpu.dot_dimension_numbers<[1], [0], [0], [1], [0, 0, 1, 1], [], []>} : vector<64x64xbf16>, vector<64x32xbf16>, vector<64x32xf32> -> vector<64x32xf32>
    %15 = arith.addf %10, %14 : vector<64x32xf32>
    %16 = vector.extract_strided_slice %5 {offsets = [0, 0], sizes = [64, 64], strides = [1, 1]} : vector<80x64xbf16> to vector<64x64xbf16>
    %c1 = arith.constant 1 : index
    %c0_10 = arith.constant 0 : index
    %c0_11 = arith.constant 0 : index
    %17 = vector.load %arg2[%c1, %c0_10, %c0_11] : memref<16x64x32xbf16, #tpu.memory_space<vmem>>, vector<1x64x32xbf16>
    %18 = vector.shape_cast %17 : vector<1x64x32xbf16> to vector<64x32xbf16>
    %cst_12 = arith.constant dense<0.000000e+00> : vector<64x32xf32>
    %19 = tpu.matmul %16, %18, %cst_12 {dimension_numbers = #tpu.dot_dimension_numbers<[1], [0], [0], [1], [0, 0, 1, 1], [], []>} : vector<64x64xbf16>, vector<64x32xbf16>, vector<64x32xf32> -> vector<64x32xf32>
    %20 = arith.addf %15, %19 : vector<64x32xf32>
    %21 = vector.extract_strided_slice %3 {offsets = [8, 0], sizes = [64, 64], strides = [1, 1]} : vector<80x64xbf16> to vector<64x64xbf16>
    %c2 = arith.constant 2 : index
    %c0_13 = arith.constant 0 : index
    %c0_14 = arith.constant 0 : index
    %22 = vector.load %arg2[%c2, %c0_13, %c0_14] : memref<16x64x32xbf16, #tpu.memory_space<vmem>>, vector<1x64x32xbf16>
    %23 = vector.shape_cast %22 : vector<1x64x32xbf16> to vector<64x32xbf16>
    %cst_15 = arith.constant dense<0.000000e+00> : vector<64x32xf32>
    %24 = tpu.matmul %21, %23, %cst_15 {dimension_numbers = #tpu.dot_dimension_numbers<[1], [0], [0], [1], [0, 0, 1, 1], [], []>} : vector<64x64xbf16>, vector<64x32xbf16>, vector<64x32xf32> -> vector<64x32xf32>
    %25 = arith.addf %20, %24 : vector<64x32xf32>
    %26 = vector.extract_strided_slice %5 {offsets = [8, 0], sizes = [64, 64], strides = [1, 1]} : vector<80x64xbf16> to vector<64x64xbf16>
    %c3 = arith.constant 3 : index
    %c0_16 = arith.constant 0 : index
    %c0_17 = arith.constant 0 : index
    %27 = vector.load %arg2[%c3, %c0_16, %c0_17] : memref<16x64x32xbf16, #tpu.memory_space<vmem>>, vector<1x64x32xbf16>
    %28 = vector.shape_cast %27 : vector<1x64x32xbf16> to vector<64x32xbf16>
    %cst_18 = arith.constant dense<0.000000e+00> : vector<64x32xf32>
    %29 = tpu.matmul %26, %28, %cst_18 {dimension_numbers = #tpu.dot_dimension_numbers<[1], [0], [0], [1], [0, 0, 1, 1], [], []>} : vector<64x64xbf16>, vector<64x32xbf16>, vector<64x32xf32> -> vector<64x32xf32>
    %30 = arith.addf %25, %29 : vector<64x32xf32>
    %31 = vector.broadcast %8 : vector<1x32xf32> to vector<64x32xf32>
    %32 = arith.addf %30, %31 : vector<64x32xf32>
    %cst_19 = arith.constant dense<0.000000e+00> : vector<32xf32>
    %33 = vector.multi_reduction <add>, %32, %cst_19 [0] : vector<64x32xf32> to vector<32xf32>
    %34 = vector.shape_cast %33 : vector<32xf32> to vector<1x32xf32>
    %35 = arith.addf %9, %34 : vector<1x32xf32>
    %36 = vector.shape_cast %32 : vector<64x32xf32> to vector<8x8x32xf32>
    %37 = arith.truncf %36 : vector<8x8x32xf32> to vector<8x8x32xbf16>
    %c0_20 = arith.constant 0 : index
    %c0_21 = arith.constant 0 : index
    %c0_22 = arith.constant 0 : index
    %c0_23 = arith.constant 0 : index
    %c0_24 = arith.constant 0 : index
    %38 = vector.load %arg4[%c0_20, %c0_21, %c0_22, %c0_23, %c0_24] : memref<1x8x2x8x64xbf16, #tpu.memory_space<vmem>>, vector<1x8x1x8x32xbf16>
    %39 = vector.shape_cast %38 : vector<1x8x1x8x32xbf16> to vector<8x8x32xbf16>
    %40 = vector.shape_cast %37 : vector<8x8x32xbf16> to vector<1x8x1x8x32xbf16>
    tpu.vector_store %arg4[%c0_20, %c0_21, %c0_22, %c0_23, %c0_24], %40 {strides = array<i32>} : memref<1x8x2x8x64xbf16, #tpu.memory_space<vmem>>, vector<1x8x1x8x32xbf16>,
    %cst_25 = arith.constant 0.000000e+00 : f32
    %41 = vector.broadcast %cst_25 : f32 to vector<64x32xf32>
    %42 = vector.extract_strided_slice %5 {offsets = [0, 0], sizes = [64, 64], strides = [1, 1]} : vector<80x64xbf16> to vector<64x64xbf16>
    %c4 = arith.constant 4 : index
    %c0_26 = arith.constant 0 : index
    %c0_27 = arith.constant 0 : index
    %43 = vector.load %arg2[%c4, %c0_26, %c0_27] : memref<16x64x32xbf16, #tpu.memory_space<vmem>>, vector<1x64x32xbf16>
    %44 = vector.shape_cast %43 : vector<1x64x32xbf16> to vector<64x32xbf16>
    %cst_28 = arith.constant dense<0.000000e+00> : vector<64x32xf32>
    %45 = tpu.matmul %42, %44, %cst_28 {dimension_numbers = #tpu.dot_dimension_numbers<[1], [0], [0], [1], [0, 0, 1, 1], [], []>} : vector<64x64xbf16>, vector<64x32xbf16>, vector<64x32xf32> -> vector<64x32xf32>
    %46 = arith.addf %41, %45 : vector<64x32xf32>
    %47 = vector.extract_strided_slice %7 {offsets = [0, 0], sizes = [64, 64], strides = [1, 1]} : vector<80x64xbf16> to vector<64x64xbf16>
    %c5 = arith.constant 5 : index
    %c0_29 = arith.constant 0 : index
    %c0_30 = arith.constant 0 : index
    %48 = vector.load %arg2[%c5, %c0_29, %c0_30] : memref<16x64x32xbf16, #tpu.memory_space<vmem>>, vector<1x64x32xbf16>
    %49 = vector.shape_cast %48 : vector<1x64x32xbf16> to vector<64x32xbf16>
    %cst_31 = arith.constant dense<0.000000e+00> : vector<64x32xf32>
    %50 = tpu.matmul %47, %49, %cst_31 {dimension_numbers = #tpu.dot_dimension_numbers<[1], [0], [0], [1], [0, 0, 1, 1], [], []>} : vector<64x64xbf16>, vector<64x32xbf16>, vector<64x32xf32> -> vector<64x32xf32>
    %51 = arith.addf %46, %50 : vector<64x32xf32>
    %52 = vector.extract_strided_slice %5 {offsets = [8, 0], sizes = [64, 64], strides = [1, 1]} : vector<80x64xbf16> to vector<64x64xbf16>
    %c6 = arith.constant 6 : index
    %c0_32 = arith.constant 0 : index
    %c0_33 = arith.constant 0 : index
    %53 = vector.load %arg2[%c6, %c0_32, %c0_33] : memref<16x64x32xbf16, #tpu.memory_space<vmem>>, vector<1x64x32xbf16>
    %54 = vector.shape_cast %53 : vector<1x64x32xbf16> to vector<64x32xbf16>
    %cst_34 = arith.constant dense<0.000000e+00> : vector<64x32xf32>
    %55 = tpu.matmul %52, %54, %cst_34 {dimension_numbers = #tpu.dot_dimension_numbers<[1], [0], [0], [1], [0, 0, 1, 1], [], []>} : vector<64x64xbf16>, vector<64x32xbf16>, vector<64x32xf32> -> vector<64x32xf32>
    %56 = arith.addf %51, %55 : vector<64x32xf32>
    %57 = vector.extract_strided_slice %7 {offsets = [8, 0], sizes = [64, 64], strides = [1, 1]} : vector<80x64xbf16> to vector<64x64xbf16>
    %c7 = arith.constant 7 : index
    %c0_35 = arith.constant 0 : index
    %c0_36 = arith.constant 0 : index
    %58 = vector.load %arg2[%c7, %c0_35, %c0_36] : memref<16x64x32xbf16, #tpu.memory_space<vmem>>, vector<1x64x32xbf16>
    %59 = vector.shape_cast %58 : vector<1x64x32xbf16> to vector<64x32xbf16>
    %cst_37 = arith.constant dense<0.000000e+00> : vector<64x32xf32>
    %60 = tpu.matmul %57, %59, %cst_37 {dimension_numbers = #tpu.dot_dimension_numbers<[1], [0], [0], [1], [0, 0, 1, 1], [], []>} : vector<64x64xbf16>, vector<64x32xbf16>, vector<64x32xf32> -> vector<64x32xf32>
    %61 = arith.addf %56, %60 : vector<64x32xf32>
    %62 = vector.broadcast %8 : vector<1x32xf32> to vector<64x32xf32>
    %63 = arith.addf %61, %62 : vector<64x32xf32>
    %cst_38 = arith.constant dense<0.000000e+00> : vector<32xf32>
    %64 = vector.multi_reduction <add>, %63, %cst_38 [0] : vector<64x32xf32> to vector<32xf32>
    %65 = vector.shape_cast %64 : vector<32xf32> to vector<1x32xf32>
    %66 = arith.addf %35, %65 : vector<1x32xf32>
    %67 = vector.shape_cast %63 : vector<64x32xf32> to vector<8x8x32xf32>
    %68 = arith.truncf %67 : vector<8x8x32xf32> to vector<8x8x32xbf16>
    %c0_39 = arith.constant 0 : index
    %c0_40 = arith.constant 0 : index
    %c0_41 = arith.constant 0 : index
    %c0_42 = arith.constant 0 : index
    %c32 = arith.constant 32 : index
    %69 = vector.load %arg4[%c0_39, %c0_40, %c0_41, %c0_42, %c32] : memref<1x8x2x8x64xbf16, #tpu.memory_space<vmem>>, vector<1x8x1x8x32xbf16>
    %70 = vector.shape_cast %69 : vector<1x8x1x8x32xbf16> to vector<8x8x32xbf16>
    %71 = vector.shape_cast %68 : vector<8x8x32xbf16> to vector<1x8x1x8x32xbf16>
    tpu.vector_store %arg4[%c0_39, %c0_40, %c0_41, %c0_42, %c32], %71 {strides = array<i32>} : memref<1x8x2x8x64xbf16, #tpu.memory_space<vmem>>, vector<1x8x1x8x32xbf16>,
    %cst_43 = arith.constant 0.000000e+00 : f32
    %72 = vector.broadcast %cst_43 : f32 to vector<64x32xf32>
    %73 = vector.extract_strided_slice %3 {offsets = [8, 0], sizes = [64, 64], strides = [1, 1]} : vector<80x64xbf16> to vector<64x64xbf16>
    %c8 = arith.constant 8 : index
    %c0_44 = arith.constant 0 : index
    %c0_45 = arith.constant 0 : index
    %74 = vector.load %arg2[%c8, %c0_44, %c0_45] : memref<16x64x32xbf16, #tpu.memory_space<vmem>>, vector<1x64x32xbf16>
    %75 = vector.shape_cast %74 : vector<1x64x32xbf16> to vector<64x32xbf16>
    %cst_46 = arith.constant dense<0.000000e+00> : vector<64x32xf32>
    %76 = tpu.matmul %73, %75, %cst_46 {dimension_numbers = #tpu.dot_dimension_numbers<[1], [0], [0], [1], [0, 0, 1, 1], [], []>} : vector<64x64xbf16>, vector<64x32xbf16>, vector<64x32xf32> -> vector<64x32xf32>
    %77 = arith.addf %72, %76 : vector<64x32xf32>
    %78 = vector.extract_strided_slice %5 {offsets = [8, 0], sizes = [64, 64], strides = [1, 1]} : vector<80x64xbf16> to vector<64x64xbf16>
    %c9 = arith.constant 9 : index
    %c0_47 = arith.constant 0 : index
    %c0_48 = arith.constant 0 : index
    %79 = vector.load %arg2[%c9, %c0_47, %c0_48] : memref<16x64x32xbf16, #tpu.memory_space<vmem>>, vector<1x64x32xbf16>
    %80 = vector.shape_cast %79 : vector<1x64x32xbf16> to vector<64x32xbf16>
    %cst_49 = arith.constant dense<0.000000e+00> : vector<64x32xf32>
    %81 = tpu.matmul %78, %80, %cst_49 {dimension_numbers = #tpu.dot_dimension_numbers<[1], [0], [0], [1], [0, 0, 1, 1], [], []>} : vector<64x64xbf16>, vector<64x32xbf16>, vector<64x32xf32> -> vector<64x32xf32>
    %82 = arith.addf %77, %81 : vector<64x32xf32>
    %83 = vector.extract_strided_slice %3 {offsets = [16, 0], sizes = [64, 64], strides = [1, 1]} : vector<80x64xbf16> to vector<64x64xbf16>
    %c10 = arith.constant 10 : index
    %c0_50 = arith.constant 0 : index
    %c0_51 = arith.constant 0 : index
    %84 = vector.load %arg2[%c10, %c0_50, %c0_51] : memref<16x64x32xbf16, #tpu.memory_space<vmem>>, vector<1x64x32xbf16>
    %85 = vector.shape_cast %84 : vector<1x64x32xbf16> to vector<64x32xbf16>
    %cst_52 = arith.constant dense<0.000000e+00> : vector<64x32xf32>
    %86 = tpu.matmul %83, %85, %cst_52 {dimension_numbers = #tpu.dot_dimension_numbers<[1], [0], [0], [1], [0, 0, 1, 1], [], []>} : vector<64x64xbf16>, vector<64x32xbf16>, vector<64x32xf32> -> vector<64x32xf32>
    %87 = arith.addf %82, %86 : vector<64x32xf32>
    %88 = vector.extract_strided_slice %5 {offsets = [16, 0], sizes = [64, 64], strides = [1, 1]} : vector<80x64xbf16> to vector<64x64xbf16>
    %c11 = arith.constant 11 : index
    %c0_53 = arith.constant 0 : index
    %c0_54 = arith.constant 0 : index
    %89 = vector.load %arg2[%c11, %c0_53, %c0_54] : memref<16x64x32xbf16, #tpu.memory_space<vmem>>, vector<1x64x32xbf16>
    %90 = vector.shape_cast %89 : vector<1x64x32xbf16> to vector<64x32xbf16>
    %cst_55 = arith.constant dense<0.000000e+00> : vector<64x32xf32>
    %91 = tpu.matmul %88, %90, %cst_55 {dimension_numbers = #tpu.dot_dimension_numbers<[1], [0], [0], [1], [0, 0, 1, 1], [], []>} : vector<64x64xbf16>, vector<64x32xbf16>, vector<64x32xf32> -> vector<64x32xf32>
    %92 = arith.addf %87, %91 : vector<64x32xf32>
    %93 = vector.broadcast %8 : vector<1x32xf32> to vector<64x32xf32>
    %94 = arith.addf %92, %93 : vector<64x32xf32>
    %cst_56 = arith.constant dense<0.000000e+00> : vector<32xf32>
    %95 = vector.multi_reduction <add>, %94, %cst_56 [0] : vector<64x32xf32> to vector<32xf32>
    %96 = vector.shape_cast %95 : vector<32xf32> to vector<1x32xf32>
    %97 = arith.addf %66, %96 : vector<1x32xf32>
    %98 = vector.shape_cast %94 : vector<64x32xf32> to vector<8x8x32xf32>
    %99 = arith.truncf %98 : vector<8x8x32xf32> to vector<8x8x32xbf16>
    %c0_57 = arith.constant 0 : index
    %c0_58 = arith.constant 0 : index
    %c1_59 = arith.constant 1 : index
    %c0_60 = arith.constant 0 : index
    %c0_61 = arith.constant 0 : index
    %100 = vector.load %arg4[%c0_57, %c0_58, %c1_59, %c0_60, %c0_61] : memref<1x8x2x8x64xbf16, #tpu.memory_space<vmem>>, vector<1x8x1x8x32xbf16>
    %101 = vector.shape_cast %100 : vector<1x8x1x8x32xbf16> to vector<8x8x32xbf16>
    %102 = vector.shape_cast %99 : vector<8x8x32xbf16> to vector<1x8x1x8x32xbf16>
    tpu.vector_store %arg4[%c0_57, %c0_58, %c1_59, %c0_60, %c0_61], %102 {strides = array<i32>} : memref<1x8x2x8x64xbf16, #tpu.memory_space<vmem>>, vector<1x8x1x8x32xbf16>,
    %cst_62 = arith.constant 0.000000e+00 : f32
    %103 = vector.broadcast %cst_62 : f32 to vector<64x32xf32>
    %104 = vector.extract_strided_slice %5 {offsets = [8, 0], sizes = [64, 64], strides = [1, 1]} : vector<80x64xbf16> to vector<64x64xbf16>
    %c12 = arith.constant 12 : index
    %c0_63 = arith.constant 0 : index
    %c0_64 = arith.constant 0 : index
    %105 = vector.load %arg2[%c12, %c0_63, %c0_64] : memref<16x64x32xbf16, #tpu.memory_space<vmem>>, vector<1x64x32xbf16>
    %106 = vector.shape_cast %105 : vector<1x64x32xbf16> to vector<64x32xbf16>
    %cst_65 = arith.constant dense<0.000000e+00> : vector<64x32xf32>
    %107 = tpu.matmul %104, %106, %cst_65 {dimension_numbers = #tpu.dot_dimension_numbers<[1], [0], [0], [1], [0, 0, 1, 1], [], []>} : vector<64x64xbf16>, vector<64x32xbf16>, vector<64x32xf32> -> vector<64x32xf32>
    %108 = arith.addf %103, %107 : vector<64x32xf32>
    %109 = vector.extract_strided_slice %7 {offsets = [8, 0], sizes = [64, 64], strides = [1, 1]} : vector<80x64xbf16> to vector<64x64xbf16>
    %c13 = arith.constant 13 : index
    %c0_66 = arith.constant 0 : index
    %c0_67 = arith.constant 0 : index
    %110 = vector.load %arg2[%c13, %c0_66, %c0_67] : memref<16x64x32xbf16, #tpu.memory_space<vmem>>, vector<1x64x32xbf16>
    %111 = vector.shape_cast %110 : vector<1x64x32xbf16> to vector<64x32xbf16>
    %cst_68 = arith.constant dense<0.000000e+00> : vector<64x32xf32>
    %112 = tpu.matmul %109, %111, %cst_68 {dimension_numbers = #tpu.dot_dimension_numbers<[1], [0], [0], [1], [0, 0, 1, 1], [], []>} : vector<64x64xbf16>, vector<64x32xbf16>, vector<64x32xf32> -> vector<64x32xf32>
    %113 = arith.addf %108, %112 : vector<64x32xf32>
    %114 = vector.extract_strided_slice %5 {offsets = [16, 0], sizes = [64, 64], strides = [1, 1]} : vector<80x64xbf16> to vector<64x64xbf16>
    %c14 = arith.constant 14 : index
    %c0_69 = arith.constant 0 : index
    %c0_70 = arith.constant 0 : index
    %115 = vector.load %arg2[%c14, %c0_69, %c0_70] : memref<16x64x32xbf16, #tpu.memory_space<vmem>>, vector<1x64x32xbf16>
    %116 = vector.shape_cast %115 : vector<1x64x32xbf16> to vector<64x32xbf16>
    %cst_71 = arith.constant dense<0.000000e+00> : vector<64x32xf32>
    %117 = tpu.matmul %114, %116, %cst_71 {dimension_numbers = #tpu.dot_dimension_numbers<[1], [0], [0], [1], [0, 0, 1, 1], [], []>} : vector<64x64xbf16>, vector<64x32xbf16>, vector<64x32xf32> -> vector<64x32xf32>
    %118 = arith.addf %113, %117 : vector<64x32xf32>
    %119 = vector.extract_strided_slice %7 {offsets = [16, 0], sizes = [64, 64], strides = [1, 1]} : vector<80x64xbf16> to vector<64x64xbf16>
    %c15 = arith.constant 15 : index
    %c0_72 = arith.constant 0 : index
    %c0_73 = arith.constant 0 : index
    %120 = vector.load %arg2[%c15, %c0_72, %c0_73] : memref<16x64x32xbf16, #tpu.memory_space<vmem>>, vector<1x64x32xbf16>
    %121 = vector.shape_cast %120 : vector<1x64x32xbf16> to vector<64x32xbf16>
    %cst_74 = arith.constant dense<0.000000e+00> : vector<64x32xf32>
    %122 = tpu.matmul %119, %121, %cst_74 {dimension_numbers = #tpu.dot_dimension_numbers<[1], [0], [0], [1], [0, 0, 1, 1], [], []>} : vector<64x64xbf16>, vector<64x32xbf16>, vector<64x32xf32> -> vector<64x32xf32>
    %123 = arith.addf %118, %122 : vector<64x32xf32>
    %124 = vector.broadcast %8 : vector<1x32xf32> to vector<64x32xf32>
    %125 = arith.addf %123, %124 : vector<64x32xf32>
    %cst_75 = arith.constant dense<0.000000e+00> : vector<32xf32>
    %126 = vector.multi_reduction <add>, %125, %cst_75 [0] : vector<64x32xf32> to vector<32xf32>
    %127 = vector.shape_cast %126 : vector<32xf32> to vector<1x32xf32>
    %128 = arith.addf %97, %127 : vector<1x32xf32>
    %129 = vector.shape_cast %125 : vector<64x32xf32> to vector<8x8x32xf32>
    %130 = arith.truncf %129 : vector<8x8x32xf32> to vector<8x8x32xbf16>
    %c0_76 = arith.constant 0 : index
    %c0_77 = arith.constant 0 : index
    %c1_78 = arith.constant 1 : index
    %c0_79 = arith.constant 0 : index
    %c32_80 = arith.constant 32 : index
    %131 = vector.load %arg4[%c0_76, %c0_77, %c1_78, %c0_79, %c32_80] : memref<1x8x2x8x64xbf16, #tpu.memory_space<vmem>>, vector<1x8x1x8x32xbf16>
    %132 = vector.shape_cast %131 : vector<1x8x1x8x32xbf16> to vector<8x8x32xbf16>
    %133 = vector.shape_cast %130 : vector<8x8x32xbf16> to vector<1x8x1x8x32xbf16>
    tpu.vector_store %arg4[%c0_76, %c0_77, %c1_78, %c0_79, %c32_80], %133 {strides = array<i32>} : memref<1x8x2x8x64xbf16, #tpu.memory_space<vmem>>, vector<1x8x1x8x32xbf16>,
    %c0_81 = arith.constant 0 : index
    %c0_82 = arith.constant 0 : index
    %c0_83 = arith.constant 0 : index
    %134 = vector.load %arg5[%c0_81, %c0_82, %c0_83] : memref<1x1x32xf32, #tpu.memory_space<vmem>>, vector<1x1x32xf32>
    %135 = vector.shape_cast %134 : vector<1x1x32xf32> to vector<1x32xf32>
    %136 = vector.shape_cast %128 : vector<1x32xf32> to vector<1x1x32xf32>
    tpu.vector_store %arg5[%c0_81, %c0_82, %c0_83], %136 {strides = array<i32>} : memref<1x1x32xf32, #tpu.memory_space<vmem>>, vector<1x1x32xf32>,
    return
  }
  func.func @transform_0(%arg0: i32) -> (i32, i32, i32, i32) {
    %c0_i32 = arith.constant 0 : i32
    %c0_i32_0 = arith.constant 0 : i32
    %c0_i32_1 = arith.constant 0 : i32
    %c0_i32_2 = arith.constant 0 : i32
    return %arg0, %c0_i32, %c0_i32_0, %c0_i32_1 : i32, i32, i32, i32
  }
  func.func @transform_1(%arg0: i32) -> (i32, i32, i32) {
    %c0_i32 = arith.constant 0 : i32
    %c0_i32_0 = arith.constant 0 : i32
    %c0_i32_1 = arith.constant 0 : i32
    %c0_i32_2 = arith.constant 0 : i32
    return %c0_i32, %c0_i32_0, %c0_i32_1 : i32, i32, i32
  }
  func.func @transform_2(%arg0: i32) -> (i32, i32) {
    %c0_i32 = arith.constant 0 : i32
    %c0_i32_0 = arith.constant 0 : i32
    %c0_i32_1 = arith.constant 0 : i32
    return %c0_i32, %c0_i32_0 : i32, i32
  }
  func.func @transform_3(%arg0: i32) -> (i32, i32, i32, i32, i32) {
    %c0_i32 = arith.constant 0 : i32
    %c0_i32_0 = arith.constant 0 : i32
    %c0_i32_1 = arith.constant 0 : i32
    %c0_i32_2 = arith.constant 0 : i32
    %c0_i32_3 = arith.constant 0 : i32
    return %arg0, %c0_i32, %c0_i32_0, %c0_i32_1, %c0_i32_2 : i32, i32, i32, i32, i32
  }
  func.func @transform_4(%arg0: i32) -> (i32, i32, i32) {
    %c0_i32 = arith.constant 0 : i32
    %c0_i32_0 = arith.constant 0 : i32
    %c0_i32_1 = arith.constant 0 : i32
    return %arg0, %c0_i32, %c0_i32_0 : i32, i32, i32
  }
}

module attributes {stable_mosaic.version = 11 : i64} {
  func.func @_attn_mlp_kernel(%arg0: memref<2x64xf32, #tpu.memory_space<vmem>>, %arg1: memref<64x17xf32, #tpu.memory_space<vmem>>, %arg2: memref<17x4xf32, #tpu.memory_space<vmem>>, %arg3: memref<4x576xf32, #tpu.memory_space<vmem>>, %arg4: memref<2x576xf32, #tpu.memory_space<vmem>>) attributes {dimension_semantics = [], scalar_prefetch = 0 : i64, scratch_operands = 0 : i64, tpu.core_type = #tpu.core_type<tc>} {
    %c0 = arith.constant 0 : index
    %c0_0 = arith.constant 0 : index
    %0 = vector.load %arg0[%c0, %c0_0] : memref<2x64xf32, #tpu.memory_space<vmem>>, vector<2x64xf32>
    %c0_1 = arith.constant 0 : index
    %c0_2 = arith.constant 0 : index
    %1 = vector.load %arg1[%c0_1, %c0_2] : memref<64x17xf32, #tpu.memory_space<vmem>>, vector<64x17xf32>
    %cst = arith.constant dense<0.000000e+00> : vector<2x17xf32>
    %2 = tpu.matmul %0, %1, %cst {dimension_numbers = #tpu.dot_dimension_numbers<[1], [0], [0], [1], [0, 0, 1, 1], [], []>} : vector<2x64xf32>, vector<64x17xf32>, vector<2x17xf32> -> vector<2x17xf32>
    %cst_3 = arith.constant 0.000000e+00 : f32
    %3 = vector.broadcast %cst_3 : f32 to vector<2x17xf32>
    %4 = arith.maximumf %2, %3 : vector<2x17xf32>
    %c0_4 = arith.constant 0 : index
    %c0_5 = arith.constant 0 : index
    %5 = vector.load %arg2[%c0_4, %c0_5] : memref<17x4xf32, #tpu.memory_space<vmem>>, vector<17x4xf32>
    %cst_6 = arith.constant dense<0.000000e+00> : vector<2x4xf32>
    %6 = tpu.matmul %4, %5, %cst_6 {dimension_numbers = #tpu.dot_dimension_numbers<[1], [0], [0], [1], [0, 0, 1, 1], [], []>} : vector<2x17xf32>, vector<17x4xf32>, vector<2x4xf32> -> vector<2x4xf32>
    %cst_7 = arith.constant 0.0333333351 : f32
    %7 = vector.broadcast %cst_7 : f32 to vector<2x4xf32>
    %8 = arith.mulf %6, %7 : vector<2x4xf32>
    %cst_8 = arith.constant dense<0xFF800000> : vector<2xf32>
    %9 = vector.multi_reduction <maximumf>, %8, %cst_8 [1] : vector<2x4xf32> to vector<2xf32>
    %10 = vector.shape_cast %9 : vector<2xf32> to vector<2x1xf32>
    %11 = vector.broadcast %10 : vector<2x1xf32> to vector<2x4xf32>
    %12 = arith.subf %8, %11 : vector<2x4xf32>
    %13 = math.exp %12 : vector<2x4xf32>
    %cst_9 = arith.constant dense<0.000000e+00> : vector<2xf32>
    %14 = vector.multi_reduction <add>, %13, %cst_9 [1] : vector<2x4xf32> to vector<2xf32>
    %15 = vector.shape_cast %14 : vector<2xf32> to vector<2x1xf32>
    %16 = vector.broadcast %15 : vector<2x1xf32> to vector<2x4xf32>
    %17 = arith.divf %13, %16 : vector<2x4xf32>
    %c0_10 = arith.constant 0 : index
    %c0_11 = arith.constant 0 : index
    %18 = vector.load %arg3[%c0_10, %c0_11] : memref<4x576xf32, #tpu.memory_space<vmem>>, vector<4x576xf32>
    %cst_12 = arith.constant dense<0.000000e+00> : vector<2x576xf32>
    %19 = tpu.matmul %17, %18, %cst_12 {dimension_numbers = #tpu.dot_dimension_numbers<[1], [0], [0], [1], [0, 0, 1, 1], [], []>} : vector<2x4xf32>, vector<4x576xf32>, vector<2x576xf32> -> vector<2x576xf32>
    %c0_13 = arith.constant 0 : index
    %c0_14 = arith.constant 0 : index
    %20 = vector.load %arg4[%c0_13, %c0_14] : memref<2x576xf32, #tpu.memory_space<vmem>>, vector<2x576xf32>
    tpu.vector_store %arg4[%c0_13, %c0_14], %19 {strides = array<i32>} : memref<2x576xf32, #tpu.memory_space<vmem>>, vector<2x576xf32>,
    return
  }
}

module attributes {stable_mosaic.version = 11 : i64} {
  func.func @_dw_conv1_kernel(%arg0: i32, %arg1: memref<1x18x18x32xbf16, #tpu.memory_space<vmem>>, %arg2: memref<1x18x18x32xbf16, #tpu.memory_space<vmem>>, %arg3: memref<1x9x64xf32, #tpu.memory_space<vmem>>, %arg4: memref<32x32xbf16, #tpu.memory_space<vmem>>, %arg5: memref<32x32xbf16, #tpu.memory_space<vmem>>, %arg6: memref<1x32xf32, #tpu.memory_space<vmem>>, %arg7: memref<1x16x16x32xbf16, #tpu.memory_space<vmem>>, %arg8: memref<1x1x32xf32, #tpu.memory_space<vmem>>) attributes {dimension_semantics = [#tpu.dimension_semantics<parallel>], iteration_bounds = array<i64: 2>, scalar_prefetch = 0 : i64, scratch_operands = 0 : i64, tpu.core_type = #tpu.core_type<tc>, window_params = [{transform_indices = @transform_0, window_bounds = array<i64: 1, 18, 18, 32>}, {transform_indices = @transform_1, window_bounds = array<i64: 1, 18, 18, 32>}, {transform_indices = @transform_2, window_bounds = array<i64: 1, 9, 64>}, {pipeline_mode = #tpu.pipeline_mode<synchronous>, transform_indices = @transform_3, window_bounds = array<i64: 32, 32>}, {pipeline_mode = #tpu.pipeline_mode<synchronous>, transform_indices = @transform_4, window_bounds = array<i64: 32, 32>}, {pipeline_mode = #tpu.pipeline_mode<synchronous>, transform_indices = @transform_5, window_bounds = array<i64: 1, 32>}, {transform_indices = @transform_6, window_bounds = array<i64: 1, 16, 16, 32>}, {transform_indices = @transform_7, window_bounds = array<i64: 1, 1, 32>}]} {
    %c0 = arith.constant 0 : index
    %c0_0 = arith.constant 0 : index
    %c0_1 = arith.constant 0 : index
    %0 = vector.load %arg3[%c0, %c0_0, %c0_1] : memref<1x9x64xf32, #tpu.memory_space<vmem>>, vector<1x9x64xf32>
    %1 = vector.shape_cast %0 : vector<1x9x64xf32> to vector<9x64xf32>
    %c0_2 = arith.constant 0 : index
    %c0_3 = arith.constant 0 : index
    %c0_4 = arith.constant 0 : index
    %c0_5 = arith.constant 0 : index
    %2 = vector.load %arg1[%c0_2, %c0_3, %c0_4, %c0_5] : memref<1x18x18x32xbf16, #tpu.memory_space<vmem>>, vector<1x18x18x32xbf16>
    %3 = vector.shape_cast %2 : vector<1x18x18x32xbf16> to vector<18x18x32xbf16>
    %4 = vector.extract_strided_slice %3 {offsets = [0, 0, 0], sizes = [18, 16, 32], strides = [1, 1, 1]} : vector<18x18x32xbf16> to vector<18x16x32xbf16>
    %5 = arith.extf %4 : vector<18x16x32xbf16> to vector<18x16x32xf32>
    %6 = vector.extract_strided_slice %3 {offsets = [0, 1, 0], sizes = [18, 16, 32], strides = [1, 1, 1]} : vector<18x18x32xbf16> to vector<18x16x32xbf16>
    %7 = arith.extf %6 : vector<18x16x32xbf16> to vector<18x16x32xf32>
    %8 = vector.extract_strided_slice %3 {offsets = [0, 2, 0], sizes = [18, 16, 32], strides = [1, 1, 1]} : vector<18x18x32xbf16> to vector<18x16x32xbf16>
    %9 = arith.extf %8 : vector<18x16x32xbf16> to vector<18x16x32xf32>
    %cst = arith.constant 0.000000e+00 : f32
    %10 = vector.broadcast %cst : f32 to vector<16x16x32xf32>
    %11 = vector.extract_strided_slice %1 {offsets = [0, 0], sizes = [1, 32], strides = [1, 1]} : vector<9x64xf32> to vector<1x32xf32>
    %12 = vector.shape_cast %11 : vector<1x32xf32> to vector<1x1x32xf32>
    %13 = vector.extract_strided_slice %5 {offsets = [0, 0, 0], sizes = [16, 16, 32], strides = [1, 1, 1]} : vector<18x16x32xf32> to vector<16x16x32xf32>
    %14 = vector.broadcast %12 : vector<1x1x32xf32> to vector<16x16x32xf32>
    %15 = arith.mulf %13, %14 : vector<16x16x32xf32>
    %16 = arith.addf %10, %15 : vector<16x16x32xf32>
    %17 = vector.extract_strided_slice %1 {offsets = [1, 0], sizes = [1, 32], strides = [1, 1]} : vector<9x64xf32> to vector<1x32xf32>
    %18 = vector.shape_cast %17 : vector<1x32xf32> to vector<1x1x32xf32>
    %19 = vector.extract_strided_slice %7 {offsets = [0, 0, 0], sizes = [16, 16, 32], strides = [1, 1, 1]} : vector<18x16x32xf32> to vector<16x16x32xf32>
    %20 = vector.broadcast %18 : vector<1x1x32xf32> to vector<16x16x32xf32>
    %21 = arith.mulf %19, %20 : vector<16x16x32xf32>
    %22 = arith.addf %16, %21 : vector<16x16x32xf32>
    %23 = vector.extract_strided_slice %1 {offsets = [2, 0], sizes = [1, 32], strides = [1, 1]} : vector<9x64xf32> to vector<1x32xf32>
    %24 = vector.shape_cast %23 : vector<1x32xf32> to vector<1x1x32xf32>
    %25 = vector.extract_strided_slice %9 {offsets = [0, 0, 0], sizes = [16, 16, 32], strides = [1, 1, 1]} : vector<18x16x32xf32> to vector<16x16x32xf32>
    %26 = vector.broadcast %24 : vector<1x1x32xf32> to vector<16x16x32xf32>
    %27 = arith.mulf %25, %26 : vector<16x16x32xf32>
    %28 = arith.addf %22, %27 : vector<16x16x32xf32>
    %29 = vector.extract_strided_slice %1 {offsets = [3, 0], sizes = [1, 32], strides = [1, 1]} : vector<9x64xf32> to vector<1x32xf32>
    %30 = vector.shape_cast %29 : vector<1x32xf32> to vector<1x1x32xf32>
    %31 = vector.extract_strided_slice %5 {offsets = [1, 0, 0], sizes = [16, 16, 32], strides = [1, 1, 1]} : vector<18x16x32xf32> to vector<16x16x32xf32>
    %32 = vector.broadcast %30 : vector<1x1x32xf32> to vector<16x16x32xf32>
    %33 = arith.mulf %31, %32 : vector<16x16x32xf32>
    %34 = arith.addf %28, %33 : vector<16x16x32xf32>
    %35 = vector.extract_strided_slice %1 {offsets = [4, 0], sizes = [1, 32], strides = [1, 1]} : vector<9x64xf32> to vector<1x32xf32>
    %36 = vector.shape_cast %35 : vector<1x32xf32> to vector<1x1x32xf32>
    %37 = vector.extract_strided_slice %7 {offsets = [1, 0, 0], sizes = [16, 16, 32], strides = [1, 1, 1]} : vector<18x16x32xf32> to vector<16x16x32xf32>
    %38 = vector.broadcast %36 : vector<1x1x32xf32> to vector<16x16x32xf32>
    %39 = arith.mulf %37, %38 : vector<16x16x32xf32>
    %40 = arith.addf %34, %39 : vector<16x16x32xf32>
    %41 = vector.extract_strided_slice %1 {offsets = [5, 0], sizes = [1, 32], strides = [1, 1]} : vector<9x64xf32> to vector<1x32xf32>
    %42 = vector.shape_cast %41 : vector<1x32xf32> to vector<1x1x32xf32>
    %43 = vector.extract_strided_slice %9 {offsets = [1, 0, 0], sizes = [16, 16, 32], strides = [1, 1, 1]} : vector<18x16x32xf32> to vector<16x16x32xf32>
    %44 = vector.broadcast %42 : vector<1x1x32xf32> to vector<16x16x32xf32>
    %45 = arith.mulf %43, %44 : vector<16x16x32xf32>
    %46 = arith.addf %40, %45 : vector<16x16x32xf32>
    %47 = vector.extract_strided_slice %1 {offsets = [6, 0], sizes = [1, 32], strides = [1, 1]} : vector<9x64xf32> to vector<1x32xf32>
    %48 = vector.shape_cast %47 : vector<1x32xf32> to vector<1x1x32xf32>
    %49 = vector.extract_strided_slice %5 {offsets = [2, 0, 0], sizes = [16, 16, 32], strides = [1, 1, 1]} : vector<18x16x32xf32> to vector<16x16x32xf32>
    %50 = vector.broadcast %48 : vector<1x1x32xf32> to vector<16x16x32xf32>
    %51 = arith.mulf %49, %50 : vector<16x16x32xf32>
    %52 = arith.addf %46, %51 : vector<16x16x32xf32>
    %53 = vector.extract_strided_slice %1 {offsets = [7, 0], sizes = [1, 32], strides = [1, 1]} : vector<9x64xf32> to vector<1x32xf32>
    %54 = vector.shape_cast %53 : vector<1x32xf32> to vector<1x1x32xf32>
    %55 = vector.extract_strided_slice %7 {offsets = [2, 0, 0], sizes = [16, 16, 32], strides = [1, 1, 1]} : vector<18x16x32xf32> to vector<16x16x32xf32>
    %56 = vector.broadcast %54 : vector<1x1x32xf32> to vector<16x16x32xf32>
    %57 = arith.mulf %55, %56 : vector<16x16x32xf32>
    %58 = arith.addf %52, %57 : vector<16x16x32xf32>
    %59 = vector.extract_strided_slice %1 {offsets = [8, 0], sizes = [1, 32], strides = [1, 1]} : vector<9x64xf32> to vector<1x32xf32>
    %60 = vector.shape_cast %59 : vector<1x32xf32> to vector<1x1x32xf32>
    %61 = vector.extract_strided_slice %9 {offsets = [2, 0, 0], sizes = [16, 16, 32], strides = [1, 1, 1]} : vector<18x16x32xf32> to vector<16x16x32xf32>
    %62 = vector.broadcast %60 : vector<1x1x32xf32> to vector<16x16x32xf32>
    %63 = arith.mulf %61, %62 : vector<16x16x32xf32>
    %64 = arith.addf %58, %63 : vector<16x16x32xf32>
    %65 = vector.shape_cast %64 : vector<16x16x32xf32> to vector<256x32xf32>
    %66 = arith.truncf %65 : vector<256x32xf32> to vector<256x32xbf16>
    %c0_6 = arith.constant 0 : index
    %c0_7 = arith.constant 0 : index
    %67 = vector.load %arg4[%c0_6, %c0_7] : memref<32x32xbf16, #tpu.memory_space<vmem>>, vector<32x32xbf16>
    %cst_8 = arith.constant dense<0.000000e+00> : vector<256x32xf32>
    %68 = tpu.matmul %66, %67, %cst_8 {dimension_numbers = #tpu.dot_dimension_numbers<[1], [0], [0], [1], [0, 0, 1, 1], [], []>} : vector<256x32xbf16>, vector<32x32xbf16>, vector<256x32xf32> -> vector<256x32xf32>
    %c0_9 = arith.constant 0 : index
    %c0_10 = arith.constant 0 : index
    %c0_11 = arith.constant 0 : index
    %c0_12 = arith.constant 0 : index
    %69 = vector.load %arg2[%c0_9, %c0_10, %c0_11, %c0_12] : memref<1x18x18x32xbf16, #tpu.memory_space<vmem>>, vector<1x18x18x32xbf16>
    %70 = vector.shape_cast %69 : vector<1x18x18x32xbf16> to vector<18x18x32xbf16>
    %71 = vector.extract_strided_slice %70 {offsets = [0, 0, 0], sizes = [18, 16, 32], strides = [1, 1, 1]} : vector<18x18x32xbf16> to vector<18x16x32xbf16>
    %72 = arith.extf %71 : vector<18x16x32xbf16> to vector<18x16x32xf32>
    %73 = vector.extract_strided_slice %70 {offsets = [0, 1, 0], sizes = [18, 16, 32], strides = [1, 1, 1]} : vector<18x18x32xbf16> to vector<18x16x32xbf16>
    %74 = arith.extf %73 : vector<18x16x32xbf16> to vector<18x16x32xf32>
    %75 = vector.extract_strided_slice %70 {offsets = [0, 2, 0], sizes = [18, 16, 32], strides = [1, 1, 1]} : vector<18x18x32xbf16> to vector<18x16x32xbf16>
    %76 = arith.extf %75 : vector<18x16x32xbf16> to vector<18x16x32xf32>
    %cst_13 = arith.constant 0.000000e+00 : f32
    %77 = vector.broadcast %cst_13 : f32 to vector<16x16x32xf32>
    %78 = vector.extract_strided_slice %1 {offsets = [0, 32], sizes = [1, 32], strides = [1, 1]} : vector<9x64xf32> to vector<1x32xf32>
    %79 = vector.shape_cast %78 : vector<1x32xf32> to vector<1x1x32xf32>
    %80 = vector.extract_strided_slice %72 {offsets = [0, 0, 0], sizes = [16, 16, 32], strides = [1, 1, 1]} : vector<18x16x32xf32> to vector<16x16x32xf32>
    %81 = vector.broadcast %79 : vector<1x1x32xf32> to vector<16x16x32xf32>
    %82 = arith.mulf %80, %81 : vector<16x16x32xf32>
    %83 = arith.addf %77, %82 : vector<16x16x32xf32>
    %84 = vector.extract_strided_slice %1 {offsets = [1, 32], sizes = [1, 32], strides = [1, 1]} : vector<9x64xf32> to vector<1x32xf32>
    %85 = vector.shape_cast %84 : vector<1x32xf32> to vector<1x1x32xf32>
    %86 = vector.extract_strided_slice %74 {offsets = [0, 0, 0], sizes = [16, 16, 32], strides = [1, 1, 1]} : vector<18x16x32xf32> to vector<16x16x32xf32>
    %87 = vector.broadcast %85 : vector<1x1x32xf32> to vector<16x16x32xf32>
    %88 = arith.mulf %86, %87 : vector<16x16x32xf32>
    %89 = arith.addf %83, %88 : vector<16x16x32xf32>
    %90 = vector.extract_strided_slice %1 {offsets = [2, 32], sizes = [1, 32], strides = [1, 1]} : vector<9x64xf32> to vector<1x32xf32>
    %91 = vector.shape_cast %90 : vector<1x32xf32> to vector<1x1x32xf32>
    %92 = vector.extract_strided_slice %76 {offsets = [0, 0, 0], sizes = [16, 16, 32], strides = [1, 1, 1]} : vector<18x16x32xf32> to vector<16x16x32xf32>
    %93 = vector.broadcast %91 : vector<1x1x32xf32> to vector<16x16x32xf32>
    %94 = arith.mulf %92, %93 : vector<16x16x32xf32>
    %95 = arith.addf %89, %94 : vector<16x16x32xf32>
    %96 = vector.extract_strided_slice %1 {offsets = [3, 32], sizes = [1, 32], strides = [1, 1]} : vector<9x64xf32> to vector<1x32xf32>
    %97 = vector.shape_cast %96 : vector<1x32xf32> to vector<1x1x32xf32>
    %98 = vector.extract_strided_slice %72 {offsets = [1, 0, 0], sizes = [16, 16, 32], strides = [1, 1, 1]} : vector<18x16x32xf32> to vector<16x16x32xf32>
    %99 = vector.broadcast %97 : vector<1x1x32xf32> to vector<16x16x32xf32>
    %100 = arith.mulf %98, %99 : vector<16x16x32xf32>
    %101 = arith.addf %95, %100 : vector<16x16x32xf32>
    %102 = vector.extract_strided_slice %1 {offsets = [4, 32], sizes = [1, 32], strides = [1, 1]} : vector<9x64xf32> to vector<1x32xf32>
    %103 = vector.shape_cast %102 : vector<1x32xf32> to vector<1x1x32xf32>
    %104 = vector.extract_strided_slice %74 {offsets = [1, 0, 0], sizes = [16, 16, 32], strides = [1, 1, 1]} : vector<18x16x32xf32> to vector<16x16x32xf32>
    %105 = vector.broadcast %103 : vector<1x1x32xf32> to vector<16x16x32xf32>
    %106 = arith.mulf %104, %105 : vector<16x16x32xf32>
    %107 = arith.addf %101, %106 : vector<16x16x32xf32>
    %108 = vector.extract_strided_slice %1 {offsets = [5, 32], sizes = [1, 32], strides = [1, 1]} : vector<9x64xf32> to vector<1x32xf32>
    %109 = vector.shape_cast %108 : vector<1x32xf32> to vector<1x1x32xf32>
    %110 = vector.extract_strided_slice %76 {offsets = [1, 0, 0], sizes = [16, 16, 32], strides = [1, 1, 1]} : vector<18x16x32xf32> to vector<16x16x32xf32>
    %111 = vector.broadcast %109 : vector<1x1x32xf32> to vector<16x16x32xf32>
    %112 = arith.mulf %110, %111 : vector<16x16x32xf32>
    %113 = arith.addf %107, %112 : vector<16x16x32xf32>
    %114 = vector.extract_strided_slice %1 {offsets = [6, 32], sizes = [1, 32], strides = [1, 1]} : vector<9x64xf32> to vector<1x32xf32>
    %115 = vector.shape_cast %114 : vector<1x32xf32> to vector<1x1x32xf32>
    %116 = vector.extract_strided_slice %72 {offsets = [2, 0, 0], sizes = [16, 16, 32], strides = [1, 1, 1]} : vector<18x16x32xf32> to vector<16x16x32xf32>
    %117 = vector.broadcast %115 : vector<1x1x32xf32> to vector<16x16x32xf32>
    %118 = arith.mulf %116, %117 : vector<16x16x32xf32>
    %119 = arith.addf %113, %118 : vector<16x16x32xf32>
    %120 = vector.extract_strided_slice %1 {offsets = [7, 32], sizes = [1, 32], strides = [1, 1]} : vector<9x64xf32> to vector<1x32xf32>
    %121 = vector.shape_cast %120 : vector<1x32xf32> to vector<1x1x32xf32>
    %122 = vector.extract_strided_slice %74 {offsets = [2, 0, 0], sizes = [16, 16, 32], strides = [1, 1, 1]} : vector<18x16x32xf32> to vector<16x16x32xf32>
    %123 = vector.broadcast %121 : vector<1x1x32xf32> to vector<16x16x32xf32>
    %124 = arith.mulf %122, %123 : vector<16x16x32xf32>
    %125 = arith.addf %119, %124 : vector<16x16x32xf32>
    %126 = vector.extract_strided_slice %1 {offsets = [8, 32], sizes = [1, 32], strides = [1, 1]} : vector<9x64xf32> to vector<1x32xf32>
    %127 = vector.shape_cast %126 : vector<1x32xf32> to vector<1x1x32xf32>
    %128 = vector.extract_strided_slice %76 {offsets = [2, 0, 0], sizes = [16, 16, 32], strides = [1, 1, 1]} : vector<18x16x32xf32> to vector<16x16x32xf32>
    %129 = vector.broadcast %127 : vector<1x1x32xf32> to vector<16x16x32xf32>
    %130 = arith.mulf %128, %129 : vector<16x16x32xf32>
    %131 = arith.addf %125, %130 : vector<16x16x32xf32>
    %132 = vector.shape_cast %131 : vector<16x16x32xf32> to vector<256x32xf32>
    %133 = arith.truncf %132 : vector<256x32xf32> to vector<256x32xbf16>
    %c0_14 = arith.constant 0 : index
    %c0_15 = arith.constant 0 : index
    %134 = vector.load %arg5[%c0_14, %c0_15] : memref<32x32xbf16, #tpu.memory_space<vmem>>, vector<32x32xbf16>
    %cst_16 = arith.constant dense<0.000000e+00> : vector<256x32xf32>
    %135 = tpu.matmul %133, %134, %cst_16 {dimension_numbers = #tpu.dot_dimension_numbers<[1], [0], [0], [1], [0, 0, 1, 1], [], []>} : vector<256x32xbf16>, vector<32x32xbf16>, vector<256x32xf32> -> vector<256x32xf32>
    %136 = arith.addf %68, %135 : vector<256x32xf32>
    %c0_17 = arith.constant 0 : index
    %c0_18 = arith.constant 0 : index
    %137 = vector.load %arg6[%c0_17, %c0_18] : memref<1x32xf32, #tpu.memory_space<vmem>>, vector<1x32xf32>
    %138 = vector.broadcast %137 : vector<1x32xf32> to vector<256x32xf32>
    %139 = arith.addf %136, %138 : vector<256x32xf32>
    %cst_19 = arith.constant 0.000000e+00 : f32
    %140 = vector.broadcast %cst_19 : f32 to vector<256x32xf32>
    %141 = arith.maximumf %139, %140 : vector<256x32xf32>
    %cst_20 = arith.constant dense<0.000000e+00> : vector<32xf32>
    %142 = vector.multi_reduction <add>, %141, %cst_20 [0] : vector<256x32xf32> to vector<32xf32>
    %143 = vector.shape_cast %142 : vector<32xf32> to vector<1x32xf32>
    %c0_21 = arith.constant 0 : index
    %c0_22 = arith.constant 0 : index
    %c0_23 = arith.constant 0 : index
    %144 = vector.load %arg8[%c0_21, %c0_22, %c0_23] : memref<1x1x32xf32, #tpu.memory_space<vmem>>, vector<1x1x32xf32>
    %145 = vector.shape_cast %144 : vector<1x1x32xf32> to vector<1x32xf32>
    %146 = vector.shape_cast %143 : vector<1x32xf32> to vector<1x1x32xf32>
    tpu.vector_store %arg8[%c0_21, %c0_22, %c0_23], %146 {strides = array<i32>} : memref<1x1x32xf32, #tpu.memory_space<vmem>>, vector<1x1x32xf32>,
    %147 = vector.shape_cast %141 : vector<256x32xf32> to vector<16x16x32xf32>
    %148 = arith.truncf %147 : vector<16x16x32xf32> to vector<16x16x32xbf16>
    %c0_24 = arith.constant 0 : index
    %c0_25 = arith.constant 0 : index
    %c0_26 = arith.constant 0 : index
    %c0_27 = arith.constant 0 : index
    %149 = vector.load %arg7[%c0_24, %c0_25, %c0_26, %c0_27] : memref<1x16x16x32xbf16, #tpu.memory_space<vmem>>, vector<1x16x16x32xbf16>
    %150 = vector.shape_cast %149 : vector<1x16x16x32xbf16> to vector<16x16x32xbf16>
    %151 = vector.shape_cast %148 : vector<16x16x32xbf16> to vector<1x16x16x32xbf16>
    tpu.vector_store %arg7[%c0_24, %c0_25, %c0_26, %c0_27], %151 {strides = array<i32>} : memref<1x16x16x32xbf16, #tpu.memory_space<vmem>>, vector<1x16x16x32xbf16>,
    return
  }
  func.func @transform_0(%arg0: i32) -> (i32, i32, i32, i32) {
    %c0_i32 = arith.constant 0 : i32
    %c0_i32_0 = arith.constant 0 : i32
    %c0_i32_1 = arith.constant 0 : i32
    %c0_i32_2 = arith.constant 0 : i32
    return %arg0, %c0_i32, %c0_i32_0, %c0_i32_1 : i32, i32, i32, i32
  }
  func.func @transform_1(%arg0: i32) -> (i32, i32, i32, i32) {
    %c0_i32 = arith.constant 0 : i32
    %c0_i32_0 = arith.constant 0 : i32
    %c0_i32_1 = arith.constant 0 : i32
    %c0_i32_2 = arith.constant 0 : i32
    return %arg0, %c0_i32, %c0_i32_0, %c0_i32_1 : i32, i32, i32, i32
  }
  func.func @transform_2(%arg0: i32) -> (i32, i32, i32) {
    %c0_i32 = arith.constant 0 : i32
    %c0_i32_0 = arith.constant 0 : i32
    %c0_i32_1 = arith.constant 0 : i32
    return %arg0, %c0_i32, %c0_i32_0 : i32, i32, i32
  }
  func.func @transform_3(%arg0: i32) -> (i32, i32) {
    %c0_i32 = arith.constant 0 : i32
    %c0_i32_0 = arith.constant 0 : i32
    %c0_i32_1 = arith.constant 0 : i32
    return %c0_i32, %c0_i32_0 : i32, i32
  }
  func.func @transform_4(%arg0: i32) -> (i32, i32) {
    %c0_i32 = arith.constant 0 : i32
    %c0_i32_0 = arith.constant 0 : i32
    %c0_i32_1 = arith.constant 0 : i32
    return %c0_i32, %c0_i32_0 : i32, i32
  }
  func.func @transform_5(%arg0: i32) -> (i32, i32) {
    %c0_i32 = arith.constant 0 : i32
    %c0_i32_0 = arith.constant 0 : i32
    %c0_i32_1 = arith.constant 0 : i32
    return %c0_i32, %c0_i32_0 : i32, i32
  }
  func.func @transform_6(%arg0: i32) -> (i32, i32, i32, i32) {
    %c0_i32 = arith.constant 0 : i32
    %c0_i32_0 = arith.constant 0 : i32
    %c0_i32_1 = arith.constant 0 : i32
    %c0_i32_2 = arith.constant 0 : i32
    return %arg0, %c0_i32, %c0_i32_0, %c0_i32_1 : i32, i32, i32, i32
  }
  func.func @transform_7(%arg0: i32) -> (i32, i32, i32) {
    %c0_i32 = arith.constant 0 : i32
    %c0_i32_0 = arith.constant 0 : i32
    %c0_i32_1 = arith.constant 0 : i32
    return %arg0, %c0_i32, %c0_i32_0 : i32, i32, i32
  }
}

module attributes {stable_mosaic.version = 11 : i64} {
  func.func @_attn_mlp_kernel(%arg0: memref<2x32xf32, #tpu.memory_space<vmem>>, %arg1: memref<32x9xf32, #tpu.memory_space<vmem>>, %arg2: memref<9x4xf32, #tpu.memory_space<vmem>>, %arg3: memref<4x288xf32, #tpu.memory_space<vmem>>, %arg4: memref<2x288xf32, #tpu.memory_space<vmem>>) attributes {dimension_semantics = [], scalar_prefetch = 0 : i64, scratch_operands = 0 : i64, tpu.core_type = #tpu.core_type<tc>} {
    %c0 = arith.constant 0 : index
    %c0_0 = arith.constant 0 : index
    %0 = vector.load %arg0[%c0, %c0_0] : memref<2x32xf32, #tpu.memory_space<vmem>>, vector<2x32xf32>
    %c0_1 = arith.constant 0 : index
    %c0_2 = arith.constant 0 : index
    %1 = vector.load %arg1[%c0_1, %c0_2] : memref<32x9xf32, #tpu.memory_space<vmem>>, vector<32x9xf32>
    %cst = arith.constant dense<0.000000e+00> : vector<2x9xf32>
    %2 = tpu.matmul %0, %1, %cst {dimension_numbers = #tpu.dot_dimension_numbers<[1], [0], [0], [1], [0, 0, 1, 1], [], []>} : vector<2x32xf32>, vector<32x9xf32>, vector<2x9xf32> -> vector<2x9xf32>
    %cst_3 = arith.constant 0.000000e+00 : f32
    %3 = vector.broadcast %cst_3 : f32 to vector<2x9xf32>
    %4 = arith.maximumf %2, %3 : vector<2x9xf32>
    %c0_4 = arith.constant 0 : index
    %c0_5 = arith.constant 0 : index
    %5 = vector.load %arg2[%c0_4, %c0_5] : memref<9x4xf32, #tpu.memory_space<vmem>>, vector<9x4xf32>
    %cst_6 = arith.constant dense<0.000000e+00> : vector<2x4xf32>
    %6 = tpu.matmul %4, %5, %cst_6 {dimension_numbers = #tpu.dot_dimension_numbers<[1], [0], [0], [1], [0, 0, 1, 1], [], []>} : vector<2x9xf32>, vector<9x4xf32>, vector<2x4xf32> -> vector<2x4xf32>
    %cst_7 = arith.constant 0.0333333351 : f32
    %7 = vector.broadcast %cst_7 : f32 to vector<2x4xf32>
    %8 = arith.mulf %6, %7 : vector<2x4xf32>
    %cst_8 = arith.constant dense<0xFF800000> : vector<2xf32>
    %9 = vector.multi_reduction <maximumf>, %8, %cst_8 [1] : vector<2x4xf32> to vector<2xf32>
    %10 = vector.shape_cast %9 : vector<2xf32> to vector<2x1xf32>
    %11 = vector.broadcast %10 : vector<2x1xf32> to vector<2x4xf32>
    %12 = arith.subf %8, %11 : vector<2x4xf32>
    %13 = math.exp %12 : vector<2x4xf32>
    %cst_9 = arith.constant dense<0.000000e+00> : vector<2xf32>
    %14 = vector.multi_reduction <add>, %13, %cst_9 [1] : vector<2x4xf32> to vector<2xf32>
    %15 = vector.shape_cast %14 : vector<2xf32> to vector<2x1xf32>
    %16 = vector.broadcast %15 : vector<2x1xf32> to vector<2x4xf32>
    %17 = arith.divf %13, %16 : vector<2x4xf32>
    %c0_10 = arith.constant 0 : index
    %c0_11 = arith.constant 0 : index
    %18 = vector.load %arg3[%c0_10, %c0_11] : memref<4x288xf32, #tpu.memory_space<vmem>>, vector<4x288xf32>
    %cst_12 = arith.constant dense<0.000000e+00> : vector<2x288xf32>
    %19 = tpu.matmul %17, %18, %cst_12 {dimension_numbers = #tpu.dot_dimension_numbers<[1], [0], [0], [1], [0, 0, 1, 1], [], []>} : vector<2x4xf32>, vector<4x288xf32>, vector<2x288xf32> -> vector<2x288xf32>
    %c0_13 = arith.constant 0 : index
    %c0_14 = arith.constant 0 : index
    %20 = vector.load %arg4[%c0_13, %c0_14] : memref<2x288xf32, #tpu.memory_space<vmem>>, vector<2x288xf32>
    tpu.vector_store %arg4[%c0_13, %c0_14], %19 {strides = array<i32>} : memref<2x288xf32, #tpu.memory_space<vmem>>, vector<2x288xf32>,
    return
  }
}

module attributes {stable_mosaic.version = 11 : i64} {
  func.func @_dw_conv1_kernel(%arg0: i32, %arg1: memref<1x18x18x32xbf16, #tpu.memory_space<vmem>>, %arg2: memref<1x9x32xf32, #tpu.memory_space<vmem>>, %arg3: memref<32x32xbf16, #tpu.memory_space<vmem>>, %arg4: memref<1x32xf32, #tpu.memory_space<vmem>>, %arg5: memref<1x32xf32, #tpu.memory_space<vmem>>, %arg6: memref<1x1xf32, #tpu.memory_space<vmem>>, %arg7: memref<1x16x16x32xf32, #tpu.memory_space<vmem>>) attributes {dimension_semantics = [#tpu.dimension_semantics<parallel>], iteration_bounds = array<i64: 2>, scalar_prefetch = 0 : i64, scratch_operands = 0 : i64, tpu.core_type = #tpu.core_type<tc>, window_params = [{transform_indices = @transform_0, window_bounds = array<i64: 1, 18, 18, 32>}, {transform_indices = @transform_1, window_bounds = array<i64: 1, 9, 32>}, {pipeline_mode = #tpu.pipeline_mode<synchronous>, transform_indices = @transform_2, window_bounds = array<i64: 32, 32>}, {pipeline_mode = #tpu.pipeline_mode<synchronous>, transform_indices = @transform_3, window_bounds = array<i64: 1, 32>}, {pipeline_mode = #tpu.pipeline_mode<synchronous>, transform_indices = @transform_4, window_bounds = array<i64: 1, 32>}, {pipeline_mode = #tpu.pipeline_mode<synchronous>, transform_indices = @transform_5, window_bounds = array<i64: 1, 1>}, {transform_indices = @transform_6, window_bounds = array<i64: 1, 16, 16, 32>}]} {
    %c0 = arith.constant 0 : index
    %c0_0 = arith.constant 0 : index
    %c0_1 = arith.constant 0 : index
    %0 = vector.load %arg2[%c0, %c0_0, %c0_1] : memref<1x9x32xf32, #tpu.memory_space<vmem>>, vector<1x9x32xf32>
    %1 = vector.shape_cast %0 : vector<1x9x32xf32> to vector<9x32xf32>
    %c0_2 = arith.constant 0 : index
    %c0_3 = arith.constant 0 : index
    %c0_4 = arith.constant 0 : index
    %c0_5 = arith.constant 0 : index
    %2 = vector.load %arg1[%c0_2, %c0_3, %c0_4, %c0_5] : memref<1x18x18x32xbf16, #tpu.memory_space<vmem>>, vector<1x18x18x32xbf16>
    %3 = vector.shape_cast %2 : vector<1x18x18x32xbf16> to vector<18x18x32xbf16>
    %4 = vector.extract_strided_slice %3 {offsets = [0, 0, 0], sizes = [18, 16, 32], strides = [1, 1, 1]} : vector<18x18x32xbf16> to vector<18x16x32xbf16>
    %5 = arith.extf %4 : vector<18x16x32xbf16> to vector<18x16x32xf32>
    %6 = vector.extract_strided_slice %3 {offsets = [0, 1, 0], sizes = [18, 16, 32], strides = [1, 1, 1]} : vector<18x18x32xbf16> to vector<18x16x32xbf16>
    %7 = arith.extf %6 : vector<18x16x32xbf16> to vector<18x16x32xf32>
    %8 = vector.extract_strided_slice %3 {offsets = [0, 2, 0], sizes = [18, 16, 32], strides = [1, 1, 1]} : vector<18x18x32xbf16> to vector<18x16x32xbf16>
    %9 = arith.extf %8 : vector<18x16x32xbf16> to vector<18x16x32xf32>
    %cst = arith.constant 0.000000e+00 : f32
    %10 = vector.broadcast %cst : f32 to vector<16x16x32xf32>
    %11 = vector.extract_strided_slice %1 {offsets = [0, 0], sizes = [1, 32], strides = [1, 1]} : vector<9x32xf32> to vector<1x32xf32>
    %12 = vector.shape_cast %11 : vector<1x32xf32> to vector<1x1x32xf32>
    %13 = vector.extract_strided_slice %5 {offsets = [0, 0, 0], sizes = [16, 16, 32], strides = [1, 1, 1]} : vector<18x16x32xf32> to vector<16x16x32xf32>
    %14 = vector.broadcast %12 : vector<1x1x32xf32> to vector<16x16x32xf32>
    %15 = arith.mulf %13, %14 : vector<16x16x32xf32>
    %16 = arith.addf %10, %15 : vector<16x16x32xf32>
    %17 = vector.extract_strided_slice %1 {offsets = [1, 0], sizes = [1, 32], strides = [1, 1]} : vector<9x32xf32> to vector<1x32xf32>
    %18 = vector.shape_cast %17 : vector<1x32xf32> to vector<1x1x32xf32>
    %19 = vector.extract_strided_slice %7 {offsets = [0, 0, 0], sizes = [16, 16, 32], strides = [1, 1, 1]} : vector<18x16x32xf32> to vector<16x16x32xf32>
    %20 = vector.broadcast %18 : vector<1x1x32xf32> to vector<16x16x32xf32>
    %21 = arith.mulf %19, %20 : vector<16x16x32xf32>
    %22 = arith.addf %16, %21 : vector<16x16x32xf32>
    %23 = vector.extract_strided_slice %1 {offsets = [2, 0], sizes = [1, 32], strides = [1, 1]} : vector<9x32xf32> to vector<1x32xf32>
    %24 = vector.shape_cast %23 : vector<1x32xf32> to vector<1x1x32xf32>
    %25 = vector.extract_strided_slice %9 {offsets = [0, 0, 0], sizes = [16, 16, 32], strides = [1, 1, 1]} : vector<18x16x32xf32> to vector<16x16x32xf32>
    %26 = vector.broadcast %24 : vector<1x1x32xf32> to vector<16x16x32xf32>
    %27 = arith.mulf %25, %26 : vector<16x16x32xf32>
    %28 = arith.addf %22, %27 : vector<16x16x32xf32>
    %29 = vector.extract_strided_slice %1 {offsets = [3, 0], sizes = [1, 32], strides = [1, 1]} : vector<9x32xf32> to vector<1x32xf32>
    %30 = vector.shape_cast %29 : vector<1x32xf32> to vector<1x1x32xf32>
    %31 = vector.extract_strided_slice %5 {offsets = [1, 0, 0], sizes = [16, 16, 32], strides = [1, 1, 1]} : vector<18x16x32xf32> to vector<16x16x32xf32>
    %32 = vector.broadcast %30 : vector<1x1x32xf32> to vector<16x16x32xf32>
    %33 = arith.mulf %31, %32 : vector<16x16x32xf32>
    %34 = arith.addf %28, %33 : vector<16x16x32xf32>
    %35 = vector.extract_strided_slice %1 {offsets = [4, 0], sizes = [1, 32], strides = [1, 1]} : vector<9x32xf32> to vector<1x32xf32>
    %36 = vector.shape_cast %35 : vector<1x32xf32> to vector<1x1x32xf32>
    %37 = vector.extract_strided_slice %7 {offsets = [1, 0, 0], sizes = [16, 16, 32], strides = [1, 1, 1]} : vector<18x16x32xf32> to vector<16x16x32xf32>
    %38 = vector.broadcast %36 : vector<1x1x32xf32> to vector<16x16x32xf32>
    %39 = arith.mulf %37, %38 : vector<16x16x32xf32>
    %40 = arith.addf %34, %39 : vector<16x16x32xf32>
    %41 = vector.extract_strided_slice %1 {offsets = [5, 0], sizes = [1, 32], strides = [1, 1]} : vector<9x32xf32> to vector<1x32xf32>
    %42 = vector.shape_cast %41 : vector<1x32xf32> to vector<1x1x32xf32>
    %43 = vector.extract_strided_slice %9 {offsets = [1, 0, 0], sizes = [16, 16, 32], strides = [1, 1, 1]} : vector<18x16x32xf32> to vector<16x16x32xf32>
    %44 = vector.broadcast %42 : vector<1x1x32xf32> to vector<16x16x32xf32>
    %45 = arith.mulf %43, %44 : vector<16x16x32xf32>
    %46 = arith.addf %40, %45 : vector<16x16x32xf32>
    %47 = vector.extract_strided_slice %1 {offsets = [6, 0], sizes = [1, 32], strides = [1, 1]} : vector<9x32xf32> to vector<1x32xf32>
    %48 = vector.shape_cast %47 : vector<1x32xf32> to vector<1x1x32xf32>
    %49 = vector.extract_strided_slice %5 {offsets = [2, 0, 0], sizes = [16, 16, 32], strides = [1, 1, 1]} : vector<18x16x32xf32> to vector<16x16x32xf32>
    %50 = vector.broadcast %48 : vector<1x1x32xf32> to vector<16x16x32xf32>
    %51 = arith.mulf %49, %50 : vector<16x16x32xf32>
    %52 = arith.addf %46, %51 : vector<16x16x32xf32>
    %53 = vector.extract_strided_slice %1 {offsets = [7, 0], sizes = [1, 32], strides = [1, 1]} : vector<9x32xf32> to vector<1x32xf32>
    %54 = vector.shape_cast %53 : vector<1x32xf32> to vector<1x1x32xf32>
    %55 = vector.extract_strided_slice %7 {offsets = [2, 0, 0], sizes = [16, 16, 32], strides = [1, 1, 1]} : vector<18x16x32xf32> to vector<16x16x32xf32>
    %56 = vector.broadcast %54 : vector<1x1x32xf32> to vector<16x16x32xf32>
    %57 = arith.mulf %55, %56 : vector<16x16x32xf32>
    %58 = arith.addf %52, %57 : vector<16x16x32xf32>
    %59 = vector.extract_strided_slice %1 {offsets = [8, 0], sizes = [1, 32], strides = [1, 1]} : vector<9x32xf32> to vector<1x32xf32>
    %60 = vector.shape_cast %59 : vector<1x32xf32> to vector<1x1x32xf32>
    %61 = vector.extract_strided_slice %9 {offsets = [2, 0, 0], sizes = [16, 16, 32], strides = [1, 1, 1]} : vector<18x16x32xf32> to vector<16x16x32xf32>
    %62 = vector.broadcast %60 : vector<1x1x32xf32> to vector<16x16x32xf32>
    %63 = arith.mulf %61, %62 : vector<16x16x32xf32>
    %64 = arith.addf %58, %63 : vector<16x16x32xf32>
    %65 = vector.shape_cast %64 : vector<16x16x32xf32> to vector<256x32xf32>
    %66 = arith.truncf %65 : vector<256x32xf32> to vector<256x32xbf16>
    %c0_6 = arith.constant 0 : index
    %c0_7 = arith.constant 0 : index
    %67 = vector.load %arg3[%c0_6, %c0_7] : memref<32x32xbf16, #tpu.memory_space<vmem>>, vector<32x32xbf16>
    %cst_8 = arith.constant dense<0.000000e+00> : vector<256x32xf32>
    %68 = tpu.matmul %66, %67, %cst_8 {dimension_numbers = #tpu.dot_dimension_numbers<[1], [0], [0], [1], [0, 0, 1, 1], [], []>} : vector<256x32xbf16>, vector<32x32xbf16>, vector<256x32xf32> -> vector<256x32xf32>
    %c0_9 = arith.constant 0 : index
    %c0_10 = arith.constant 0 : index
    %69 = vector.load %arg4[%c0_9, %c0_10] : memref<1x32xf32, #tpu.memory_space<vmem>>, vector<1x32xf32>
    %70 = vector.broadcast %69 : vector<1x32xf32> to vector<256x32xf32>
    %71 = arith.addf %68, %70 : vector<256x32xf32>
    %cst_11 = arith.constant 0.000000e+00 : f32
    %72 = vector.broadcast %cst_11 : f32 to vector<256x32xf32>
    %73 = arith.maximumf %71, %72 : vector<256x32xf32>
    %c0_12 = arith.constant 0 : index
    %c0_13 = arith.constant 0 : index
    %74 = vector.load %arg5[%c0_12, %c0_13] : memref<1x32xf32, #tpu.memory_space<vmem>>, vector<1x32xf32>
    %75 = vector.broadcast %74 : vector<1x32xf32> to vector<256x32xf32>
    %76 = arith.mulf %73, %75 : vector<256x32xf32>
    %cst_14 = arith.constant dense<0.000000e+00> : vector<256xf32>
    %77 = vector.multi_reduction <add>, %76, %cst_14 [1] : vector<256x32xf32> to vector<256xf32>
    %78 = vector.shape_cast %77 : vector<256xf32> to vector<256x1xf32>
    %c0_15 = arith.constant 0 : index
    %c0_16 = arith.constant 0 : index
    %79 = vector.load %arg6[%c0_15, %c0_16] : memref<1x1xf32, #tpu.memory_space<vmem>>, vector<1x1xf32>
    %80 = vector.broadcast %79 : vector<1x1xf32> to vector<256x1xf32>
    %81 = arith.addf %78, %80 : vector<256x1xf32>
    %82 = arith.negf %81 : vector<256x1xf32>
    %83 = math.exp %82 : vector<256x1xf32>
    %cst_17 = arith.constant 1.000000e+00 : f32
    %84 = vector.broadcast %cst_17 : f32 to vector<256x1xf32>
    %85 = arith.addf %84, %83 : vector<256x1xf32>
    %86 = arith.divf %84, %85 : vector<256x1xf32>
    %87 = vector.broadcast %86 : vector<256x1xf32> to vector<256x32xf32>
    %88 = arith.mulf %73, %87 : vector<256x32xf32>
    %89 = vector.shape_cast %88 : vector<256x32xf32> to vector<16x16x32xf32>
    %c0_18 = arith.constant 0 : index
    %c0_19 = arith.constant 0 : index
    %c0_20 = arith.constant 0 : index
    %c0_21 = arith.constant 0 : index
    %90 = vector.load %arg7[%c0_18, %c0_19, %c0_20, %c0_21] : memref<1x16x16x32xf32, #tpu.memory_space<vmem>>, vector<1x16x16x32xf32>
    %91 = vector.shape_cast %90 : vector<1x16x16x32xf32> to vector<16x16x32xf32>
    %92 = vector.shape_cast %89 : vector<16x16x32xf32> to vector<1x16x16x32xf32>
    tpu.vector_store %arg7[%c0_18, %c0_19, %c0_20, %c0_21], %92 {strides = array<i32>} : memref<1x16x16x32xf32, #tpu.memory_space<vmem>>, vector<1x16x16x32xf32>,
    return
  }
  func.func @transform_0(%arg0: i32) -> (i32, i32, i32, i32) {
    %c0_i32 = arith.constant 0 : i32
    %c0_i32_0 = arith.constant 0 : i32
    %c0_i32_1 = arith.constant 0 : i32
    %c0_i32_2 = arith.constant 0 : i32
    return %arg0, %c0_i32, %c0_i32_0, %c0_i32_1 : i32, i32, i32, i32
  }
  func.func @transform_1(%arg0: i32) -> (i32, i32, i32) {
    %c0_i32 = arith.constant 0 : i32
    %c0_i32_0 = arith.constant 0 : i32
    %c0_i32_1 = arith.constant 0 : i32
    return %arg0, %c0_i32, %c0_i32_0 : i32, i32, i32
  }
  func.func @transform_2(%arg0: i32) -> (i32, i32) {
    %c0_i32 = arith.constant 0 : i32
    %c0_i32_0 = arith.constant 0 : i32
    %c0_i32_1 = arith.constant 0 : i32
    return %c0_i32, %c0_i32_0 : i32, i32
  }
  func.func @transform_3(%arg0: i32) -> (i32, i32) {
    %c0_i32 = arith.constant 0 : i32
    %c0_i32_0 = arith.constant 0 : i32
    %c0_i32_1 = arith.constant 0 : i32
    return %c0_i32, %c0_i32_0 : i32, i32
  }
  func.func @transform_4(%arg0: i32) -> (i32, i32) {
    %c0_i32 = arith.constant 0 : i32
    %c0_i32_0 = arith.constant 0 : i32
    %c0_i32_1 = arith.constant 0 : i32
    return %c0_i32, %c0_i32_0 : i32, i32
  }
  func.func @transform_5(%arg0: i32) -> (i32, i32) {
    %c0_i32 = arith.constant 0 : i32
    %c0_i32_0 = arith.constant 0 : i32
    %c0_i32_1 = arith.constant 0 : i32
    return %c0_i32, %c0_i32_0 : i32, i32
  }
  func.func @transform_6(%arg0: i32) -> (i32, i32, i32, i32) {
    %c0_i32 = arith.constant 0 : i32
    %c0_i32_0 = arith.constant 0 : i32
    %c0_i32_1 = arith.constant 0 : i32
    %c0_i32_2 = arith.constant 0 : i32
    return %arg0, %c0_i32, %c0_i32_0, %c0_i32_1 : i32, i32, i32, i32
  }
}

</mosaic_0001>

<bundles_post_ra>
// kernel: unet_up_origin_forward.6
= control target key start
LH: loop header
LB: loop body
LE: loop exit
PB: predicated region body
PF: predicated region fallthrough
CT: control target
= control target key end

     0   :  { %v552_v0 = vmov 0.0|0.0   ;;  %vm553_vm0 = vmmov 0   ;;  %v554_v4 = vmov 0.0   ;;  %vm26_vm1 = vcmask 523264   ;;  %s647_s1 = inlined_call_operand.vmem [shape: f32[64,17], index: 1, kind: input, shape index: {}]   ;;  %s648_s2 = inlined_call_operand.vmem [shape: f32[17,4], index: 2, kind: input, shape index: {}]   ;;  %s649_s0 = inlined_call_operand.vmem [shape: f32[2,64], index: 0, kind: input, shape index: {}]   ;;  %s650_s3 = inlined_call_operand.vmem [shape: f32[4,576], index: 3, kind: input, shape index: {}]   ;;  %s651_s4 = inlined_call_operand.vmem [shape: f32[2,576], index: 4, kind: output, shape index: {}]  }
   0x1   :  { %527 = vmatprep.subr.bf16.mxu0 %v552_v0  ;;  %v18_v1 = vld [vmem:[%s647_s1] sm:$0xff]  ;;  %v19_v2 = vld [vmem:[%s647_s1 + $0x8] sm:$0xff]  ;;  %v20_v3 = vld [vmem:[%s647_s1 + $0x10] sm:$0xff]  ;;  %510 = vmatprep.mubr.msk.f32.mxu0 %vm553_vm0, %v554_v4  ;;  %vm108_vm2 = vcmask 1040384   ;;  %vm104_vm3 = vcmask 138240   ;;  %vm183_vm4 = vcmask 25600   ;;  %v440_v41 = vlaneseq }
   0x2   :  { %v528_v5 = vpack.c.bf16 %v19_v2, %v18_v1  ;;  %v21_v6 = vld [vmem:[%s647_s1 + $0x18] sm:$0xff]  ;;  %539 = vmatprep.subr.bf16.mxu1 %v552_v0  ;;  %519 = vmatprep.mubr.msk.f32.mxu1 %vm553_vm0, %v554_v4  ;;  %v101_v8 = vld [vmem:[%s648_s2] sm:$0xff]  ;;  %v102_v9 = vld [vmem:[%s648_s2 + $0x8] sm:$0xff]  ;;  %vm207_vm5 = vcmask 1043456   ;;  %vm203_vm6 = vcmask 31744   ;;  %vm462_vm7 = vcmask 517120  }
   0x3   :  { %v531_v7 = vpack.c.bf16 %v21_v6, %v20_v3  ;;  %v22_v10 = vld [vmem:[%s647_s1 + $0x20] sm:$0xff]  ;;  %v23_v11 = vld [vmem:[%s647_s1 + $0x28] sm:$0xff]  ;;  %v540_v12 = vpack.c.bf16 %v102_v9, %v101_v8  ;;  %v24_v14 = vld [vmem:[%s647_s1 + $0x30] sm:$0xff]  ;;  %v555_v39 = vmov 1983009808   ;;  %v441_v44 = vshrl.u32 %v440_v41, 7 }
   0x4   :  { %529 = vmatpush3.bf16.msra.mxu0 %v528_v5  ;;  %v534_v13 = vpack.c.bf16 %v23_v11, %v22_v10  ;;  %v25_v15 = vld [vmem:[%s647_s1 + $0x38] sm:$0xff]  ;;  %v17_v17 = vld [vmem:[%s649_s0] sm:$0x3]  ;;  %v103_v18 = vld [vmem:[%s648_s2 + $0x10] sm:$0x1]  ;;  %v438_v40 = vunpack.c.l.s4 %v555_v39 }
   0x5   :  { %530 = vmatprep.subr.bf16.mxu0 %v552_v0  ;;  %541 = vmatpush3.bf16.msra.mxu1 %v540_v12  ;;  %v537_v16 = vpack.c.bf16 %v25_v15, %v24_v14  ;;  %v195_v31 = vld [vmem:[%s650_s3] sm:$0xff]  ;;  %v196_v33 = vld [vmem:[%s650_s3 + $0x8] sm:$0xff]  ;;  %v197_v38 = vld [vmem:[%s650_s3 + $0x10] sm:$0xf] }
   0x6   :  { %517 = vmatprep.subr.mxu1 %v554_v4  ;;  %v201_v32 = vcombine.high %v195_v31, %v195_v31  ;;  %v202_v34 = vcombine.high %v196_v33, %v196_v33  ;;  %v439_v43 = vunpack.c.0.s8 %v438_v40 }
   0x8   :  { %532 = vmatpush3.bf16.msra.mxu0 %v531_v7  ;;  %v442_v47 = vsub.s32 %v439_v43, %v441_v44 }
   0x9   :  { %533 = vmatprep.subr.bf16.mxu0 %v552_v0  ;;  %518 = vmatpush3.msk.msra.mxu1 %vm108_vm2, %v103_v18 }
   0xa   :  { %471 = vmatprep.subr.msk.mxu1 %vm207_vm5, %v201_v32 }
   0xc   :  { %535 = vmatpush3.bf16.msra.mxu0 %v534_v13 }
   0xd   :  { %536 = vmatprep.subr.bf16.mxu0 %v552_v0 }
  0x10   :  { %538 = vmatpush3.bf16.msra.mxu0 %v537_v16 }
  0x13   :  { %511 = vmatmul.mubr.msk.f32.vlgmr.msra.gmra.mrb[0].mxu0 %vm26_vm1, %v17_v17 }
  0xe6   :  { %v96_v19 = vpop.f32.mrb[0].mxu0 }
  0xe7   :  { %v100_v20 = vmax.f32 %v96_v19, 0.0  ;;  %v512_v21 = vpop.f32.mrb[1].mxu0 }
  0xe9   :  { %520 = vmatmul.mubr.msk.f32.vlgmr.msra.gmra.mrb[0].mxu1 %vm104_vm3, %v100_v20 }
  0xea   :  { %282 = vmatprep.mubr.f32.mxu1 %v554_v4  ;;  %472 = vmatpush1.msk.msra.mxu1 %vm207_vm5, %v195_v31 }
  0xeb   :  { %474 = vmatprep.subr.msk.mxu1 %vm207_vm5, %v202_v34 }
 0x1bc   :  { %v178_v22 = vpop.f32.mrb[0].mxu1 }
 0x1bd   :  { %v182_v23 = vmul.f32 0.033333335, %v178_v22  ;;  %v521_v24 = vpop.f32.mrb[1].mxu1 }
 0x1bf   :  { %v184_v25 = vsel %vm183_vm4, %v182_v23, -inf }
 0x1c0   :  { %185 = vmax.xlane.f32.xlu0 %v184_v25 }
 0x24d   :  { %v186_v26 = vpop.xlane.xlu0 %185 }
 0x24e   :  { %v187_v27 = vsub.f32 %v182_v23, %v186_v26 }
 0x250   :  { %v188_v28 = vmul.f32 1.442695, %v187_v27 }
 0x252   :  { %548 = vpow2.f32 %v188_v28 }
 0x25c   :  { %v549_v29 = vpop.eup %548 }
 0x25d   :  { %v190_v30 = vsel %vm183_vm4, %v549_v29, 0.0 }
 0x25e   :  { %191 = vadd.xlane.f32.xlu0 %v190_v30 }
 0x2eb   :  { %v192_v35 = vpop.xlane.xlu0 %191 }
 0x2ec   :  { %550 = vrcp.f32 %v192_v35 }
 0x2f6   :  { %v551_v36 = vpop.eup %550 }
 0x2f7   :  { %v194_v37 = vmul.f32 %v551_v36, %v549_v29 }
 0x2f9   :  { %473 = vmatmul.mubr.msk.f32.vlgmr.msra.gmra.mrb[2].mxu1 %vm203_vm6, %v194_v37 }
 0x2fa   :  { %475 = vmatpush1.msk.msra.mxu1 %vm207_vm5, %v196_v33  ;;  %353 = vmatprep.mubr.f32.mxu1 %v554_v4 }
 0x2fb   :  { %522 = vmatprep.subr.mxu1 %v554_v4 }
 0x2fd   :  { %476 = vmatmul.mubr.msk.f32.vlgmr.msra.gmra.mrb[4].mxu1 %vm203_vm6, %v194_v37 }
 0x2fe   :  { %523 = vmatpush3.msk.msra.mxu1 %vm207_vm5, %v197_v38  ;;  %524 = vmatprep.mubr.msk.f32.mxu1 %vm553_vm0, %v554_v4 }
 0x301   :  { %525 = vmatmul.mubr.msk.f32.vlgmr.msra.gmra.mrb[6].mxu1 %vm203_vm6, %v194_v37 }
 0x3cc   :  { %v284_v42 = vpop.f32.mrb[2].mxu1 }
 0x3cd   :  { %v286_v45 = vpop.f32.mrb[3].mxu1 }
 0x3ce   :  { %v435_v46 = vcombine.low %v284_v42, %v286_v45 }
 0x3d0   :  { %v355_v48 = vpop.f32.mrb[4].mxu1  ;;  %v443_v51 = vrot.slane %v435_v46, %v442_v47 }
 0x3d1   :  { %v357_v49 = vpop.f32.mrb[5].mxu1 }
 0x3d2   :  { %v436_v50 = vcombine.low %v355_v48, %v357_v49 }
 0x3d4   :  { %v450_v52 = vrot.slane %v436_v50, %v442_v47  ;;  %v426_v53 = vpop.f32.mrb[6].mxu1 }
 0x3d5   :  { %v458_v54 = vrot.slane %v426_v53, %v442_v47  ;;  %v526_v55 = vpop.f32.mrb[7].mxu1 }
 0x3d6   :  { %v451_v56 = vcombine.low %v443_v51, %v450_v52 }
 0x3d7   :  { %463 = vst.msk [vmem:[%s651_s4 + $0x8] sm:$0x3] %vm462_vm7, %v458_v54 }
 0x3d8   :  { %461 = vst [vmem:[%s651_s4] sm:$0xff] %v451_v56 }

// kernel: unet_up_origin_forward.8
= control target key start
LH: loop header
LB: loop body
LE: loop exit
PB: predicated region body
PF: predicated region fallthrough
CT: control target
= control target key end

     0   :  { %v438_v0 = vmov 0.0|0.0   ;;  %vm439_vm0 = vmmov 0   ;;  %v440_v4 = vmov 0.0   ;;  %vm22_vm1 = vcmask 261120   ;;  %s501_s1 = inlined_call_operand.vmem [shape: f32[32,9], index: 1, kind: input, shape index: {}]   ;;  %s502_s0 = inlined_call_operand.vmem [shape: f32[2,32], index: 0, kind: input, shape index: {}]   ;;  %s503_s2 = inlined_call_operand.vmem [shape: f32[9,4], index: 2, kind: input, shape index: {}]   ;;  %s504_s3 = inlined_call_operand.vmem [shape: f32[4,288], index: 3, kind: input, shape index: {}]   ;;  %s505_s4 = inlined_call_operand.vmem [shape: f32[2,288], index: 4, kind: output, shape index: {}]  }
   0x1   :  { %418 = vmatprep.subr.bf16.mxu0 %v438_v0  ;;  %v18_v1 = vld [vmem:[%s501_s1] sm:$0xff]  ;;  %v19_v2 = vld [vmem:[%s501_s1 + $0x8] sm:$0xff]  ;;  %v20_v3 = vld [vmem:[%s501_s1 + $0x10] sm:$0xff]  ;;  %403 = vmatprep.mubr.msk.f32.mxu0 %vm439_vm0, %v440_v4  ;;  %vm103_vm2 = vcmask 1040384   ;;  %vm441_vm3 = vmmov 1   ;;  %vm99_vm5 = vcmask 72704   ;;  %v354_v32 = vlaneseq }
   0x2   :  { %v419_v5 = vpack.c.bf16 %v19_v2, %v18_v1  ;;  %v21_v6 = vld [vmem:[%s501_s1 + $0x18] sm:$0xff]  ;;  %424 = vmatprep.subr.bf16.mxu1 %v438_v0  ;;  %410 = vmatprep.mubr.msk.f32.mxu1 %vm439_vm0, %v440_v4  ;;  %v17_v8 = vld [vmem:[%s502_s0] sm:$0x3]  ;;  %v98_v10 = vld [vmem:[%s503_s2 + $0x8] sm:$0x1]  ;;  %vm178_vm6 = vcmask 25600  }
   0x3   :  { %v422_v7 = vpack.c.bf16 %v21_v6, %v20_v3  ;;  %v97_v9 = vld [vmem:[%s503_s2] sm:$0xff]  ;;  %vm426_vm4 = vmpackc.low %vm103_vm2, %vm441_vm3  ;;  %vm199_vm7 = vcmask 1043456   ;;  %v191_v26 = vld [vmem:[%s504_s3 + $0x8] sm:$0xf]  ;;  %vm195_vm8 = vcmask 31744   ;;  %v355_v34 = vshrl.u32 %v354_v32, 7 }
   0x4   :  { %420 = vmatpush3.bf16.msra.mxu0 %v419_v5  ;;  %v425_v11 = vpack.c.bf16 %v98_v10, %v97_v9  ;;  %v190_v24 = vld [vmem:[%s504_s3] sm:$0xff]  ;;  %v442_v30 = vmov 1983009808   ;;  %vm367_vm9 = vcmask 1041408   ;;  %vm368_vm10 = vcmask 1043458  }
   0x5   :  { %421 = vmatprep.subr.bf16.mxu0 %v438_v0  ;;  %v194_v25 = vcombine.high %v190_v24, %v190_v24  ;;  %v352_v31 = vunpack.c.l.s4 %v442_v30  ;;  %vm369_vm11 = vmor %vm368_vm10, %vm367_vm9  ;;  %vm370_vm12 = vcmask 259076  }
   0x6   :  { %427 = vmatpush3.bf16.msk.msra.mxu1 %vm426_vm4, %v425_v11  ;;  %vm371_vm13 = vmor %vm370_vm12, %vm369_vm11 }
   0x7   :  { %380 = vmatprep.subr.msk.mxu1 %vm199_vm7, %v194_v25  ;;  %v353_v33 = vunpack.c.0.s8 %v352_v31 }
   0x8   :  { %423 = vmatpush3.bf16.msra.mxu0 %v422_v7 }
   0x9   :  { %413 = vmatprep.subr.mxu0 %v440_v4  ;;  %v356_v37 = vsub.s32 %v353_v33, %v355_v34 }
   0xb   :  { %404 = vmatmul.mubr.msk.f32.vlgmr.msra.gmra.mrb[0].mxu0 %vm22_vm1, %v17_v8 }
   0xc   :  { %415 = vmatprep.mubr.msk.f32.mxu0 %vm439_vm0, %v440_v4  ;;  %414 = vmatpush3.msk.msra.mxu0 %vm199_vm7, %v191_v26 }
  0xde   :  { %v92_v12 = vpop.f32.mrb[0].mxu0 }
  0xdf   :  { %v96_v13 = vmax.f32 %v92_v12, 0.0  ;;  %v405_v14 = vpop.f32.mrb[1].mxu0 }
  0xe1   :  { %411 = vmatmul.mubr.msk.f32.vlgmr.msra.gmra.mrb[0].mxu1 %vm99_vm5, %v96_v13 }
  0xe2   :  { %270 = vmatprep.mubr.f32.mxu1 %v440_v4  ;;  %381 = vmatpush1.msk.msra.mxu1 %vm199_vm7, %v190_v24 }
 0x1b4   :  { %v173_v15 = vpop.f32.mrb[0].mxu1 }
 0x1b5   :  { %v177_v16 = vmul.f32 0.033333335, %v173_v15  ;;  %v412_v17 = vpop.f32.mrb[1].mxu1 }
 0x1b7   :  { %v179_v18 = vsel %vm178_vm6, %v177_v16, -inf }
 0x1b8   :  { %180 = vmax.xlane.f32.xlu0 %v179_v18 }
 0x245   :  { %v181_v19 = vpop.xlane.xlu0 %180 }
 0x246   :  { %v182_v20 = vsub.f32 %v177_v16, %v181_v19 }
 0x248   :  { %v183_v21 = vmul.f32 1.442695, %v182_v20 }
 0x24a   :  { %434 = vpow2.f32 %v183_v21 }
 0x254   :  { %v435_v22 = vpop.eup %434 }
 0x255   :  { %v185_v23 = vsel %vm178_vm6, %v435_v22, 0.0 }
 0x256   :  { %186 = vadd.xlane.f32.xlu0 %v185_v23 }
 0x2e3   :  { %v187_v27 = vpop.xlane.xlu0 %186 }
 0x2e4   :  { %436 = vrcp.f32 %v187_v27 }
 0x2ee   :  { %v437_v28 = vpop.eup %436 }
 0x2ef   :  { %v189_v29 = vmul.f32 %v437_v28, %v435_v22 }
 0x2f1   :  { %382 = vmatmul.mubr.msk.f32.vlgmr.msra.gmra.mrb[2].mxu1 %vm195_vm8, %v189_v29  ;;  %416 = vmatmul.mubr.msk.f32.vlgmr.msra.gmra.mrb[2].mxu0 %vm195_vm8, %v189_v29 }
 0x3c4   :  { %v272_v35 = vpop.f32.mrb[2].mxu1  ;;  %v343_v36 = vpop.f32.mrb[2].mxu0 }
 0x3c5   :  { %v274_v38 = vpop.f32.mrb[3].mxu1  ;;  %v417_v39 = vpop.f32.mrb[3].mxu0  ;;  %v364_v41 = vrot.slane %v343_v36, %v356_v37 }
 0x3c6   :  { %v350_v40 = vcombine.low %v272_v35, %v274_v38 }
 0x3c8   :  { %v357_v42 = vrot.slane %v350_v40, %v356_v37 }
 0x3ca   :  { %v365_v43 = vcombine.low %v357_v42, %v364_v41 }
 0x3cc   :  { %372 = vst.msk [vmem:[%s505_s4] sm:$0x3f] %vm371_vm13, %v365_v43 }

// kernel: unet_up_origin_forward.5
= control target key start
LH: loop header
LB: loop body
LE: loop exit
PB: predicated region body
PF: predicated region fallthrough
CT: control target
= control target key end

     0   :  { %10 = vsyncpa [#allocation3], 0  ;;  %s4602_s0 = inlined_call_operand.hbm [shape: bf16[2,10,10,64], index: 0, kind: input, shape index: {}]   ;;  %s4603_s1 = inlined_call_operand.hbm [shape: bf16[16,64,32], index: 1, kind: input, shape index: {}]   ;;  %s4604_s2 = inlined_call_operand.hbm [shape: f32[1,32], index: 2, kind: input, shape index: {}]   ;;  %s4605_s3 = inlined_call_operand.hbm [shape: bf16[2,8,2,8,64], index: 3, kind: output, shape index: {0}]   ;;  %s4606_s4 = inlined_call_operand.hbm [shape: f32[2,1,32], index: 4, kind: output, shape index: {1}]  }
   0x1   :  { %12 = vsyncpa [#allocation3 + $0x1], 0 }
   0x2   :  { %13 = vsyncpa [#allocation6], 0 }
   0x3   :  { %14 = vsyncpa [#allocation4], 0 }
   0x4   :  { %16 = vsyncpa [#allocation4 + $0x1], 0 }
   0x5   :  { %17 = vsyncpa [#allocation10], 0 }
   0x6   :  { %19 = vsyncpa [#allocation10 + $0x1], 0  ;;  %s3783_s15 = smov 0   ;;  %s3785_s16 = smov 0  }
   0x7   :  { %s3787_s17 = smov 0   ;;  %s3789_s18 = smov 0  }
   0x8 LB: > { %s3804_s19 = sadd.s32 4294967295, %s3746_s18   ;;  %s2694_s20 = sadd.s32 4294967294, %s3746_s18   ;;  %s3746_s18 = sphi %s3789_s18, %s4630_s18   ;;  %s3742_s17 = sphi %s3787_s17, %s4629_s17   ;;  %s3738_s16 = sphi %s3785_s16, %s4628_s16   ;;  %s3734_s15 = sphi %s3783_s15, %s4627_s15  }
   0x9   : > { %p45_p0 = scmp.ne.s32.totalorder %s3738_s16, %s3734_s15  ;;  %p4607_p1 = scmp.eq.s32.totalorder %s3804_s19, 0 }
   0xa   : > { %p117_p3 = scmp.eq.s32.totalorder %s2694_s20, 1  ;;  %p2695_p5 = scmp.ge.s32.totalorder %s3746_s18, 1 }
   0xb   : > { %p3813_p4 = por %p4607_p1, %p45_p0  ;;  %p150_p7 = scmp.lt.s32.totalorder %s3746_s18, 3 }
   0xc   : > { %p3818_p6 = por %p117_p3, %p45_p0  ;;  %s3748_s24 = smov [#allocation5]  }
   0xd   : > { %s4610_s21 = scalar_select %p3813_p4, 1, 0 }
   0xe   : > { %s4611_s22 = scalar_select %p3818_p6, 1, 0 }
   0xf   : > { %p3823_p8 = pnand %p2695_p5, %p150_p7  ;;  %s162_s25 = sshll.u32 %s3748_s24, 4  ;;  %s3827_s25 = int_to_ptr.vmem [resolvable:$true] %s162_s25 }
  0x10   : > { %s3749_s27 = smov [#allocation7]   ;;  %s3558_s5 = scalar_lea.hbm %s4603_s1, 8192 }
  0x11   : > { %p3422_p9 = pneg %p3823_p8  ;;  %s176_s28 = sshll.u32 %s3749_s27, 4  ;;  %s3838_s28 = int_to_ptr.vmem [resolvable:$true] %s176_s28 }
  0x12   : > { %p3559_p12 = scmp.ne.s32.totalorder %s4603_s1, %s3558_s5  ;;  %p3565_p5 = scmp.lt.u32.totalorder %s3558_s5, %s4603_s1 }
  0x13   : > { %p3834_p11 = pnand %p3422_p9, %p4607_p1 }
  0x15   : > { %p3560_p13 = pneg %p3834_p11 }
  0x17   : > { %p3561_p0 = pnand %p3560_p13, %p3559_p12 }
  0x19   : > { %p3562_p3 = pneg %p3561_p0 }
  0x1b   : > { %p3567_p7 = pnand %p3565_p5, %p3562_p3 }
  0x1d   : > { %3570 = shalt.err (!%p3567_p7)
}
  0x1e   : > { %s3571_s10 = scalar_lea.vmem %s3827_s25, 8192  ;;  %p3579_p2 = scmp.lt.s32.totalorder %s3827_s25, %s3827_s25 }
  0x1f   : > { %p3572_p9 = scmp.ne.s32.totalorder %s3827_s25, %s3571_s10  ;;  %p3580_p12 = scmp.lt.s32.totalorder %s3571_s10, %s3571_s10 }
  0x21   : > { %p3574_p10 = pnand %p3572_p9, %p3560_p13  ;;  %p3581_p0 = por %p3580_p12, %p3579_p2 }
  0x23   : > { %p3575_p1 = pneg %p3574_p10 }
  0x25   : > { %p3582_p6 = pnand %p3581_p0, %p3575_p1 }
  0x27   : > { %3585 = shalt.err (!%p3582_p6)
}
  0x28   : > { %s3750_s11 = smov 64   ;;  %s3751_s12 = smov 4  }
  0x29   : > { %3425 = dma.hbm_to_vmem [thread:$0]  (!%p3834_p11), %s4603_s1, 8192, %s3827_s25, [#allocation6], %s3750_s11, %s3750_s11, %s3751_s12  }
  0x2a   : > { %s3586_s27 = scalar_lea.hbm %s4604_s2, 16 }
  0x2b   : > { %p3587_p1 = scmp.ne.s32.totalorder %s4604_s2, %s3586_s27  ;;  %p3593_p10 = scmp.lt.u32.totalorder %s3586_s27, %s4604_s2 }
  0x2d   : > { %p3589_p2 = pnand %p3587_p1, %p3560_p13 }
  0x2f   : > { %p3590_p6 = pneg %p3589_p2 }
  0x31   : > { %p3595_p3 = pnand %p3593_p10, %p3590_p6 }
  0x33   : > { %3598 = shalt.err (!%p3595_p3)
}
  0x34   : > { %s3599_s25 = scalar_lea.vmem %s3838_s28, 16  ;;  %s3606_s7 = scalar_lea.vmem %s3838_s28, 32 }
  0x35   : > { %p3600_p5 = scmp.ne.s32.totalorder %s3838_s28, %s3599_s25  ;;  %p3607_p12 = scmp.lt.s32.totalorder %s3838_s28, %s3838_s28 }
  0x36   : > { %p3608_p0 = scmp.lt.s32.totalorder %s3606_s7, %s3599_s25 }
  0x37   : > { %p3602_p7 = pnand %p3600_p5, %p3560_p13 }
  0x38   : > { %p3609_p1 = por %p3608_p0, %p3607_p12 }
  0x39   : > { %p3603_p9 = pneg %p3602_p7 }
  0x3b   : > { %p3610_p2 = pnand %p3609_p1, %p3603_p9 }
  0x3d   : > { %3613 = shalt.err (!%p3610_p2)
}
  0x3e   : > { %3428 = dma.hbm_to_vmem [thread:$0]  (!%p3834_p11), %s4604_s2, 16, %s3838_s28, [#allocation6]  }
  0x3f   : > { %s3897_s10 = sadd.s32 1, %s3746_s18   ;;  %s32_s26 = sadd.s32 1, %s3742_s17 }
  0x40   : > { %s29_s13 = ssub.s32 %s3746_s18, %s3897_s10  ;;  %p39_p13 = scmp.ne.s32.totalorder %s3742_s17, %s3738_s16 }
  0x41   : > { %p30_p6 = scmp.eq.s32.totalorder %s29_s13, 0  ;;  %p40_p10 = scmp.eq.s32.totalorder %s3746_s18, 0 }
  0x42   : > { %p4614_p3 = scmp.eq.s32.totalorder %s3804_s19, 1  ;;  %p3442_p7 = scmp.lt.s32.totalorder %s3746_s18, 2 }
  0x43   : > { %s3913_s20 = scalar_select %p30_p6, %s3742_s17, %s32_s26  }
  0x44   : > { %p3907_p5 = por %p4614_p3, %p39_p13  ;;  %p41_p9 = por %p40_p10, %p39_p13 }
  0x45   : > { %s187_s24 = sand.u32 1, %s3742_s17   ;;  %s3406_s28 = smul.u32 1280, %s3746_s18 }
  0x46   : > { %s4615_s14 = scalar_select %p3907_p5, 1, 0 }
  0x47   : > { %s3405_s27 = smul.u32 80, %s187_s24  ;;  %p3917_p11 = pnand %p3442_p7, %p41_p9 }
  0x48   : > { %s3924_s6 = scalar_lea.hbm %s4602_s0, %s3406_s28  ;;  %s3928_s8 = scalar_lea.sflag [#allocation3], %s187_s24 }
  0x49   : > { %s191_s25 = scalar_lea.vmem [#allocation2], %s3405_s27  ;;  %s3614_s9 = scalar_lea.hbm %s3924_s6, 1280 }
  0x4a   : > { %s198_s7 = sshll.u32 %s191_s25, 4  ;;  %p3615_p12 = scmp.ne.s32.totalorder %s3924_s6, %s3614_s9  ;;  %s3926_s7 = int_to_ptr.vmem [resolvable:$true] %s198_s7 }
  0x4b   : > { %p3616_p0 = pneg %p3917_p11  ;;  %s3619_s28 = scalar_lea.hbm %s4602_s0, 2560 }
  0x4c   : > { %p3620_p13 = scmp.lt.u32.totalorder %s3924_s6, %s4602_s0  ;;  %p3621_p6 = scmp.lt.u32.totalorder %s3619_s28, %s3614_s9 }
  0x4d   : > { %p3617_p1 = pnand %p3616_p0, %p3615_p12  ;;  %p3623_p3 = scmp.lt.u32.totalorder %s3614_s9, %s3924_s6 }
  0x4e   : > { %p3622_p10 = por %p3621_p6, %p3620_p13 }
  0x4f   : > { %p3618_p2 = pneg %p3617_p1 }
  0x50   : > { %p3624_p7 = por %p3623_p3, %p3622_p10 }
  0x52   : > { %p3625_p9 = pnand %p3624_p7, %p3618_p2 }
  0x54   : > { %3628 = shalt.err (!%p3625_p9)
}
  0x55   : > { %s3629_s24 = scalar_lea.vmem %s3926_s7, 1280  ;;  %s3752_s27 = smov [#allocation2]  }
  0x56   : > { %p3630_p12 = scmp.ne.s32.totalorder %s3926_s7, %s3629_s24  ;;  %s3634_s25 = sshll.u32 %s3752_s27, 4  ;;  %s3635_s25 = int_to_ptr.vmem [resolvable:$false] %s3634_s25 }
  0x57   : > { %s3636_s26 = scalar_lea.vmem %s3635_s25, 2560  ;;  %p3637_p4 = scmp.lt.s32.totalorder %s3926_s7, %s3635_s25 }
  0x58   : > { %p3632_p1 = pnand %p3630_p12, %p3616_p0  ;;  %p3638_p13 = scmp.lt.s32.totalorder %s3636_s26, %s3629_s24 }
  0x5a   : > { %p3633_p5 = pneg %p3632_p1  ;;  %p3639_p6 = por %p3638_p13, %p3637_p4 }
  0x5c   : > { %p3640_p10 = pnand %p3639_p6, %p3633_p5 }
  0x5e   : > { %3643 = shalt.err (!%p3640_p10)
}
  0x5f   : > { %3432 = dma.hbm_to_vmem [thread:$0]  (!%p3917_p11), %s3924_s6, 1280, %s3926_s7, %s3928_s8, %s3750_s11, %s3750_s11, %s3751_s12  }
  0x60   : > { %210 = sbr.rel (%p3823_p8) target bundleno = 607 (0x25f), region = 32  ;;  %s3962_s9 = sand.u32 (!%p3823_p8), 1, %s3738_s16  }
  0x61   : > { %s3407_s13 = smul.u32 (!%p3823_p8), 80, %s3962_s9  ;;  %s213_s28 = scalar_lea.sflag (!%p3823_p8), [#allocation3], %s3962_s9 }
  0x62   : > { %p4617_p4 = scmp.ne.s32.totalorder (!%p3823_p8), %s4610_s21, 0 }
  0x63   : > { %s3966_s30 = scalar_lea.vmem (!%p3823_p8), [#allocation2], %s3407_s13 }
  0x67   : > { %3717 = dma.done.wait (%p4617_p4), %s213_s28, 1280  }
  0x68   : > { %3719 = vsyncadd (%p4617_p4), %s213_s28, 4294966016  ;;  %p4618_p5 = scmp.eq.s32.totalorder %s3804_s19, 0 }
  0x6a   : > { %3721 = dma.done.wait (%p4618_p5), [#allocation6], 8208   ;;  %p4619_p8 = pmov %p4618_p5 }
  0x6b   : > { %v3485_v0 = vld [vmem:[#allocation5 + $0x20] sm:$0xff]   ;;  %v3487_v2 = vld [vmem:[#allocation5 + $0x28] sm:$0xff]   ;;  %v3489_v4 = vld [vmem:[#allocation5 + $0x30] sm:$0xff]   ;;  %vm274_vm0 = vsmask.f32 3328  ;;  %vm437_vm2 = vcmask 1042432  }
  0x6c   : > { %3723 = vsyncadd (%p4619_p8), [#allocation6], 4294959088  ;;  %v3486_v1 = vld [vmem:[#allocation5 + $0xa0] sm:$0xff]   ;;  %3053 = vmatprep.subr.bf16.mxu0 %v3485_v0  ;;  %v3488_v3 = vld [vmem:[#allocation5 + $0xa8] sm:$0xff]   ;;  %vm275_vm1 = vsmask.f32 7440 }
  0x6d   : > { %3117 = vmatprep.subr.bf16.mxu1 %v3486_v1  ;;  %3054 = vmatpush3.bf16.msra.mxu0 %v3485_v0  ;;  %v3490_v5 = vld [vmem:[#allocation5 + $0xb0] sm:$0xff]   ;;  %v3491_v6 = vld [vmem:[#allocation5 + $0x38] sm:$0xff]   ;;  %vm438_vm3 = vcmask 1046532   ;;  %v4014_v34 = vld [vmem:[#allocation5] sm:$0xff]   ;;  %vm534_vm6 = vcmask 523264   ;;  %s2703_s21 = sshll.u32 %s3962_s9, 6 }
  0x6e   : > { %3118 = vmatpush3.bf16.msra.mxu1 %v3486_v1  ;;  %3055 = vmatprep.subr.bf16.mxu0 %v3487_v2  ;;  %v3977_v7 = vld [vmem:[%s3966_s30] sm:$0xf]  ;;  %v3980_v8 = vld [vmem:[%s3966_s30 + $0x4] sm:$0x1]  ;;  %v3983_v9 = vld [vmem:[%s3966_s30 + $0x8] sm:$0xf] }
  0x6f   : > { %3119 = vmatprep.subr.bf16.mxu1 %v3488_v3  ;;  %v3492_v10 = vld [vmem:[#allocation5 + $0xb8] sm:$0xff]   ;;  %v3989_v12 = vld [vmem:[%s3966_s30 + $0x10] sm:$0xf]  ;;  %v3992_v13 = vld [vmem:[%s3966_s30 + $0x14] sm:$0x1]  ;;  %v278_v17 = vshrl.u32 %v3977_v7, 16 }
  0x70   : > { %v3986_v11 = vld [vmem:[%s3966_s30 + $0xc] sm:$0x1]  ;;  %v3995_v14 = vld [vmem:[%s3966_s30 + $0x18] sm:$0xf]  ;;  %v3998_v15 = vld [vmem:[%s3966_s30 + $0x1c] sm:$0x1] }
  0x71   : > { %3056 = vmatpush3.bf16.msra.mxu0 %v3487_v2  ;;  %v4001_v16 = vld [vmem:[%s3966_s30 + $0x20] sm:$0xf]  ;;  %v281_v18 = vshll.u32 %v3977_v7, 16  ;;  %v287_v19 = vshll.u32 %v3980_v8, 16  ;;  %v292_v20 = vshrl.u32 %v3983_v9, 16  ;;  %v295_v21 = vshll.u32 %v3983_v9, 16  ;;  %vm4023_vm4 = vmor %vm274_vm0, %vm275_vm1 }
  0x72   : > { %3120 = vmatpush3.bf16.msra.mxu1 %v3488_v3  ;;  %3057 = vmatprep.subr.bf16.mxu0 %v3489_v4  ;;  %v301_v22 = vshll.u32 %v3986_v11, 16  ;;  %v306_v23 = vshrl.u32 %v3989_v12, 16  ;;  %v309_v24 = vshll.u32 %v3989_v12, 16  ;;  %v280_v25 = vrot.slane %v278_v17, 4  ;;  %v4012_v29 = vld [vmem:[%s3966_s30 + $0x24] sm:$0x1]  ;;  %vm4037_vm5 = vmor %vm437_vm2, %vm438_vm3 }
  0x73   : > { %3121 = vmatprep.subr.bf16.mxu1 %v3490_v5  ;;  %v283_v26 = vrot.slane %v281_v18, 5  ;;  %v289_v27 = vrot.slane %v287_v19, 5  ;;  %v294_v28 = vrot.slane %v292_v20, 4  ;;  %v297_v30 = vrot.slane %v295_v21, 5  ;;  %v4016_v35 = vld [vmem:[#allocation5 + $0x80] sm:$0xff]   ;;  %v3532_v57 = vld [vmem:[#allocation5 + $0x1b8] sm:$0xff]  }
  0x74   : > { %v303_v31 = vrot.slane %v301_v22, 5  ;;  %v308_v32 = vrot.slane %v306_v23, 4  ;;  %v311_v33 = vrot.slane %v309_v24, 5  ;;  %v315_v37 = vshll.u32 %v3992_v13, 16  ;;  %v265_v19 = vld [vmem:[%s3966_s30 + $0x2c] sm:$0x1] }
  0x75   : > { %3058 = vmatpush3.bf16.msra.mxu0 %v3489_v4  ;;  %v284_v36 = vor.u32 %v283_v26, %v280_v25  ;;  %v320_v38 = vshrl.u32 %v3995_v14, 16  ;;  %v323_v39 = vshll.u32 %v3995_v14, 16  ;;  %v298_v41 = vor.u32 %v297_v30, %v294_v28  ;;  %v4081_v23 = vld [vmem:[%s3966_s30 + $0x30] sm:$0xf]  ;;  %v4091_v28 = vld [vmem:[%s3966_s30 + $0x38] sm:$0xf] }
  0x76   : > { %3122 = vmatpush3.bf16.msra.mxu1 %v3490_v5  ;;  %3059 = vmatprep.subr.bf16.mxu0 %v3491_v6  ;;  %v312_v42 = vor.u32 %v311_v33, %v308_v32  ;;  %v329_v43 = vshll.u32 %v3998_v15, 16  ;;  %v334_v44 = vshrl.u32 %v4001_v16, 16  ;;  %v317_v46 = vrot.slane %v315_v37, 5  ;;  %v3495_v5 = vld [vmem:[#allocation5 + $0x8] sm:$0xff]   ;;  %v3557_v40 = vld [vmem:[#allocation5 + $0x1f8] sm:$0xff]   ;;  %s3753_s23 = smov 32  }
  0x77   : > { %3123 = vmatprep.subr.bf16.mxu1 %v3492_v10  ;;  %v285_v45 = vrot.slane %v284_v36, 4  ;;  %v322_v47 = vrot.slane %v320_v38, 4  ;;  %v325_v48 = vrot.slane %v323_v39, 5  ;;  %v299_v49 = vrot.slane %v298_v41, 4  ;;  %v3497_v36 = vld [vmem:[#allocation5 + $0x10] sm:$0xff]   ;;  %s4385_s11 = scalar_lea.vmem [#allocation8], %s2703_s21 }
  0x78   : > { %v313_v50 = vrot.slane %v312_v42, 4  ;;  %v331_v51 = vrot.slane %v329_v43, 5  ;;  %v336_v52 = vrot.slane %v334_v44, 4  ;;  %v337_v55 = vshll.u32 %v4001_v16, 16  ;;  %v269_v42 = vld [vmem:[%s3966_s30 + $0x3c] sm:$0x1] }
  0x79   : > { %3060 = vmatpush3.bf16.msra.mxu0 %v3491_v6  ;;  %v290_v53 = vsel %vm4023_vm4, %v285_v45, %v289_v27  ;;  %v326_v54 = vor.u32 %v325_v48, %v322_v47  ;;  %v343_v56 = vshll.u32 %v4012_v29, 16  ;;  %v4043_v58 = vsel %vm4023_vm4, %v299_v49, %v303_v31  ;;  %v4059_v6 = vld [vmem:[%s3966_s30 + $0x28] sm:$0xf]  ;;  %v267_v27 = vld [vmem:[%s3966_s30 + $0x34] sm:$0x1]  ;;  %s2905_s12 = sshll.u32 %s3804_s19, 4 }
  0x7a   : > { %3124 = vmatpush3.bf16.msra.mxu1 %v3492_v10  ;;  %3069 = vmatprep.subr.bf16.mxu0 %v4014_v34  ;;  %v2704_v59 = vrot.slane %v3977_v7, 9  ;;  %v442_v60 = vrot.slane %v3980_v8, 5  ;;  %v4049_v61 = vsel %vm4023_vm4, %v313_v50, %v317_v46  ;;  %v339_v63 = vrot.slane %v337_v55, 5  ;;  %v3496_v31 = vld [vmem:[#allocation5 + $0x88] sm:$0xff]   ;;  %s252_s29 = scalar_lea.vmem [#allocation9], %s3962_s9  ;;  %s4493_s5 = scalar_lea.hbm %s4606_s4, %s2905_s12 }
  0x7b   : > { %3133 = vmatprep.subr.bf16.mxu1 %v4016_v35  ;;  %v327_v62 = vrot.slane %v326_v54, 4  ;;  %v4052_v0 = vcombine.low %v290_v53, %v4043_v58  ;;  %v345_v1 = vrot.slane %v343_v56, 5  ;;  %v2705_v3 = vrot.slane %v3983_v9, 9  ;;  %v3498_v54 = vld [vmem:[#allocation5 + $0x90] sm:$0xff]   ;;  %s2577_s6 = sshll.u32 %s252_s29, 4  ;;  %s2549_s24 = scalar_lea.sflag [#allocation10], %s3962_s9  ;;  %s4495_s6 = int_to_ptr.vmem [resolvable:$true] %s2577_s6 }
  0x7c   : > { %v443_v2 = vsel %vm4037_vm5, %v2704_v59, %v442_v60  ;;  %v446_v4 = vrot.slane %v3986_v11, 5  ;;  %v340_v10 = vor.u32 %v339_v63, %v336_v52  ;;  %v2706_v17 = vrot.slane %v3989_v12, 9  ;;  %v3499_v60 = vld [vmem:[#allocation5 + $0x18] sm:$0xff]   ;;  %s3644_s27 = scalar_lea.vmem %s4495_s6, 16  ;;  %p4624_p0 = scmp.ne.s32.totalorder %s4615_s14, 0 }
  0x7d   : > { %v4063_v8 = vsel %vm4023_vm4, %v327_v62, %v331_v51  ;;  %3061 = vmatprep.mubr.msk.bf16.mxu0 %vm534_vm6, %v4052_v0  ;;  %v450_v18 = vrot.slane %v3992_v13, 5  ;;  %v2707_v21 = vrot.slane %v3995_v14, 9  ;;  %v454_v22 = vrot.slane %v3998_v15, 5  ;;  %p3645_p11 = scmp.ne.s32.totalorder %s4495_s6, %s3644_s27  ;;  %s3754_s25 = smov [#allocation9]  }
  0x7e   : > { %v4072_v11 = vcombine.low %v4049_v61, %v4063_v8  ;;  %v4076_v20 = vsel %vm4037_vm5, %v2705_v3, %v446_v4  ;;  %v341_v24 = vrot.slane %v340_v10, 4  ;;  %v2708_v13 = vrot.slane %v4001_v16, 9  ;;  %s3648_s26 = sshll.u32 %s3754_s25, 4  ;;  %s3649_s26 = int_to_ptr.vmem [resolvable:$false] %s3648_s26 }
  0x7f   : > { %v4085_v25 = vsel %vm4037_vm5, %v2706_v17, %v450_v18  ;;  %v458_v26 = vrot.slane %v4012_v29, 5  ;;  %v4095_v30 = vsel %vm4037_vm5, %v2707_v21, %v454_v22  ;;  %v2763_v15 = vcombine.low %v443_v2, %v4076_v20  ;;  %v3500_v21 = vld [vmem:[#allocation5 + $0x98] sm:$0xff]   ;;  %p3646_p2 = pnand %p3645_p11, %p4624_p0  ;;  %s3650_s13 = scalar_lea.vmem %s3649_s26, 32 }
  0x80   : > { %3062 = vmatmul.mubr.msk.bf16.vlgmr.msra.gmra.mrb[0].mxu0 %vm534_vm6, %v4072_v11  ;;  %v348_v32 = vshrl.u32 %v4059_v6, 16  ;;  %v4103_v33 = vcombine.low %v4085_v25, %v4095_v30  ;;  %v351_v29 = vshll.u32 %v4059_v6, 16  ;;  %v4109_v37 = vsel %vm4023_vm4, %v341_v24, %v345_v1  ;;  %p3651_p7 = scmp.lt.s32.totalorder %s4495_s6, %s3649_s26  ;;  %p3652_p9 = scmp.lt.s32.totalorder %s3650_s13, %s3644_s27 }
  0x81   : > { %3070 = vmatpush3.bf16.msra.mxu0 %v4014_v34  ;;  %v4113_v38 = vsel %vm4037_vm5, %v2708_v13, %v458_v26  ;;  %3125 = vmatprep.mubr.msk.bf16.mxu1 %vm534_vm6, %v2763_v15  ;;  %v357_v41 = vshll.u32 %v265_v19, 16  ;;  %v2709_v43 = vrot.slane %v4059_v6, 9  ;;  %v462_v44 = vrot.slane %v265_v19, 5  ;;  %p3647_p3 = pneg %p3646_p2 }
  0x82   : > { %3071 = vmatprep.subr.bf16.mxu0 %v3495_v5  ;;  %v350_v39 = vrot.slane %v348_v32, 4  ;;  %3126 = vmatmul.mubr.msk.bf16.vlgmr.msra.gmra.mrb[0].mxu1 %vm534_vm6, %v4103_v33  ;;  %v353_v34 = vrot.slane %v351_v29, 5  ;;  %v362_v45 = vshrl.u32 %v4081_v23, 16  ;;  %v365_v47 = vshll.u32 %v4081_v23, 16  ;;  %p3653_p12 = por %p3652_p9, %p3651_p7 }
  0x83   : > { %3134 = vmatpush3.bf16.msra.mxu1 %v4016_v35  ;;  %v359_v46 = vrot.slane %v357_v41, 5  ;;  %v371_v48 = vshll.u32 %v267_v27, 16  ;;  %v376_v49 = vshrl.u32 %v4091_v28, 16  ;;  %v4126_v51 = vsel %vm4037_vm5, %v2709_v43, %v462_v44  ;;  %v3505_v43 = vld [vmem:[#allocation5 + $0x48] sm:$0xff]  }
  0x84   : > { %3135 = vmatprep.subr.bf16.mxu1 %v3496_v31  ;;  %v354_v50 = vor.u32 %v353_v34, %v350_v39  ;;  %v364_v52 = vrot.slane %v362_v45, 4  ;;  %v379_v53 = vshll.u32 %v4091_v28, 16  ;;  %v4131_v35 = vcombine.low %v4113_v38, %v4126_v51  ;;  %v3504_v39 = vld [vmem:[#allocation5 + $0xc0] sm:$0xff]   ;;  %p3654_p1 = pnand %p3653_p12, %p3647_p3 }
  0x85   : > { %3072 = vmatpush3.bf16.msra.mxu0 %v3495_v5  ;;  %v367_v55 = vrot.slane %v365_v47, 5  ;;  %v373_v56 = vrot.slane %v371_v48, 5  ;;  %v378_v59 = vrot.slane %v376_v49, 4  ;;  %v385_v1 = vshll.u32 %v269_v42, 16  ;;  %v4178_v34 = vld [vmem:[%s3966_s30 + $0x40] sm:$0xf] }
  0x86   : > { %3073 = vmatprep.subr.bf16.mxu0 %v3497_v36  ;;  %v355_v62 = vrot.slane %v354_v50, 4  ;;  %v381_v63 = vrot.slane %v379_v53, 5  ;;  %v2710_v2 = vrot.slane %v4081_v23, 9  ;;  %3129 = vmatprep.mubr.msk.bf16.mxu1 %vm534_vm6, %v4131_v35  ;;  %v466_v4 = vrot.slane %v267_v27, 5  ;;  %v3509_v47 = vld [vmem:[#allocation5 + $0x50] sm:$0xff]   ;;  %v3512_v48 = vld [vmem:[#allocation5 + $0xd8] sm:$0xff]  }
  0x87   : > { %3136 = vmatpush3.bf16.msra.mxu1 %v3496_v31  ;;  %v368_v3 = vor.u32 %v367_v55, %v364_v52  ;;  %v2711_v5 = vrot.slane %v4091_v28, 9  ;;  %v470_v10 = vrot.slane %v269_v42, 5  ;;  %v387_v19 = vrot.slane %v385_v1, 5  ;;  %v3503_v31 = vld [vmem:[#allocation5 + $0x40] sm:$0xff]   ;;  %v3506_v42 = vld [vmem:[#allocation5 + $0xc8] sm:$0xff]  }
  0x88   : > { %v4139_v17 = vsel %vm4023_vm4, %v355_v62, %v359_v46  ;;  %v382_v18 = vor.u32 %v381_v63, %v378_v59  ;;  %3137 = vmatprep.subr.bf16.mxu1 %v3498_v54  ;;  %v4147_v13 = vsel %vm4037_vm5, %v2710_v2, %v466_v4  ;;  %v390_v44 = vshrl.u32 %v4178_v34, 16  ;;  %v3510_v46 = vld [vmem:[#allocation5 + $0xd0] sm:$0xff]   ;;  %v3516_v59 = vld [vmem:[#allocation5 + $0xe0] sm:$0xff]   ;;  %v3518_v63 = vld [vmem:[#allocation5 + $0xe8] sm:$0xff]  }
  0x89   : > { %3074 = vmatpush3.bf16.msra.mxu0 %v3497_v36  ;;  %v4143_v22 = vcombine.low %v4109_v37, %v4139_v17  ;;  %v369_v24 = vrot.slane %v368_v3, 4  ;;  %v4151_v26 = vsel %vm4037_vm5, %v2711_v5, %v470_v10  ;;  %v2726_v36 = vcombine.low %v3977_v7, %v3983_v9  ;;  %v4203_v53 = vld [vmem:[%s3966_s30 + $0x44] sm:$0x1]  ;;  %v3524_v4 = vld [vmem:[#allocation5 + $0xf8] sm:$0xff]  }
  0x8a   : > { %3075 = vmatprep.subr.bf16.mxu0 %v3499_v60  ;;  %v383_v27 = vrot.slane %v382_v18, 4  ;;  %v4155_v15 = vcombine.low %v4147_v13, %v4151_v26  ;;  %v4182_v7 = vcombine.low %v3989_v12, %v3995_v14  ;;  %v393_v45 = vshll.u32 %v4178_v34, 16  ;;  %v3523_v10 = vld [vmem:[#allocation5 + $0x78] sm:$0xff]  }
  0x8b   : > { %3065 = vmatprep.mubr.msk.bf16.mxu0 %vm534_vm6, %v4143_v22  ;;  %v374_v32 = vsel %vm4023_vm4, %v369_v24, %v373_v56  ;;  %3138 = vmatpush3.bf16.msra.mxu1 %v3498_v54  ;;  %v392_v49 = vrot.slane %v390_v44, 4  ;;  %v4200_v52 = vcombine.low %v4043_v58, %v4049_v61  ;;  %v4207_v54 = vcombine.low %v4081_v23, %v4091_v28  ;;  %v3511_v56 = vld [vmem:[#allocation5 + $0x58] sm:$0xff]   ;;  %v3536_v44 = vld [vmem:[#allocation5 + $0x188] sm:$0xff]  }
  0x8c   : > { %v4163_v29 = vsel %vm4023_vm4, %v383_v27, %v387_v19  ;;  %3130 = vmatmul.mubr.msk.bf16.gmra.mrb[4].mxu1 %vm534_vm6, %v4155_v15  ;;  %3139 = vmatprep.subr.bf16.mxu1 %v3500_v21  ;;  %v395_v50 = vrot.slane %v393_v45, 5  ;;  %v4213_v55 = vcombine.low %v3983_v9, %v3989_v12  ;;  %v399_v61 = vshll.u32 %v4203_v53, 16  ;;  %v3515_v9 = vld [vmem:[#allocation5 + $0x60] sm:$0xff]   ;;  %v4271_v19 = vld [vmem:[%s3966_s30 + $0x48] sm:$0xf] }
  0x8d   : > { %v4170_v41 = vcombine.low %v374_v32, %v4163_v29  ;;  %3076 = vmatpush3.bf16.msra.mxu0 %v3499_v60  ;;  %3141 = vmatprep.mubr.msk.bf16.mxu1 %vm534_vm6, %v4052_v0  ;;  %v4188_v0 = vcombine.low %v4001_v16, %v4059_v6  ;;  %v4222_v60 = vcombine.low %v4063_v8, %v4109_v37  ;;  %v3517_v37 = vld [vmem:[#allocation5 + $0x68] sm:$0xff]   ;;  %v474_v18 = vrot.slane %v4203_v53, 5  ;;  %v3541_v53 = vld [vmem:[#allocation5 + $0x140] sm:$0xff]  }
  0x8e   : > { %3085 = vmatprep.subr.bf16.mxu0 %v3503_v31  ;;  %v396_v58 = vor.u32 %v395_v50, %v392_v49  ;;  %v401_v62 = vrot.slane %v399_v61, 5  ;;  %v4227_v1 = vcombine.low %v4139_v17, %v374_v32  ;;  %v4231_v2 = vcombine.low %v3995_v14, %v4001_v16  ;;  %v3522_v14 = vld [vmem:[#allocation5 + $0xf0] sm:$0xff]   ;;  %v3526_v17 = vld [vmem:[#allocation5 + $0x1a0] sm:$0xff]   ;;  %v3535_v45 = vld [vmem:[#allocation5 + $0x108] sm:$0xff]  }
  0x8f   : > { %3066 = vmatmul.mubr.msk.bf16.gmra.mrb[4].mxu0 %vm534_vm6, %v4170_v41  ;;  %3140 = vmatpush3.bf16.msra.mxu1 %v3500_v21  ;;  %v4237_v8 = vcombine.low %v4059_v6, %v4081_v23  ;;  %v3521_v6 = vld [vmem:[#allocation5 + $0x70] sm:$0xff]   ;;  %v2791_v23 = vcombine.low %v4076_v20, %v4085_v25  ;;  %v4257_v5 = vcombine.low %v4091_v28, %v4178_v34  ;;  %v3525_v25 = vld [vmem:[#allocation5 + $0x120] sm:$0xff]   ;;  %v2712_v28 = vrot.slane %v4178_v34, 9  ;;  %v3528_v21 = vld [vmem:[#allocation5 + $0x1a8] sm:$0xff]  }
  0x90   : > { %3077 = vmatprep.mubr.msk.bf16.mxu0 %vm534_vm6, %v2726_v36  ;;  %3149 = vmatprep.subr.bf16.mxu1 %v3504_v39  ;;  %v397_v12 = vrot.slane %v396_v58, 4  ;;  %v2792_v20 = vcombine.low %v4095_v30, %v4113_v38  ;;  %v2793_v24 = vcombine.low %v4126_v51, %v4147_v13  ;;  %v2713_v30 = vrot.slane %v4271_v19, 9  ;;  %v4277_v38 = vld [vmem:[%s3966_s30 + $0x4c] sm:$0x1]  ;;  %v3530_v51 = vld [vmem:[#allocation5 + $0x1b0] sm:$0xff]   ;;  %v3542_v50 = vld [vmem:[#allocation5 + $0x1c0] sm:$0xff]  }
  0x91   : > { %v478_v27 = vrot.slane %v4277_v38, 5  ;;  %v4283_v32 = vsel %vm4037_vm5, %v2712_v28, %v474_v18  ;;  %v3539_v49 = vld [vmem:[#allocation5 + $0x118] sm:$0xff]   ;;  %v404_v58 = vshrl.u32 %v4271_v19, 16  ;;  %v407_v61 = vshll.u32 %v4271_v19, 16 }
  0x92   : > { %v4241_v3 = vsel %vm4023_vm4, %v397_v12, %v401_v62  ;;  %v2794_v36 = vcombine.low %v4151_v26, %v4283_v32  ;;  %v3533_v26 = vld [vmem:[#allocation5 + $0x100] sm:$0xff]   ;;  %v3548_v12 = vld [vmem:[#allocation5 + $0x1d8] sm:$0xff]   ;;  %vm985_vm7 = vcmask 261120   ;;  %vm1016_vm8 = vcmask 257024  }
  0x93   : > { %v4251_v16 = vcombine.low %v4163_v29, %v4241_v3  ;;  %v4288_v13 = vsel %vm4037_vm5, %v2713_v30, %v478_v27  ;;  %v3547_v62 = vld [vmem:[#allocation5 + $0x158] sm:$0xff]   ;;  %vm2541_vm9 = vcmask 253952  }
  0x94   : > { %3142 = vmatmul.mubr.msk.bf16.vlgmr.msra.gmra.mrb[0].mxu1 %vm534_vm6, %v4072_v11  ;;  %v2877_v29 = vcombine.low %v4283_v32, %v4288_v13 }
  0x95   : > { %3150 = vmatpush3.bf16.msra.mxu1 %v3504_v39  ;;  %3145 = vmatprep.mubr.msk.bf16.mxu1 %vm534_vm6, %v4143_v22  ;;  %v3529_v39 = vld [vmem:[#allocation5 + $0x130] sm:$0xff]  }
  0x96   : > { %3151 = vmatprep.subr.bf16.mxu1 %v3506_v42 }
  0x97   : > { %3078 = vmatmul.mubr.msk.bf16.vlgmr.msra.gmra.mrb[0].mxu0 %vm534_vm6, %v4182_v7 }
  0x98   : > { %3086 = vmatpush3.bf16.msra.mxu0 %v3503_v31  ;;  %3081 = vmatprep.mubr.msk.bf16.mxu0 %vm534_vm6, %v4188_v0  ;;  %v3527_v31 = vld [vmem:[#allocation5 + $0x128] sm:$0xff]  }
  0x99   : > { %3087 = vmatprep.subr.bf16.mxu0 %v3505_v43  ;;  %3152 = vmatpush3.bf16.msra.mxu1 %v3506_v42  ;;  %v3531_v42 = vld [vmem:[#allocation5 + $0x138] sm:$0xff]  }
  0x9a   : > { %3153 = vmatprep.subr.bf16.mxu1 %v3510_v46 }
  0x9c   : > { %3088 = vmatpush3.bf16.msra.mxu0 %v3505_v43  ;;  %3146 = vmatmul.mubr.msk.bf16.gmra.mrb[4].mxu1 %vm534_vm6, %v4170_v41  ;;  %v3534_v43 = vld [vmem:[#allocation5 + $0x180] sm:$0xff]  }
  0x9d   : > { %3089 = vmatprep.subr.bf16.mxu0 %v3509_v47  ;;  %3154 = vmatpush3.bf16.msra.mxu1 %v3510_v46  ;;  %v3538_v46 = vld [vmem:[#allocation5 + $0x190] sm:$0xff]  }
  0x9e   : > { %3155 = vmatprep.subr.bf16.mxu1 %v3512_v48  ;;  %3157 = vmatprep.mubr.msk.bf16.mxu1 %vm534_vm6, %v4200_v52 }
  0x9f   : > { %3082 = vmatmul.mubr.msk.bf16.gmra.mrb[4].mxu0 %vm534_vm6, %v4207_v54 }
  0xa0   : > { %3090 = vmatpush3.bf16.msra.mxu0 %v3509_v47  ;;  %3093 = vmatprep.mubr.msk.bf16.mxu0 %vm534_vm6, %v4213_v55  ;;  %v3537_v47 = vld [vmem:[#allocation5 + $0x110] sm:$0xff]  }
  0xa1   : > { %3091 = vmatprep.subr.bf16.mxu0 %v3511_v56  ;;  %3156 = vmatpush3.bf16.msra.mxu1 %v3512_v48  ;;  %v3540_v48 = vld [vmem:[#allocation5 + $0x198] sm:$0xff]  }
  0xa2   : > { %3165 = vmatprep.subr.bf16.mxu1 %v3516_v59 }
  0xa4   : > { %3092 = vmatpush3.bf16.msra.mxu0 %v3511_v56  ;;  %3158 = vmatmul.mubr.msk.bf16.vlgmr.msra.gmra.mrb[0].mxu1 %vm534_vm6, %v4222_v60  ;;  %v3544_v56 = vld [vmem:[#allocation5 + $0x1c8] sm:$0xff]  }
  0xa5   : > { %3101 = vmatprep.subr.bf16.mxu0 %v3515_v9  ;;  %3166 = vmatpush3.bf16.msra.mxu1 %v3516_v59  ;;  %v3545_v59 = vld [vmem:[#allocation5 + $0x150] sm:$0xff]  }
  0xa6   : > { %3167 = vmatprep.subr.bf16.mxu1 %v3518_v63  ;;  %3161 = vmatprep.mubr.msk.bf16.mxu1 %vm534_vm6, %v4227_v1 }
  0xa7   : > { %3094 = vmatmul.mubr.msk.bf16.vlgmr.msra.gmra.mrb[0].mxu0 %vm534_vm6, %v4231_v2 }
  0xa8   : > { %3102 = vmatpush3.bf16.msra.mxu0 %v3515_v9  ;;  %3097 = vmatprep.mubr.msk.bf16.mxu0 %vm534_vm6, %v4237_v8  ;;  %v409_v9 = vrot.slane %v407_v61, 5 }
  0xa9   : > { %3103 = vmatprep.subr.bf16.mxu0 %v3517_v37  ;;  %3168 = vmatpush3.bf16.msra.mxu1 %v3518_v63 }
  0xaa   : > { %3169 = vmatprep.subr.bf16.mxu1 %v3522_v14 }
  0xac   : > { %3104 = vmatpush3.bf16.msra.mxu0 %v3517_v37  ;;  %3162 = vmatmul.mubr.msk.bf16.gmra.mrb[4].mxu1 %vm534_vm6, %v4251_v16 }
  0xad   : > { %3105 = vmatprep.subr.bf16.mxu0 %v3521_v6  ;;  %3170 = vmatpush3.bf16.msra.mxu1 %v3522_v14 }
  0xae   : > { %3171 = vmatprep.subr.bf16.mxu1 %v3524_v4  ;;  %3173 = vmatprep.mubr.msk.bf16.mxu1 %vm534_vm6, %v2791_v23 }
  0xaf   : > { %3098 = vmatmul.mubr.msk.bf16.gmra.mrb[4].mxu0 %vm534_vm6, %v4257_v5 }
  0xb0   : > { %3106 = vmatpush3.bf16.msra.mxu0 %v3521_v6  ;;  %3109 = vmatprep.mubr.msk.bf16.mxu0 %vm534_vm6, %v4200_v52  ;;  %v3551_v6 = vld [vmem:[#allocation5 + $0x168] sm:$0xff]  }
  0xb1   : > { %3107 = vmatprep.subr.bf16.mxu0 %v3523_v10  ;;  %3172 = vmatpush3.bf16.msra.mxu1 %v3524_v4 }
  0xb2   : > { %3245 = vmatprep.subr.bf16.mxu1 %v3526_v17 }
  0xb4   : > { %3108 = vmatpush3.bf16.msra.mxu0 %v3523_v10  ;;  %3174 = vmatmul.mubr.msk.bf16.vlgmr.msra.gmra.mrb[0].mxu1 %vm534_vm6, %v2792_v20  ;;  %v2827_v10 = vcombine.low %v4178_v34, %v4271_v19 }
  0xb5   : > { %3181 = vmatprep.subr.bf16.mxu0 %v3525_v25  ;;  %3246 = vmatpush3.bf16.msra.mxu1 %v3526_v17 }
  0xb6   : > { %3247 = vmatprep.subr.bf16.mxu1 %v3528_v21  ;;  %3177 = vmatprep.mubr.msk.bf16.mxu1 %vm534_vm6, %v2793_v24 }
  0xb7   : > { %3110 = vmatmul.mubr.msk.bf16.vlgmr.msra.gmra.mrb[0].mxu0 %vm534_vm6, %v4222_v60 }
  0xb8   : > { %3182 = vmatpush3.bf16.msra.mxu0 %v3525_v25  ;;  %3113 = vmatprep.mubr.msk.bf16.mxu0 %vm534_vm6, %v4227_v1 }
  0xb9   : > { %3183 = vmatprep.subr.bf16.mxu0 %v3527_v31  ;;  %3248 = vmatpush3.bf16.msra.mxu1 %v3528_v21 }
  0xba   : > { %3249 = vmatprep.subr.bf16.mxu1 %v3530_v51 }
  0xbc   : > { %3184 = vmatpush3.bf16.msra.mxu0 %v3527_v31  ;;  %3178 = vmatmul.mubr.msk.bf16.gmra.mrb[4].mxu1 %vm534_vm6, %v2794_v36 }
  0xbd   : > { %3185 = vmatprep.subr.bf16.mxu0 %v3529_v39  ;;  %3250 = vmatpush3.bf16.msra.mxu1 %v3530_v51 }
  0xbe   : > { %3251 = vmatprep.subr.bf16.mxu1 %v3532_v57  ;;  %3253 = vmatprep.mubr.msk.bf16.mxu1 %vm534_vm6, %v2791_v23 }
  0xbf   : > { %3114 = vmatmul.mubr.msk.bf16.gmra.mrb[4].mxu0 %vm534_vm6, %v4251_v16 }
  0xc0   : > { %3186 = vmatpush3.bf16.msra.mxu0 %v3529_v39  ;;  %3189 = vmatprep.mubr.msk.bf16.mxu0 %vm534_vm6, %v4200_v52 }
  0xc1   : > { %3187 = vmatprep.subr.bf16.mxu0 %v3531_v42  ;;  %3252 = vmatpush3.bf16.msra.mxu1 %v3532_v57 }
  0xc2   : > { %3261 = vmatprep.subr.bf16.mxu1 %v3534_v43 }
  0xc4   : > { %3188 = vmatpush3.bf16.msra.mxu0 %v3531_v42  ;;  %3254 = vmatmul.mubr.msk.bf16.vlgmr.msra.gmra.mrb[8].mxu1 %vm534_vm6, %v2792_v20 }
  0xc5   : > { %3197 = vmatprep.subr.bf16.mxu0 %v3533_v26  ;;  %3262 = vmatpush3.bf16.msra.mxu1 %v3534_v43 }
  0xc6   : > { %3263 = vmatprep.subr.bf16.mxu1 %v3536_v44  ;;  %3257 = vmatprep.mubr.msk.bf16.mxu1 %vm534_vm6, %v2793_v24 }
  0xc7   : > { %3190 = vmatmul.mubr.msk.bf16.vlgmr.msra.gmra.mrb[8].mxu0 %vm534_vm6, %v4222_v60 }
  0xc8   : > { %3198 = vmatpush3.bf16.msra.mxu0 %v3533_v26  ;;  %3193 = vmatprep.mubr.msk.bf16.mxu0 %vm534_vm6, %v4227_v1 }
  0xc9   : > { %3199 = vmatprep.subr.bf16.mxu0 %v3535_v45  ;;  %3264 = vmatpush3.bf16.msra.mxu1 %v3536_v44 }
  0xca   : > { %3265 = vmatprep.subr.bf16.mxu1 %v3538_v46 }
  0xcc   : > { %3200 = vmatpush3.bf16.msra.mxu0 %v3535_v45  ;;  %3258 = vmatmul.mubr.msk.bf16.gmra.mrb[12].mxu1 %vm534_vm6, %v2794_v36 }
  0xcd   : > { %3201 = vmatprep.subr.bf16.mxu0 %v3537_v47  ;;  %3266 = vmatpush3.bf16.msra.mxu1 %v3538_v46 }
  0xce   : > { %3267 = vmatprep.subr.bf16.mxu1 %v3540_v48  ;;  %3269 = vmatprep.mubr.msk.bf16.mxu1 %vm534_vm6, %v4200_v52  ;;  %v3543_v52 = vld [vmem:[#allocation5 + $0x148] sm:$0xff]  }
  0xcf   : > { %3194 = vmatmul.mubr.msk.bf16.gmra.mrb[12].mxu0 %vm534_vm6, %v4251_v16 }
  0xd0   : > { %3202 = vmatpush3.bf16.msra.mxu0 %v3537_v47  ;;  %3205 = vmatprep.mubr.msk.bf16.mxu0 %vm534_vm6, %v4213_v55  ;;  %v3546_v55 = vld [vmem:[#allocation5 + $0x1d0] sm:$0xff]  }
  0xd1   : > { %3203 = vmatprep.subr.bf16.mxu0 %v3539_v49  ;;  %3268 = vmatpush3.bf16.msra.mxu1 %v3540_v48 }
  0xd2   : > { %3277 = vmatprep.subr.bf16.mxu1 %v3542_v50 }
  0xd4   : > { %3204 = vmatpush3.bf16.msra.mxu0 %v3539_v49  ;;  %3270 = vmatmul.mubr.msk.bf16.vlgmr.msra.gmra.mrb[8].mxu1 %vm534_vm6, %v4222_v60  ;;  %v406_v60 = vrot.slane %v404_v58, 4 }
  0xd5   : > { %3213 = vmatprep.subr.bf16.mxu0 %v3541_v53  ;;  %3278 = vmatpush3.bf16.msra.mxu1 %v3542_v50 }
  0xd6   : > { %3279 = vmatprep.subr.bf16.mxu1 %v3544_v56  ;;  %3273 = vmatprep.mubr.msk.bf16.mxu1 %vm534_vm6, %v4227_v1  ;;  %v410_v63 = vor.u32 %v409_v9, %v406_v60  ;;  %v413_v1 = vshll.u32 %v4277_v38, 16 }
  0xd7   : > { %3206 = vmatmul.mubr.msk.bf16.vlgmr.msra.gmra.mrb[8].mxu0 %vm534_vm6, %v4231_v2  ;;  %v3550_v2 = vld [vmem:[#allocation5 + $0x1e0] sm:$0xff]  }
  0xd8   : > { %3214 = vmatpush3.bf16.msra.mxu0 %v3541_v53  ;;  %3209 = vmatprep.mubr.msk.bf16.mxu0 %vm534_vm6, %v4237_v8  ;;  %v3549_v8 = vld [vmem:[#allocation5 + $0x160] sm:$0xff]   ;;  %v411_v37 = vrot.slane %v410_v63, 4  ;;  %v415_v14 = vrot.slane %v413_v1, 5 }
  0xd9   : > { %3215 = vmatprep.subr.bf16.mxu0 %v3543_v52  ;;  %3280 = vmatpush3.bf16.msra.mxu1 %v3544_v56 }
  0xda   : > { %3281 = vmatprep.subr.bf16.mxu1 %v3546_v55  ;;  %v416_v23 = vsel %vm4023_vm4, %v411_v37, %v415_v14 }
  0xdb   : > { %v2836_v4 = vcombine.low %v4241_v3, %v416_v23 }
  0xdc   : > { %3216 = vmatpush3.bf16.msra.mxu0 %v3543_v52  ;;  %3274 = vmatmul.mubr.msk.bf16.gmra.mrb[12].mxu1 %vm534_vm6, %v4251_v16  ;;  %v3552_v16 = vld [vmem:[#allocation5 + $0x1e8] sm:$0xff]  }
  0xdd   : > { %3217 = vmatprep.subr.bf16.mxu0 %v3545_v59  ;;  %3282 = vmatpush3.bf16.msra.mxu1 %v3546_v55 }
  0xde   : > { %3283 = vmatprep.subr.bf16.mxu1 %v3548_v12  ;;  %3285 = vmatprep.mubr.msk.bf16.mxu1 %vm534_vm6, %v4072_v11 }
  0xdf   : > { %3210 = vmatmul.mubr.msk.bf16.gmra.mrb[12].mxu0 %vm534_vm6, %v4257_v5  ;;  %v3554_v5 = vld [vmem:[#allocation5 + $0x170] sm:$0xff]  }
  0xe0   : > { %3218 = vmatpush3.bf16.msra.mxu0 %v3545_v59  ;;  %3221 = vmatprep.mubr.msk.bf16.mxu0 %vm534_vm6, %v4182_v7  ;;  %v3555_v7 = vld [vmem:[#allocation5 + $0x1f0] sm:$0xff]  }
  0xe1   : > { %3219 = vmatprep.subr.bf16.mxu0 %v3547_v62  ;;  %3284 = vmatpush3.bf16.msra.mxu1 %v3548_v12 }
  0xe2   : > { %3293 = vmatprep.subr.bf16.mxu1 %v3550_v2 }
  0xe4   : > { %3220 = vmatpush3.bf16.msra.mxu0 %v3547_v62  ;;  %3286 = vmatmul.mubr.msk.bf16.vlgmr.msra.gmra.mrb[8].mxu1 %vm534_vm6, %v4143_v22 }
  0xe5   : > { %3229 = vmatprep.subr.bf16.mxu0 %v3549_v8  ;;  %3294 = vmatpush3.bf16.msra.mxu1 %v3550_v2 }
  0xe6   : > { %3295 = vmatprep.subr.bf16.mxu1 %v3552_v16  ;;  %3289 = vmatprep.mubr.msk.bf16.mxu1 %vm534_vm6, %v4170_v41 }
  0xe7   : > { %3222 = vmatmul.mubr.msk.bf16.vlgmr.msra.gmra.mrb[8].mxu0 %vm534_vm6, %v4188_v0  ;;  %v3556_v0 = vld [vmem:[#allocation5 + $0x178] sm:$0xff]  }
  0xe8   : > { %3230 = vmatpush3.bf16.msra.mxu0 %v3549_v8  ;;  %3225 = vmatprep.mubr.msk.bf16.mxu0 %vm534_vm6, %v4207_v54 }
  0xe9   : > { %3231 = vmatprep.subr.bf16.mxu0 %v3551_v6  ;;  %3296 = vmatpush3.bf16.msra.mxu1 %v3552_v16 }
  0xea   : > { %3297 = vmatprep.subr.bf16.mxu1 %v3555_v7 }
  0xec   : > { %3232 = vmatpush3.bf16.msra.mxu0 %v3551_v6  ;;  %3290 = vmatmul.mubr.msk.bf16.gmra.mrb[12].mxu1 %vm534_vm6, %v2836_v4 }
  0xed   : > { %3233 = vmatprep.subr.bf16.mxu0 %v3554_v5  ;;  %3298 = vmatpush3.bf16.msra.mxu1 %v3555_v7 }
  0xee   : > { %3299 = vmatprep.subr.bf16.mxu1 %v3557_v40  ;;  %3301 = vmatprep.mubr.msk.bf16.mxu1 %vm534_vm6, %v4103_v33 }
  0xef   : > { %3226 = vmatmul.mubr.msk.bf16.gmra.mrb[12].mxu0 %vm534_vm6, %v2827_v10 }
  0xf0   : > { %3234 = vmatpush3.bf16.msra.mxu0 %v3554_v5  ;;  %3237 = vmatprep.mubr.msk.bf16.mxu0 %vm534_vm6, %v4072_v11  ;;  %v4368_v11 = vld [vmem:[#allocation7] ss:$0 sm:$0xff] }
  0xf1   : > { %3235 = vmatprep.subr.bf16.mxu0 %v3556_v0  ;;  %3300 = vmatpush3.bf16.msra.mxu1 %v3557_v40 }
  0xf4   : > { %3236 = vmatpush3.bf16.msra.mxu0 %v3556_v0  ;;  %3302 = vmatmul.mubr.msk.bf16.vlgmr.msra.gmra.mrb[8].mxu1 %vm534_vm6, %v4131_v35 }
  0xf5   : > { %3305 = vmatprep.mubr.msk.bf16.mxu1 %vm534_vm6, %v4155_v15 }
  0xf7   : > { %3238 = vmatmul.mubr.msk.bf16.vlgmr.msra.gmra.mrb[8].mxu0 %vm534_vm6, %v4143_v22 }
  0xf8   : > { %3241 = vmatprep.mubr.msk.bf16.mxu0 %vm534_vm6, %v4170_v41 }
  0xfc   : > { %3306 = vmatmul.mubr.msk.bf16.gmra.mrb[12].mxu1 %vm534_vm6, %v2877_v29 }
  0xff   : > { %3242 = vmatmul.mubr.msk.bf16.gmra.mrb[12].mxu0 %vm534_vm6, %v2836_v4 }
 0x187   : > { %v3175_v33 = vpop.f32.mrb[0].mxu1 }
 0x188   : > { %v1476_v35 = vadd.f32 %v3175_v33, %v4368_v11  ;;  %v1435_v34 = vpop.f32.mrb[1].mxu1 }
 0x189   : > { %v1474_v22 = vadd.f32 %v4368_v11, %v1435_v34  ;;  %v3176_v15 = vpop.f32.mrb[2].mxu1 }
 0x18a   : > { %v3111_v54 = vpop.f32.mrb[0].mxu0  ;;  %v1477_v41 = vadd.f32 %v3176_v15, %v4368_v11  ;;  %v1438_v3 = vpop.f32.mrb[3].mxu1  ;;  %v2910_v17 = vpack.c.bf16 %v1476_v35, %v1476_v35  ;;  %v1485_v57 = vsel %vm985_vm7, %v1476_v35, 0.0 }
 0x18b   : > { %v979_v20 = vadd.f32 %v3111_v54, %v4368_v11  ;;  %v932_v25 = vpop.f32.mrb[1].mxu0  ;;  %v1475_v28 = vadd.f32 %v4368_v11, %v1438_v3  ;;  %v2908_v18 = vpack.c.bf16 %v1474_v22, %v1474_v22  ;;  %v1482_v21 = vsel %vm985_vm7, %v1474_v22, 0.0 }
 0x18c   : > { %v977_v19 = vadd.f32 %v4368_v11, %v932_v25  ;;  %v3112_v24 = vpop.f32.mrb[2].mxu0  ;;  %1540 = vrot.lane.b32.xlu1 %v2910_v17, %s3753_s23  ;;  %v2911_v27 = vpack.c.bf16 %v1477_v41, %v1477_v41  ;;  %v1487_v49 = vsel %vm985_vm7, %v1477_v41, 0.0 }
 0x18d   : > { %v1010_v30 = vpack.c.bf16 %v979_v20, %v979_v20  ;;  %v980_v38 = vadd.f32 %v3112_v24, %v4368_v11  ;;  %v935_v31 = vpop.f32.mrb[3].mxu0  ;;  %v1483_v32 = vsel %vm985_vm7, %v1475_v28, 0.0  ;;  %1536 = vrot.lane.b32.xlu0 %v2908_v18, %s3753_s23  ;;  %v989_v39 = vsel %vm985_vm7, %v979_v20, 0.0 }
 0x18e   : > { %v986_v51 = vsel %vm985_vm7, %v977_v19, 0.0  ;;  %v1008_v13 = vpack.c.bf16 %v977_v19, %v977_v19  ;;  %v978_v29 = vadd.f32 %v4368_v11, %v935_v31  ;;  %v1484_v36 = vadd.f32 %v1483_v32, %v1482_v21 }
 0x18f   : > { %1019 = vst.msk [vmem:[%s4385_s11 + $0x10] sm:$0xf] %vm1016_vm8, %v1010_v30  ;;  %v1011_v42 = vpack.c.bf16 %v980_v38, %v980_v38  ;;  %v2909_v43 = vpack.c.bf16 %v1475_v28, %v1475_v28  ;;  %v3179_v26 = vpop.f32.mrb[4].mxu1  ;;  %v991_v52 = vsel %vm985_vm7, %v980_v38, 0.0 }
 0x190   : > { %1017 = vst.msk [vmem:[%s4385_s11] sm:$0xf] %vm1016_vm8, %v1008_v13  ;;  %v987_v44 = vsel %vm985_vm7, %v978_v29, 0.0  ;;  %v1009_v45 = vpack.c.bf16 %v978_v29, %v978_v29  ;;  %v1486_v46 = vadd.f32 %v1485_v57, %v1484_v36  ;;  %v1480_v47 = vadd.f32 %v3179_v26, %v4368_v11  ;;  %1542 = vrot.lane.b32.xlu1 %v2911_v27, %s3753_s23  ;;  %v1451_v48 = vpop.f32.mrb[5].mxu1 }
 0x191   : > { %1020 = vst.msk [vmem:[%s4385_s11 + $0x18] sm:$0xf] %vm1016_vm8, %v1011_v42  ;;  %v988_v50 = vadd.f32 %v987_v44, %v986_v51  ;;  %v1478_v53 = vadd.f32 %v4368_v11, %v1451_v48  ;;  %1538 = vrot.lane.b32.xlu0 %v2909_v43, %s3753_s23  ;;  %v3180_v56 = vpop.f32.mrb[6].mxu1 }
 0x192   : > { %1018 = vst.msk [vmem:[%s4385_s11 + $0x8] sm:$0xf] %vm1016_vm8, %v1009_v45  ;;  %v3115_v58 = vpop.f32.mrb[4].mxu0  ;;  %v2914_v61 = vpack.c.bf16 %v1480_v47, %v1480_v47  ;;  %v1488_v55 = vadd.f32 %v1487_v49, %v1486_v46  ;;  %v1481_v59 = vadd.f32 %v3180_v56, %v4368_v11  ;;  %v1454_v60 = vpop.f32.mrb[7].mxu1  ;;  %v1493_v17 = vsel %vm985_vm7, %v1480_v47, 0.0 }
 0x193   : > { %v990_v9 = vadd.f32 %v989_v39, %v988_v50  ;;  %v983_v12 = vadd.f32 %v3115_v58, %v4368_v11  ;;  %v948_v62 = vpop.f32.mrb[5].mxu0  ;;  %v1489_v63 = vsel %vm985_vm7, %v1478_v53, 0.0  ;;  %v1479_v40 = vadd.f32 %v4368_v11, %v1454_v60 }
 0x194   : > { %v981_v1 = vadd.f32 %v4368_v11, %v948_v62  ;;  %v1490_v2 = vadd.f32 %v1489_v63, %v1488_v55  ;;  %v3116_v8 = vpop.f32.mrb[6].mxu0  ;;  %v2915_v37 = vpack.c.bf16 %v1481_v59, %v1481_v59  ;;  %v2912_v33 = vpack.c.bf16 %v1478_v53, %v1478_v53 }
 0x195   : > { %v1014_v14 = vpack.c.bf16 %v983_v12, %v983_v12  ;;  %v992_v16 = vadd.f32 %v991_v52, %v990_v9  ;;  %v984_v6 = vadd.f32 %v3116_v8, %v4368_v11  ;;  %v951_v23 = vpop.f32.mrb[7].mxu0  ;;  %1548 = vrot.lane.b32.xlu0 %v2914_v61, %s3753_s23  ;;  %v997_v10 = vsel %vm985_vm7, %v983_v12, 0.0 }
 0x196   : > { %v993_v7 = vsel %vm985_vm7, %v981_v1, 0.0  ;;  %v1012_v4 = vpack.c.bf16 %v981_v1, %v981_v1  ;;  %v982_v5 = vadd.f32 %v4368_v11, %v951_v23  ;;  %1550 = vrot.lane.b32.xlu1 %v2915_v37, %s3753_s23  ;;  %v1491_v15 = vsel %vm985_vm7, %v1479_v40, 0.0 }
 0x197   : > { %1023 = vst.msk [vmem:[%s4385_s11 + $0x30] sm:$0xf] %vm1016_vm8, %v1014_v14  ;;  %v994_v0 = vadd.f32 %v993_v7, %v992_v16  ;;  %v1015_v35 = vpack.c.bf16 %v984_v6, %v984_v6  ;;  %v2913_v54 = vpack.c.bf16 %v1479_v40, %v1479_v40  ;;  %v1492_v3 = vadd.f32 %v1491_v15, %v1490_v2 }
 0x198   : > { %1021 = vst.msk [vmem:[%s4385_s11 + $0x20] sm:$0xf] %vm1016_vm8, %v1012_v4  ;;  %v995_v34 = vsel %vm985_vm7, %v982_v5, 0.0  ;;  %v1013_v22 = vpack.c.bf16 %v982_v5, %v982_v5  ;;  %v999_v20 = vsel %vm985_vm7, %v984_v6, 0.0  ;;  %v1495_v18 = vsel %vm985_vm7, %v1481_v59, 0.0 }
 0x199   : > { %1024 = vst.msk [vmem:[%s4385_s11 + $0x38] sm:$0xf] %vm1016_vm8, %v1015_v35  ;;  %v996_v41 = vadd.f32 %v995_v34, %v994_v0  ;;  %1544 = vrot.lane.b32.xlu0 %v2912_v33, %s3753_s23  ;;  %v1494_v28 = vadd.f32 %v1493_v17, %v1492_v3 }
 0x19a   : > { %1022 = vst.msk [vmem:[%s4385_s11 + $0x28] sm:$0xf] %vm1016_vm8, %v1013_v22  ;;  %1546 = vrot.lane.b32.xlu1 %v2913_v54, %s3753_s23 }
 0x19b   : > { %v998_v25 = vadd.f32 %v997_v10, %v996_v41  ;;  %v1496_v21 = vadd.f32 %v1495_v18, %v1494_v28 }
 0x19d   : > { %v1000_v19 = vadd.f32 %v999_v20, %v998_v25  ;;  %v1497_v30 = vrot.slane %v1496_v21, 4 }
 0x19f   : > { %v1001_v24 = vrot.slane %v1000_v19, 4  ;;  %v1498_v27 = vadd.f32 %v1497_v30, %v1496_v21 }
 0x1a1   : > { %v1002_v38 = vadd.f32 %v1001_v24, %v1000_v19  ;;  %v1499_v32 = vrot.slane %v1498_v27, 2 }
 0x1a3   : > { %v1003_v31 = vrot.slane %v1002_v38, 2  ;;  %v1500_v13 = vadd.f32 %v1499_v32, %v1498_v27 }
 0x1a5   : > { %v1004_v51 = vadd.f32 %v1003_v31, %v1002_v38  ;;  %v1501_v36 = vrot.slane %v1500_v13, 1 }
 0x1a7   : > { %v1005_v29 = vrot.slane %v1004_v51, 1  ;;  %v1502_v57 = vadd.f32 %v1501_v36, %v1500_v13 }
 0x1a9   : > { %v1006_v39 = vadd.f32 %v1005_v29, %v1004_v51 }
 0x1ab   : > { %v4429_v42 = vadd.f32 %v1502_v57, %v1006_v39 }
 0x1c7   : > { %v3303_v43 = vpop.f32.mrb[8].mxu1 }
 0x1c8   : > { %v2449_v26 = vadd.f32 %v3303_v43, %v4368_v11  ;;  %v2408_v44 = vpop.f32.mrb[9].mxu1 }
 0x1c9   : > { %v2447_v45 = vadd.f32 %v4368_v11, %v2408_v44  ;;  %v3304_v46 = vpop.f32.mrb[10].mxu1 }
 0x1ca   : > { %v3239_v47 = vpop.f32.mrb[8].mxu0  ;;  %v2918_v48 = vpack.c.bf16 %v2449_v26, %v2449_v26  ;;  %v2450_v49 = vadd.f32 %v3304_v46, %v4368_v11  ;;  %v2411_v50 = vpop.f32.mrb[11].mxu1  ;;  %v2458_v16 = vsel %vm985_vm7, %v2449_v26, 0.0 }
 0x1cb   : > { %v1989_v53 = vadd.f32 %v3239_v47, %v4368_v11  ;;  %v1948_v56 = vpop.f32.mrb[9].mxu0  ;;  %v2448_v52 = vadd.f32 %v4368_v11, %v2411_v50  ;;  %v2455_v61 = vsel %vm985_vm7, %v2447_v45, 0.0  ;;  %v2916_v9 = vpack.c.bf16 %v2447_v45, %v2447_v45 }
 0x1cc   : > { %v1987_v58 = vadd.f32 %v4368_v11, %v1948_v56  ;;  %v3240_v55 = vpop.f32.mrb[10].mxu0  ;;  %v2919_v59 = vpack.c.bf16 %v2450_v49, %v2450_v49  ;;  %2513 = vrot.lane.b32.xlu0 %v2918_v48, %s3753_s23  ;;  %v2460_v0 = vsel %vm985_vm7, %v2450_v49, 0.0 }
 0x1cd   : > { %v2019_v60 = vpack.c.bf16 %v1989_v53, %v1989_v53  ;;  %v1990_v12 = vadd.f32 %v3240_v55, %v4368_v11  ;;  %v1951_v62 = vpop.f32.mrb[11].mxu0  ;;  %v2456_v63 = vsel %vm985_vm7, %v2448_v52, 0.0  ;;  %v1998_v14 = vsel %vm985_vm7, %v1989_v53, 0.0 }
 0x1ce   : > { %v1995_v1 = vsel %vm985_vm7, %v1987_v58, 0.0  ;;  %v2017_v2 = vpack.c.bf16 %v1987_v58, %v1987_v58  ;;  %v1988_v8 = vadd.f32 %v4368_v11, %v1951_v62  ;;  %v2457_v37 = vadd.f32 %v2456_v63, %v2455_v61  ;;  %2515 = vrot.lane.b32.xlu1 %v2919_v59, %s3753_s23 }
 0x1cf   : > { %2847 = vst.msk [vmem:[%s4385_s11 + $0x14] sm:$0xf] %vm1016_vm8, %v2019_v60  ;;  %v2020_v6 = vpack.c.bf16 %v1990_v12, %v1990_v12  ;;  %v3307_v23 = vpop.f32.mrb[12].mxu1  ;;  %v2917_v40 = vpack.c.bf16 %v2448_v52, %v2448_v52  ;;  %v2000_v15 = vsel %vm985_vm7, %v1990_v12, 0.0 }
 0x1d0   : > { %2845 = vst.msk [vmem:[%s4385_s11 + $0x4] sm:$0xf] %vm1016_vm8, %v2017_v2  ;;  %v1996_v7 = vsel %vm985_vm7, %v1988_v8, 0.0  ;;  %v2018_v4 = vpack.c.bf16 %v1988_v8, %v1988_v8  ;;  %v2459_v5 = vadd.f32 %v2458_v16, %v2457_v37  ;;  %2509 = vrot.lane.b32.xlu0 %v2916_v9, %s3753_s23  ;;  %v2424_v10 = vpop.f32.mrb[13].mxu1  ;;  %v2453_v35 = vadd.f32 %v3307_v23, %v4368_v11 }
 0x1d1   : > { %2848 = vst.msk [vmem:[%s4385_s11 + $0x1c] sm:$0xf] %vm1016_vm8, %v2020_v6  ;;  %v1997_v33 = vadd.f32 %v1996_v7, %v1995_v1  ;;  %v2451_v34 = vadd.f32 %v4368_v11, %v2424_v10  ;;  %v3308_v22 = vpop.f32.mrb[14].mxu1 }
 0x1d2   : > { %2846 = vst.msk [vmem:[%s4385_s11 + $0xc] sm:$0xf] %vm1016_vm8, %v2018_v4  ;;  %v3243_v54 = vpop.f32.mrb[12].mxu0  ;;  %v2461_v41 = vadd.f32 %v2460_v0, %v2459_v5  ;;  %v2427_v3 = vpop.f32.mrb[15].mxu1  ;;  %2511 = vrot.lane.b32.xlu1 %v2917_v40, %s3753_s23  ;;  %v2922_v38 = vpack.c.bf16 %v2453_v35, %v2453_v35  ;;  %v2454_v26 = vadd.f32 %v3308_v22, %v4368_v11  ;;  %v2466_v50 = vsel %vm985_vm7, %v2453_v35, 0.0 }
 0x1d3   : > { %v1999_v17 = vadd.f32 %v1998_v14, %v1997_v33  ;;  %v1993_v20 = vadd.f32 %v3243_v54, %v4368_v11  ;;  %v1964_v25 = vpop.f32.mrb[13].mxu0  ;;  %v2462_v28 = vsel %vm985_vm7, %v2451_v34, 0.0  ;;  %v2920_v18 = vpack.c.bf16 %v2451_v34, %v2451_v34 }
 0x1d4   : > { %v1991_v19 = vadd.f32 %v4368_v11, %v1964_v25  ;;  %v2463_v21 = vadd.f32 %v2462_v28, %v2461_v41  ;;  %v3244_v24 = vpop.f32.mrb[14].mxu0  ;;  %v2452_v29 = vadd.f32 %v4368_v11, %v2427_v3  ;;  %v2468_v52 = vsel %vm985_vm7, %v2454_v26, 0.0 }
 0x1d5   : > { %v2023_v30 = vpack.c.bf16 %v1993_v20, %v1993_v20  ;;  %v2001_v27 = vadd.f32 %v2000_v15, %v1999_v17  ;;  %v1994_v31 = vadd.f32 %v3244_v24, %v4368_v11  ;;  %v1967_v32 = vpop.f32.mrb[15].mxu0  ;;  %2517 = vrot.lane.b32.xlu0 %v2920_v18, %s3753_s23  ;;  %v2006_v39 = vsel %vm985_vm7, %v1993_v20, 0.0 }
 0x1d6   : > { %v2002_v51 = vsel %vm985_vm7, %v1991_v19, 0.0  ;;  %v2021_v13 = vpack.c.bf16 %v1991_v19, %v1991_v19  ;;  %v1992_v36 = vadd.f32 %v4368_v11, %v1967_v32  ;;  %v2464_v44 = vsel %vm985_vm7, %v2452_v29, 0.0 }
 0x1d7   : > { %2851 = vst.msk [vmem:[%s4385_s11 + $0x34] sm:$0xf] %vm1016_vm8, %v2023_v30  ;;  %v2003_v57 = vadd.f32 %v2002_v51, %v2001_v27  ;;  %v2024_v43 = vpack.c.bf16 %v1994_v31, %v1994_v31  ;;  %v2921_v45 = vpack.c.bf16 %v2452_v29, %v2452_v29  ;;  %v2465_v48 = vadd.f32 %v2464_v44, %v2463_v21 }
 0x1d8   : > { %2849 = vst.msk [vmem:[%s4385_s11 + $0x24] sm:$0xf] %vm1016_vm8, %v2021_v13  ;;  %v2004_v46 = vsel %vm985_vm7, %v1992_v36, 0.0  ;;  %v2022_v47 = vpack.c.bf16 %v1992_v36, %v1992_v36  ;;  %v2008_v53 = vsel %vm985_vm7, %v1994_v31, 0.0  ;;  %v2923_v58 = vpack.c.bf16 %v2454_v26, %v2454_v26 }
 0x1d9   : > { %2852 = vst.msk [vmem:[%s4385_s11 + $0x3c] sm:$0xf] %vm1016_vm8, %v2024_v43  ;;  %v2005_v49 = vadd.f32 %v2004_v46, %v2003_v57  ;;  %2521 = vrot.lane.b32.xlu0 %v2922_v38, %s3753_s23  ;;  %2519 = vrot.lane.b32.xlu1 %v2921_v45, %s3753_s23  ;;  %v2467_v11 = vadd.f32 %v2466_v50, %v2465_v48 }
 0x1da   : > { %2850 = vst.msk [vmem:[%s4385_s11 + $0x2c] sm:$0xf] %vm1016_vm8, %v2022_v47 }
 0x1db   : > { %v2007_v56 = vadd.f32 %v2006_v39, %v2005_v49  ;;  %v2469_v61 = vadd.f32 %v2468_v52, %v2467_v11 }
 0x1dd   : > { %v2009_v55 = vadd.f32 %v2008_v53, %v2007_v56  ;;  %2523 = vrot.lane.b32.xlu1 %v2923_v58, %s3753_s23  ;;  %v2470_v59 = vrot.slane %v2469_v61, 4 }
 0x1df   : > { %v2010_v60 = vrot.slane %v2009_v55, 4  ;;  %v2471_v9 = vadd.f32 %v2470_v59, %v2469_v61 }
 0x1e1   : > { %v2011_v12 = vadd.f32 %v2010_v60, %v2009_v55  ;;  %v2472_v62 = vrot.slane %v2471_v9, 2 }
 0x1e3   : > { %v2012_v63 = vrot.slane %v2011_v12, 2  ;;  %v2473_v1 = vadd.f32 %v2472_v62, %v2471_v9 }
 0x1e5   : > { %v2013_v2 = vadd.f32 %v2012_v63, %v2011_v12  ;;  %v2474_v8 = vrot.slane %v2473_v1, 1 }
 0x1e7   : > { %v2014_v37 = vrot.slane %v2013_v2, 1  ;;  %v2475_v16 = vadd.f32 %v2474_v8, %v2473_v1 }
 0x1e9   : > { %v2015_v14 = vadd.f32 %v2014_v37, %v2013_v2 }
 0x1eb   : > { %v2016_v6 = vadd.f32 %v2015_v14, %v4429_v42 }
 0x1ed   : > { %v2476_v23 = vadd.f32 %v2475_v16, %v2016_v6 }
 0x1ef   : > { %2542 = vst.msk [vmem:[%s252_s29] sm:$0x1] %vm2541_vm9, %v2476_v23 }
 0x1f0   : > { %3657 = shalt.err (!%p3654_p1)
}
 0x1f1   : > { %s3658_s28 = scalar_lea.hbm %s4493_s5, 16  ;;  %s3662_s23 = scalar_lea.hbm %s4606_s4, 32 }
 0x1f2   : > { %p3659_p13 = scmp.ne.s32.totalorder %s4493_s5, %s3658_s28  ;;  %p3663_p4 = scmp.lt.u32.totalorder %s4493_s5, %s4606_s4 }
 0x1f3   : > { %p3664_p5 = scmp.lt.u32.totalorder %s3662_s23, %s3658_s28  ;;  %p3666_p11 = scmp.lt.u32.totalorder %s3658_s28, %s4493_s5 }
 0x1f4   : > { %p3660_p6 = pnand %p3659_p13, %p4624_p0 }
 0x1f5   : > { %p3665_p8 = por %p3664_p5, %p3663_p4 }
 0x1f6   : > { %p3661_p10 = pneg %p3660_p6 }
 0x1f7   : > { %p3667_p2 = por %p3666_p11, %p3665_p8 }
 0x1f9   : > { %p3668_p3 = pnand %p3667_p2, %p3661_p10 }
 0x1fb   : > { %3671 = shalt.err (!%p3668_p3)
}
 0x1fc   : > { %3419 = dma.vmem_to_hbm [thread:$0]  (%p4624_p0), %s4495_s6, 16, %s4493_s5, %s2549_s24   ;;  %vm1560_vm10 = vcmask 519424  }
 0x1fd   : > { %s2924_s6 = sshll.u32 %s3804_s19, 10  ;;  %s2561_s7 = sshll.u32 %s4385_s11, 4  ;;  %s4556_s7 = int_to_ptr.vmem [resolvable:$true] %s2561_s7 }
 0x1fe   : > { %v1541_v42 = vpop.permute.xlu1 %1540  ;;  %s4554_s24 = scalar_lea.hbm %s4605_s3, %s2924_s6  ;;  %s2544_s19 = scalar_lea.sflag [#allocation4], %s3962_s9 }
 0x1ff   : > { %1563 = vst.msk [vmem:[%s4385_s11 + $0x10] sm:$0xf] %vm1560_vm10, %v1541_v42  ;;  %v1537_v7 = vpop.permute.xlu0 %1536  ;;  %s3672_s27 = scalar_lea.vmem %s4556_s7, 1024  ;;  %s3755_s25 = smov [#allocation8]  }
 0x200   : > { %1561 = vst.msk [vmem:[%s4385_s11] sm:$0xf] %vm1560_vm10, %v1537_v7  ;;  %p3673_p7 = scmp.ne.s32.totalorder %s4556_s7, %s3672_s27  ;;  %s3676_s26 = sshll.u32 %s3755_s25, 4  ;;  %s3677_s26 = int_to_ptr.vmem [resolvable:$false] %s3676_s26 }
 0x201   : > { %s3678_s13 = scalar_lea.vmem %s3677_s26, 2048  ;;  %p3679_p1 = scmp.lt.s32.totalorder %s4556_s7, %s3677_s26 }
 0x202   : > { %v1543_v4 = vpop.permute.xlu1 %1542  ;;  %p3674_p9 = pnand %p3673_p7, %p4624_p0  ;;  %p3680_p13 = scmp.lt.s32.totalorder %s3678_s13, %s3672_s27 }
 0x203   : > { %1564 = vst.msk [vmem:[%s4385_s11 + $0x18] sm:$0xf] %vm1560_vm10, %v1543_v4  ;;  %v1539_v5 = vpop.permute.xlu0 %1538 }
 0x204   : > { %1562 = vst.msk [vmem:[%s4385_s11 + $0x8] sm:$0xf] %vm1560_vm10, %v1539_v5  ;;  %p3675_p12 = pneg %p3674_p9  ;;  %p3681_p6 = por %p3680_p13, %p3679_p1 }
 0x206   : > { %p3682_p10 = pnand %p3681_p6, %p3675_p12 }
 0x207   : > { %v1549_v40 = vpop.permute.xlu0 %1548 }
 0x208   : > { %1567 = vst.msk [vmem:[%s4385_s11 + $0x30] sm:$0xf] %vm1560_vm10, %v1549_v40  ;;  %v1551_v10 = vpop.permute.xlu1 %1550 }
 0x209   : > { %1568 = vst.msk [vmem:[%s4385_s11 + $0x38] sm:$0xf] %vm1560_vm10, %v1551_v10 }
 0x20b   : > { %v1545_v0 = vpop.permute.xlu0 %1544 }
 0x20c   : > { %1565 = vst.msk [vmem:[%s4385_s11 + $0x20] sm:$0xf] %vm1560_vm10, %v1545_v0  ;;  %v1547_v33 = vpop.permute.xlu1 %1546 }
 0x20d   : > { %1566 = vst.msk [vmem:[%s4385_s11 + $0x28] sm:$0xf] %vm1560_vm10, %v1547_v33 }
 0x23e   : > { %v2514_v35 = vpop.permute.xlu0 %2513 }
 0x23f   : > { %2896 = vst.msk [vmem:[%s4385_s11 + $0x14] sm:$0xf] %vm1560_vm10, %v2514_v35 }
 0x240   : > { %v2516_v34 = vpop.permute.xlu1 %2515 }
 0x241   : > { %2897 = vst.msk [vmem:[%s4385_s11 + $0x1c] sm:$0xf] %vm1560_vm10, %v2516_v34 }
 0x242   : > { %v2510_v22 = vpop.permute.xlu0 %2509 }
 0x243   : > { %2894 = vst.msk [vmem:[%s4385_s11 + $0x4] sm:$0xf] %vm1560_vm10, %v2510_v22 }
 0x244   : > { %v2512_v15 = vpop.permute.xlu1 %2511 }
 0x245   : > { %2895 = vst.msk [vmem:[%s4385_s11 + $0xc] sm:$0xf] %vm1560_vm10, %v2512_v15 }
 0x247   : > { %v2518_v54 = vpop.permute.xlu0 %2517 }
 0x248   : > { %2898 = vst.msk [vmem:[%s4385_s11 + $0x24] sm:$0xf] %vm1560_vm10, %v2518_v54 }
 0x24b   : > { %v2522_v41 = vpop.permute.xlu0 %2521  ;;  %v2520_v3 = vpop.permute.xlu1 %2519 }
 0x24c   : > { %2900 = vst.msk [vmem:[%s4385_s11 + $0x34] sm:$0xf] %vm1560_vm10, %v2522_v41  ;;  %2899 = vst.msk [vmem:[%s4385_s11 + $0x2c] sm:$0xf] %vm1560_vm10, %v2520_v3 }
 0x24f   : > { %v2524_v17 = vpop.permute.xlu1 %2523 }
 0x250   : > { %2901 = vst.msk [vmem:[%s4385_s11 + $0x3c] sm:$0xf] %vm1560_vm10, %v2524_v17 }
 0x251   : > { %3685 = shalt.err (!%p3682_p10)
}
 0x252   : > { %s3686_s11 = scalar_lea.hbm %s4554_s24, 1024  ;;  %s3690_s21 = scalar_lea.hbm %s4605_s3, 2048 }
 0x253   : > { %p3687_p4 = scmp.ne.s32.totalorder %s4554_s24, %s3686_s11  ;;  %p3691_p11 = scmp.lt.u32.totalorder %s4554_s24, %s4605_s3 }
 0x254   : > { %p3692_p2 = scmp.lt.u32.totalorder %s3690_s21, %s3686_s11  ;;  %p3694_p7 = scmp.lt.u32.totalorder %s3686_s11, %s4554_s24 }
 0x255   : > { %p3688_p5 = pnand %p3687_p4, %p4624_p0 }
 0x256   : > { %p3693_p3 = por %p3692_p2, %p3691_p11 }
 0x257   : > { %p3689_p8 = pneg %p3688_p5 }
 0x258   : > { %p3695_p9 = por %p3694_p7, %p3693_p3 }
 0x25a   : > { %p3696_p12 = pnand %p3695_p9, %p3689_p8 }
 0x25c   : > { %3699 = shalt.err (!%p3696_p12)
}
 0x25d   : > { %s3756_s29 = smov 64   ;;  %s3757_s6 = smov 4  }
 0x25e   : > { %3418 = dma.vmem_to_hbm [thread:$0]  (%p4624_p0), %s4556_s7, 1024, %s4554_s24, %s2544_s19, %s3756_s29, %s3756_s29, %s3757_s6  }
 0x25f PF: > { %s2589_s8 = sand.u32 1, %s3734_s15   ;;  %p4625_p1 = scmp.ne.s32.totalorder %s4611_s22, 0 }
 0x260   : > { %p4626_p13 = scmp.ge.s32.totalorder %s3746_s18, 2  ;;  %s2590_s5 = scalar_lea.sflag [#allocation4], %s2589_s8 }
 0x262   : > { %p3434_p6 = pnand %p4626_p13, %p4625_p1 }
 0x264   : > { %3725 = dma.done.wait (!%p3434_p6), %s2590_s5, 1024  }
 0x265   : > { %3727 = vsyncadd (!%p3434_p6), %s2590_s5, 4294966272  ;;  %s2599_s27 = scalar_lea.sflag [#allocation10], %s2589_s8 }
 0x266   : > { %3729 = dma.done.wait (!%p3434_p6), %s2599_s27, 16  }
 0x267   : > { %3731 = vsyncadd (!%p3434_p6), %s2599_s27, 4294967280  ;;  %p22_p0 = scmp.ge.s32.totalorder %s3897_s10, 4   ;;  %s4627_s15 = smov %s3738_s16 }
 0x268   : > { %s4628_s16 = smov %s3742_s17  ;;  %s4629_s17 = smov %s3913_s20 }
 0x269   : > { %s4630_s18 = smov %s3897_s10  ;;  %24 = sbr.rel (!%p22_p0) target bundleno = 8 (0x8), region = 118 }
 0x270   :  { %2603 = vsyncpa [#allocation3], 1 }
 0x271   :  { %2605 = vsyncpa [#allocation3 + $0x1], 1 }
 0x272   :  { %2606 = vsyncpa [#allocation6], 1 }
 0x273   :  { %2607 = vsyncpa [#allocation4], 1 }
 0x274   :  { %2609 = vsyncpa [#allocation4 + $0x1], 1 }
 0x275   :  { %2610 = vsyncpa [#allocation10], 1 }
 0x276   :  { %2612 = vsyncpa [#allocation10 + $0x1], 1 }

// kernel: unet_up_origin_forward.9
= control target key start
LH: loop header
LB: loop body
LE: loop exit
PB: predicated region body
PF: predicated region fallthrough
CT: control target
= control target key end

     0   :  { %s5745_s0 = inlined_call_operand.hbm [shape: bf16[2,18,18,32], index: 0, kind: input, shape index: {}]   ;;  %s5746_s1 = inlined_call_operand.hbm [shape: f32[2,9,32], index: 1, kind: input, shape index: {}]   ;;  %s5747_s2 = inlined_call_operand.hbm [shape: bf16[32,32], index: 2, kind: input, shape index: {}]   ;;  %s5748_s3 = inlined_call_operand.hbm [shape: f32[1,32], index: 3, kind: input, shape index: {}]   ;;  %s5749_s4 = inlined_call_operand.hbm [shape: f32[1,32], index: 4, kind: input, shape index: {}]   ;;  %s5750_s5 = inlined_call_operand.<no memory space> [shape: f32[1,1], index: 5, kind: input, shape index: {}]   ;;  %s5751_s6 = inlined_call_operand.hbm [shape: f32[2,16,16,32], index: 6, kind: output, shape index: {}]  }
   0x1   :  { %5782 = sst [smem:[#allocation18_spill]] %s5745_s0  ;;  %v11_v0 = vstv %s5750_s5 }
   0x2   :  { %5783 = sst [smem:[#allocation19_spill]] %s5747_s2  ;;  %12 = vst [vmem:[#allocation2] sm:$0x1] %v11_v0 }
   0x3   :  { %5784 = sst [smem:[#allocation20_spill]] %s5748_s3 }
   0x4   :  { %13 = vsyncpa [#allocation4], 0 }
   0x5   :  { %15 = vsyncpa [#allocation4 + $0x1], 0 }
   0x6   :  { %16 = vsyncpa [#allocation7], 0 }
   0x7   :  { %18 = vsyncpa [#allocation7 + $0x1], 0 }
   0x8   :  { %19 = vsyncpa [#allocation10], 0 }
   0x9   :  { %20 = vsyncpa [#allocation5], 0 }
   0xa   :  { %22 = vsyncpa [#allocation5 + $0x1], 0  ;;  %s3821_s23 = smov 0   ;;  %s3823_s24 = smov 0  }
   0xb   :  { %s3825_s25 = smov 0   ;;  %s3827_s26 = smov 0  }
   0xc LB: > { %s3842_s5 = sadd.s32 4294967295, %s3768_s26   ;;  %s3141_s27 = sadd.s32 4294967294, %s3768_s26   ;;  %s3768_s26 = sphi %s3827_s26, %s5835_s26   ;;  %s3764_s25 = sphi %s3825_s25, %s5834_s25   ;;  %s3760_s24 = sphi %s3823_s24, %s5833_s24   ;;  %s3756_s23 = sphi %s3821_s23, %s5832_s23  }
   0xd   : > { %p48_p0 = scmp.ne.s32.totalorder %s3760_s24, %s3756_s23  ;;  %p5752_p1 = scmp.eq.s32.totalorder %s3842_s5, 0 }
   0xe   : > { %p188_p3 = scmp.eq.s32.totalorder %s3141_s27, 1  ;;  %p3142_p5 = scmp.ge.s32.totalorder %s3768_s26, 1 }
   0xf   : > { %p3851_p4 = por %p5752_p1, %p48_p0  ;;  %p195_p7 = scmp.lt.s32.totalorder %s3768_s26, 3 }
  0x10   : > { %p3856_p6 = por %p188_p3, %p48_p0  ;;  %s3770_s7 = smov [#allocation8]  }
  0x11   : > { %s5785_s28 = scalar_select %p3851_p4, 1, 0 }
  0x12   : > { %s5786_s29 = scalar_select %p3856_p6, 1, 0 }
  0x13   : > { %p3861_p8 = pnand %p3142_p5, %p195_p7  ;;  %s207_s8 = sshll.u32 %s3770_s7, 4  ;;  %s3865_s8 = int_to_ptr.vmem [resolvable:$true] %s207_s8 }
  0x14   : > { %s3771_s10 = smov [#allocation9]   ;;  %s3772_s12 = smov [#allocation11]  }
  0x15   : > { %s5787_s30 = scalar_select %p3861_p8, 1, 0 }
  0x16   : > { %p3341_p9 = pneg %p3861_p8  ;;  %s221_s11 = sshll.u32 %s3771_s10, 4  ;;  %s3876_s11 = int_to_ptr.vmem [resolvable:$true] %s221_s11 }
  0x17   : > { %s3878_s13 = sshll.u32 %s3772_s12, 4  ;;  %s5789_s2 = sld [smem:[#allocation19_spill]]  ;;  %s233_s13 = int_to_ptr.vmem [resolvable:$true] %s3878_s13 }
  0x18   : > { %p3872_p11 = pnand %p3341_p9, %p5752_p1 }
  0x1a   : > { %p3888_p13 = pneg %p3872_p11 }
  0x1d   : > { %s3546_s16 = scalar_lea.hbm %s5789_s2, 256 }
  0x1e   : > { %p3547_p12 = scmp.ne.s32.totalorder %s5789_s2, %s3546_s16  ;;  %p3553_p5 = scmp.lt.u32.totalorder %s3546_s16, %s5789_s2 }
  0x20   : > { %p3549_p0 = pnand %p3888_p13, %p3547_p12 }
  0x22   : > { %p3550_p3 = pneg %p3549_p0 }
  0x24   : > { %p3555_p7 = pnand %p3553_p5, %p3550_p3 }
  0x26   : > { %3558 = shalt.err (!%p3555_p7)
}
  0x27   : > { %s3559_s22 = scalar_lea.vmem %s3865_s8, 256  ;;  %p3567_p2 = scmp.lt.s32.totalorder %s3865_s8, %s3865_s8 }
  0x28   : > { %p3560_p9 = scmp.ne.s32.totalorder %s3865_s8, %s3559_s22  ;;  %p3568_p6 = scmp.lt.s32.totalorder %s3559_s22, %s3559_s22 }
  0x2a   : > { %p3562_p10 = pnand %p3560_p9, %p3888_p13  ;;  %p3569_p12 = por %p3568_p6, %p3567_p2 }
  0x2c   : > { %p3563_p1 = pneg %p3562_p10 }
  0x2e   : > { %p3570_p0 = pnand %p3569_p12, %p3563_p1 }
  0x30   : > { %3573 = shalt.err (!%p3570_p0)
}
  0x31   : > { %s5755_s27 = smov 64   ;;  %s5756_s7 = smov 4  }
  0x32   : > { %3344 = dma.hbm_to_vmem [thread:$0]  (!%p3872_p11), %s5789_s2, 256, %s3865_s8, [#allocation7], %s5755_s27, %s5755_s27, %s5756_s7  }
  0x33   : > { %s5791_s3 = sld [smem:[#allocation20_spill]] }
  0x39   : > { %s3574_s16 = scalar_lea.hbm %s5791_s3, 16 }
  0x3a   : > { %p3575_p1 = scmp.ne.s32.totalorder %s5791_s3, %s3574_s16  ;;  %p3581_p10 = scmp.lt.u32.totalorder %s3574_s16, %s5791_s3 }
  0x3c   : > { %p3577_p2 = pnand %p3575_p1, %p3888_p13 }
  0x3e   : > { %p3578_p6 = pneg %p3577_p2 }
  0x40   : > { %p3583_p3 = pnand %p3581_p10, %p3578_p6 }
  0x42   : > { %3586 = shalt.err (!%p3583_p3)
}
  0x43   : > { %s3587_s8 = scalar_lea.vmem %s3876_s11, 16  ;;  %s3594_s22 = scalar_lea.vmem %s3876_s11, 32 }
  0x44   : > { %p3588_p5 = scmp.ne.s32.totalorder %s3876_s11, %s3587_s8  ;;  %p3595_p12 = scmp.lt.s32.totalorder %s3876_s11, %s3876_s11 }
  0x45   : > { %p3596_p0 = scmp.lt.s32.totalorder %s3594_s22, %s3587_s8 }
  0x46   : > { %p3590_p7 = pnand %p3588_p5, %p3888_p13 }
  0x47   : > { %p3597_p1 = por %p3596_p0, %p3595_p12 }
  0x48   : > { %p3591_p9 = pneg %p3590_p7 }
  0x4a   : > { %p3598_p2 = pnand %p3597_p1, %p3591_p9 }
  0x4c   : > { %3601 = shalt.err (!%p3598_p2)
}
  0x4d   : > { %3347 = dma.hbm_to_vmem [thread:$0]  (!%p3872_p11), %s5791_s3, 16, %s3876_s11, [#allocation10]  }
  0x4e   : > { %s3602_s16 = scalar_lea.hbm %s5749_s4, 16 }
  0x4f   : > { %p3603_p6 = scmp.ne.s32.totalorder %s5749_s4, %s3602_s16  ;;  %p3609_p5 = scmp.lt.u32.totalorder %s3602_s16, %s5749_s4 }
  0x51   : > { %p3605_p10 = pnand %p3603_p6, %p3888_p13 }
  0x53   : > { %p3606_p3 = pneg %p3605_p10 }
  0x55   : > { %p3611_p7 = pnand %p3609_p5, %p3606_p3 }
  0x57   : > { %3614 = shalt.err (!%p3611_p7)
}
  0x58   : > { %s3615_s8 = scalar_lea.vmem %s233_s13, 16  ;;  %s3622_s11 = scalar_lea.vmem %s233_s13, 32 }
  0x59   : > { %p3616_p9 = scmp.ne.s32.totalorder %s233_s13, %s3615_s8  ;;  %p3623_p1 = scmp.lt.s32.totalorder %s233_s13, %s233_s13 }
  0x5a   : > { %p3624_p2 = scmp.lt.s32.totalorder %s3622_s11, %s3615_s8 }
  0x5b   : > { %p3618_p12 = pnand %p3616_p9, %p3888_p13 }
  0x5c   : > { %p3625_p4 = por %p3624_p2, %p3623_p1 }
  0x5d   : > { %p3619_p0 = pneg %p3618_p12 }
  0x5f   : > { %p3626_p8 = pnand %p3625_p4, %p3619_p0 }
  0x61   : > { %3629 = shalt.err (!%p3626_p8)
}
  0x62   : > { %3350 = dma.hbm_to_vmem [thread:$0]  (!%p3872_p11), %s5749_s4, 16, %s233_s13, [#allocation10]  }
  0x63   : > { %s3956_s19 = sadd.s32 1, %s3768_s26   ;;  %s35_s12 = sadd.s32 1, %s3764_s25 }
  0x64   : > { %s32_s9 = ssub.s32 %s3768_s26, %s3956_s19  ;;  %p42_p8 = scmp.ne.s32.totalorder %s3764_s25, %s3760_s24 }
  0x65   : > { %p33_p4 = scmp.eq.s32.totalorder %s32_s9, 0  ;;  %p43_p13 = scmp.eq.s32.totalorder %s3768_s26, 0 }
  0x66   : > { %p3365_p6 = scmp.lt.s32.totalorder %s3768_s26, 2  ;;  %p5792_p3 = scmp.eq.s32.totalorder %s3842_s5, 1 }
  0x67   : > { %s3966_s14 = scalar_select %p33_p4, %s3764_s25, %s35_s12  }
  0x68   : > { %p44_p10 = por %p43_p13, %p42_p8  ;;  %p3970_p5 = por %p5792_p3, %p42_p8 }
  0x69   : > { %s3975_s16 = sand.u32 1, %s3764_s25   ;;  %s3321_s13 = smul.u32 3456, %s3768_s26 }
  0x6a   : > { %s3320_s17 = smul.u32 216, %s3975_s16  ;;  %s5794_s0 = sld [smem:[#allocation18_spill]] }
  0x6b   : > { %p3984_p11 = pnand %p3365_p6, %p44_p10  ;;  %s247_s9 = scalar_lea.sflag [#allocation4], %s3975_s16 }
  0x6c   : > { %s250_s22 = scalar_lea.vmem [#allocation3], %s3320_s17 }
  0x6d   : > { %s257_s10 = sshll.u32 %s250_s22, 4  ;;  %p3632_p9 = pneg %p3984_p11  ;;  %s3989_s10 = int_to_ptr.vmem [resolvable:$true] %s257_s10 }
  0x70   : > { %s3982_s21 = scalar_lea.hbm %s5794_s0, %s3321_s13  ;;  %s3635_s20 = scalar_lea.hbm %s5794_s0, 6912 }
  0x71   : > { %s3630_s12 = scalar_lea.hbm %s3982_s21, 3456  ;;  %p3636_p1 = scmp.lt.u32.totalorder %s3982_s21, %s5794_s0 }
  0x72   : > { %p3631_p7 = scmp.ne.s32.totalorder %s3982_s21, %s3630_s12  ;;  %p3637_p2 = scmp.lt.u32.totalorder %s3635_s20, %s3630_s12 }
  0x73   : > { %p3639_p8 = scmp.lt.u32.totalorder %s3630_s12, %s3982_s21 }
  0x74   : > { %p3633_p12 = pnand %p3632_p9, %p3631_p7  ;;  %p3638_p4 = por %p3637_p2, %p3636_p1 }
  0x76   : > { %p3634_p0 = pneg %p3633_p12  ;;  %p3640_p13 = por %p3639_p8, %p3638_p4 }
  0x78   : > { %p3641_p6 = pnand %p3640_p13, %p3634_p0 }
  0x7a   : > { %3644 = shalt.err (!%p3641_p6)
}
  0x7b   : > { %s3645_s17 = scalar_lea.vmem %s3989_s10, 3456  ;;  %s3775_s22 = smov [#allocation3]  }
  0x7c   : > { %p3646_p10 = scmp.ne.s32.totalorder %s3989_s10, %s3645_s17  ;;  %s3650_s13 = sshll.u32 %s3775_s22, 4  ;;  %s3651_s13 = int_to_ptr.vmem [resolvable:$false] %s3650_s13 }
  0x7d   : > { %s3652_s27 = scalar_lea.vmem %s3651_s13, 6912  ;;  %p3653_p12 = scmp.lt.s32.totalorder %s3989_s10, %s3651_s13 }
  0x7e   : > { %p3648_p3 = pnand %p3646_p10, %p3632_p9  ;;  %p3654_p1 = scmp.lt.s32.totalorder %s3652_s27, %s3645_s17 }
  0x80   : > { %p3649_p7 = pneg %p3648_p3  ;;  %p3655_p2 = por %p3654_p1, %p3653_p12 }
  0x82   : > { %p3656_p4 = pnand %p3655_p2, %p3649_p7 }
  0x84   : > { %3659 = shalt.err (!%p3656_p4)
}
  0x85   : > { %s5796_s7 = smov 4   ;;  %s5797_s12 = smov 64  }
  0x86   : > { %3354 = dma.hbm_to_vmem [thread:$0]  (!%p3984_p11), %s3982_s21, 3456, %s3989_s10, %s247_s9, %s5797_s12, %s5797_s12, %s5796_s7  }
  0x87   : > { %s3148_s18 = sshll.u32 %s3975_s16, 4  ;;  %s3216_s20 = sshll.u32 %s3768_s26, 8 }
  0x88   : > { %s4027_s13 = scalar_lea.hbm %s5746_s1, %s3216_s20  ;;  %s271_s27 = scalar_lea.vmem [#allocation6], %s3148_s18 }
  0x89   : > { %s278_s11 = sshll.u32 %s271_s27, 4  ;;  %s5798_s0 = sand.u32 1, %s3768_s26   ;;  %s4029_s11 = int_to_ptr.vmem [resolvable:$true] %s278_s11 }
  0x8a   : > { %s4033_s2 = scalar_lea.sflag [#allocation7], %s5798_s0  ;;  %s3660_s3 = scalar_lea.hbm %s4027_s13, 256 }
  0x8b   : > { %p3661_p0 = scmp.ne.s32.totalorder %s4027_s13, %s3660_s3  ;;  %s3665_s10 = scalar_lea.hbm %s5746_s1, 512 }
  0x8c   : > { %p3666_p6 = scmp.lt.u32.totalorder %s4027_s13, %s5746_s1  ;;  %p3667_p10 = scmp.lt.u32.totalorder %s3665_s10, %s3660_s3 }
  0x8d   : > { %p3663_p8 = pnand %p3661_p0, %p3632_p9  ;;  %p3669_p7 = scmp.lt.u32.totalorder %s3660_s3, %s4027_s13 }
  0x8e   : > { %p3668_p3 = por %p3667_p10, %p3666_p6 }
  0x8f   : > { %p3664_p13 = pneg %p3663_p8 }
  0x90   : > { %p3670_p12 = por %p3669_p7, %p3668_p3 }
  0x92   : > { %p3671_p1 = pnand %p3670_p12, %p3664_p13 }
  0x94   : > { %3674 = shalt.err (!%p3671_p1)
}
  0x95   : > { %s3675_s0 = scalar_lea.vmem %s4029_s11, 256  ;;  %s3776_s12 = smov [#allocation6]  }
  0x96   : > { %p3676_p2 = scmp.ne.s32.totalorder %s4029_s11, %s3675_s0  ;;  %s3680_s18 = sshll.u32 %s3776_s12, 4  ;;  %s3681_s18 = int_to_ptr.vmem [resolvable:$false] %s3680_s18 }
  0x97   : > { %s3682_s20 = scalar_lea.vmem %s3681_s18, 512  ;;  %p3683_p8 = scmp.lt.s32.totalorder %s4029_s11, %s3681_s18 }
  0x98   : > { %p3678_p4 = pnand %p3676_p2, %p3632_p9  ;;  %p3684_p6 = scmp.lt.s32.totalorder %s3682_s20, %s3675_s0 }
  0x9a   : > { %p3679_p0 = pneg %p3678_p4  ;;  %p3685_p10 = por %p3684_p6, %p3683_p8 }
  0x9c   : > { %p3686_p3 = pnand %p3685_p10, %p3679_p0 }
  0x9e   : > { %3689 = shalt.err (!%p3686_p3)
}
  0x9f   : > { %s3777_s3 = smov 128   ;;  %s3778_s17 = smov 8  }
  0xa0   : > { %3357 = dma.hbm_to_vmem [thread:$0]  (!%p3984_p11), %s4027_s13, 256, %s4029_s11, %s4033_s2, %s3777_s3, %s3777_s3, %s3778_s17  }
  0xa1   : > { %p5799_p9 = scmp.ne.s32.totalorder %s5787_s30, 0 }
  0xa2   : > { %s4062_s22 = sand.u32 (!%p5799_p9), 1, %s3760_s24   ;;  %p5800_p13 = scmp.ne.s32.totalorder (!%p5799_p9), %s5785_s28, 0 }
  0xa3   : > { %290 = sbr.rel (%p5799_p9) target bundleno = 1038 (0x40e), region = 44  ;;  %s293_s16 = scalar_lea.sflag (!%p5799_p9), [#allocation4], %s4062_s22 }
  0xa4   : > { %s3322_s27 = smul.u32 (!%p5799_p9), 216, %s4062_s22 }
  0xa6   : > { %s4066_s21 = scalar_lea.vmem (!%p5799_p9), [#allocation3], %s3322_s27 }
  0xaa   : > { %3735 = dma.done.wait (%p5800_p13), %s293_s16, 3456  }
  0xab   : > { %3737 = vsyncadd (%p5800_p13), %s293_s16, 4294963840  ;;  %s301_s2 = sand.u32 1, %s3842_s5   ;;  %s3152_s30 = sshll.u32 %s4062_s22, 4 }
  0xac   : > { %s302_s8 = scalar_lea.sflag [#allocation7], %s301_s2  ;;  %s4074_s11 = scalar_lea.vmem [#allocation6], %s3152_s30 }
  0xad   : > { %3739 = dma.done.wait (%p5800_p13), %s302_s8, 256  }
  0xae   : > { %3741 = vsyncadd (%p5800_p13), %s302_s8, 4294967040  ;;  %p5801_p11 = scmp.eq.s32.totalorder %s3842_s5, 0 }
  0xb0   : > { %3743 = dma.done.wait (%p5801_p11), [#allocation7], 256   ;;  %p5802_p7 = pmov %p5801_p11 }
  0xb2   : > { %3745 = vsyncadd (%p5802_p7), [#allocation7], 4294967040  ;;  %p5803_p12 = pmov %p5802_p7 }
  0xb3   : > { %p5804_p1 = pmov %p5802_p7 }
  0xb4   : > { %3747 = dma.done.wait (%p5803_p12), [#allocation10], 32  }
  0xb5   : > { %3749 = vsyncadd (%p5804_p1), [#allocation10], 4294967264  ;;  %v462_v1 = vlaneseq  ;;  %vm630_vm0 = vcmask 1046528   ;;  %v3414_v5 = vld [vmem:[#allocation8] sm:$0xff]   ;;  %v3415_v7 = vld [vmem:[#allocation8 + $0x8] sm:$0xff]   ;;  %vm875_vm1 = vcmask 1045504  }
  0xb6   : > { %3280 = vmatprep.subr.bf16.mxu0 %v3414_v5  ;;  %3316 = vmatprep.subr.bf16.mxu1 %v3414_v5  ;;  %v4095_v9 = vld [vmem:[%s4074_s11] sm:$0xff]  ;;  %v3219_v10 = vld [vmem:[%s4066_s21] sm:$0xff]   ;;  %v3254_v22 = vld [vmem:[%s4066_s21 + $0x18] sm:$0xff]   ;;  %vm2171_vm2 = vcmask 261120   ;;  %s3156_s28 = sshll.u32 %s4062_s22, 8  ;;  %s3217_s10 = sshll.u32 %s3842_s5, 12 }
  0xb7   : > { %v4088_v2 = vshrl.u32 %v462_v1, 7  ;;  %3281 = vmatpush3.bf16.msra.mxu0 %v3414_v5  ;;  %3318 = vmatpush3.bf16.msra.mxu1 %v3414_v5  ;;  %v3220_v15 = vunpack.c.l.bf16 %v3219_v10  ;;  %v3221_v16 = vunpack.c.h.bf16 %v3219_v10  ;;  %v356_v17 = vld [vmem:[%s4066_s21 + $0x8] sm:$0x1]  ;;  %v357_v18 = vld [vmem:[%s4066_s21 + $0xc] sm:$0xff]   ;;  %v359_v19 = vld [vmem:[%s4066_s21 + $0x14] sm:$0x1]  ;;  %v4122_v29 = vunpack.c.l.bf16 %v3254_v22  ;;  %s5695_s12 = scalar_lea.hbm %s5751_s6, %s3217_s10 }
  0xb8   : > { %3282 = vmatprep.subr.bf16.mxu0 %v3415_v7  ;;  %3317 = vmatprep.subr.bf16.mxu1 %v3415_v7  ;;  %v362_v23 = vld [vmem:[%s4066_s21 + $0x20] sm:$0x1]  ;;  %v4113_v24 = vunpack.c.l.bf16 %v357_v18  ;;  %v4115_v25 = vunpack.c.h.bf16 %v357_v18  ;;  %v444_v26 = vunpack.c.l.bf16 %v356_v17  ;;  %v4117_v27 = vunpack.c.l.bf16 %v359_v19  ;;  %s5568_s13 = scalar_lea.vmem [#allocation12], %s3156_s28  ;;  %s3004_s5 = scalar_lea.sflag [#allocation5], %s4062_s22 }
  0xb9   : > { %v464_v3 = vsub.s32 0, %v4088_v2  ;;  %v532_v4 = vsub.s32 1, %v4088_v2  ;;  %v777_v6 = vsub.s32 2, %v4088_v2  ;;  %v1022_v8 = vsub.s32 3, %v4088_v2  ;;  %v4120_v28 = vld [vmem:[%s4066_s21 + $0x60] sm:$0xff]   ;;  %s3017_s9 = sshll.u32 %s5568_s13, 4  ;;  %s5697_s9 = int_to_ptr.vmem [resolvable:$true] %s3017_s9 }
  0xba   : > { %v1090_v11 = vsub.s32 4, %v4088_v2  ;;  %v1334_v12 = vsub.s32 5, %v4088_v2  ;;  %v1578_v13 = vsub.s32 6, %v4088_v2  ;;  %v1646_v14 = vsub.s32 7, %v4088_v2  ;;  %s3690_s18 = scalar_lea.vmem %s5697_s9, 4096  ;;  %s3780_s20 = smov [#allocation12]  }
  0xbb   : > { %v4106_v20 = vrot.slane %v4095_v9, %v464_v3  ;;  %v4109_v21 = vrot.slane %v4095_v9, %v532_v4  ;;  %v4124_v30 = vunpack.c.h.bf16 %v3254_v22  ;;  %v4126_v31 = vunpack.c.l.bf16 %v362_v23  ;;  %3283 = vmatpush3.bf16.msra.mxu0 %v3415_v7  ;;  %3319 = vmatpush3.bf16.msra.mxu1 %v3415_v7  ;;  %p3691_p2 = scmp.ne.s32.totalorder %s5697_s9, %s3690_s18  ;;  %s3694_s3 = sshll.u32 %s3780_s20, 4  ;;  %s3695_s3 = int_to_ptr.vmem [resolvable:$false] %s3694_s3 }
  0xbc   : > { %v4134_v37 = vrot.slane %v4095_v9, %v777_v6  ;;  %v4137_v38 = vrot.slane %v4095_v9, %v1022_v8  ;;  %v4140_v39 = vrot.slane %v4095_v9, %v1090_v11  ;;  %v4143_v40 = vunpack.c.l.bf16 %v4120_v28  ;;  %v4172_v6 = vld [vmem:[%s4074_s11 + $0x8] ss:$0 sm:$0xff]  ;;  %s3696_s17 = scalar_lea.vmem %s3695_s3, 8192  ;;  %p3697_p8 = scmp.lt.s32.totalorder %s5697_s9, %s3695_s3 }
  0xbd   : > { %v466_v32 = vmul.f32 %v3220_v15, %v4106_v20  ;;  %v467_v33 = vmul.f32 %v3221_v16, %v4106_v20  ;;  %v534_v34 = vmul.f32 %v3220_v15, %v4109_v21  ;;  %v535_v35 = vmul.f32 %v3221_v16, %v4109_v21  ;;  %p3692_p4 = pnand %p3691_p2, %p3970_p5  ;;  %p3698_p6 = scmp.lt.s32.totalorder %s3696_s17, %s3690_s18 }
  0xbe   : > { %v536_v36 = vmul.f32 %v4109_v21, %v444_v26  ;;  %v4146_v44 = vrot.slane %v4095_v9, %v1334_v12  ;;  %v779_v45 = vmul.f32 %v3220_v15, %v4134_v37  ;;  %v780_v46 = vmul.f32 %v3221_v16, %v4134_v37 }
  0xbf   : > { %v631_v41 = vrot.slane %v534_v34, 1  ;;  %v632_v42 = vrot.slane %v535_v35, 1  ;;  %v781_v47 = vmul.f32 %v4134_v37, %v444_v26  ;;  %v1024_v48 = vmul.f32 %v4137_v38, %v4113_v24  ;;  %p3693_p0 = pneg %p3692_p4  ;;  %p3699_p10 = por %p3698_p6, %p3697_p8 }
  0xc0   : > { %v634_v43 = vrot.slane %v536_v36, 1  ;;  %v1025_v51 = vmul.f32 %v4137_v38, %v4115_v25  ;;  %v1092_v52 = vmul.f32 %v4140_v39, %v4113_v24  ;;  %v876_v55 = vrot.slane %v779_v45, 2 }
  0xc1   : > { %v633_v49 = vsel %vm630_vm0, %v631_v41, %v632_v42  ;;  %v877_v56 = vrot.slane %v780_v46, 2  ;;  %v879_v57 = vrot.slane %v781_v47, 2  ;;  %v1093_v58 = vmul.f32 %v4140_v39, %v4115_v25  ;;  %p3700_p3 = pnand %p3699_p10, %p3693_p0 }
  0xc2   : > { %v635_v50 = vsel %vm630_vm0, %v632_v42, %v634_v43  ;;  %v743_v53 = vadd.f32 %v633_v49, %v466_v32  ;;  %v1094_v59 = vmul.f32 %v4140_v39, %v4117_v27  ;;  %v1188_v60 = vrot.slane %v1092_v52, 1  ;;  %v3258_v43 = vld [vmem:[%s4066_s21 + $0x78] sm:$0xff]  }
  0xc3   : > { %v744_v54 = vadd.f32 %v635_v50, %v467_v33  ;;  %v878_v61 = vsel %vm875_vm1, %v876_v55, %v877_v56  ;;  %v1336_v62 = vmul.f32 %v4146_v44, %v4113_v24  ;;  %v1337_v63 = vmul.f32 %v4146_v44, %v4115_v25 }
  0xc4   : > { %v1338_v0 = vmul.f32 %v4146_v44, %v4117_v27  ;;  %v880_v1 = vsel %vm875_vm1, %v877_v56, %v879_v57  ;;  %v988_v3 = vadd.f32 %v878_v61, %v743_v53  ;;  %v1189_v4 = vrot.slane %v1093_v58, 1  ;;  %v380_v53 = vld [vmem:[%s4066_s21 + $0x68] sm:$0x1]  ;;  %v383_v58 = vld [vmem:[%s4066_s21 + $0x74] sm:$0x1] }
  0xc5   : > { %v1191_v5 = vrot.slane %v1094_v59, 1  ;;  %v989_v7 = vadd.f32 %v880_v1, %v744_v54  ;;  %v1432_v8 = vrot.slane %v1336_v62, 2  ;;  %v1433_v10 = vrot.slane %v1337_v63, 2  ;;  %v381_v54 = vld [vmem:[%s4066_s21 + $0x6c] sm:$0xff]  }
  0xc6   : > { %v1435_v11 = vrot.slane %v1338_v0, 2  ;;  %v1056_v12 = vadd.f32 %v1024_v48, %v988_v3  ;;  %v1190_v15 = vsel %vm630_vm0, %v1188_v60, %v1189_v4  ;;  %v4179_v17 = vrot.slane %v4095_v9, %v1578_v13  ;;  %v386_v60 = vld [vmem:[%s4066_s21 + $0x80] sm:$0x1] }
  0xc7   : > { %v1192_v16 = vsel %vm630_vm0, %v1189_v4, %v1191_v5  ;;  %v1057_v18 = vadd.f32 %v1025_v51, %v989_v7  ;;  %v1434_v19 = vsel %vm875_vm1, %v1432_v8, %v1433_v10  ;;  %v4186_v23 = vrot.slane %v4095_v9, %v1646_v14 }
  0xc8   : > { %v1436_v22 = vsel %vm875_vm1, %v1433_v10, %v1435_v11  ;;  %v1300_v26 = vadd.f32 %v1190_v15, %v1056_v12  ;;  %v1580_v32 = vmul.f32 %v4122_v29, %v4179_v17  ;;  %v1581_v33 = vmul.f32 %v4124_v30, %v4179_v17 }
  0xc9   : > { %v1892_v13 = vmul.f32 %v4122_v29, %v4172_v6  ;;  %v1301_v34 = vadd.f32 %v1192_v16, %v1057_v18  ;;  %v1648_v35 = vmul.f32 %v4122_v29, %v4186_v23  ;;  %v1649_v2 = vmul.f32 %v4124_v30, %v4186_v23 }
  0xca   : > { %v1650_v9 = vmul.f32 %v4186_v23, %v4126_v31  ;;  %v1544_v14 = vadd.f32 %v1434_v19, %v1300_v26  ;;  %v1893_v36 = vmul.f32 %v4124_v30, %v4172_v6  ;;  %v1894_v41 = vmul.f32 %v4172_v6, %v4126_v31 }
  0xcb   : > { %v1988_v42 = vrot.slane %v1892_v13, 2  ;;  %v1545_v45 = vadd.f32 %v1436_v22, %v1301_v34  ;;  %v1744_v46 = vrot.slane %v1648_v35, 1  ;;  %v1745_v47 = vrot.slane %v1649_v2, 1 }
  0xcc   : > { %v1747_v48 = vrot.slane %v1650_v9, 1  ;;  %v1612_v49 = vadd.f32 %v1580_v32, %v1544_v14  ;;  %v1989_v50 = vrot.slane %v1893_v36, 2  ;;  %v1991_v51 = vrot.slane %v1894_v41, 2 }
  0xcd   : > { %v4206_v52 = vunpack.c.h.bf16 %v4120_v28  ;;  %v1613_v55 = vadd.f32 %v1581_v33, %v1545_v45  ;;  %v1746_v56 = vsel %vm630_vm0, %v1744_v46, %v1745_v47  ;;  %v4213_v59 = vunpack.c.l.bf16 %v3258_v43 }
  0xce   : > { %v1748_v57 = vsel %vm630_vm0, %v1745_v47, %v1747_v48  ;;  %v1856_v61 = vadd.f32 %v1746_v56, %v1612_v49  ;;  %v1990_v62 = vsel %vm875_vm1, %v1988_v42, %v1989_v50  ;;  %v1992_v63 = vsel %vm875_vm1, %v1989_v50, %v1991_v51 }
  0xcf   : > { %v4218_v0 = vunpack.c.h.bf16 %v3258_v43  ;;  %v1857_v28 = vadd.f32 %v1748_v57, %v1613_v55  ;;  %v4220_v1 = vunpack.c.l.bf16 %v381_v54  ;;  %v4222_v3 = vunpack.c.h.bf16 %v381_v54 }
  0xd0   : > { %v4224_v4 = vunpack.c.l.bf16 %v380_v53  ;;  %v2100_v5 = vadd.f32 %v1990_v62, %v1856_v61  ;;  %v4226_v7 = vunpack.c.l.bf16 %v383_v58  ;;  %v4228_v8 = vunpack.c.l.bf16 %v386_v60 }
  0xd1   : > { %v482_v10 = vmul.f32 %v4143_v40, %v4106_v20  ;;  %v2101_v11 = vadd.f32 %v1992_v63, %v1857_v28  ;;  %v483_v12 = vmul.f32 %v4206_v52, %v4106_v20  ;;  %v558_v15 = vmul.f32 %v4143_v40, %v4109_v21 }
  0xd2   : > { %v559_v16 = vmul.f32 %v4206_v52, %v4109_v21  ;;  %v560_v18 = vmul.f32 %v4109_v21, %v4224_v4  ;;  %v803_v19 = vmul.f32 %v4143_v40, %v4134_v37  ;;  %v804_v22 = vmul.f32 %v4206_v52, %v4134_v37 }
  0xd3   : > { %v805_v26 = vmul.f32 %v4134_v37, %v4224_v4  ;;  %v2132_v32 = vpack.c.bf16 %v2101_v11, %v2100_v5  ;;  %v671_v33 = vrot.slane %v558_v15, 1  ;;  %v1040_v34 = vmul.f32 %v4137_v38, %v4220_v1 }
  0xd4   : > { %v672_v13 = vrot.slane %v559_v16, 1  ;;  %v674_v35 = vrot.slane %v560_v18, 1  ;;  %v916_v2 = vrot.slane %v803_v19, 2  ;;  %v917_v9 = vrot.slane %v804_v22, 2 }
  0xd5   : > { %v919_v14 = vrot.slane %v805_v26, 2  ;;  %3284 = vmatprep.mubr.msk.bf16.mxu0 %vm2171_vm2, %v2132_v32  ;;  %v1041_v41 = vmul.f32 %v4137_v38, %v4222_v3  ;;  %v1116_v42 = vmul.f32 %v4140_v39, %v4220_v1  ;;  %v1117_v43 = vmul.f32 %v4140_v39, %v4222_v3  ;;  %v363_v32 = vld [vmem:[%s4066_s21 + $0x24] sm:$0xff]  }
  0xd6   : > { %v673_v36 = vsel %vm630_vm0, %v671_v33, %v672_v13  ;;  %v675_v45 = vsel %vm630_vm0, %v672_v13, %v674_v35  ;;  %v918_v47 = vsel %vm875_vm1, %v916_v2, %v917_v9  ;;  %v1118_v50 = vmul.f32 %v4140_v39, %v4226_v7 }
  0xd7   : > { %v759_v46 = vadd.f32 %v673_v36, %v482_v10  ;;  %v920_v48 = vsel %vm875_vm1, %v917_v9, %v919_v14  ;;  %v760_v49 = vadd.f32 %v675_v45, %v483_v12  ;;  %v1228_v51 = vrot.slane %v1116_v42, 1 }
  0xd8   : > { %v1229_v53 = vrot.slane %v1117_v43, 1  ;;  %v1360_v55 = vmul.f32 %v4146_v44, %v4220_v1  ;;  %v1361_v56 = vmul.f32 %v4146_v44, %v4222_v3  ;;  %v1362_v57 = vmul.f32 %v4146_v44, %v4226_v7 }
  0xd9   : > { %v1004_v54 = vadd.f32 %v918_v47, %v759_v46  ;;  %v1005_v58 = vadd.f32 %v920_v48, %v760_v49  ;;  %v1231_v61 = vrot.slane %v1118_v50, 1  ;;  %v1596_v62 = vmul.f32 %v4213_v59, %v4179_v17 }
  0xda   : > { %v1230_v60 = vsel %vm630_vm0, %v1228_v51, %v1229_v53  ;;  %v1472_v28 = vrot.slane %v1360_v55, 2  ;;  %v1473_v5 = vrot.slane %v1361_v56, 2  ;;  %v1475_v10 = vrot.slane %v1362_v57, 2 }
  0xdb   : > { %v1072_v63 = vadd.f32 %v1040_v34, %v1004_v54  ;;  %v1073_v11 = vadd.f32 %v1041_v41, %v1005_v58  ;;  %v1232_v12 = vsel %vm630_vm0, %v1229_v53, %v1231_v61  ;;  %v1597_v15 = vmul.f32 %v4218_v0, %v4179_v17  ;;  %v365_v41 = vld [vmem:[%s4066_s21 + $0x2c] sm:$0x1] }
  0xdc   : > { %v1672_v16 = vmul.f32 %v4213_v59, %v4186_v23  ;;  %v1474_v19 = vsel %vm875_vm1, %v1472_v28, %v1473_v5  ;;  %v1476_v22 = vsel %vm875_vm1, %v1473_v5, %v1475_v10  ;;  %v1673_v26 = vmul.f32 %v4218_v0, %v4186_v23 }
  0xdd   : > { %v1316_v18 = vadd.f32 %v1230_v60, %v1072_v63  ;;  %v1317_v33 = vadd.f32 %v1232_v12, %v1073_v11  ;;  %v1674_v13 = vmul.f32 %v4186_v23, %v4228_v8  ;;  %v1916_v35 = vmul.f32 %v4213_v59, %v4172_v6 }
  0xde   : > { %v1784_v34 = vrot.slane %v1672_v16, 1  ;;  %v1785_v9 = vrot.slane %v1673_v26, 1  ;;  %v1917_v14 = vmul.f32 %v4218_v0, %v4172_v6  ;;  %v1918_v36 = vmul.f32 %v4172_v6, %v4228_v8 }
  0xdf   : > { %v1560_v2 = vadd.f32 %v1474_v19, %v1316_v18  ;;  %v1561_v42 = vadd.f32 %v1476_v22, %v1317_v33  ;;  %v1787_v43 = vrot.slane %v1674_v13, 1  ;;  %v2028_v45 = vrot.slane %v1916_v35, 2 }
  0xe0   : > { %v4289_v46 = vunpack.c.l.bf16 %v363_v32  ;;  %v1786_v48 = vsel %vm630_vm0, %v1784_v34, %v1785_v9  ;;  %v2029_v49 = vrot.slane %v1917_v14, 2  ;;  %v2031_v50 = vrot.slane %v1918_v36, 2 }
  0xe1   : > { %v1628_v47 = vadd.f32 %v1596_v62, %v1560_v2  ;;  %v1629_v51 = vadd.f32 %v1597_v15, %v1561_v42  ;;  %v1788_v53 = vsel %vm630_vm0, %v1785_v9, %v1787_v43  ;;  %v4293_v54 = vunpack.c.h.bf16 %v363_v32 }
  0xe2   : > { %v4295_v55 = vunpack.c.l.bf16 %v365_v41  ;;  %v2030_v57 = vsel %vm875_vm1, %v2028_v45, %v2029_v49  ;;  %v2032_v58 = vsel %vm875_vm1, %v2029_v49, %v2031_v50  ;;  %v468_v60 = vmul.f32 %v4106_v20, %v4113_v24 }
  0xe3   : > { %v1872_v56 = vadd.f32 %v1786_v48, %v1628_v47  ;;  %v1873_v61 = vadd.f32 %v1788_v53, %v1629_v51  ;;  %v469_v62 = vmul.f32 %v4106_v20, %v4115_v25  ;;  %v537_v63 = vmul.f32 %v4109_v21, %v4113_v24 }
  0xe4   : > { %v538_v28 = vmul.f32 %v4109_v21, %v4115_v25  ;;  %v539_v10 = vmul.f32 %v4109_v21, %v4117_v27  ;;  %v782_v11 = vmul.f32 %v4134_v37, %v4113_v24  ;;  %v783_v12 = vmul.f32 %v4134_v37, %v4115_v25 }
  0xe5   : > { %v2116_v5 = vadd.f32 %v2030_v57, %v1872_v56  ;;  %v2117_v15 = vadd.f32 %v2032_v58, %v1873_v61  ;;  %v636_v16 = vrot.slane %v537_v63, 1  ;;  %v784_v19 = vmul.f32 %v4134_v37, %v4117_v27 }
  0xe6   : > { %v637_v18 = vrot.slane %v538_v28, 1  ;;  %v639_v22 = vrot.slane %v539_v10, 1  ;;  %v881_v26 = vrot.slane %v782_v11, 2  ;;  %v882_v32 = vrot.slane %v783_v12, 2 }
  0xe7   : > { %v1026_v33 = vmul.f32 %v4122_v29, %v4137_v38  ;;  %v2140_v13 = vpack.c.bf16 %v2117_v15, %v2116_v5  ;;  %v884_v35 = vrot.slane %v784_v19, 2  ;;  %v1027_v24 = vmul.f32 %v4124_v30, %v4137_v38 }
  0xe8   : > { %v638_v34 = vsel %vm630_vm0, %v636_v16, %v637_v18  ;;  %v640_v25 = vsel %vm630_vm0, %v637_v18, %v639_v22  ;;  %v883_v9 = vsel %vm875_vm1, %v881_v26, %v882_v32  ;;  %v1095_v27 = vmul.f32 %v4122_v29, %v4140_v39  ;;  %v387_v22 = vld [vmem:[%s4066_s21 + $0x84] sm:$0xff]  }
  0xe9   : > { %v745_v2 = vadd.f32 %v638_v34, %v468_v60  ;;  %3300 = vmatprep.mubr.msk.bf16.mxu1 %vm2171_vm2, %v2140_v13  ;;  %v746_v14 = vadd.f32 %v640_v25, %v469_v62  ;;  %v885_v36 = vsel %vm875_vm1, %v882_v32, %v884_v35  ;;  %v1096_v41 = vmul.f32 %v4124_v30, %v4140_v39 }
  0xea   : > { %v1097_v42 = vmul.f32 %v4140_v39, %v4126_v31  ;;  %v1193_v45 = vrot.slane %v1095_v27, 1  ;;  %v1339_v47 = vmul.f32 %v4122_v29, %v4146_v44  ;;  %v1340_v48 = vmul.f32 %v4124_v30, %v4146_v44 }
  0xeb   : > { %v990_v43 = vadd.f32 %v883_v9, %v745_v2  ;;  %v991_v49 = vadd.f32 %v885_v36, %v746_v14  ;;  %v1194_v50 = vrot.slane %v1096_v41, 1  ;;  %v1341_v53 = vmul.f32 %v4146_v44, %v4126_v31  ;;  %v389_v2 = vld [vmem:[%s4066_s21 + $0x8c] sm:$0x1] }
  0xec   : > { %v1196_v51 = vrot.slane %v1097_v42, 1  ;;  %v1437_v57 = vrot.slane %v1339_v47, 2  ;;  %v1438_v58 = vrot.slane %v1340_v48, 2  ;;  %v1582_v60 = vmul.f32 %v4179_v17, %v4289_v46 }
  0xed   : > { %v1058_v56 = vadd.f32 %v1026_v33, %v990_v43  ;;  %v1059_v61 = vadd.f32 %v1027_v24, %v991_v49  ;;  %v1195_v62 = vsel %vm630_vm0, %v1193_v45, %v1194_v50  ;;  %v1440_v28 = vrot.slane %v1341_v53, 2 }
  0xee   : > { %v1197_v63 = vsel %vm630_vm0, %v1194_v50, %v1196_v51  ;;  %v1439_v10 = vsel %vm875_vm1, %v1437_v57, %v1438_v58  ;;  %v1583_v11 = vmul.f32 %v4179_v17, %v4293_v54  ;;  %v1651_v12 = vmul.f32 %v4186_v23, %v4289_v46 }
  0xef   : > { %v1302_v5 = vadd.f32 %v1195_v62, %v1058_v56  ;;  %v1303_v15 = vadd.f32 %v1197_v63, %v1059_v61  ;;  %v1441_v16 = vsel %vm875_vm1, %v1438_v58, %v1440_v28  ;;  %v1652_v18 = vmul.f32 %v4186_v23, %v4293_v54 }
  0xf0   : > { %v1653_v19 = vmul.f32 %v4186_v23, %v4295_v55  ;;  %v1749_v32 = vrot.slane %v1651_v12, 1  ;;  %v1895_v33 = vmul.f32 %v4172_v6, %v4289_v46  ;;  %v1896_v13 = vmul.f32 %v4172_v6, %v4293_v54 }
  0xf1   : > { %v1546_v26 = vadd.f32 %v1439_v10, %v1302_v5  ;;  %v1547_v34 = vadd.f32 %v1441_v16, %v1303_v15  ;;  %v1750_v35 = vrot.slane %v1652_v18, 1  ;;  %v1897_v25 = vmul.f32 %v4172_v6, %v4295_v55 }
  0xf2   : > { %v1752_v24 = vrot.slane %v1653_v19, 1  ;;  %v1993_v27 = vrot.slane %v1895_v33, 2  ;;  %v1994_v14 = vrot.slane %v1896_v13, 2  ;;  %v4358_v36 = vunpack.c.l.bf16 %v387_v22 }
  0xf3   : > { %v1614_v9 = vadd.f32 %v1582_v60, %v1546_v26  ;;  %v1615_v41 = vadd.f32 %v1583_v11, %v1547_v34  ;;  %v1751_v42 = vsel %vm630_vm0, %v1749_v32, %v1750_v35  ;;  %v1996_v45 = vrot.slane %v1897_v25, 2 }
  0xf4   : > { %v1753_v43 = vsel %vm630_vm0, %v1750_v35, %v1752_v24  ;;  %v1995_v48 = vsel %vm875_vm1, %v1993_v27, %v1994_v14  ;;  %v4363_v49 = vunpack.c.h.bf16 %v387_v22  ;;  %v4365_v50 = vunpack.c.l.bf16 %v389_v2 }
  0xf5   : > { %v1858_v47 = vadd.f32 %v1751_v42, %v1614_v9  ;;  %v1859_v51 = vadd.f32 %v1753_v43, %v1615_v41  ;;  %v1997_v53 = vsel %vm875_vm1, %v1994_v14, %v1996_v45  ;;  %v484_v56 = vmul.f32 %v4106_v20, %v4220_v1 }
  0xf6   : > { %v485_v57 = vmul.f32 %v4106_v20, %v4222_v3  ;;  %v561_v60 = vmul.f32 %v4109_v21, %v4220_v1  ;;  %v562_v61 = vmul.f32 %v4109_v21, %v4222_v3  ;;  %v563_v62 = vmul.f32 %v4109_v21, %v4226_v7 }
  0xf7   : > { %v2102_v58 = vadd.f32 %v1995_v48, %v1858_v47  ;;  %v2103_v63 = vadd.f32 %v1997_v53, %v1859_v51  ;;  %v806_v28 = vmul.f32 %v4134_v37, %v4220_v1  ;;  %v807_v5 = vmul.f32 %v4134_v37, %v4222_v3 }
  0xf8   : > { %v808_v10 = vmul.f32 %v4134_v37, %v4226_v7  ;;  %v676_v11 = vrot.slane %v561_v60, 1  ;;  %v677_v12 = vrot.slane %v562_v61, 1  ;;  %v679_v15 = vrot.slane %v563_v62, 1 }
  0xf9   : > { %v1042_v16 = vmul.f32 %v4213_v59, %v4137_v38  ;;  %v2133_v18 = vpack.c.bf16 %v2103_v63, %v2102_v58  ;;  %v921_v19 = vrot.slane %v806_v28, 2  ;;  %v922_v22 = vrot.slane %v807_v5, 2 }
  0xfa   : > { %v924_v26 = vrot.slane %v808_v10, 2  ;;  %v678_v32 = vsel %vm630_vm0, %v676_v11, %v677_v12  ;;  %v680_v33 = vsel %vm630_vm0, %v677_v12, %v679_v15  ;;  %v1043_v13 = vmul.f32 %v4218_v0, %v4137_v38 }
  0xfb   : > { %v1119_v34 = vmul.f32 %v4213_v59, %v4140_v39  ;;  %3285 = vmatmul.mubr.msk.bf16.vlgmr.msra.gmra.mrb[0].mxu0 %vm2171_vm2, %v2133_v18  ;;  %v761_v35 = vadd.f32 %v678_v32, %v484_v56  ;;  %v762_v24 = vadd.f32 %v680_v33, %v485_v57  ;;  %v923_v25 = vsel %vm875_vm1, %v921_v19, %v922_v22 }
  0xfc   : > { %v925_v2 = vsel %vm875_vm1, %v922_v22, %v924_v26  ;;  %v1120_v9 = vmul.f32 %v4218_v0, %v4140_v39  ;;  %v1121_v27 = vmul.f32 %v4140_v39, %v4228_v8  ;;  %v1363_v41 = vmul.f32 %v4213_v59, %v4146_v44 }
  0xfd   : > { %v1233_v14 = vrot.slane %v1119_v34, 1  ;;  %v1006_v42 = vadd.f32 %v923_v25, %v761_v35  ;;  %v1007_v43 = vadd.f32 %v925_v2, %v762_v24  ;;  %v1364_v45 = vmul.f32 %v4218_v0, %v4146_v44  ;;  %v368_v35 = vld [vmem:[%s4066_s21 + $0x38] sm:$0x1] }
  0xfe   : > { %v1365_v47 = vmul.f32 %v4146_v44, %v4228_v8  ;;  %v1234_v48 = vrot.slane %v1120_v9, 1  ;;  %v1236_v51 = vrot.slane %v1121_v27, 1  ;;  %v1477_v53 = vrot.slane %v1363_v41, 2 }
  0xff   : > { %v1598_v56 = vmul.f32 %v4179_v17, %v4358_v36  ;;  %v1074_v57 = vadd.f32 %v1042_v16, %v1006_v42  ;;  %v1075_v58 = vadd.f32 %v1043_v13, %v1007_v43  ;;  %v1478_v60 = vrot.slane %v1364_v45, 2  ;;  %v3255_v16 = vld [vmem:[%s4066_s21 + $0x30] sm:$0xff]  }
 0x100   : > { %v1480_v61 = vrot.slane %v1365_v47, 2  ;;  %v1235_v62 = vsel %vm630_vm0, %v1233_v14, %v1234_v48  ;;  %v1237_v63 = vsel %vm630_vm0, %v1234_v48, %v1236_v51  ;;  %v1599_v28 = vmul.f32 %v4179_v17, %v4363_v49 }
 0x101   : > { %v1675_v5 = vmul.f32 %v4186_v23, %v4358_v36  ;;  %v1318_v10 = vadd.f32 %v1235_v62, %v1074_v57  ;;  %v1319_v11 = vadd.f32 %v1237_v63, %v1075_v58  ;;  %v1479_v12 = vsel %vm875_vm1, %v1477_v53, %v1478_v60 }
 0x102   : > { %v1481_v15 = vsel %vm875_vm1, %v1478_v60, %v1480_v61  ;;  %v1676_v18 = vmul.f32 %v4186_v23, %v4363_v49  ;;  %v1677_v19 = vmul.f32 %v4186_v23, %v4365_v50  ;;  %v1919_v26 = vmul.f32 %v4172_v6, %v4358_v36 }
 0x103   : > { %v1789_v22 = vrot.slane %v1675_v5, 1  ;;  %v1562_v32 = vadd.f32 %v1479_v12, %v1318_v10  ;;  %v1563_v33 = vadd.f32 %v1481_v15, %v1319_v11  ;;  %v1920_v13 = vmul.f32 %v4172_v6, %v4363_v49 }
 0x104   : > { %v1921_v34 = vmul.f32 %v4172_v6, %v4365_v50  ;;  %v1790_v24 = vrot.slane %v1676_v18, 1  ;;  %v1792_v25 = vrot.slane %v1677_v19, 1  ;;  %v2033_v2 = vrot.slane %v1919_v26, 2 }
 0x105   : > { %v4427_v9 = vunpack.c.l.bf16 %v3255_v16  ;;  %v1630_v27 = vadd.f32 %v1598_v56, %v1562_v32  ;;  %v1631_v14 = vadd.f32 %v1599_v28, %v1563_v33  ;;  %v2034_v41 = vrot.slane %v1920_v13, 2 }
 0x106   : > { %v2036_v42 = vrot.slane %v1921_v34, 2  ;;  %v1791_v43 = vsel %vm630_vm0, %v1789_v22, %v1790_v24  ;;  %v1793_v45 = vsel %vm630_vm0, %v1790_v24, %v1792_v25  ;;  %v4431_v47 = vunpack.c.h.bf16 %v3255_v16 }
 0x107   : > { %v4433_v48 = vunpack.c.l.bf16 %v368_v35  ;;  %v1874_v51 = vadd.f32 %v1791_v43, %v1630_v27  ;;  %v1875_v53 = vadd.f32 %v1793_v45, %v1631_v14  ;;  %v2035_v57 = vsel %vm875_vm1, %v2033_v2, %v2034_v41 }
 0x108   : > { %v2037_v58 = vsel %vm875_vm1, %v2034_v41, %v2036_v42  ;;  %v470_v56 = vmul.f32 %v4122_v29, %v4106_v20  ;;  %v471_v60 = vmul.f32 %v4124_v30, %v4106_v20  ;;  %v540_v61 = vmul.f32 %v4122_v29, %v4109_v21 }
 0x109   : > { %v541_v62 = vmul.f32 %v4124_v30, %v4109_v21  ;;  %v2118_v63 = vadd.f32 %v2035_v57, %v1874_v51  ;;  %v2119_v28 = vadd.f32 %v2037_v58, %v1875_v53  ;;  %v542_v5 = vmul.f32 %v4109_v21, %v4126_v31 }
 0x10a   : > { %v785_v10 = vmul.f32 %v4122_v29, %v4134_v37  ;;  %v641_v11 = vrot.slane %v540_v61, 1  ;;  %v786_v15 = vmul.f32 %v4124_v30, %v4134_v37  ;;  %v787_v16 = vmul.f32 %v4134_v37, %v4126_v31 }
 0x10b   : > { %v642_v12 = vrot.slane %v541_v62, 1  ;;  %v2141_v18 = vpack.c.bf16 %v2119_v28, %v2118_v63  ;;  %v644_v19 = vrot.slane %v542_v5, 1  ;;  %v1028_v26 = vmul.f32 %v4137_v38, %v4289_v46 }
 0x10c   : > { %v886_v22 = vrot.slane %v785_v10, 2  ;;  %v887_v33 = vrot.slane %v786_v15, 2  ;;  %v889_v13 = vrot.slane %v787_v16, 2  ;;  %v1029_v29 = vmul.f32 %v4137_v38, %v4293_v54 }
 0x10d   : > { %v643_v32 = vsel %vm630_vm0, %v641_v11, %v642_v12  ;;  %3301 = vmatmul.mubr.msk.bf16.vlgmr.msra.gmra.mrb[0].mxu1 %vm2171_vm2, %v2141_v18  ;;  %v645_v30 = vsel %vm630_vm0, %v642_v12, %v644_v19  ;;  %v1098_v31 = vmul.f32 %v4140_v39, %v4289_v46  ;;  %v1099_v35 = vmul.f32 %v4140_v39, %v4293_v54 }
 0x10e   : > { %v747_v34 = vadd.f32 %v643_v32, %v470_v56  ;;  %v748_v24 = vadd.f32 %v645_v30, %v471_v60  ;;  %v888_v25 = vsel %vm875_vm1, %v886_v22, %v887_v33  ;;  %v890_v2 = vsel %vm875_vm1, %v887_v33, %v889_v13 }
 0x10f   : > { %v1100_v27 = vmul.f32 %v4140_v39, %v4295_v55  ;;  %v1198_v41 = vrot.slane %v1098_v31, 1  ;;  %v1199_v42 = vrot.slane %v1099_v35, 1  ;;  %v1342_v43 = vmul.f32 %v4146_v44, %v4289_v46 }
 0x110   : > { %v992_v14 = vadd.f32 %v888_v25, %v747_v34  ;;  %v993_v45 = vadd.f32 %v890_v2, %v748_v24  ;;  %v1343_v53 = vmul.f32 %v4146_v44, %v4293_v54  ;;  %v1344_v57 = vmul.f32 %v4146_v44, %v4295_v55  ;;  %v371_v24 = vld [vmem:[%s4066_s21 + $0x44] sm:$0x1] }
 0x111   : > { %v1201_v51 = vrot.slane %v1100_v27, 1  ;;  %v1200_v56 = vsel %vm630_vm0, %v1198_v41, %v1199_v42  ;;  %v1442_v60 = vrot.slane %v1342_v43, 2  ;;  %v1584_v61 = vmul.f32 %v4427_v9, %v4179_v17 }
 0x112   : > { %v1060_v58 = vadd.f32 %v1028_v26, %v992_v14  ;;  %v1061_v62 = vadd.f32 %v1029_v29, %v993_v45  ;;  %v1443_v28 = vrot.slane %v1343_v53, 2  ;;  %v1445_v5 = vrot.slane %v1344_v57, 2  ;;  %v369_v26 = vld [vmem:[%s4066_s21 + $0x3c] sm:$0xff]  }
 0x113   : > { %v1202_v63 = vsel %vm630_vm0, %v1199_v42, %v1201_v51  ;;  %v1585_v11 = vmul.f32 %v4431_v47, %v4179_v17  ;;  %v1654_v12 = vmul.f32 %v4427_v9, %v4186_v23  ;;  %v1655_v15 = vmul.f32 %v4431_v47, %v4186_v23 }
 0x114   : > { %v1304_v10 = vadd.f32 %v1200_v56, %v1060_v58  ;;  %v1305_v16 = vadd.f32 %v1202_v63, %v1061_v62  ;;  %v1444_v18 = vsel %vm875_vm1, %v1442_v60, %v1443_v28  ;;  %v1446_v19 = vsel %vm875_vm1, %v1443_v28, %v1445_v5 }
 0x115   : > { %v1656_v22 = vmul.f32 %v4186_v23, %v4433_v48  ;;  %v1754_v33 = vrot.slane %v1654_v12, 1  ;;  %v1755_v13 = vrot.slane %v1655_v15, 1  ;;  %v1898_v29 = vmul.f32 %v4427_v9, %v4172_v6 }
 0x116   : > { %v1548_v32 = vadd.f32 %v1444_v18, %v1304_v10  ;;  %v1549_v30 = vadd.f32 %v1446_v19, %v1305_v16  ;;  %v1899_v31 = vmul.f32 %v4431_v47, %v4172_v6  ;;  %v1900_v35 = vmul.f32 %v4172_v6, %v4433_v48 }
 0x117   : > { %v1757_v34 = vrot.slane %v1656_v22, 1  ;;  %v1756_v2 = vsel %vm630_vm0, %v1754_v33, %v1755_v13  ;;  %v1998_v27 = vrot.slane %v1898_v29, 2  ;;  %v4497_v14 = vunpack.c.l.bf16 %v369_v26 }
 0x118   : > { %v1616_v25 = vadd.f32 %v1584_v61, %v1548_v32  ;;  %v1617_v41 = vadd.f32 %v1585_v11, %v1549_v30  ;;  %v1999_v43 = vrot.slane %v1899_v31, 2  ;;  %v2001_v45 = vrot.slane %v1900_v35, 2 }
 0x119   : > { %v1758_v42 = vsel %vm630_vm0, %v1755_v13, %v1757_v34  ;;  %v4500_v53 = vunpack.c.h.bf16 %v369_v26  ;;  %v4502_v57 = vunpack.c.l.bf16 %v371_v24  ;;  %v472_v58 = vmul.f32 %v4106_v20, %v4289_v46 }
 0x11a   : > { %v1860_v51 = vadd.f32 %v1756_v2, %v1616_v25  ;;  %v1861_v56 = vadd.f32 %v1758_v42, %v1617_v41  ;;  %v2000_v60 = vsel %vm875_vm1, %v1998_v27, %v1999_v43  ;;  %v2002_v61 = vsel %vm875_vm1, %v1999_v43, %v2001_v45 }
 0x11b   : > { %v473_v62 = vmul.f32 %v4106_v20, %v4293_v54  ;;  %v543_v28 = vmul.f32 %v4109_v21, %v4289_v46  ;;  %v544_v5 = vmul.f32 %v4109_v21, %v4293_v54  ;;  %v545_v10 = vmul.f32 %v4109_v21, %v4295_v55 }
 0x11c   : > { %v2104_v63 = vadd.f32 %v2000_v60, %v1860_v51  ;;  %v2105_v11 = vadd.f32 %v2002_v61, %v1861_v56  ;;  %v788_v12 = vmul.f32 %v4134_v37, %v4289_v46  ;;  %v789_v15 = vmul.f32 %v4134_v37, %v4293_v54 }
 0x11d   : > { %v790_v16 = vmul.f32 %v4134_v37, %v4295_v55  ;;  %v646_v18 = vrot.slane %v543_v28, 1  ;;  %v647_v19 = vrot.slane %v544_v5, 1  ;;  %v649_v22 = vrot.slane %v545_v10, 1 }
 0x11e   : > { %v1030_v26 = vmul.f32 %v4427_v9, %v4137_v38  ;;  %v2134_v32 = vpack.c.bf16 %v2105_v11, %v2104_v63  ;;  %v891_v33 = vrot.slane %v788_v12, 2  ;;  %v892_v13 = vrot.slane %v789_v15, 2 }
 0x11f   : > { %v894_v29 = vrot.slane %v790_v16, 2  ;;  %v648_v30 = vsel %vm630_vm0, %v646_v18, %v647_v19  ;;  %v650_v46 = vsel %vm630_vm0, %v647_v19, %v649_v22  ;;  %v1031_v54 = vmul.f32 %v4431_v47, %v4137_v38 }
 0x120   : > { %v1101_v55 = vmul.f32 %v4427_v9, %v4140_v39  ;;  %3288 = vmatprep.mubr.msk.bf16.mxu0 %vm2171_vm2, %v2134_v32  ;;  %v749_v34 = vadd.f32 %v648_v30, %v472_v58  ;;  %v750_v31 = vadd.f32 %v650_v46, %v473_v62  ;;  %v893_v35 = vsel %vm875_vm1, %v891_v33, %v892_v13 }
 0x121   : > { %v895_v24 = vsel %vm875_vm1, %v892_v13, %v894_v29  ;;  %v1102_v25 = vmul.f32 %v4431_v47, %v4140_v39  ;;  %v1103_v2 = vmul.f32 %v4140_v39, %v4433_v48  ;;  %v1345_v41 = vmul.f32 %v4427_v9, %v4146_v44 }
 0x122   : > { %v1203_v27 = vrot.slane %v1101_v55, 1  ;;  %v994_v42 = vadd.f32 %v893_v35, %v749_v34  ;;  %v995_v43 = vadd.f32 %v895_v24, %v750_v31  ;;  %v1346_v45 = vmul.f32 %v4431_v47, %v4146_v44  ;;  %v392_v34 = vld [vmem:[%s4066_s21 + $0x98] sm:$0x1] }
 0x123   : > { %v1347_v51 = vmul.f32 %v4146_v44, %v4433_v48  ;;  %v1204_v58 = vrot.slane %v1102_v25, 1  ;;  %v1206_v56 = vrot.slane %v1103_v2, 1  ;;  %v1447_v60 = vrot.slane %v1345_v41, 2 }
 0x124   : > { %v1586_v61 = vmul.f32 %v4179_v17, %v4497_v14  ;;  %v1062_v62 = vadd.f32 %v1030_v26, %v994_v42  ;;  %v1063_v63 = vadd.f32 %v1031_v54, %v995_v43  ;;  %v1448_v28 = vrot.slane %v1346_v45, 2  ;;  %v3259_v26 = vld [vmem:[%s4066_s21 + $0x90] sm:$0xff]  }
 0x125   : > { %v1450_v5 = vrot.slane %v1347_v51, 2  ;;  %v1205_v10 = vsel %vm630_vm0, %v1203_v27, %v1204_v58  ;;  %v1207_v11 = vsel %vm630_vm0, %v1204_v58, %v1206_v56  ;;  %v1587_v12 = vmul.f32 %v4179_v17, %v4500_v53 }
 0x126   : > { %v1657_v15 = vmul.f32 %v4186_v23, %v4497_v14  ;;  %v1306_v16 = vadd.f32 %v1205_v10, %v1062_v62  ;;  %v1307_v18 = vadd.f32 %v1207_v11, %v1063_v63  ;;  %v1449_v19 = vsel %vm875_vm1, %v1447_v60, %v1448_v28 }
 0x127   : > { %v1451_v22 = vsel %vm875_vm1, %v1448_v28, %v1450_v5  ;;  %v1658_v32 = vmul.f32 %v4186_v23, %v4500_v53  ;;  %v1659_v33 = vmul.f32 %v4186_v23, %v4502_v57  ;;  %v1901_v29 = vmul.f32 %v4172_v6, %v4497_v14 }
 0x128   : > { %v1759_v13 = vrot.slane %v1657_v15, 1  ;;  %v1550_v30 = vadd.f32 %v1449_v19, %v1306_v16  ;;  %v1551_v46 = vadd.f32 %v1451_v22, %v1307_v18  ;;  %v1902_v54 = vmul.f32 %v4172_v6, %v4500_v53 }
 0x129   : > { %v1903_v55 = vmul.f32 %v4172_v6, %v4502_v57  ;;  %v1760_v31 = vrot.slane %v1658_v32, 1  ;;  %v1762_v35 = vrot.slane %v1659_v33, 1  ;;  %v2003_v24 = vrot.slane %v1901_v29, 2 }
 0x12a   : > { %v4565_v25 = vunpack.c.l.bf16 %v3259_v26  ;;  %v1618_v2 = vadd.f32 %v1586_v61, %v1550_v30  ;;  %v1619_v27 = vadd.f32 %v1587_v12, %v1551_v46  ;;  %v2004_v41 = vrot.slane %v1902_v54, 2 }
 0x12b   : > { %v2006_v42 = vrot.slane %v1903_v55, 2  ;;  %v1761_v43 = vsel %vm630_vm0, %v1759_v13, %v1760_v31  ;;  %v1763_v45 = vsel %vm630_vm0, %v1760_v31, %v1762_v35  ;;  %v4569_v51 = vunpack.c.h.bf16 %v3259_v26 }
 0x12c   : > { %v4571_v58 = vunpack.c.l.bf16 %v392_v34  ;;  %v1862_v56 = vadd.f32 %v1761_v43, %v1618_v2  ;;  %v1863_v60 = vadd.f32 %v1763_v45, %v1619_v27  ;;  %v2005_v62 = vsel %vm875_vm1, %v2003_v24, %v2004_v41 }
 0x12d   : > { %v2007_v63 = vsel %vm875_vm1, %v2004_v41, %v2006_v42  ;;  %v486_v61 = vmul.f32 %v4213_v59, %v4106_v20  ;;  %v487_v28 = vmul.f32 %v4218_v0, %v4106_v20  ;;  %v564_v5 = vmul.f32 %v4213_v59, %v4109_v21 }
 0x12e   : > { %v565_v10 = vmul.f32 %v4218_v0, %v4109_v21  ;;  %v2106_v11 = vadd.f32 %v2005_v62, %v1862_v56  ;;  %v2107_v12 = vadd.f32 %v2007_v63, %v1863_v60  ;;  %v566_v15 = vmul.f32 %v4109_v21, %v4228_v8 }
 0x12f   : > { %v809_v16 = vmul.f32 %v4213_v59, %v4134_v37  ;;  %v681_v18 = vrot.slane %v564_v5, 1  ;;  %v810_v22 = vmul.f32 %v4218_v0, %v4134_v37  ;;  %v811_v26 = vmul.f32 %v4134_v37, %v4228_v8 }
 0x130   : > { %v682_v19 = vrot.slane %v565_v10, 1  ;;  %v2135_v32 = vpack.c.bf16 %v2107_v12, %v2106_v11  ;;  %v684_v33 = vrot.slane %v566_v15, 1  ;;  %v1044_v29 = vmul.f32 %v4137_v38, %v4358_v36 }
 0x131   : > { %v926_v13 = vrot.slane %v809_v16, 2  ;;  %v927_v46 = vrot.slane %v810_v22, 2  ;;  %v929_v54 = vrot.slane %v811_v26, 2  ;;  %v1045_v59 = vmul.f32 %v4137_v38, %v4363_v49 }
 0x132   : > { %v683_v30 = vsel %vm630_vm0, %v681_v18, %v682_v19  ;;  %3289 = vmatmul.mubr.msk.bf16.gmra.mrb[4].mxu0 %vm2171_vm2, %v2135_v32  ;;  %v685_v0 = vsel %vm630_vm0, %v682_v19, %v684_v33  ;;  %v1122_v8 = vmul.f32 %v4140_v39, %v4358_v36  ;;  %v1123_v34 = vmul.f32 %v4140_v39, %v4363_v49 }
 0x133   : > { %v763_v55 = vadd.f32 %v683_v30, %v486_v61  ;;  %v764_v31 = vadd.f32 %v685_v0, %v487_v28  ;;  %v928_v35 = vsel %vm875_vm1, %v926_v13, %v927_v46  ;;  %v930_v24 = vsel %vm875_vm1, %v927_v46, %v929_v54 }
 0x134   : > { %v1124_v2 = vmul.f32 %v4140_v39, %v4365_v50  ;;  %v1238_v41 = vrot.slane %v1122_v8, 1  ;;  %v1239_v42 = vrot.slane %v1123_v34, 1  ;;  %v1366_v43 = vmul.f32 %v4146_v44, %v4358_v36 }
 0x135   : > { %v1008_v27 = vadd.f32 %v928_v35, %v763_v55  ;;  %v1009_v45 = vadd.f32 %v930_v24, %v764_v31  ;;  %v1367_v60 = vmul.f32 %v4146_v44, %v4363_v49  ;;  %v1368_v62 = vmul.f32 %v4146_v44, %v4365_v50  ;;  %v395_v31 = vld [vmem:[%s4066_s21 + $0xa4] sm:$0x1] }
 0x136   : > { %v1241_v56 = vrot.slane %v1124_v2, 1  ;;  %v1240_v61 = vsel %vm630_vm0, %v1238_v41, %v1239_v42  ;;  %v1482_v28 = vrot.slane %v1366_v43, 2  ;;  %v1600_v5 = vmul.f32 %v4565_v25, %v4179_v17 }
 0x137   : > { %v1076_v63 = vadd.f32 %v1044_v29, %v1008_v27  ;;  %v1077_v10 = vadd.f32 %v1045_v59, %v1009_v45  ;;  %v1483_v12 = vrot.slane %v1367_v60, 2  ;;  %v1485_v15 = vrot.slane %v1368_v62, 2  ;;  %v393_v29 = vld [vmem:[%s4066_s21 + $0x9c] sm:$0xff]  }
 0x138   : > { %v1242_v11 = vsel %vm630_vm0, %v1239_v42, %v1241_v56  ;;  %v1601_v18 = vmul.f32 %v4569_v51, %v4179_v17  ;;  %v1678_v19 = vmul.f32 %v4565_v25, %v4186_v23  ;;  %v1679_v22 = vmul.f32 %v4569_v51, %v4186_v23 }
 0x139   : > { %v1320_v16 = vadd.f32 %v1240_v61, %v1076_v63  ;;  %v1321_v26 = vadd.f32 %v1242_v11, %v1077_v10  ;;  %v1484_v32 = vsel %vm875_vm1, %v1482_v28, %v1483_v12  ;;  %v1486_v33 = vsel %vm875_vm1, %v1483_v12, %v1485_v15 }
 0x13a   : > { %v1680_v13 = vmul.f32 %v4186_v23, %v4571_v58  ;;  %v1794_v46 = vrot.slane %v1678_v19, 1  ;;  %v1795_v54 = vrot.slane %v1679_v22, 1  ;;  %v1922_v59 = vmul.f32 %v4565_v25, %v4172_v6 }
 0x13b   : > { %v1564_v30 = vadd.f32 %v1484_v32, %v1320_v16  ;;  %v1565_v0 = vadd.f32 %v1486_v33, %v1321_v26  ;;  %v1923_v8 = vmul.f32 %v4569_v51, %v4172_v6  ;;  %v1924_v34 = vmul.f32 %v4172_v6, %v4571_v58 }
 0x13c   : > { %v1797_v55 = vrot.slane %v1680_v13, 1  ;;  %v1796_v24 = vsel %vm630_vm0, %v1794_v46, %v1795_v54  ;;  %v2038_v2 = vrot.slane %v1922_v59, 2  ;;  %v4635_v27 = vunpack.c.l.bf16 %v393_v29 }
 0x13d   : > { %v1632_v35 = vadd.f32 %v1600_v5, %v1564_v30  ;;  %v1633_v41 = vadd.f32 %v1601_v18, %v1565_v0  ;;  %v2039_v43 = vrot.slane %v1923_v8, 2  ;;  %v2041_v45 = vrot.slane %v1924_v34, 2 }
 0x13e   : > { %v1798_v42 = vsel %vm630_vm0, %v1795_v54, %v1797_v55  ;;  %v4638_v60 = vunpack.c.h.bf16 %v393_v29  ;;  %v4640_v62 = vunpack.c.l.bf16 %v395_v31  ;;  %v488_v6 = vmul.f32 %v4106_v20, %v4358_v36 }
 0x13f   : > { %v1876_v56 = vadd.f32 %v1796_v24, %v1632_v35  ;;  %v1877_v63 = vadd.f32 %v1798_v42, %v1633_v41  ;;  %v2040_v61 = vsel %vm875_vm1, %v2038_v2, %v2039_v43  ;;  %v2042_v28 = vsel %vm875_vm1, %v2039_v43, %v2041_v45 }
 0x140   : > { %v489_v5 = vmul.f32 %v4106_v20, %v4363_v49  ;;  %v567_v11 = vmul.f32 %v4109_v21, %v4358_v36  ;;  %v568_v12 = vmul.f32 %v4109_v21, %v4363_v49  ;;  %v569_v15 = vmul.f32 %v4109_v21, %v4365_v50 }
 0x141   : > { %v2120_v10 = vadd.f32 %v2040_v61, %v1876_v56  ;;  %v2121_v16 = vadd.f32 %v2042_v28, %v1877_v63  ;;  %v812_v18 = vmul.f32 %v4134_v37, %v4358_v36  ;;  %v813_v19 = vmul.f32 %v4134_v37, %v4363_v49 }
 0x142   : > { %v814_v22 = vmul.f32 %v4134_v37, %v4365_v50  ;;  %v686_v26 = vrot.slane %v567_v11, 1  ;;  %v687_v32 = vrot.slane %v568_v12, 1  ;;  %v689_v33 = vrot.slane %v569_v15, 1 }
 0x143   : > { %v1046_v13 = vmul.f32 %v4565_v25, %v4137_v38  ;;  %v2142_v29 = vpack.c.bf16 %v2121_v16, %v2120_v10  ;;  %v931_v30 = vrot.slane %v812_v18, 2  ;;  %v932_v46 = vrot.slane %v813_v19, 2 }
 0x144   : > { %v934_v54 = vrot.slane %v814_v22, 2  ;;  %v688_v59 = vsel %vm630_vm0, %v686_v26, %v687_v32  ;;  %v690_v36 = vsel %vm630_vm0, %v687_v32, %v689_v33  ;;  %v1047_v49 = vmul.f32 %v4569_v51, %v4137_v38  ;;  %v3256_v33 = vld [vmem:[%s4066_s21 + $0x48] sm:$0xff]  }
 0x145   : > { %v1125_v50 = vmul.f32 %v4565_v25, %v4140_v39  ;;  %3304 = vmatprep.mubr.msk.bf16.mxu1 %vm2171_vm2, %v2142_v29  ;;  %v765_v0 = vadd.f32 %v688_v59, %v488_v6  ;;  %v766_v55 = vadd.f32 %v690_v36, %v489_v5  ;;  %v933_v8 = vsel %vm875_vm1, %v931_v30, %v932_v46 }
 0x146   : > { %v935_v34 = vsel %vm875_vm1, %v932_v46, %v934_v54  ;;  %v1126_v31 = vmul.f32 %v4569_v51, %v4140_v39  ;;  %v1127_v35 = vmul.f32 %v4140_v39, %v4571_v58  ;;  %v1369_v2 = vmul.f32 %v4565_v25, %v4146_v44  ;;  %v4697_v46 = vld [vmem:[%s4074_s11 + $0x8] ss:$0 sm:$0xff] }
 0x147   : > { %v1243_v24 = vrot.slane %v1125_v50, 1  ;;  %v1010_v41 = vadd.f32 %v933_v8, %v765_v0  ;;  %v1011_v42 = vadd.f32 %v935_v34, %v766_v55  ;;  %v1370_v43 = vmul.f32 %v4569_v51, %v4146_v44  ;;  %v374_v0 = vld [vmem:[%s4066_s21 + $0x50] sm:$0x1] }
 0x148   : > { %v1371_v45 = vmul.f32 %v4146_v44, %v4571_v58  ;;  %v1244_v56 = vrot.slane %v1126_v31, 1  ;;  %v1246_v6 = vrot.slane %v1127_v35, 1  ;;  %v1487_v63 = vrot.slane %v1369_v2, 2 }
 0x149   : > { %v1602_v61 = vmul.f32 %v4179_v17, %v4635_v27  ;;  %v1078_v28 = vadd.f32 %v1046_v13, %v1010_v41  ;;  %v1079_v5 = vadd.f32 %v1047_v49, %v1011_v42  ;;  %v1488_v10 = vrot.slane %v1370_v43, 2 }
 0x14a   : > { %v1490_v11 = vrot.slane %v1371_v45, 2  ;;  %v1245_v12 = vsel %vm630_vm0, %v1243_v24, %v1244_v56  ;;  %v1247_v15 = vsel %vm630_vm0, %v1244_v56, %v1246_v6  ;;  %v1603_v16 = vmul.f32 %v4179_v17, %v4638_v60 }
 0x14b   : > { %v1681_v18 = vmul.f32 %v4186_v23, %v4635_v27  ;;  %v1322_v19 = vadd.f32 %v1245_v12, %v1078_v28  ;;  %v1323_v22 = vadd.f32 %v1247_v15, %v1079_v5  ;;  %v1489_v26 = vsel %vm875_vm1, %v1487_v63, %v1488_v10 }
 0x14c   : > { %v1491_v32 = vsel %vm875_vm1, %v1488_v10, %v1490_v11  ;;  %v1682_v13 = vmul.f32 %v4186_v23, %v4638_v60  ;;  %v1683_v29 = vmul.f32 %v4186_v23, %v4640_v62  ;;  %v1925_v54 = vmul.f32 %v4697_v46, %v4635_v27 }
 0x14d   : > { %v1799_v30 = vrot.slane %v1681_v18, 1  ;;  %v1566_v59 = vadd.f32 %v1489_v26, %v1322_v19  ;;  %v1567_v36 = vadd.f32 %v1491_v32, %v1323_v22  ;;  %v1926_v49 = vmul.f32 %v4697_v46, %v4638_v60 }
 0x14e   : > { %v1927_v50 = vmul.f32 %v4697_v46, %v4640_v62  ;;  %v1800_v55 = vrot.slane %v1682_v13, 1  ;;  %v1802_v8 = vrot.slane %v1683_v29, 1  ;;  %v2043_v34 = vrot.slane %v1925_v54, 2 }
 0x14f   : > { %v4706_v31 = vunpack.c.l.bf16 %v3256_v33  ;;  %v1634_v35 = vadd.f32 %v1602_v61, %v1566_v59  ;;  %v1635_v24 = vadd.f32 %v1603_v16, %v1567_v36  ;;  %v2044_v2 = vrot.slane %v1926_v49, 2 }
 0x150   : > { %v2046_v41 = vrot.slane %v1927_v50, 2  ;;  %v1801_v42 = vsel %vm630_vm0, %v1799_v30, %v1800_v55  ;;  %v1803_v43 = vsel %vm630_vm0, %v1800_v55, %v1802_v8  ;;  %v4710_v45 = vunpack.c.h.bf16 %v3256_v33 }
 0x151   : > { %v4712_v56 = vunpack.c.l.bf16 %v374_v0  ;;  %v1878_v6 = vadd.f32 %v1801_v42, %v1634_v35  ;;  %v1879_v63 = vadd.f32 %v1803_v43, %v1635_v24  ;;  %v2045_v28 = vsel %vm875_vm1, %v2043_v34, %v2044_v2 }
 0x152   : > { %v2047_v5 = vsel %vm875_vm1, %v2044_v2, %v2046_v41  ;;  %v474_v61 = vmul.f32 %v4427_v9, %v4106_v20  ;;  %v475_v10 = vmul.f32 %v4431_v47, %v4106_v20  ;;  %v546_v11 = vmul.f32 %v4427_v9, %v4109_v21 }
 0x153   : > { %v547_v12 = vmul.f32 %v4431_v47, %v4109_v21  ;;  %v2122_v15 = vadd.f32 %v2045_v28, %v1878_v6  ;;  %v2123_v16 = vadd.f32 %v2047_v5, %v1879_v63  ;;  %v548_v18 = vmul.f32 %v4109_v21, %v4433_v48 }
 0x154   : > { %v791_v19 = vmul.f32 %v4427_v9, %v4134_v37  ;;  %v651_v22 = vrot.slane %v546_v11, 1  ;;  %v792_v32 = vmul.f32 %v4431_v47, %v4134_v37  ;;  %v793_v33 = vmul.f32 %v4134_v37, %v4433_v48 }
 0x155   : > { %v652_v26 = vrot.slane %v547_v12, 1  ;;  %v2143_v13 = vpack.c.bf16 %v2123_v16, %v2122_v15  ;;  %v654_v29 = vrot.slane %v548_v18, 1  ;;  %v1032_v54 = vmul.f32 %v4137_v38, %v4497_v14 }
 0x156   : > { %v896_v30 = vrot.slane %v791_v19, 2  ;;  %v897_v36 = vrot.slane %v792_v32, 2  ;;  %v899_v49 = vrot.slane %v793_v33, 2  ;;  %v1033_v9 = vmul.f32 %v4137_v38, %v4500_v53 }
 0x157   : > { %v653_v59 = vsel %vm630_vm0, %v651_v22, %v652_v26  ;;  %3305 = vmatmul.mubr.msk.bf16.gmra.mrb[4].mxu1 %vm2171_vm2, %v2143_v13  ;;  %v655_v47 = vsel %vm630_vm0, %v652_v26, %v654_v29  ;;  %v1104_v48 = vmul.f32 %v4140_v39, %v4497_v14  ;;  %v1105_v0 = vmul.f32 %v4140_v39, %v4500_v53 }
 0x158   : > { %v751_v50 = vadd.f32 %v653_v59, %v474_v61  ;;  %v752_v55 = vadd.f32 %v655_v47, %v475_v10  ;;  %v898_v8 = vsel %vm875_vm1, %v896_v30, %v897_v36  ;;  %v900_v34 = vsel %vm875_vm1, %v897_v36, %v899_v49 }
 0x159   : > { %v1106_v35 = vmul.f32 %v4140_v39, %v4502_v57  ;;  %v1208_v2 = vrot.slane %v1104_v48, 1  ;;  %v1209_v41 = vrot.slane %v1105_v0, 1  ;;  %v1348_v42 = vmul.f32 %v4146_v44, %v4497_v14 }
 0x15a   : > { %v996_v24 = vadd.f32 %v898_v8, %v751_v50  ;;  %v997_v43 = vadd.f32 %v900_v34, %v752_v55  ;;  %v1349_v63 = vmul.f32 %v4146_v44, %v4500_v53  ;;  %v1350_v28 = vmul.f32 %v4146_v44, %v4502_v57  ;;  %v377_v55 = vld [vmem:[%s4066_s21 + $0x5c] sm:$0x1] }
 0x15b   : > { %v1211_v6 = vrot.slane %v1106_v35, 1  ;;  %v1210_v61 = vsel %vm630_vm0, %v1208_v2, %v1209_v41  ;;  %v1452_v10 = vrot.slane %v1348_v42, 2  ;;  %v1588_v11 = vmul.f32 %v4706_v31, %v4179_v17 }
 0x15c   : > { %v1064_v5 = vadd.f32 %v1032_v54, %v996_v24  ;;  %v1065_v12 = vadd.f32 %v1033_v9, %v997_v43  ;;  %v1453_v16 = vrot.slane %v1349_v63, 2  ;;  %v1455_v18 = vrot.slane %v1350_v28, 2  ;;  %v375_v54 = vld [vmem:[%s4066_s21 + $0x54] sm:$0xff]  }
 0x15d   : > { %v1212_v15 = vsel %vm630_vm0, %v1209_v41, %v1211_v6  ;;  %v1589_v22 = vmul.f32 %v4710_v45, %v4179_v17  ;;  %v1660_v26 = vmul.f32 %v4706_v31, %v4186_v23  ;;  %v1661_v32 = vmul.f32 %v4710_v45, %v4186_v23 }
 0x15e   : > { %v1308_v19 = vadd.f32 %v1210_v61, %v1064_v5  ;;  %v1309_v33 = vadd.f32 %v1212_v15, %v1065_v12  ;;  %v1454_v13 = vsel %vm875_vm1, %v1452_v10, %v1453_v16  ;;  %v1456_v29 = vsel %vm875_vm1, %v1453_v16, %v1455_v18 }
 0x15f   : > { %v1662_v30 = vmul.f32 %v4186_v23, %v4712_v56  ;;  %v1764_v36 = vrot.slane %v1660_v26, 1  ;;  %v1765_v49 = vrot.slane %v1661_v32, 1  ;;  %v1904_v9 = vmul.f32 %v4697_v46, %v4706_v31 }
 0x160   : > { %v1552_v59 = vadd.f32 %v1454_v13, %v1308_v19  ;;  %v1553_v47 = vadd.f32 %v1456_v29, %v1309_v33  ;;  %v1905_v48 = vmul.f32 %v4697_v46, %v4710_v45  ;;  %v1906_v0 = vmul.f32 %v4697_v46, %v4712_v56 }
 0x161   : > { %v1767_v50 = vrot.slane %v1662_v30, 1  ;;  %v1766_v34 = vsel %vm630_vm0, %v1764_v36, %v1765_v49  ;;  %v2008_v35 = vrot.slane %v1904_v9, 2  ;;  %v4776_v24 = vunpack.c.l.bf16 %v375_v54 }
 0x162   : > { %v1620_v8 = vadd.f32 %v1588_v11, %v1552_v59  ;;  %v1621_v2 = vadd.f32 %v1589_v22, %v1553_v47  ;;  %v2009_v42 = vrot.slane %v1905_v48, 2  ;;  %v2011_v43 = vrot.slane %v1906_v0, 2 }
 0x163   : > { %v1768_v41 = vsel %vm630_vm0, %v1765_v49, %v1767_v50  ;;  %v4779_v63 = vunpack.c.h.bf16 %v375_v54  ;;  %v4781_v28 = vunpack.c.l.bf16 %v377_v55  ;;  %v476_v5 = vmul.f32 %v4106_v20, %v4497_v14 }
 0x164   : > { %v1864_v6 = vadd.f32 %v1766_v34, %v1620_v8  ;;  %v1865_v61 = vadd.f32 %v1768_v41, %v1621_v2  ;;  %v2010_v10 = vsel %vm875_vm1, %v2008_v35, %v2009_v42  ;;  %v2012_v11 = vsel %vm875_vm1, %v2009_v42, %v2011_v43 }
 0x165   : > { %v477_v12 = vmul.f32 %v4106_v20, %v4500_v53  ;;  %v549_v16 = vmul.f32 %v4109_v21, %v4497_v14  ;;  %v550_v18 = vmul.f32 %v4109_v21, %v4500_v53  ;;  %v551_v19 = vmul.f32 %v4109_v21, %v4502_v57 }
 0x166   : > { %v2108_v15 = vadd.f32 %v2010_v10, %v1864_v6  ;;  %v2109_v22 = vadd.f32 %v2012_v11, %v1865_v61  ;;  %v794_v26 = vmul.f32 %v4134_v37, %v4497_v14  ;;  %v795_v32 = vmul.f32 %v4134_v37, %v4500_v53 }
 0x167   : > { %v796_v33 = vmul.f32 %v4134_v37, %v4502_v57  ;;  %v656_v13 = vrot.slane %v549_v16, 1  ;;  %v657_v29 = vrot.slane %v550_v18, 1  ;;  %v659_v30 = vrot.slane %v551_v19, 1 }
 0x168   : > { %v1034_v54 = vmul.f32 %v4706_v31, %v4137_v38  ;;  %v2136_v59 = vpack.c.bf16 %v2109_v22, %v2108_v15  ;;  %v901_v36 = vrot.slane %v794_v26, 2  ;;  %v902_v49 = vrot.slane %v795_v32, 2 }
 0x169   : > { %v904_v9 = vrot.slane %v796_v33, 2  ;;  %v658_v47 = vsel %vm630_vm0, %v656_v13, %v657_v29  ;;  %v660_v14 = vsel %vm630_vm0, %v657_v29, %v659_v30  ;;  %v1035_v53 = vmul.f32 %v4710_v45, %v4137_v38 }
 0x16a   : > { %v1107_v57 = vmul.f32 %v4706_v31, %v4140_v39  ;;  %3292 = vmatprep.mubr.msk.bf16.mxu0 %vm2171_vm2, %v2136_v59  ;;  %v753_v50 = vadd.f32 %v658_v47, %v476_v5  ;;  %v754_v48 = vadd.f32 %v660_v14, %v477_v12  ;;  %v903_v0 = vsel %vm875_vm1, %v901_v36, %v902_v49 }
 0x16b   : > { %v905_v55 = vsel %vm875_vm1, %v902_v49, %v904_v9  ;;  %v1108_v8 = vmul.f32 %v4710_v45, %v4140_v39  ;;  %v1109_v34 = vmul.f32 %v4140_v39, %v4712_v56  ;;  %v1351_v2 = vmul.f32 %v4706_v31, %v4146_v44 }
 0x16c   : > { %v1213_v35 = vrot.slane %v1107_v57, 1  ;;  %v998_v41 = vadd.f32 %v903_v0, %v753_v50  ;;  %v999_v42 = vadd.f32 %v905_v55, %v754_v48  ;;  %v1352_v43 = vmul.f32 %v4710_v45, %v4146_v44  ;;  %v398_v50 = vld [vmem:[%s4066_s21 + $0xb0] sm:$0x1] }
 0x16d   : > { %v1353_v6 = vmul.f32 %v4146_v44, %v4712_v56  ;;  %v1214_v5 = vrot.slane %v1108_v8, 1  ;;  %v1216_v61 = vrot.slane %v1109_v34, 1  ;;  %v1457_v10 = vrot.slane %v1351_v2, 2 }
 0x16e   : > { %v1590_v11 = vmul.f32 %v4179_v17, %v4776_v24  ;;  %v1066_v12 = vadd.f32 %v1034_v54, %v998_v41  ;;  %v1067_v15 = vadd.f32 %v1035_v53, %v999_v42  ;;  %v1458_v16 = vrot.slane %v1352_v43, 2  ;;  %v3260_v54 = vld [vmem:[%s4066_s21 + $0xa8] sm:$0xff]  }
 0x16f   : > { %v1460_v18 = vrot.slane %v1353_v6, 2  ;;  %v1215_v19 = vsel %vm630_vm0, %v1213_v35, %v1214_v5  ;;  %v1217_v22 = vsel %vm630_vm0, %v1214_v5, %v1216_v61  ;;  %v1591_v26 = vmul.f32 %v4179_v17, %v4779_v63 }
 0x170   : > { %v1663_v32 = vmul.f32 %v4186_v23, %v4776_v24  ;;  %v1310_v33 = vadd.f32 %v1215_v19, %v1066_v12  ;;  %v1311_v13 = vadd.f32 %v1217_v22, %v1067_v15  ;;  %v1459_v29 = vsel %vm875_vm1, %v1457_v10, %v1458_v16 }
 0x171   : > { %v1461_v30 = vsel %vm875_vm1, %v1458_v16, %v1460_v18  ;;  %v1664_v59 = vmul.f32 %v4186_v23, %v4779_v63  ;;  %v1665_v36 = vmul.f32 %v4186_v23, %v4781_v28  ;;  %v1907_v9 = vmul.f32 %v4697_v46, %v4776_v24 }
 0x172   : > { %v1769_v49 = vrot.slane %v1663_v32, 1  ;;  %v1554_v47 = vadd.f32 %v1459_v29, %v1310_v33  ;;  %v1555_v14 = vadd.f32 %v1461_v30, %v1311_v13  ;;  %v1908_v53 = vmul.f32 %v4697_v46, %v4779_v63 }
 0x173   : > { %v1909_v57 = vmul.f32 %v4697_v46, %v4781_v28  ;;  %v1770_v48 = vrot.slane %v1664_v59, 1  ;;  %v1772_v0 = vrot.slane %v1665_v36, 1  ;;  %v2013_v55 = vrot.slane %v1907_v9, 2 }
 0x174   : > { %v4844_v8 = vunpack.c.l.bf16 %v3260_v54  ;;  %v1622_v34 = vadd.f32 %v1590_v11, %v1554_v47  ;;  %v1623_v35 = vadd.f32 %v1591_v26, %v1555_v14  ;;  %v2014_v2 = vrot.slane %v1908_v53, 2 }
 0x175   : > { %v2016_v41 = vrot.slane %v1909_v57, 2  ;;  %v1771_v42 = vsel %vm630_vm0, %v1769_v49, %v1770_v48  ;;  %v1773_v43 = vsel %vm630_vm0, %v1770_v48, %v1772_v0  ;;  %v4848_v6 = vunpack.c.h.bf16 %v3260_v54 }
 0x176   : > { %v4850_v5 = vunpack.c.l.bf16 %v398_v50  ;;  %v1866_v61 = vadd.f32 %v1771_v42, %v1622_v34  ;;  %v1867_v10 = vadd.f32 %v1773_v43, %v1623_v35  ;;  %v2015_v12 = vsel %vm875_vm1, %v2013_v55, %v2014_v2 }
 0x177   : > { %v2017_v15 = vsel %vm875_vm1, %v2014_v2, %v2016_v41  ;;  %v490_v11 = vmul.f32 %v4565_v25, %v4106_v20  ;;  %v491_v16 = vmul.f32 %v4569_v51, %v4106_v20  ;;  %v570_v18 = vmul.f32 %v4565_v25, %v4109_v21 }
 0x178   : > { %v571_v19 = vmul.f32 %v4569_v51, %v4109_v21  ;;  %v2110_v22 = vadd.f32 %v2015_v12, %v1866_v61  ;;  %v2111_v26 = vadd.f32 %v2017_v15, %v1867_v10  ;;  %v572_v32 = vmul.f32 %v4109_v21, %v4571_v58 }
 0x179   : > { %v815_v33 = vmul.f32 %v4565_v25, %v4134_v37  ;;  %v691_v13 = vrot.slane %v570_v18, 1  ;;  %v816_v30 = vmul.f32 %v4569_v51, %v4134_v37  ;;  %v817_v54 = vmul.f32 %v4134_v37, %v4571_v58 }
 0x17a   : > { %v692_v29 = vrot.slane %v571_v19, 1  ;;  %v2137_v59 = vpack.c.bf16 %v2111_v26, %v2110_v22  ;;  %v694_v36 = vrot.slane %v572_v32, 1  ;;  %v1048_v9 = vmul.f32 %v4137_v38, %v4635_v27 }
 0x17b   : > { %v936_v49 = vrot.slane %v815_v33, 2  ;;  %v937_v14 = vrot.slane %v816_v30, 2  ;;  %v939_v53 = vrot.slane %v817_v54, 2  ;;  %v1049_v25 = vmul.f32 %v4137_v38, %v4638_v60 }
 0x17c   : > { %v693_v47 = vsel %vm630_vm0, %v691_v13, %v692_v29  ;;  %3293 = vmatmul.mubr.msk.bf16.gmra.mrb[8].mxu0 %vm2171_vm2, %v2137_v59  ;;  %v695_v51 = vsel %vm630_vm0, %v692_v29, %v694_v36  ;;  %v1128_v58 = vmul.f32 %v4140_v39, %v4635_v27  ;;  %v1129_v50 = vmul.f32 %v4140_v39, %v4638_v60 }
 0x17d   : > { %v767_v57 = vadd.f32 %v693_v47, %v490_v11  ;;  %v768_v48 = vadd.f32 %v695_v51, %v491_v16  ;;  %v938_v0 = vsel %vm875_vm1, %v936_v49, %v937_v14  ;;  %v940_v55 = vsel %vm875_vm1, %v937_v14, %v939_v53 }
 0x17e   : > { %v1130_v34 = vmul.f32 %v4140_v39, %v4640_v62  ;;  %v1248_v2 = vrot.slane %v1128_v58, 1  ;;  %v1249_v41 = vrot.slane %v1129_v50, 1  ;;  %v1372_v42 = vmul.f32 %v4146_v44, %v4635_v27 }
 0x17f   : > { %v1012_v35 = vadd.f32 %v938_v0, %v767_v57  ;;  %v1013_v43 = vadd.f32 %v940_v55, %v768_v48  ;;  %v1373_v10 = vmul.f32 %v4146_v44, %v4638_v60  ;;  %v1374_v12 = vmul.f32 %v4146_v44, %v4640_v62  ;;  %v401_v48 = vld [vmem:[%s4066_s21 + $0xbc] sm:$0x1] }
 0x180   : > { %v1251_v61 = vrot.slane %v1130_v34, 1  ;;  %v1250_v11 = vsel %vm630_vm0, %v1248_v2, %v1249_v41  ;;  %v1492_v16 = vrot.slane %v1372_v42, 2  ;;  %v1604_v18 = vmul.f32 %v4844_v8, %v4179_v17 }
 0x181   : > { %v1080_v15 = vadd.f32 %v1048_v9, %v1012_v35  ;;  %v1081_v19 = vadd.f32 %v1049_v25, %v1013_v43  ;;  %v1493_v26 = vrot.slane %v1373_v10, 2  ;;  %v1495_v32 = vrot.slane %v1374_v12, 2  ;;  %v399_v9 = vld [vmem:[%s4066_s21 + $0xb4] sm:$0xff]  }
 0x182   : > { %v1252_v22 = vsel %vm630_vm0, %v1249_v41, %v1251_v61  ;;  %v1605_v13 = vmul.f32 %v4848_v6, %v4179_v17  ;;  %v1684_v29 = vmul.f32 %v4844_v8, %v4186_v23  ;;  %v1685_v30 = vmul.f32 %v4848_v6, %v4186_v23 }
 0x183   : > { %v1324_v33 = vadd.f32 %v1250_v11, %v1080_v15  ;;  %v1325_v54 = vadd.f32 %v1252_v22, %v1081_v19  ;;  %v1494_v59 = vsel %vm875_vm1, %v1492_v16, %v1493_v26  ;;  %v1496_v36 = vsel %vm875_vm1, %v1493_v26, %v1495_v32 }
 0x184   : > { %v1686_v49 = vmul.f32 %v4186_v23, %v4850_v5  ;;  %v1804_v14 = vrot.slane %v1684_v29, 1  ;;  %v1805_v53 = vrot.slane %v1685_v30, 1  ;;  %v1928_v25 = vmul.f32 %v4697_v46, %v4844_v8 }
 0x185   : > { %v1568_v47 = vadd.f32 %v1494_v59, %v1324_v33  ;;  %v1569_v51 = vadd.f32 %v1496_v36, %v1325_v54  ;;  %v1929_v58 = vmul.f32 %v4697_v46, %v4848_v6  ;;  %v1930_v50 = vmul.f32 %v4697_v46, %v4850_v5 }
 0x186   : > { %v1807_v57 = vrot.slane %v1686_v49, 1  ;;  %v1806_v55 = vsel %vm630_vm0, %v1804_v14, %v1805_v53  ;;  %v2048_v34 = vrot.slane %v1928_v25, 2  ;;  %v4914_v35 = vunpack.c.l.bf16 %v399_v9 }
 0x187   : > { %v1636_v0 = vadd.f32 %v1604_v18, %v1568_v47  ;;  %v1637_v2 = vadd.f32 %v1605_v13, %v1569_v51  ;;  %v2049_v42 = vrot.slane %v1929_v58, 2  ;;  %v2051_v43 = vrot.slane %v1930_v50, 2 }
 0x188   : > { %v1808_v41 = vsel %vm630_vm0, %v1805_v53, %v1807_v57  ;;  %v4917_v10 = vunpack.c.h.bf16 %v399_v9  ;;  %v4919_v12 = vunpack.c.l.bf16 %v401_v48  ;;  %v492_v15 = vmul.f32 %v4106_v20, %v4635_v27 }
 0x189   : > { %v1880_v61 = vadd.f32 %v1806_v55, %v1636_v0  ;;  %v1881_v11 = vadd.f32 %v1808_v41, %v1637_v2  ;;  %v2050_v16 = vsel %vm875_vm1, %v2048_v34, %v2049_v42  ;;  %v2052_v18 = vsel %vm875_vm1, %v2049_v42, %v2051_v43 }
 0x18a   : > { %v493_v19 = vmul.f32 %v4106_v20, %v4638_v60  ;;  %v573_v26 = vmul.f32 %v4109_v21, %v4635_v27  ;;  %v574_v32 = vmul.f32 %v4109_v21, %v4638_v60  ;;  %v575_v33 = vmul.f32 %v4109_v21, %v4640_v62 }
 0x18b   : > { %v2124_v22 = vadd.f32 %v2050_v16, %v1880_v61  ;;  %v2125_v13 = vadd.f32 %v2052_v18, %v1881_v11  ;;  %v818_v29 = vmul.f32 %v4134_v37, %v4635_v27  ;;  %v819_v30 = vmul.f32 %v4134_v37, %v4638_v60 }
 0x18c   : > { %v820_v54 = vmul.f32 %v4134_v37, %v4640_v62  ;;  %v696_v59 = vrot.slane %v573_v26, 1  ;;  %v697_v36 = vrot.slane %v574_v32, 1  ;;  %v699_v49 = vrot.slane %v575_v33, 1 }
 0x18d   : > { %v1050_v9 = vmul.f32 %v4844_v8, %v4137_v38  ;;  %v2144_v47 = vpack.c.bf16 %v2125_v13, %v2124_v22  ;;  %v941_v14 = vrot.slane %v818_v29, 2  ;;  %v942_v53 = vrot.slane %v819_v30, 2 }
 0x18e   : > { %v944_v25 = vrot.slane %v820_v54, 2  ;;  %v698_v51 = vsel %vm630_vm0, %v696_v59, %v697_v36  ;;  %v700_v27 = vsel %vm630_vm0, %v697_v36, %v699_v49  ;;  %v1051_v60 = vmul.f32 %v4848_v6, %v4137_v38 }
 0x18f   : > { %v1131_v62 = vmul.f32 %v4844_v8, %v4140_v39  ;;  %3308 = vmatprep.mubr.msk.bf16.mxu1 %vm2171_vm2, %v2144_v47  ;;  %v769_v57 = vadd.f32 %v698_v51, %v492_v15  ;;  %v770_v58 = vadd.f32 %v700_v27, %v493_v19  ;;  %v943_v50 = vsel %vm875_vm1, %v941_v14, %v942_v53 }
 0x190   : > { %v945_v48 = vsel %vm875_vm1, %v942_v53, %v944_v25  ;;  %v1132_v0 = vmul.f32 %v4848_v6, %v4140_v39  ;;  %v1133_v55 = vmul.f32 %v4140_v39, %v4850_v5  ;;  %v1375_v2 = vmul.f32 %v4844_v8, %v4146_v44 }
 0x191   : > { %v1253_v34 = vrot.slane %v1131_v62, 1  ;;  %v1014_v41 = vadd.f32 %v943_v50, %v769_v57  ;;  %v1015_v42 = vadd.f32 %v945_v48, %v770_v58  ;;  %v1376_v43 = vmul.f32 %v4848_v6, %v4146_v44 }
 0x192   : > { %v1377_v61 = vmul.f32 %v4146_v44, %v4850_v5  ;;  %v1254_v15 = vrot.slane %v1132_v0, 1  ;;  %v1256_v11 = vrot.slane %v1133_v55, 1  ;;  %v1497_v16 = vrot.slane %v1375_v2, 2 }
 0x193   : > { %v1606_v18 = vmul.f32 %v4179_v17, %v4914_v35  ;;  %v1082_v19 = vadd.f32 %v1050_v9, %v1014_v41  ;;  %v1083_v22 = vadd.f32 %v1051_v60, %v1015_v42  ;;  %v1498_v26 = vrot.slane %v1376_v43, 2 }
 0x194   : > { %v1500_v32 = vrot.slane %v1377_v61, 2  ;;  %v1255_v33 = vsel %vm630_vm0, %v1253_v34, %v1254_v15  ;;  %v1257_v13 = vsel %vm630_vm0, %v1254_v15, %v1256_v11  ;;  %v1607_v29 = vmul.f32 %v4179_v17, %v4917_v10 }
 0x195   : > { %v1687_v30 = vmul.f32 %v4186_v23, %v4914_v35  ;;  %v1326_v54 = vadd.f32 %v1255_v33, %v1082_v19  ;;  %v1327_v59 = vadd.f32 %v1257_v13, %v1083_v22  ;;  %v1499_v36 = vsel %vm875_vm1, %v1497_v16, %v1498_v26 }
 0x196   : > { %v1501_v49 = vsel %vm875_vm1, %v1498_v26, %v1500_v32  ;;  %v1688_v9 = vmul.f32 %v4186_v23, %v4917_v10  ;;  %v1689_v47 = vmul.f32 %v4186_v23, %v4919_v12  ;;  %v1931_v53 = vmul.f32 %v4697_v46, %v4914_v35 }
 0x197   : > { %v1809_v14 = vrot.slane %v1687_v30, 1  ;;  %v1570_v25 = vadd.f32 %v1499_v36, %v1326_v54  ;;  %v1571_v51 = vadd.f32 %v1501_v49, %v1327_v59  ;;  %v1932_v27 = vmul.f32 %v4697_v46, %v4917_v10 }
 0x198   : > { %v1933_v60 = vmul.f32 %v4697_v46, %v4919_v12  ;;  %v1810_v62 = vrot.slane %v1688_v9, 1  ;;  %v1812_v57 = vrot.slane %v1689_v47, 1  ;;  %v2053_v58 = vrot.slane %v1931_v53, 2 }
 0x199   : > { %v478_v50 = vmul.f32 %v4706_v31, %v4106_v20  ;;  %v1638_v48 = vadd.f32 %v1606_v18, %v1570_v25  ;;  %v1639_v0 = vadd.f32 %v1607_v29, %v1571_v51  ;;  %v2054_v55 = vrot.slane %v1932_v27, 2 }
 0x19a   : > { %v2056_v34 = vrot.slane %v1933_v60, 2  ;;  %v1811_v2 = vsel %vm630_vm0, %v1809_v14, %v1810_v62  ;;  %v1813_v41 = vsel %vm630_vm0, %v1810_v62, %v1812_v57  ;;  %v479_v42 = vmul.f32 %v4710_v45, %v4106_v20 }
 0x19b   : > { %v552_v43 = vmul.f32 %v4706_v31, %v4109_v21  ;;  %v1882_v61 = vadd.f32 %v1811_v2, %v1638_v48  ;;  %v1883_v15 = vadd.f32 %v1813_v41, %v1639_v0  ;;  %v2055_v11 = vsel %vm875_vm1, %v2053_v58, %v2054_v55 }
 0x19c   : > { %v2057_v16 = vsel %vm875_vm1, %v2054_v55, %v2056_v34  ;;  %v553_v18 = vmul.f32 %v4710_v45, %v4109_v21  ;;  %v554_v19 = vmul.f32 %v4109_v21, %v4712_v56  ;;  %v797_v26 = vmul.f32 %v4706_v31, %v4134_v37 }
 0x19d   : > { %v661_v22 = vrot.slane %v552_v43, 1  ;;  %v2126_v32 = vadd.f32 %v2055_v11, %v1882_v61  ;;  %v2127_v33 = vadd.f32 %v2057_v16, %v1883_v15  ;;  %v798_v13 = vmul.f32 %v4710_v45, %v4134_v37 }
 0x19e   : > { %v799_v29 = vmul.f32 %v4134_v37, %v4712_v56  ;;  %v662_v30 = vrot.slane %v553_v18, 1  ;;  %v664_v54 = vrot.slane %v554_v19, 1  ;;  %v906_v59 = vrot.slane %v797_v26, 2 }
 0x19f   : > { %v1036_v36 = vmul.f32 %v4137_v38, %v4776_v24  ;;  %v2145_v49 = vpack.c.bf16 %v2127_v33, %v2126_v32  ;;  %v907_v9 = vrot.slane %v798_v13, 2  ;;  %v1037_v31 = vmul.f32 %v4137_v38, %v4779_v63 }
 0x1a0   : > { %v909_v47 = vrot.slane %v799_v29, 2  ;;  %v663_v14 = vsel %vm630_vm0, %v661_v22, %v662_v30  ;;  %v665_v53 = vsel %vm630_vm0, %v662_v30, %v664_v54  ;;  %v1110_v45 = vmul.f32 %v4140_v39, %v4776_v24 }
 0x1a1   : > { %v1111_v56 = vmul.f32 %v4140_v39, %v4779_v63  ;;  %3309 = vmatmul.mubr.msk.bf16.gmra.mrb[8].mxu1 %vm2171_vm2, %v2145_v49  ;;  %v755_v25 = vadd.f32 %v663_v14, %v478_v50  ;;  %v756_v51 = vadd.f32 %v665_v53, %v479_v42  ;;  %v908_v27 = vsel %vm875_vm1, %v906_v59, %v907_v9 }
 0x1a2   : > { %v910_v60 = vsel %vm875_vm1, %v907_v9, %v909_v47  ;;  %v1112_v62 = vmul.f32 %v4140_v39, %v4781_v28  ;;  %v1218_v57 = vrot.slane %v1110_v45, 1  ;;  %v1354_v48 = vmul.f32 %v4146_v44, %v4776_v24 }
 0x1a3   : > { %v1219_v58 = vrot.slane %v1111_v56, 1  ;;  %v1000_v0 = vadd.f32 %v908_v27, %v755_v25  ;;  %v1001_v55 = vadd.f32 %v910_v60, %v756_v51  ;;  %v1355_v34 = vmul.f32 %v4146_v44, %v4779_v63 }
 0x1a4   : > { %v1356_v50 = vmul.f32 %v4146_v44, %v4781_v28  ;;  %v1221_v41 = vrot.slane %v1112_v62, 1  ;;  %v1462_v42 = vrot.slane %v1354_v48, 2  ;;  %v1592_v43 = vmul.f32 %v4143_v40, %v4179_v17 }
 0x1a5   : > { %v1220_v2 = vsel %vm630_vm0, %v1218_v57, %v1219_v58  ;;  %v1068_v61 = vadd.f32 %v1036_v36, %v1000_v0  ;;  %v1069_v15 = vadd.f32 %v1037_v31, %v1001_v55  ;;  %v1463_v11 = vrot.slane %v1355_v34, 2 }
 0x1a6   : > { %v1465_v16 = vrot.slane %v1356_v50, 2  ;;  %v1222_v18 = vsel %vm630_vm0, %v1219_v58, %v1221_v41  ;;  %v1593_v19 = vmul.f32 %v4206_v52, %v4179_v17  ;;  %v1666_v22 = vmul.f32 %v4143_v40, %v4186_v23 }
 0x1a7   : > { %v1667_v26 = vmul.f32 %v4206_v52, %v4186_v23  ;;  %v1312_v32 = vadd.f32 %v1220_v2, %v1068_v61  ;;  %v1313_v33 = vadd.f32 %v1222_v18, %v1069_v15  ;;  %v1464_v13 = vsel %vm875_vm1, %v1462_v42, %v1463_v11 }
 0x1a8   : > { %v1466_v29 = vsel %vm875_vm1, %v1463_v11, %v1465_v16  ;;  %v1668_v30 = vmul.f32 %v4186_v23, %v4224_v4  ;;  %v1774_v54 = vrot.slane %v1666_v22, 1  ;;  %v1910_v36 = vmul.f32 %v4697_v46, %v4143_v40 }
 0x1a9   : > { %v1775_v59 = vrot.slane %v1667_v26, 1  ;;  %v1556_v49 = vadd.f32 %v1464_v13, %v1312_v32  ;;  %v1557_v9 = vadd.f32 %v1466_v29, %v1313_v33  ;;  %v1911_v47 = vmul.f32 %v4697_v46, %v4206_v52 }
 0x1aa   : > { %v1912_v31 = vmul.f32 %v4697_v46, %v4224_v4  ;;  %v1777_v53 = vrot.slane %v1668_v30, 1  ;;  %v2018_v45 = vrot.slane %v1910_v36, 2  ;;  %v480_v56 = vmul.f32 %v4106_v20, %v4776_v24 }
 0x1ab   : > { %v1776_v14 = vsel %vm630_vm0, %v1774_v54, %v1775_v59  ;;  %v1624_v25 = vadd.f32 %v1592_v43, %v1556_v49  ;;  %v1625_v51 = vadd.f32 %v1593_v19, %v1557_v9  ;;  %v2019_v27 = vrot.slane %v1911_v47, 2 }
 0x1ac   : > { %v2021_v60 = vrot.slane %v1912_v31, 2  ;;  %v1778_v62 = vsel %vm630_vm0, %v1775_v59, %v1777_v53  ;;  %v481_v57 = vmul.f32 %v4106_v20, %v4779_v63  ;;  %v555_v58 = vmul.f32 %v4109_v21, %v4776_v24 }
 0x1ad   : > { %v556_v48 = vmul.f32 %v4109_v21, %v4779_v63  ;;  %v1868_v0 = vadd.f32 %v1776_v14, %v1624_v25  ;;  %v1869_v55 = vadd.f32 %v1778_v62, %v1625_v51  ;;  %v2020_v34 = vsel %vm875_vm1, %v2018_v45, %v2019_v27 }
 0x1ae   : > { %v2022_v50 = vsel %vm875_vm1, %v2019_v27, %v2021_v60  ;;  %v557_v2 = vmul.f32 %v4109_v21, %v4781_v28  ;;  %v666_v41 = vrot.slane %v555_v58, 1  ;;  %v800_v43 = vmul.f32 %v4134_v37, %v4776_v24 }
 0x1af   : > { %v667_v42 = vrot.slane %v556_v48, 1  ;;  %v2112_v61 = vadd.f32 %v2020_v34, %v1868_v0  ;;  %v2113_v15 = vadd.f32 %v2022_v50, %v1869_v55  ;;  %v801_v11 = vmul.f32 %v4134_v37, %v4779_v63 }
 0x1b0   : > { %v802_v16 = vmul.f32 %v4134_v37, %v4781_v28  ;;  %v669_v19 = vrot.slane %v557_v2, 1  ;;  %v911_v22 = vrot.slane %v800_v43, 2  ;;  %v1038_v26 = vmul.f32 %v4143_v40, %v4137_v38 }
 0x1b1   : > { %v668_v18 = vsel %vm630_vm0, %v666_v41, %v667_v42  ;;  %v2138_v32 = vpack.c.bf16 %v2113_v15, %v2112_v61  ;;  %v912_v13 = vrot.slane %v801_v11, 2  ;;  %v1039_v30 = vmul.f32 %v4206_v52, %v4137_v38 }
 0x1b2   : > { %v757_v33 = vadd.f32 %v668_v18, %v480_v56  ;;  %v914_v29 = vrot.slane %v802_v16, 2  ;;  %v670_v24 = vsel %vm630_vm0, %v667_v42, %v669_v19  ;;  %v1113_v63 = vmul.f32 %v4143_v40, %v4140_v39  ;;  %v3261_v42 = vld [vmem:[%s4066_s21 + $0xc0] sm:$0xff]  }
 0x1b3   : > { %v1114_v28 = vmul.f32 %v4206_v52, %v4140_v39  ;;  %3296 = vmatprep.mubr.msk.bf16.mxu0 %vm2171_vm2, %v2138_v32  ;;  %v758_v54 = vadd.f32 %v670_v24, %v481_v57  ;;  %v913_v59 = vsel %vm875_vm1, %v911_v22, %v912_v13  ;;  %v1115_v49 = vmul.f32 %v4140_v39, %v4224_v4 }
 0x1b4   : > { %v915_v36 = vsel %vm875_vm1, %v912_v13, %v914_v29  ;;  %v1002_v9 = vadd.f32 %v913_v59, %v757_v33  ;;  %v1223_v47 = vrot.slane %v1113_v63, 1  ;;  %v1357_v14 = vmul.f32 %v4143_v40, %v4146_v44 }
 0x1b5   : > { %v1224_v31 = vrot.slane %v1114_v28, 1  ;;  %v1003_v53 = vadd.f32 %v915_v36, %v758_v54  ;;  %v1226_v45 = vrot.slane %v1115_v49, 1  ;;  %v1358_v56 = vmul.f32 %v4206_v52, %v4146_v44 }
 0x1b6   : > { %v1359_v25 = vmul.f32 %v4146_v44, %v4224_v4  ;;  %v1070_v51 = vadd.f32 %v1038_v26, %v1002_v9  ;;  %v1467_v60 = vrot.slane %v1357_v14, 2  ;;  %v1594_v62 = vmul.f32 %v4179_v17, %v4220_v1  ;;  %v404_v26 = vld [vmem:[%s4066_s21 + $0xc8] sm:$0x1] }
 0x1b7   : > { %v1225_v27 = vsel %vm630_vm0, %v1223_v47, %v1224_v31  ;;  %v1071_v57 = vadd.f32 %v1039_v30, %v1003_v53  ;;  %v1227_v58 = vsel %vm630_vm0, %v1224_v31, %v1226_v45  ;;  %v1468_v40 = vrot.slane %v1358_v56, 2 }
 0x1b8   : > { %v1470_v48 = vrot.slane %v1359_v25, 2  ;;  %v1314_v0 = vadd.f32 %v1225_v27, %v1070_v51  ;;  %v1595_v52 = vmul.f32 %v4179_v17, %v4222_v3  ;;  %v1669_v4 = vmul.f32 %v4186_v23, %v4220_v1 }
 0x1b9   : > { %v1670_v55 = vmul.f32 %v4186_v23, %v4222_v3  ;;  %v1315_v34 = vadd.f32 %v1227_v58, %v1071_v57  ;;  %v1469_v50 = vsel %vm875_vm1, %v1467_v60, %v1468_v40  ;;  %v1671_v41 = vmul.f32 %v4186_v23, %v4226_v7 }
 0x1ba   : > { %v1471_v2 = vsel %vm875_vm1, %v1468_v40, %v1470_v48  ;;  %v1558_v43 = vadd.f32 %v1469_v50, %v1314_v0  ;;  %v1779_v61 = vrot.slane %v1669_v4, 1  ;;  %v1913_v11 = vmul.f32 %v4697_v46, %v4220_v1 }
 0x1bb   : > { %v1780_v15 = vrot.slane %v1670_v55, 1  ;;  %v1559_v16 = vadd.f32 %v1471_v2, %v1315_v34  ;;  %v1782_v18 = vrot.slane %v1671_v41, 1  ;;  %v1914_v19 = vmul.f32 %v4697_v46, %v4222_v3 }
 0x1bc   : > { %v1915_v22 = vmul.f32 %v4697_v46, %v4226_v7  ;;  %v1626_v32 = vadd.f32 %v1594_v62, %v1558_v43  ;;  %v2023_v13 = vrot.slane %v1913_v11, 2  ;;  %v5105_v29 = vunpack.c.l.bf16 %v3261_v42 }
 0x1bd   : > { %v1781_v33 = vsel %vm630_vm0, %v1779_v61, %v1780_v15  ;;  %v1627_v24 = vadd.f32 %v1595_v52, %v1559_v16  ;;  %v1783_v30 = vsel %vm630_vm0, %v1780_v15, %v1782_v18  ;;  %v2024_v63 = vrot.slane %v1914_v19, 2 }
 0x1be   : > { %v2026_v1 = vrot.slane %v1915_v22, 2  ;;  %v1870_v28 = vadd.f32 %v1781_v33, %v1626_v32  ;;  %v5108_v54 = vunpack.c.h.bf16 %v3261_v42  ;;  %v5110_v59 = vunpack.c.l.bf16 %v404_v26 }
 0x1bf   : > { %v494_v3 = vmul.f32 %v4844_v8, %v4106_v20  ;;  %v1871_v7 = vadd.f32 %v1783_v30, %v1627_v24  ;;  %v2025_v46 = vsel %vm875_vm1, %v2023_v13, %v2024_v63  ;;  %v495_v49 = vmul.f32 %v4848_v6, %v4106_v20 }
 0x1c0   : > { %v2027_v36 = vsel %vm875_vm1, %v2024_v63, %v2026_v1  ;;  %v2114_v9 = vadd.f32 %v2025_v46, %v1870_v28  ;;  %v576_v47 = vmul.f32 %v4844_v8, %v4109_v21  ;;  %v577_v31 = vmul.f32 %v4848_v6, %v4109_v21 }
 0x1c1   : > { %v578_v14 = vmul.f32 %v4109_v21, %v4850_v5  ;;  %v2115_v53 = vadd.f32 %v2027_v36, %v1871_v7  ;;  %v821_v45 = vmul.f32 %v4844_v8, %v4134_v37  ;;  %v822_v56 = vmul.f32 %v4848_v6, %v4134_v37  ;;  %v405_v36 = vld [vmem:[%s4066_s21 + $0xcc] sm:$0xff]  }
 0x1c2   : > { %v823_v25 = vmul.f32 %v4134_v37, %v4850_v5  ;;  %v701_v51 = vrot.slane %v576_v47, 1  ;;  %v702_v27 = vrot.slane %v577_v31, 1  ;;  %v1052_v62 = vmul.f32 %v4137_v38, %v4914_v35  ;;  %v5167_v31 = vld [vmem:[%s4074_s11 + $0x8] ss:$0 sm:$0xff] }
 0x1c3   : > { %v704_v60 = vrot.slane %v578_v14, 1  ;;  %v2139_v57 = vpack.c.bf16 %v2115_v53, %v2114_v9  ;;  %v946_v58 = vrot.slane %v821_v45, 2  ;;  %v947_v40 = vrot.slane %v822_v56, 2 }
 0x1c4   : > { %v949_v48 = vrot.slane %v823_v25, 2  ;;  %v703_v0 = vsel %vm630_vm0, %v701_v51, %v702_v27  ;;  %v1053_v6 = vmul.f32 %v4137_v38, %v4917_v10  ;;  %v1134_v5 = vmul.f32 %v4140_v39, %v4914_v35  ;;  %v5176_v51 = vld [vmem:[%s4066_s21 + $0xd4] sm:$0x1] }
 0x1c5   : > { %v705_v8 = vsel %vm630_vm0, %v702_v27, %v704_v60  ;;  %3297 = vmatmul.mubr.msk.bf16.gmra.mrb[12].mxu0 %vm2171_vm2, %v2139_v57  ;;  %v771_v52 = vadd.f32 %v703_v0, %v494_v3  ;;  %v948_v55 = vsel %vm875_vm1, %v946_v58, %v947_v40  ;;  %v1135_v50 = vmul.f32 %v4140_v39, %v4917_v10 }
 0x1c6   : > { %v772_v4 = vadd.f32 %v705_v8, %v495_v49  ;;  %v950_v34 = vsel %vm875_vm1, %v947_v40, %v949_v48  ;;  %v1136_v2 = vmul.f32 %v4140_v39, %v4919_v12  ;;  %v1258_v41 = vrot.slane %v1134_v5, 1 }
 0x1c7   : > { %v1378_v42 = vmul.f32 %v4146_v44, %v4914_v35  ;;  %v1016_v43 = vadd.f32 %v948_v55, %v771_v52  ;;  %v1379_v15 = vmul.f32 %v4146_v44, %v4917_v10  ;;  %v1380_v11 = vmul.f32 %v4146_v44, %v4919_v12 }
 0x1c8   : > { %v1017_v61 = vadd.f32 %v950_v34, %v772_v4  ;;  %v1259_v16 = vrot.slane %v1135_v50, 1  ;;  %v1261_v18 = vrot.slane %v1136_v2, 1  ;;  %v1608_v22 = vmul.f32 %v5105_v29, %v4179_v17 }
 0x1c9   : > { %v1502_v19 = vrot.slane %v1378_v42, 2  ;;  %v1084_v26 = vadd.f32 %v1052_v62, %v1016_v43  ;;  %v1503_v33 = vrot.slane %v1379_v15, 2  ;;  %v1505_v13 = vrot.slane %v1380_v11, 2 }
 0x1ca   : > { %v1085_v32 = vadd.f32 %v1053_v6, %v1017_v61  ;;  %v1260_v24 = vsel %vm630_vm0, %v1258_v41, %v1259_v16  ;;  %v1262_v30 = vsel %vm630_vm0, %v1259_v16, %v1261_v18  ;;  %v1609_v63 = vmul.f32 %v5108_v54, %v4179_v17 }
 0x1cb   : > { %v1690_v1 = vmul.f32 %v5105_v29, %v4186_v23  ;;  %v1328_v28 = vadd.f32 %v1260_v24, %v1084_v26  ;;  %v1504_v7 = vsel %vm875_vm1, %v1502_v19, %v1503_v33  ;;  %v1506_v46 = vsel %vm875_vm1, %v1503_v33, %v1505_v13 }
 0x1cc   : > { %v1329_v3 = vadd.f32 %v1262_v30, %v1085_v32  ;;  %v1691_v49 = vmul.f32 %v5108_v54, %v4186_v23  ;;  %v1692_v9 = vmul.f32 %v4186_v23, %v5110_v59  ;;  %v1934_v14 = vmul.f32 %v5167_v31, %v5105_v29 }
 0x1cd   : > { %v1814_v47 = vrot.slane %v1690_v1, 1  ;;  %v1572_v53 = vadd.f32 %v1504_v7, %v1328_v28  ;;  %v1935_v56 = vmul.f32 %v5167_v31, %v5108_v54  ;;  %v1936_v25 = vmul.f32 %v5167_v31, %v5110_v59 }
 0x1ce   : > { %v1573_v45 = vadd.f32 %v1506_v46, %v1329_v3  ;;  %v1815_v27 = vrot.slane %v1691_v49, 1  ;;  %v1817_v60 = vrot.slane %v1692_v9, 1  ;;  %v2058_v62 = vrot.slane %v1934_v14, 2  ;;  %v5180_v58 = vpop.f32.mrb[0].mxu0 }
 0x1cf   : > { %v5178_v57 = vunpack.c.l.bf16 %v405_v36  ;;  %v1640_v40 = vadd.f32 %v1608_v22, %v1572_v53  ;;  %v2059_v0 = vrot.slane %v1935_v56, 2  ;;  %v2061_v8 = vrot.slane %v1936_v25, 2  ;;  %v5182_v6 = vpop.f32.mrb[1].mxu0 }
 0x1d0   : > { %v1641_v48 = vadd.f32 %v1609_v63, %v1573_v45  ;;  %v1816_v5 = vsel %vm630_vm0, %v1814_v47, %v1815_v27  ;;  %v1818_v52 = vsel %vm630_vm0, %v1815_v27, %v1817_v60  ;;  %v5186_v4 = vunpack.c.h.bf16 %v405_v36  ;;  %v5189_v34 = vpop.f32.mrb[2].mxu0 }
 0x1d1   : > { %v461_v55 = vunpack.c.l.bf16 %v5176_v51  ;;  %v1884_v50 = vadd.f32 %v1816_v5, %v1640_v40  ;;  %v2060_v41 = vsel %vm875_vm1, %v2058_v62, %v2059_v0  ;;  %v2062_v42 = vsel %vm875_vm1, %v2059_v0, %v2061_v8  ;;  %v5193_v43 = vpop.f32.mrb[3].mxu0 }
 0x1d2   : > { %v1885_v2 = vadd.f32 %v1818_v52, %v1641_v48  ;;  %v496_v61 = vmul.f32 %v4106_v20, %v4914_v35  ;;  %v497_v15 = vmul.f32 %v4106_v20, %v4917_v10  ;;  %v579_v11 = vmul.f32 %v4109_v21, %v4914_v35 }
 0x1d3   : > { %v580_v16 = vmul.f32 %v4109_v21, %v4917_v10  ;;  %v2128_v18 = vadd.f32 %v2060_v41, %v1884_v50  ;;  %v581_v22 = vmul.f32 %v4109_v21, %v4919_v12  ;;  %v824_v26 = vmul.f32 %v4134_v37, %v4914_v35 }
 0x1d4   : > { %v2129_v19 = vadd.f32 %v2062_v42, %v1885_v2  ;;  %v706_v32 = vrot.slane %v579_v11, 1  ;;  %v825_v13 = vmul.f32 %v4134_v37, %v4917_v10  ;;  %v826_v20 = vmul.f32 %v4134_v37, %v4919_v12  ;;  %v5247_v42 = vld [vmem:[#allocation9] ss:$0 sm:$0xff] }
 0x1d5   : > { %v707_v33 = vrot.slane %v580_v16, 1  ;;  %v709_v30 = vrot.slane %v581_v22, 1  ;;  %v951_v63 = vrot.slane %v824_v26, 2  ;;  %v1054_v1 = vmul.f32 %v5105_v29, %v4137_v38 }
 0x1d6   : > { %v2146_v24 = vpack.c.bf16 %v2129_v19, %v2128_v18  ;;  %v952_v21 = vrot.slane %v825_v13, 2  ;;  %v954_v3 = vrot.slane %v826_v20, 2  ;;  %v1055_v35 = vmul.f32 %v5108_v54, %v4137_v38 }
 0x1d7   : > { %v708_v28 = vsel %vm630_vm0, %v706_v32, %v707_v33  ;;  %v710_v10 = vsel %vm630_vm0, %v707_v33, %v709_v30  ;;  %v1137_v37 = vmul.f32 %v5105_v29, %v4140_v39  ;;  %v1138_v12 = vmul.f32 %v5108_v54, %v4140_v39 }
 0x1d8   : > { %3312 = vmatprep.mubr.msk.bf16.mxu1 %vm2171_vm2, %v2146_v24  ;;  %v773_v7 = vadd.f32 %v708_v28, %v496_v61  ;;  %v774_v46 = vadd.f32 %v710_v10, %v497_v15  ;;  %v953_v36 = vsel %vm875_vm1, %v951_v63, %v952_v21  ;;  %v955_v49 = vsel %vm875_vm1, %v952_v21, %v954_v3  ;;  %v5275_v10 = vld [vmem:[#allocation11] ss:$0 sm:$0xff] }
 0x1d9   : > { %v1139_v9 = vmul.f32 %v4140_v39, %v5110_v59  ;;  %v1263_v47 = vrot.slane %v1137_v37, 1  ;;  %v1264_v14 = vrot.slane %v1138_v12, 1  ;;  %v1381_v53 = vmul.f32 %v5105_v29, %v4146_v44 }
 0x1da   : > { %v1018_v38 = vadd.f32 %v953_v36, %v773_v7  ;;  %v1019_v45 = vadd.f32 %v955_v49, %v774_v46  ;;  %v1382_v25 = vmul.f32 %v5108_v54, %v4146_v44  ;;  %v1383_v27 = vmul.f32 %v4146_v44, %v5110_v59 }
 0x1db   : > { %v1266_v56 = vrot.slane %v1139_v9, 1  ;;  %v1265_v62 = vsel %vm630_vm0, %v1263_v47, %v1264_v14  ;;  %v1507_v40 = vrot.slane %v1381_v53, 2  ;;  %v1610_v39 = vmul.f32 %v4179_v17, %v5178_v57 }
 0x1dc   : > { %v1086_v60 = vadd.f32 %v1054_v1, %v1018_v38  ;;  %v1087_v48 = vadd.f32 %v1055_v35, %v1019_v45  ;;  %v1508_v8 = vrot.slane %v1382_v25, 2  ;;  %v1510_v29 = vrot.slane %v1383_v27, 2 }
 0x1dd   : > { %v1267_v0 = vsel %vm630_vm0, %v1264_v14, %v1266_v56  ;;  %v1611_v52 = vmul.f32 %v4179_v17, %v5186_v4  ;;  %v1693_v54 = vmul.f32 %v4186_v23, %v5178_v57  ;;  %v1694_v44 = vmul.f32 %v4186_v23, %v5186_v4 }
 0x1de   : > { %v1330_v5 = vadd.f32 %v1265_v62, %v1086_v60  ;;  %v1331_v59 = vadd.f32 %v1267_v0, %v1087_v48  ;;  %v1509_v50 = vsel %vm875_vm1, %v1507_v40, %v1508_v8  ;;  %v1511_v2 = vsel %vm875_vm1, %v1508_v8, %v1510_v29 }
 0x1df   : > { %v1695_v41 = vmul.f32 %v4186_v23, %v461_v55  ;;  %v1819_v15 = vrot.slane %v1693_v54, 1  ;;  %v1820_v17 = vrot.slane %v1694_v44, 1  ;;  %v1937_v11 = vmul.f32 %v5167_v31, %v5178_v57 }
 0x1e0   : > { %v1574_v61 = vadd.f32 %v1509_v50, %v1330_v5  ;;  %v1575_v16 = vadd.f32 %v1511_v2, %v1331_v59  ;;  %v1938_v19 = vmul.f32 %v5167_v31, %v5186_v4  ;;  %v1939_v22 = vmul.f32 %v5167_v31, %v461_v55  ;;  %v3302_v26 = vpop.f32.mrb[0].mxu1 }
 0x1e1   : > { %v1822_v18 = vrot.slane %v1695_v41, 1  ;;  %v1821_v23 = vsel %vm630_vm0, %v1819_v15, %v1820_v17  ;;  %v2063_v33 = vrot.slane %v1937_v11, 2  ;;  %v5259_v13 = vadd.f32 %v5180_v58, %v5247_v42  ;;  %v2318_v20 = vpop.f32.mrb[1].mxu1 }
 0x1e2   : > { %v1642_v32 = vadd.f32 %v1610_v39, %v1574_v61  ;;  %v1643_v57 = vadd.f32 %v1611_v52, %v1575_v16  ;;  %v2064_v30 = vrot.slane %v1938_v19, 2  ;;  %v2066_v63 = vrot.slane %v1939_v22, 2  ;;  %v3303_v4 = vpop.f32.mrb[2].mxu1 }
 0x1e3   : > { %v1823_v24 = vsel %vm630_vm0, %v1820_v17, %v1822_v18  ;;  %v2383_v51 = vmax.f32 %v5259_v13, 0.0  ;;  %v5264_v31 = vadd.f32 %v3302_v26, %v5247_v42  ;;  %v5268_v55 = vadd.f32 %v5247_v42, %v5182_v6  ;;  %v2321_v28 = vpop.f32.mrb[3].mxu1 }
 0x1e4   : > { %v1886_v1 = vadd.f32 %v1821_v23, %v1642_v32  ;;  %v1887_v58 = vadd.f32 %v1823_v24, %v1643_v57  ;;  %v2065_v21 = vsel %vm875_vm1, %v2063_v33, %v2064_v30  ;;  %v2067_v3 = vsel %vm875_vm1, %v2064_v30, %v2066_v63 }
 0x1e5   : > { %v5273_v35 = vadd.f32 %v5247_v42, %v2318_v20  ;;  %v2399_v37 = vmax.f32 %v5264_v31, 0.0  ;;  %v2381_v12 = vmax.f32 %v5268_v55, 0.0  ;;  %v5281_v6 = vadd.f32 %v5189_v34, %v5247_v42 }
 0x1e6   : > { %v2130_v7 = vadd.f32 %v2065_v21, %v1886_v1  ;;  %v2131_v46 = vadd.f32 %v2067_v3, %v1887_v58  ;;  %v5284_v36 = vadd.f32 %v3303_v4, %v5247_v42  ;;  %v2422_v38 = vmul.f32 %v5275_v10, %v2383_v51 }
 0x1e7   : > { %v5780_v49 = vmax.f32 %v5281_v6, 0.0  ;;  %v2438_v9 = vmul.f32 %v5275_v10, %v2399_v37  ;;  %v2397_v14 = vmax.f32 %v5273_v35, 0.0  ;;  %v5296_v34 = vadd.f32 %v5247_v42, %v5193_v43 }
 0x1e8   : > { %v2147_v47 = vpack.c.bf16 %v2131_v46, %v2130_v7  ;;  %v2458_v45 = vsel %vm2171_vm2, %v2422_v38, 0.0  ;;  %v2420_v56 = vmul.f32 %v5275_v10, %v2381_v12  ;;  %v2400_v25 = vmax.f32 %v5284_v36, 0.0 }
 0x1e9   : > { %v2506_v53 = vsel %vm2171_vm2, %v2438_v9, 0.0  ;;  %v5306_v27 = vadd.f32 %v5247_v42, %v2321_v28  ;;  %v2423_v43 = vmul.f32 %v5275_v10, %v5780_v49  ;;  %2459 = vadd.xlane.f32.xlu1 %v2458_v45  ;;  %v5774_v60 = vmax.f32 %v5296_v34, 0.0 }
 0x1ea   : > { %3313 = vmatmul.mubr.msk.bf16.gmra.mrb[12].mxu1 %vm2171_vm2, %v2147_v47  ;;  %2507 = vadd.xlane.f32.xlu0 %v2506_v53  ;;  %v2452_v62 = vsel %vm2171_vm2, %v2420_v56, 0.0  ;;  %v2436_v40 = vmul.f32 %v5275_v10, %v2397_v14  ;;  %v2439_v0 = vmul.f32 %v5275_v10, %v2400_v25 }
 0x1eb   : > { %v2398_v39 = vmax.f32 %v5306_v27, 0.0  ;;  %v2461_v48 = vsel %vm2171_vm2, %v2423_v43, 0.0  ;;  %v2421_v29 = vmul.f32 %v5275_v10, %v5774_v60 }
 0x1ec   : > { %v2500_v8 = vsel %vm2171_vm2, %v2436_v40, 0.0  ;;  %v2509_v5 = vsel %vm2171_vm2, %v2439_v0, 0.0 }
 0x1ed   : > { %2462 = vadd.xlane.f32.xlu1 %v2461_v48  ;;  %v2437_v52 = vmul.f32 %v5275_v10, %v2398_v39  ;;  %v2455_v54 = vsel %vm2171_vm2, %v2421_v29, 0.0 }
 0x1ee   : > { %2453 = vadd.xlane.f32.xlu0 %v2452_v62 }
 0x1ef   : > { %v2503_v44 = vsel %vm2171_vm2, %v2437_v52, 0.0 }
 0x1f1   : > { %2510 = vadd.xlane.f32.xlu1 %v2509_v5 }
 0x1f2   : > { %2501 = vadd.xlane.f32.xlu0 %v2500_v8 }
 0x1f5   : > { %2504 = vadd.xlane.f32.xlu1 %v2503_v44 }
 0x1f6   : > { %2456 = vadd.xlane.f32.xlu0 %v2455_v54 }
 0x205   : > { %v3290_v59 = vpop.f32.mrb[4].mxu0 }
 0x206   : > { %v5332_v50 = vadd.f32 %v3290_v59, %v5247_v42  ;;  %v2270_v2 = vpop.f32.mrb[5].mxu0 }
 0x207   : > { %v3291_v41 = vpop.f32.mrb[6].mxu0  ;;  %v5348_v26 = vadd.f32 %v5247_v42, %v2270_v2 }
 0x208   : > { %v5773_v61 = vmax.f32 %v5332_v50, 0.0  ;;  %v5336_v15 = vadd.f32 %v3291_v41, %v5247_v42  ;;  %v2273_v17 = vpop.f32.mrb[7].mxu0 }
 0x209   : > { %v5354_v20 = vadd.f32 %v5247_v42, %v2273_v17  ;;  %v5771_v24 = vmax.f32 %v5348_v26, 0.0 }
 0x20a   : > { %v5768_v11 = vmax.f32 %v5336_v15, 0.0  ;;  %v2426_v16 = vmul.f32 %v5275_v10, %v5773_v61 }
 0x20b   : > { %v5767_v58 = vmax.f32 %v5354_v20, 0.0  ;;  %v2424_v38 = vmul.f32 %v5275_v10, %v5771_v24 }
 0x20c   : > { %v2427_v18 = vmul.f32 %v5275_v10, %v5768_v11  ;;  %v2470_v19 = vsel %vm2171_vm2, %v2426_v16, 0.0 }
 0x20d   : > { %2471 = vadd.xlane.f32.xlu0 %v2470_v19  ;;  %v2425_v45 = vmul.f32 %v5275_v10, %v5767_v58  ;;  %v2464_v56 = vsel %vm2171_vm2, %v2424_v38, 0.0  ;;  %v3779_v19 = vmov 0  }
 0x20e   : > { %v2473_v22 = vsel %vm2171_vm2, %v2427_v18, 0.0  ;;  %3412 = vset.pattern.permute.xlu1 %v3779_v19  ;;  %3413 = vset.pattern.permute.xlu0 %v3779_v19 }
 0x20f   : > { %2474 = vadd.xlane.f32.xlu1 %v2473_v22  ;;  %v2467_v62 = vsel %vm2171_vm2, %v2425_v45, 0.0 }
 0x22a   : > { %v3306_v32 = vpop.f32.mrb[4].mxu1 }
 0x22b   : > { %v5351_v23 = vadd.f32 %v3306_v32, %v5247_v42  ;;  %v2334_v33 = vpop.f32.mrb[5].mxu1 }
 0x22c   : > { %v3307_v57 = vpop.f32.mrb[6].mxu1  ;;  %v5359_v63 = vadd.f32 %v5247_v42, %v2334_v33 }
 0x22d   : > { %v5772_v30 = vmax.f32 %v5351_v23, 0.0  ;;  %v5362_v4 = vadd.f32 %v3307_v57, %v5247_v42  ;;  %v2337_v1 = vpop.f32.mrb[7].mxu1 }
 0x22e   : > { %v5367_v21 = vadd.f32 %v5247_v42, %v2337_v1  ;;  %v5770_v7 = vmax.f32 %v5359_v63, 0.0 }
 0x22f   : > { %v2404_v28 = vmax.f32 %v5362_v4, 0.0  ;;  %v2442_v3 = vmul.f32 %v5275_v10, %v5772_v30  ;;  %v5807_v4 = vmax.f32 %v5296_v34, 0.0 }
 0x230   : > { %v5779_v47 = vmax.f32 %v5367_v21, 0.0  ;;  %v2440_v43 = vmul.f32 %v5275_v10, %v5770_v7 }
 0x231   : > { %v2443_v46 = vmul.f32 %v5275_v10, %v2404_v28  ;;  %v2518_v9 = vsel %vm2171_vm2, %v2442_v3, 0.0 }
 0x232   : > { %2519 = vadd.xlane.f32.xlu0 %v2518_v9  ;;  %v2441_v40 = vmul.f32 %v5275_v10, %v5779_v47  ;;  %v2512_v48 = vsel %vm2171_vm2, %v2440_v43, 0.0 }
 0x233   : > { %v2521_v53 = vsel %vm2171_vm2, %v2443_v46, 0.0 }
 0x234   : > { %2522 = vadd.xlane.f32.xlu1 %v2521_v53  ;;  %v2515_v0 = vsel %vm2171_vm2, %v2441_v40, 0.0 }
 0x236   : > { %2465 = vadd.xlane.f32.xlu0 %v2464_v56 }
 0x238   : > { %2468 = vadd.xlane.f32.xlu1 %v2467_v62 }
 0x23a   : > { %2513 = vadd.xlane.f32.xlu0 %v2512_v48 }
 0x23c   : > { %2516 = vadd.xlane.f32.xlu1 %v2515_v0 }
 0x24f   : > { %v3294_v8 = vpop.f32.mrb[8].mxu0 }
 0x250   : > { %v5396_v29 = vadd.f32 %v3294_v8, %v5247_v42  ;;  %v2286_v5 = vpop.f32.mrb[9].mxu0 }
 0x251   : > { %v3295_v52 = vpop.f32.mrb[10].mxu0  ;;  %v5412_v22 = vadd.f32 %v5247_v42, %v2286_v5 }
 0x252   : > { %v5766_v54 = vmax.f32 %v5396_v29, 0.0  ;;  %v5400_v44 = vadd.f32 %v3295_v52, %v5247_v42  ;;  %v2289_v59 = vpop.f32.mrb[11].mxu0 }
 0x253   : > { %v5418_v1 = vadd.f32 %v5247_v42, %v2289_v59  ;;  %v5762_v46 = vmax.f32 %v5412_v22, 0.0 }
 0x254   : > { %v5769_v2 = vmax.f32 %v5400_v44, 0.0  ;;  %v2430_v41 = vmul.f32 %v5275_v10, %v5766_v54 }
 0x255   : > { %v5760_v43 = vmax.f32 %v5418_v1, 0.0  ;;  %v2428_v5 = vmul.f32 %v5275_v10, %v5762_v46 }
 0x256   : > { %v2431_v17 = vmul.f32 %v5275_v10, %v5769_v2  ;;  %v2482_v16 = vsel %vm2171_vm2, %v2430_v41, 0.0 }
 0x257   : > { %2483 = vadd.xlane.f32.xlu0 %v2482_v16  ;;  %v2429_v41 = vmul.f32 %v5275_v10, %v5760_v43  ;;  %v5483_v43 = vld [vmem:[#allocation2] ss:$0 sm:$0xff] }
 0x258   : > { %v2485_v18 = vsel %vm2171_vm2, %v2431_v17, 0.0  ;;  %v2476_v17 = vsel %vm2171_vm2, %v2428_v5, 0.0 }
 0x259   : > { %2486 = vadd.xlane.f32.xlu1 %v2485_v18  ;;  %v2479_v18 = vsel %vm2171_vm2, %v2429_v41, 0.0 }
 0x274   : > { %v3310_v32 = vpop.f32.mrb[8].mxu1 }
 0x275   : > { %v5415_v33 = vadd.f32 %v3310_v32, %v5247_v42  ;;  %v2350_v57 = vpop.f32.mrb[9].mxu1 }
 0x276   : > { %v3311_v3 = vpop.f32.mrb[10].mxu1  ;;  %v5423_v38 = vadd.f32 %v5247_v42, %v2350_v57 }
 0x277   : > { %v5765_v9 = vmax.f32 %v5415_v33, 0.0  ;;  %v5426_v53 = vadd.f32 %v3311_v3, %v5247_v42  ;;  %v2353_v45 = vpop.f32.mrb[11].mxu1 }
 0x278   : > { %v5431_v62 = vadd.f32 %v5247_v42, %v2353_v45  ;;  %v5759_v48 = vmax.f32 %v5423_v38, 0.0 }
 0x279   : > { %v5763_v56 = vmax.f32 %v5426_v53, 0.0  ;;  %v2446_v40 = vmul.f32 %v5275_v10, %v5765_v9 }
 0x27a   : > { %v5757_v52 = vmax.f32 %v5431_v62, 0.0  ;;  %v2444_v16 = vmul.f32 %v5275_v10, %v5759_v48 }
 0x27b   : > { %v2447_v0 = vmul.f32 %v5275_v10, %v5763_v56  ;;  %v2530_v8 = vsel %vm2171_vm2, %v2446_v40, 0.0 }
 0x27c   : > { %2531 = vadd.xlane.f32.xlu0 %v2530_v8  ;;  %v2445_v19 = vmul.f32 %v5275_v10, %v5757_v52  ;;  %v2524_v32 = vsel %vm2171_vm2, %v2444_v16, 0.0 }
 0x27d   : > { %v2533_v59 = vsel %vm2171_vm2, %v2447_v0, 0.0 }
 0x27e   : > { %2534 = vadd.xlane.f32.xlu1 %v2533_v59  ;;  %v2527_v57 = vsel %vm2171_vm2, %v2445_v19, 0.0 }
 0x280   : > { %2477 = vadd.xlane.f32.xlu0 %v2476_v17 }
 0x282   : > { %2480 = vadd.xlane.f32.xlu1 %v2479_v18 }
 0x284   : > { %2525 = vadd.xlane.f32.xlu0 %v2524_v32 }
 0x286   : > { %2528 = vadd.xlane.f32.xlu1 %v2527_v57 }
 0x298   : > { %v3298_v3 = vpop.f32.mrb[12].mxu0 }
 0x299   : > { %v5460_v45 = vadd.f32 %v3298_v3, %v5247_v42  ;;  %v2302_v40 = vpop.f32.mrb[13].mxu0 }
 0x29a   : > { %v5463_v0 = vadd.f32 %v5247_v42, %v2302_v40  ;;  %v3299_v8 = vpop.f32.mrb[14].mxu0 }
 0x29b   : > { %v5758_v5 = vmax.f32 %v5460_v45, 0.0  ;;  %v5467_v59 = vadd.f32 %v3299_v8, %v5247_v42  ;;  %v2305_v41 = vpop.f32.mrb[15].mxu0  ;;  %v2460_v8 = vpop.xlane.xlu1 %2459 }
 0x29c   : > { %v5761_v17 = vmax.f32 %v5463_v0, 0.0  ;;  %v2557_v56 = vadd.f32 %v5483_v43, %v2460_v8  ;;  %v5494_v54 = vadd.f32 %v5247_v42, %v2305_v41 }
 0x29d   : > { %v5764_v16 = vmax.f32 %v5467_v59, 0.0  ;;  %v2434_v18 = vmul.f32 %v5275_v10, %v5758_v5  ;;  %v2508_v5 = vpop.xlane.xlu0 %2507 }
 0x29e   : > { %v2432_v19 = vmul.f32 %v5275_v10, %v5761_v17 }
 0x29f   : > { %v2435_v32 = vmul.f32 %v5275_v10, %v5764_v16  ;;  %v2494_v57 = vsel %vm2171_vm2, %v2434_v18, 0.0  ;;  %v2463_v52 = vpop.xlane.xlu1 %2462 }
 0x2a0   : > { %2495 = vadd.xlane.f32.xlu0 %v2494_v57  ;;  %v2488_v40 = vsel %vm2171_vm2, %v2432_v19, 0.0 }
 0x2a1   : > { %v2497_v3 = vsel %vm2171_vm2, %v2435_v32, 0.0  ;;  %v2454_v17 = vpop.xlane.xlu0 %2453  ;;  %v3181_v32 = vmul.f32 -1.442695, %v2557_v56 }
 0x2a2   : > { %2498 = vadd.xlane.f32.xlu1 %v2497_v3  ;;  %v2555_v16 = vadd.f32 %v5483_v43, %v2454_v17  ;;  %v2573_v17 = vadd.f32 %v5483_v43, %v2508_v5  ;;  %v5778_v5 = vmax.f32 %v5494_v54, 0.0 }
 0x2a3   : > { %v2511_v48 = vpop.xlane.xlu1 %2510  ;;  %3416 = vpow2.f32 %v3181_v32 }
 0x2a4   : > { %2489 = vadd.xlane.f32.xlu0 %v2488_v40  ;;  %v2574_v19 = vadd.f32 %v5483_v43, %v2511_v48  ;;  %v3179_v58 = vmul.f32 -1.442695, %v2555_v16  ;;  %v3197_v32 = vmul.f32 -1.442695, %v2573_v17  ;;  %v2433_v17 = vmul.f32 %v5275_v10, %v5778_v5 }
 0x2a5   : > { %v2502_v18 = vpop.xlane.xlu0 %2501 }
 0x2a6   : > { %v2571_v48 = vadd.f32 %v5483_v43, %v2502_v18  ;;  %v3198_v41 = vmul.f32 -1.442695, %v2574_v19  ;;  %3418 = vpow2.f32 %v3179_v58 }
 0x2a7   : > { %v2505_v46 = vpop.xlane.xlu1 %2504 }
 0x2a8   : > { %v2572_v16 = vadd.f32 %v5483_v43, %v2505_v46  ;;  %v3195_v46 = vmul.f32 -1.442695, %v2571_v48  ;;  %3420 = vpow2.f32 %v3198_v41 }
 0x2a9   : > { %v2457_v24 = vpop.xlane.xlu0 %2456  ;;  %3422 = vpow2.f32 %v3197_v32 }
 0x2aa   : > { %3424 = vpow2.f32 %v3195_v46 }
 0x2ab   : > { %v5487_v57 = vpop.xlane.xlu1 %2474 }
 0x2bd   : > { %v3314_v9 = vpop.f32.mrb[12].mxu1 }
 0x2be   : > { %v5491_v3 = vadd.f32 %v3314_v9, %v5247_v42  ;;  %v2366_v40 = vpop.f32.mrb[13].mxu1 }
 0x2bf   : > { %v5497_v11 = vadd.f32 %v5247_v42, %v2366_v40  ;;  %v3315_v8 = vpop.f32.mrb[14].mxu1 }
 0x2c0   : > { %v5501_v2 = vadd.f32 %v3315_v8, %v5247_v42  ;;  %v2369_v56 = vpop.f32.mrb[15].mxu1  ;;  %v5777_v9 = vmax.f32 %v5491_v3, 0.0 }
 0x2c1   : > { %v5775_v7 = vmax.f32 %v5497_v11, 0.0  ;;  %v2523_v40 = vpop.xlane.xlu1 %2522  ;;  %v5510_v8 = vadd.f32 %v5247_v42, %v2369_v56  ;;  %v3196_v42 = vmul.f32 -1.442695, %v2572_v16 }
 0x2c2   : > { %v5776_v30 = vmax.f32 %v5501_v2, 0.0  ;;  %v2450_v60 = vmul.f32 %v5275_v10, %v5777_v9  ;;  %v2578_v48 = vadd.f32 %v5483_v43, %v2523_v40  ;;  %v3417_v9 = vpop.eup %3416 }
 0x2c3   : > { %v2448_v18 = vmul.f32 %v5275_v10, %v5775_v7  ;;  %v5781_v58 = vmax.f32 %v5510_v8, 0.0  ;;  %3426 = vpow2.f32 %v3196_v42  ;;  %v3419_v40 = vpop.eup %3418  ;;  %v2685_v46 = vadd.f32 1.0, %v3417_v9 }
 0x2c4   : > { %v2451_v19 = vmul.f32 %v5275_v10, %v5776_v30  ;;  %v2558_v30 = vadd.f32 %v5483_v43, %v2463_v52  ;;  %v2542_v41 = vsel %vm2171_vm2, %v2450_v60, 0.0  ;;  %v2556_v52 = vadd.f32 %v5483_v43, %v2457_v24  ;;  %v3421_v49 = vpop.eup %3420 }
 0x2c5   : > { %v2536_v61 = vsel %vm2171_vm2, %v2448_v18, 0.0  ;;  %v5522_v56 = vpop.xlane.xlu1 %2468  ;;  %v2472_v18 = vpop.xlane.xlu0 %2471  ;;  %v2449_v5 = vmul.f32 %v5275_v10, %v5781_v58  ;;  %v2683_v10 = vadd.f32 1.0, %v3419_v40  ;;  %v2702_v9 = vadd.f32 1.0, %v3421_v49 }
 0x2c6   : > { %v2545_v7 = vsel %vm2171_vm2, %v2451_v19, 0.0  ;;  %2537 = vadd.xlane.f32.xlu0 %v2536_v61  ;;  %v2491_v19 = vsel %vm2171_vm2, %v2433_v17, 0.0  ;;  %v3202_v61 = vmul.f32 -1.442695, %v2578_v48  ;;  %v3182_v32 = vmul.f32 -1.442695, %v2558_v30 }
 0x2c7   : > { %2546 = vadd.xlane.f32.xlu1 %v2545_v7  ;;  %v2539_v42 = vsel %vm2171_vm2, %v2449_v5, 0.0  ;;  %v2561_v47 = vadd.f32 %v5483_v43, %v2472_v18  ;;  %v3180_v48 = vmul.f32 -1.442695, %v2556_v52 }
 0x2c8   : > { %3428 = vpow2.f32 %v3202_v61 }
 0x2c9   : > { %v2517_v16 = vpop.xlane.xlu1 %2516  ;;  %v2520_v60 = vpop.xlane.xlu0 %2519  ;;  %3430 = vpow2.f32 %v3182_v32 }
 0x2ca   : > { %2543 = vadd.xlane.f32.xlu0 %v2542_v41  ;;  %v2576_v7 = vadd.f32 %v5483_v43, %v2517_v16  ;;  %v3423_v41 = vpop.eup %3422  ;;  %3432 = vrcp.f32 %v2685_v46  ;;  %v2577_v16 = vadd.f32 %v5483_v43, %v2520_v60 }
 0x2cb   : > { %2492 = vadd.xlane.f32.xlu1 %v2491_v19  ;;  %v3425_v30 = vpop.eup %3424  ;;  %v3185_v19 = vmul.f32 -1.442695, %v2561_v47  ;;  %v2701_v58 = vadd.f32 1.0, %v3423_v41 }
 0x2cc   : > { %v3200_v17 = vmul.f32 -1.442695, %v2576_v7  ;;  %v3201_v18 = vmul.f32 -1.442695, %v2577_v16  ;;  %v2699_v61 = vadd.f32 1.0, %v3425_v30 }
 0x2cd   : > { %v3427_v24 = vpop.eup %3426  ;;  %v2466_v5 = vpop.xlane.xlu0 %2465 }
 0x2ce   : > { %3434 = vpow2.f32 %v3200_v17  ;;  %v2700_v7 = vadd.f32 1.0, %v3427_v24  ;;  %v2559_v32 = vadd.f32 %v5483_v43, %v2466_v5 }
 0x2cf   : > { %2540 = vadd.xlane.f32.xlu1 %v2539_v42  ;;  %3436 = vrcp.f32 %v2683_v10 }
 0x2d0   : > { %3438 = vpow2.f32 %v3180_v48  ;;  %v3183_v42 = vmul.f32 -1.442695, %v2559_v32  ;;  %v2560_v32 = vadd.f32 %v5483_v43, %v5522_v56 }
 0x2d1   : > { %3440 = vpow2.f32 %v3185_v19  ;;  %v2514_v52 = vpop.xlane.xlu0 %2513 }
 0x2d2   : > { %3442 = vrcp.f32 %v2702_v9  ;;  %v3429_v40 = vpop.eup %3428  ;;  %v2575_v17 = vadd.f32 %v5483_v43, %v2514_v52 }
 0x2d3   : > { %3444 = vrcp.f32 %v2701_v58  ;;  %v3431_v46 = vpop.eup %3430  ;;  %v2706_v60 = vadd.f32 1.0, %v3429_v40  ;;  %v2562_v58 = vadd.f32 %v5483_v43, %v5487_v57 }
 0x2d4   : > { %3446 = vpow2.f32 %v3201_v18  ;;  %v3433_v47 = vpop.eup %3432  ;;  %v2686_v48 = vadd.f32 1.0, %v3431_v46  ;;  %v3199_v19 = vmul.f32 -1.442695, %v2575_v17 }
 0x2d5   : > { %3448 = vrcp.f32 %v2699_v61  ;;  %v3186_v40 = vmul.f32 -1.442695, %v2562_v58 }
 0x2d6   : > { %3450 = vrcp.f32 %v2700_v7 }
 0x2d7   : > { %3452 = vrcp.f32 %v2706_v60 }
 0x2d8   : > { %v3435_v49 = vpop.eup %3434  ;;  %3454 = vpow2.f32 %v3183_v42 }
 0x2d9   : > { %v3437_v10 = vpop.eup %3436  ;;  %v2704_v16 = vadd.f32 1.0, %v3435_v49  ;;  %3456 = vrcp.f32 %v2686_v48  ;;  %v3184_v49 = vmul.f32 -1.442695, %v2560_v32 }
 0x2da   : > { %v3439_v41 = vpop.eup %3438 }
 0x2db   : > { %v3441_v30 = vpop.eup %3440  ;;  %v2684_v9 = vadd.f32 1.0, %v3439_v41  ;;  %3458 = vrcp.f32 %v2704_v16 }
 0x2dc   : > { %v3443_v24 = vpop.eup %3442  ;;  %v2689_v61 = vadd.f32 1.0, %v3441_v30  ;;  %3460 = vpow2.f32 %v3199_v19 }
 0x2dd   : > { %v3445_v5 = vpop.eup %3444  ;;  %3462 = vrcp.f32 %v2684_v9 }
 0x2de   : > { %v3447_v18 = vpop.eup %3446  ;;  %3464 = vrcp.f32 %v2689_v61 }
 0x2df   : > { %v3449_v7 = vpop.eup %3448  ;;  %v2705_v52 = vadd.f32 1.0, %v3447_v18  ;;  %3466 = vpow2.f32 %v3186_v40 }
 0x2e0   : > { %2791 = vperm.xlu1 %3412, %v3433_v47   ;;  %2781 = vperm.xlu0 %3413, %v3437_v10   ;;  %v3451_v57 = vpop.eup %3450 }
 0x2e1   : > { %v3453_v17 = vpop.eup %3452  ;;  %3468 = vrcp.f32 %v2705_v52 }
 0x2e2   : > { %v3455_v56 = vpop.eup %3454 }
 0x2e3   : > { %v3457_v48 = vpop.eup %3456  ;;  %v2687_v30 = vadd.f32 1.0, %v3455_v56 }
 0x2e4   : > { %2871 = vperm.xlu1 %3412, %v3445_v5   ;;  %2876 = vperm.xlu0 %3413, %v3443_v24   ;;  %v2484_v60 = vpop.xlane.xlu0 %2483 }
 0x2e5   : > { %v2565_v42 = vadd.f32 %v5483_v43, %v2484_v60  ;;  %v3459_v16 = vpop.eup %3458 }
 0x2e6   : > { %v2487_v46 = vpop.xlane.xlu1 %2486  ;;  %v3461_v58 = vpop.eup %3460 }
 0x2e7   : > { %v2566_v47 = vadd.f32 %v5483_v43, %v2487_v46  ;;  %v3189_v41 = vmul.f32 -1.442695, %v2565_v42  ;;  %v3463_v19 = vpop.eup %3462  ;;  %v2703_v9 = vadd.f32 1.0, %v3461_v58 }
 0x2e8   : > { %2861 = vperm.xlu1 %3412, %v3449_v7   ;;  %2866 = vperm.xlu0 %3413, %v3451_v57   ;;  %v3465_v24 = vpop.eup %3464 }
 0x2e9   : > { %v3190_v10 = vmul.f32 -1.442695, %v2566_v47  ;;  %v3467_v5 = vpop.eup %3466 }
 0x2ea   : > { %v2690_v7 = vadd.f32 1.0, %v3467_v5 }
 0x2eb   : > { %3470 = vpow2.f32 %v3190_v10  ;;  %v3469_v18 = vpop.eup %3468 }
 0x2ec   : > { %3472 = vpow2.f32 %v3184_v49  ;;  %2796 = vperm.xlu1 %3412, %v3457_v48   ;;  %2896 = vperm.xlu0 %3413, %v3453_v17  }
 0x2ed   : > { %3474 = vpow2.f32 %v3189_v41 }
 0x2ee   : > { %3476 = vrcp.f32 %v2687_v30 }
 0x2ef   : > { %3478 = vrcp.f32 %v2703_v9 }
 0x2f0   : > { %2786 = vperm.xlu1 %3412, %v3463_v19   ;;  %2886 = vperm.xlu0 %3413, %v3459_v16  }
 0x2f4   : > { %2811 = vperm.xlu1 %3412, %v3465_v24  }
 0x2f5   : > { %v3471_v61 = vpop.eup %3470 }
 0x2f6   : > { %v3473_v40 = vpop.eup %3472  ;;  %v2694_v32 = vadd.f32 1.0, %v3471_v61 }
 0x2f7   : > { %v2688_v57 = vadd.f32 1.0, %v3473_v40  ;;  %v3475_v52 = vpop.eup %3474 }
 0x2f8   : > { %3480 = vrcp.f32 %v2694_v32  ;;  %2891 = vperm.xlu1 %3412, %v3469_v18   ;;  %v3477_v46 = vpop.eup %3476  ;;  %v2693_v47 = vadd.f32 1.0, %v3475_v52 }
 0x2f9   : > { %3482 = vrcp.f32 %v2690_v7  ;;  %v3479_v60 = vpop.eup %3478 }
 0x2fa   : > { %3484 = vrcp.f32 %v2688_v57 }
 0x2fb   : > { %3486 = vrcp.f32 %v2693_v47 }
 0x2fc   : > { %2801 = vperm.xlu1 %3412, %v3477_v46  }
 0x300   : > { %2881 = vperm.xlu1 %3412, %v3479_v60  }
 0x302   : > { %v3481_v49 = vpop.eup %3480 }
 0x303   : > { %v3483_v42 = vpop.eup %3482  ;;  %2836 = vperm.xlu0 %3413, %v3481_v49  }
 0x304   : > { %2816 = vperm.xlu1 %3412, %v3483_v42   ;;  %v3485_v17 = vpop.eup %3484 }
 0x305   : > { %v3487_v48 = vpop.eup %3486 }
 0x308   : > { %2806 = vperm.xlu1 %3412, %v3485_v17  }
 0x309   : > { %v2532_v10 = vpop.xlane.xlu0 %2531 }
 0x30a   : > { %v2581_v56 = vadd.f32 %v5483_v43, %v2532_v10 }
 0x30b   : > { %v2535_v41 = vpop.xlane.xlu1 %2534 }
 0x30c   : > { %v2582_v16 = vadd.f32 %v5483_v43, %v2535_v41  ;;  %v3205_v30 = vmul.f32 -1.442695, %v2581_v56  ;;  %2831 = vperm.xlu1 %3412, %v3487_v48  }
 0x30d   : > { %v2478_v58 = vpop.xlane.xlu0 %2477 }
 0x30e   : > { %v3206_v19 = vmul.f32 -1.442695, %v2582_v16  ;;  %3488 = vpow2.f32 %v3205_v30  ;;  %v2563_v24 = vadd.f32 %v5483_v43, %v2478_v58 }
 0x30f   : > { %v2481_v9 = vpop.xlane.xlu1 %2480 }
 0x310   : > { %3490 = vpow2.f32 %v3206_v19  ;;  %v2564_v5 = vadd.f32 %v5483_v43, %v2481_v9  ;;  %v3187_v18 = vmul.f32 -1.442695, %v2563_v24 }
 0x311   : > { %v2526_v61 = vpop.xlane.xlu0 %2525 }
 0x312   : > { %v3188_v7 = vmul.f32 -1.442695, %v2564_v5  ;;  %3492 = vpow2.f32 %v3187_v18  ;;  %v2579_v40 = vadd.f32 %v5483_v43, %v2526_v61 }
 0x313   : > { %v2529_v32 = vpop.xlane.xlu1 %2528 }
 0x314   : > { %3494 = vpow2.f32 %v3188_v7  ;;  %v2580_v57 = vadd.f32 %v5483_v43, %v2529_v32  ;;  %v3203_v52 = vmul.f32 -1.442695, %v2579_v40 }
 0x316   : > { %v3204_v46 = vmul.f32 -1.442695, %v2580_v57  ;;  %3496 = vpow2.f32 %v3203_v52 }
 0x318   : > { %v3489_v47 = vpop.eup %3488  ;;  %3498 = vpow2.f32 %v3204_v46 }
 0x319   : > { %v2709_v60 = vadd.f32 1.0, %v3489_v47 }
 0x31a   : > { %v3491_v49 = vpop.eup %3490 }
 0x31b   : > { %v2710_v42 = vadd.f32 1.0, %v3491_v49  ;;  %3500 = vrcp.f32 %v2709_v60 }
 0x31c   : > { %v3493_v17 = vpop.eup %3492 }
 0x31d   : > { %3502 = vrcp.f32 %v2710_v42  ;;  %v2691_v10 = vadd.f32 1.0, %v3493_v17 }
 0x31e   : > { %v3495_v56 = vpop.eup %3494 }
 0x31f   : > { %v2692_v48 = vadd.f32 1.0, %v3495_v56  ;;  %3504 = vrcp.f32 %v2691_v10 }
 0x320   : > { %v3497_v41 = vpop.eup %3496 }
 0x321   : > { %3506 = vrcp.f32 %v2692_v48  ;;  %v2707_v16 = vadd.f32 1.0, %v3497_v41 }
 0x322   : > { %v3499_v30 = vpop.eup %3498 }
 0x323   : > { %v2708_v58 = vadd.f32 1.0, %v3499_v30  ;;  %3508 = vrcp.f32 %v2707_v16 }
 0x325   : > { %v3501_v19 = vpop.eup %3500  ;;  %3510 = vrcp.f32 %v2708_v58 }
 0x326   : > { %2911 = vperm.xlu1 %3412, %v3501_v19  }
 0x327   : > { %v3503_v24 = vpop.eup %3502 }
 0x328   : > { %2916 = vperm.xlu0 %3413, %v3503_v24  }
 0x329   : > { %v3505_v9 = vpop.eup %3504 }
 0x32a   : > { %2821 = vperm.xlu1 %3412, %v3505_v9  }
 0x32b   : > { %v3507_v5 = vpop.eup %3506 }
 0x32c   : > { %2826 = vperm.xlu0 %3413, %v3507_v5  }
 0x32d   : > { %v3509_v18 = vpop.eup %3508  ;;  %v2496_v61 = vpop.xlane.xlu0 %2495 }
 0x32e   : > { %v2569_v7 = vadd.f32 %v5483_v43, %v2496_v61  ;;  %2901 = vperm.xlu1 %3412, %v3509_v18  }
 0x32f   : > { %v3511_v40 = vpop.eup %3510  ;;  %v2499_v32 = vpop.xlane.xlu1 %2498 }
 0x330   : > { %v2570_v57 = vadd.f32 %v5483_v43, %v2499_v32  ;;  %v3193_v52 = vmul.f32 -1.442695, %v2569_v7  ;;  %2906 = vperm.xlu0 %3413, %v3511_v40  }
 0x331   : > { %v2490_v46 = vpop.xlane.xlu0 %2489 }
 0x332   : > { %v3194_v47 = vmul.f32 -1.442695, %v2570_v57  ;;  %3512 = vpow2.f32 %v3193_v52  ;;  %v2567_v60 = vadd.f32 %v5483_v43, %v2490_v46 }
 0x334   : > { %3514 = vpow2.f32 %v3194_v47  ;;  %v3191_v49 = vmul.f32 -1.442695, %v2567_v60 }
 0x336   : > { %3516 = vpow2.f32 %v3191_v49 }
 0x33c   : > { %v3513_v42 = vpop.eup %3512 }
 0x33d   : > { %v2697_v17 = vadd.f32 1.0, %v3513_v42 }
 0x33e   : > { %v3515_v10 = vpop.eup %3514 }
 0x33f   : > { %v2698_v56 = vadd.f32 1.0, %v3515_v10  ;;  %3518 = vrcp.f32 %v2697_v17 }
 0x340   : > { %v3517_v48 = vpop.eup %3516 }
 0x341   : > { %3520 = vrcp.f32 %v2698_v56  ;;  %v2695_v41 = vadd.f32 1.0, %v3517_v48 }
 0x343   : > { %3522 = vrcp.f32 %v2695_v41 }
 0x349   : > { %v3519_v16 = vpop.eup %3518 }
 0x34a   : > { %2851 = vperm.xlu1 %3412, %v3519_v16  }
 0x34b   : > { %v3521_v30 = vpop.eup %3520 }
 0x34c   : > { %2856 = vperm.xlu0 %3413, %v3521_v30  }
 0x34d   : > { %v3523_v58 = vpop.eup %3522 }
 0x34e   : > { %2841 = vperm.xlu1 %3412, %v3523_v58  }
 0x353   : > { %v2538_v19 = vpop.xlane.xlu0 %2537 }
 0x354   : > { %v2547_v24 = vpop.xlane.xlu1 %2546  ;;  %v2583_v9 = vadd.f32 %v5483_v43, %v2538_v19 }
 0x355   : > { %v2586_v61 = vadd.f32 %v5483_v43, %v2547_v24 }
 0x356   : > { %v3207_v5 = vmul.f32 -1.442695, %v2583_v9 }
 0x357   : > { %v2544_v18 = vpop.xlane.xlu0 %2543  ;;  %v3210_v46 = vmul.f32 -1.442695, %v2586_v61 }
 0x358   : > { %v2493_v7 = vpop.xlane.xlu1 %2492  ;;  %3524 = vpow2.f32 %v3207_v5  ;;  %v2585_v40 = vadd.f32 %v5483_v43, %v2544_v18 }
 0x359   : > { %v2568_v32 = vadd.f32 %v5483_v43, %v2493_v7 }
 0x35a   : > { %v3209_v57 = vmul.f32 -1.442695, %v2585_v40 }
 0x35b   : > { %v3192_v52 = vmul.f32 -1.442695, %v2568_v32  ;;  %v5806_v32 = vmax.f32 %v5367_v21, 0.0 }
 0x35c   : > { %v2541_v47 = vpop.xlane.xlu1 %2540  ;;  %3526 = vpow2.f32 %v3209_v57 }
 0x35d   : > { %3528 = vpow2.f32 %v3192_v52  ;;  %v2584_v60 = vadd.f32 %v5483_v43, %v2541_v47  ;;  %v5808_v47 = vmax.f32 %v5332_v50, 0.0  ;;  %v5810_v50 = vmax.f32 %v5348_v26, 0.0 }
 0x35e   : > { %3530 = vpow2.f32 %v3210_v46  ;;  %v5813_v26 = vmax.f32 %v5336_v15, 0.0  ;;  %v5816_v15 = vmax.f32 %v5415_v33, 0.0 }
 0x35f   : > { %v3208_v49 = vmul.f32 -1.442695, %v2584_v60  ;;  %v2782_v42 = vpop.permute.xlu0 %2781 }
 0x360   : > { %v2792_v17 = vpop.permute.xlu1 %2791  ;;  %v2939_v10 = vmul.f32 %v2782_v42, %v2381_v12 }
 0x361   : > { %3532 = vpow2.f32 %v3208_v49  ;;  %v2941_v56 = vmul.f32 %v2792_v17, %v2383_v51  ;;  %v5809_v49 = vmax.f32 %v5351_v23, 0.0  ;;  %v5812_v23 = vmax.f32 %v5400_v44, 0.0 }
 0x362   : > { %v3525_v48 = vpop.eup %3524  ;;  %2971 = vst.msk [vmem:[%s5568_s13] sm:$0xff] %vm2171_vm2, %v2939_v10 }
 0x363   : > { %v2711_v43 = vadd.f32 1.0, %v3525_v48  ;;  %2973 = vst.msk [vmem:[%s5568_s13 + $0x10] sm:$0xff] %vm2171_vm2, %v2941_v56  ;;  %v2877_v41 = vpop.permute.xlu0 %2876 }
 0x364   : > { %v2872_v16 = vpop.permute.xlu1 %2871  ;;  %v2958_v55 = vmul.f32 %v2877_v41, %v2400_v25 }
 0x365   : > { %3534 = vrcp.f32 %v2711_v43  ;;  %v2957_v13 = vmul.f32 %v2872_v16, %v2399_v37  ;;  %v5811_v43 = vmax.f32 %v5359_v63, 0.0  ;;  %v5814_v63 = vmax.f32 %v5354_v20, 0.0 }
 0x366   : > { %v3527_v51 = vpop.eup %3526  ;;  %2990 = vst.msk [vmem:[%s5568_s13 + $0x98] sm:$0xff] %vm2171_vm2, %v2958_v55  ;;  %v5817_v20 = vmax.f32 %v5426_v53, 0.0  ;;  %v5820_v53 = vmax.f32 %v5423_v38, 0.0 }
 0x367   : > { %v3529_v12 = vpop.eup %3528  ;;  %v2713_v30 = vadd.f32 1.0, %v3527_v51  ;;  %2989 = vst.msk [vmem:[%s5568_s13 + $0x90] sm:$0xff] %vm2171_vm2, %v2957_v13  ;;  %v2867_v58 = vpop.permute.xlu0 %2866 }
 0x368   : > { %v2696_v19 = vadd.f32 1.0, %v3529_v12  ;;  %v2862_v24 = vpop.permute.xlu1 %2861  ;;  %v2956_v36 = vmul.f32 %v2867_v58, %v2398_v39  ;;  %v3531_v37 = vpop.eup %3530  ;;  %v5805_v39 = vmax.f32 %v5281_v6, 0.0  ;;  %v5815_v58 = vmax.f32 %v5396_v29, 0.0 }
 0x369   : > { %3536 = vrcp.f32 %v2713_v30  ;;  %v2955_v31 = vmul.f32 %v2862_v24, %v2397_v14  ;;  %v2714_v61 = vadd.f32 1.0, %v3531_v37  ;;  %v5818_v29 = vmax.f32 %v5412_v22, 0.0 }
 0x36a   : > { %3538 = vrcp.f32 %v2696_v19  ;;  %2988 = vst.msk [vmem:[%s5568_s13 + $0x88] sm:$0xff] %vm2171_vm2, %v2956_v36  ;;  %v5821_v22 = vmax.f32 %v5431_v62, 0.0  ;;  %v5824_v62 = vmax.f32 %v5463_v0, 0.0 }
 0x36b   : > { %v3533_v25 = vpop.eup %3532  ;;  %2987 = vst.msk [vmem:[%s5568_s13 + $0x80] sm:$0xff] %vm2171_vm2, %v2955_v31  ;;  %v2897_v9 = vpop.permute.xlu0 %2896 }
 0x36c   : > { %v2712_v5 = vadd.f32 1.0, %v3533_v25  ;;  %v2797_v18 = vpop.permute.xlu1 %2796  ;;  %v2962_v27 = vmul.f32 %v2897_v9, %v2404_v28 }
 0x36d   : > { %v2942_v35 = vmul.f32 %v2797_v18, %v5805_v39  ;;  %v5819_v18 = vmax.f32 %v5418_v1, 0.0 }
 0x36e   : > { %3540 = vrcp.f32 %v2712_v5  ;;  %2994 = vst.msk [vmem:[%s5568_s13 + $0xb8] sm:$0xff] %vm2171_vm2, %v2962_v27 }
 0x36f   : > { %v3535_v14 = vpop.eup %3534  ;;  %2974 = vst.msk [vmem:[%s5568_s13 + $0x18] sm:$0xff] %vm2171_vm2, %v2942_v35  ;;  %v2887_v7 = vpop.permute.xlu0 %2886  ;;  %3542 = vrcp.f32 %v2714_v61 }
 0x370   : > { %2921 = vperm.xlu1 %3412, %v3535_v14   ;;  %v2787_v40 = vpop.permute.xlu1 %2786  ;;  %v2960_v57 = vmul.f32 %v2887_v7, %v5806_v32  ;;  %v5822_v14 = vmax.f32 %v5460_v45, 0.0  ;;  %v5823_v32 = vmax.f32 %v5467_v59, 0.0 }
 0x371   : > { %v2940_v28 = vmul.f32 %v2787_v40, %v5807_v4 }
 0x372   : > { %2992 = vst.msk [vmem:[%s5568_s13 + $0xa8] sm:$0xff] %vm2171_vm2, %v2960_v57 }
 0x373   : > { %v3537_v6 = vpop.eup %3536  ;;  %2972 = vst.msk [vmem:[%s5568_s13 + $0x8] sm:$0xff] %vm2171_vm2, %v2940_v28  ;;  %v5825_v28 = vmax.f32 %v5497_v11, 0.0  ;;  %v5828_v11 = vmax.f32 %v5510_v8, 0.0 }
 0x374   : > { %v3539_v52 = vpop.eup %3538  ;;  %2931 = vperm.xlu1 %3412, %v3537_v6   ;;  %v2812_v46 = vpop.permute.xlu1 %2811 }
 0x375   : > { %2846 = vperm.xlu0 %3413, %v3539_v52   ;;  %v2945_v21 = vmul.f32 %v2812_v46, %v5808_v47  ;;  %v5826_v46 = vmax.f32 %v5491_v3, 0.0 }
 0x377   : > { %2977 = vst.msk [vmem:[%s5568_s13 + $0x30] sm:$0xff] %vm2171_vm2, %v2945_v21  ;;  %v5827_v21 = vmax.f32 %v5494_v54, 0.0  ;;  %v5829_v54 = vmax.f32 %v5501_v2, 0.0 }
 0x378   : > { %v3541_v34 = vpop.eup %3540  ;;  %v2892_v60 = vpop.permute.xlu1 %2891 }
 0x379   : > { %2926 = vperm.xlu0 %3413, %v3541_v34   ;;  %v2961_v42 = vmul.f32 %v2892_v60, %v5809_v49  ;;  %v3543_v17 = vpop.eup %3542 }
 0x37b   : > { %2993 = vst.msk [vmem:[%s5568_s13 + $0xb0] sm:$0xff] %vm2171_vm2, %v2961_v42 }
 0x37c   : > { %v2802_v10 = vpop.permute.xlu1 %2801 }
 0x37d   : > { %2936 = vperm.xlu0 %3413, %v3543_v17   ;;  %v2943_v56 = vmul.f32 %v2802_v10, %v5810_v50 }
 0x37f   : > { %2975 = vst.msk [vmem:[%s5568_s13 + $0x20] sm:$0xff] %vm2171_vm2, %v2943_v56 }
 0x380   : > { %v2882_v48 = vpop.permute.xlu1 %2881 }
 0x381   : > { %v2959_v41 = vmul.f32 %v2882_v48, %v5811_v43 }
 0x382   : > { %v2837_v16 = vpop.permute.xlu0 %2836 }
 0x383   : > { %2991 = vst.msk [vmem:[%s5568_s13 + $0xa0] sm:$0xff] %vm2171_vm2, %v2959_v41  ;;  %v2950_v55 = vmul.f32 %v2837_v16, %v5812_v23 }
 0x384   : > { %v2817_v13 = vpop.permute.xlu1 %2816 }
 0x385   : > { %2982 = vst.msk [vmem:[%s5568_s13 + $0x58] sm:$0xff] %vm2171_vm2, %v2950_v55  ;;  %v2946_v51 = vmul.f32 %v2817_v13, %v5813_v26 }
 0x387   : > { %2978 = vst.msk [vmem:[%s5568_s13 + $0x38] sm:$0xff] %vm2171_vm2, %v2946_v51 }
 0x388   : > { %v2807_v12 = vpop.permute.xlu1 %2806 }
 0x389   : > { %v2944_v30 = vmul.f32 %v2807_v12, %v5814_v63 }
 0x38b   : > { %2976 = vst.msk [vmem:[%s5568_s13 + $0x28] sm:$0xff] %vm2171_vm2, %v2944_v30 }
 0x38c   : > { %v2832_v44 = vpop.permute.xlu1 %2831 }
 0x38d   : > { %v2949_v19 = vmul.f32 %v2832_v44, %v5815_v58 }
 0x38f   : > { %2981 = vst.msk [vmem:[%s5568_s13 + $0x50] sm:$0xff] %vm2171_vm2, %v2949_v19 }
 0x3a5   : > { %v2912_v24 = vpop.permute.xlu1 %2911 }
 0x3a6   : > { %v2965_v36 = vmul.f32 %v2912_v24, %v5816_v15 }
 0x3a7   : > { %v2917_v31 = vpop.permute.xlu0 %2916 }
 0x3a8   : > { %v2966_v37 = vmul.f32 %v2917_v31, %v5817_v20  ;;  %2997 = vst.msk [vmem:[%s5568_s13 + $0xd0] sm:$0xff] %vm2171_vm2, %v2965_v36 }
 0x3a9   : > { %v2822_v25 = vpop.permute.xlu1 %2821 }
 0x3aa   : > { %2998 = vst.msk [vmem:[%s5568_s13 + $0xd8] sm:$0xff] %vm2171_vm2, %v2966_v37  ;;  %v2947_v9 = vmul.f32 %v2822_v25, %v5818_v29 }
 0x3ab   : > { %v2827_v5 = vpop.permute.xlu0 %2826 }
 0x3ac   : > { %v2948_v33 = vmul.f32 %v2827_v5, %v5819_v18  ;;  %2979 = vst.msk [vmem:[%s5568_s13 + $0x40] sm:$0xff] %vm2171_vm2, %v2947_v9 }
 0x3ad   : > { %v2902_v27 = vpop.permute.xlu1 %2901 }
 0x3ae   : > { %2980 = vst.msk [vmem:[%s5568_s13 + $0x48] sm:$0xff] %vm2171_vm2, %v2948_v33  ;;  %v2963_v39 = vmul.f32 %v2902_v27, %v5820_v53 }
 0x3af   : > { %v2907_v35 = vpop.permute.xlu0 %2906 }
 0x3b0   : > { %v2964_v61 = vmul.f32 %v2907_v35, %v5821_v22  ;;  %2995 = vst.msk [vmem:[%s5568_s13 + $0xc0] sm:$0xff] %vm2171_vm2, %v2963_v39 }
 0x3b2   : > { %2996 = vst.msk [vmem:[%s5568_s13 + $0xc8] sm:$0xff] %vm2171_vm2, %v2964_v61 }
 0x3c9   : > { %v2852_v1 = vpop.permute.xlu1 %2851 }
 0x3ca   : > { %v2953_v7 = vmul.f32 %v2852_v1, %v5822_v14 }
 0x3cb   : > { %v2857_v40 = vpop.permute.xlu0 %2856 }
 0x3cc   : > { %v2954_v38 = vmul.f32 %v2857_v40, %v5823_v32  ;;  %2985 = vst.msk [vmem:[%s5568_s13 + $0x70] sm:$0xff] %vm2171_vm2, %v2953_v7 }
 0x3cd   : > { %v2842_v57 = vpop.permute.xlu1 %2841 }
 0x3ce   : > { %2986 = vst.msk [vmem:[%s5568_s13 + $0x78] sm:$0xff] %vm2171_vm2, %v2954_v38  ;;  %v2951_v4 = vmul.f32 %v2842_v57, %v5824_v62 }
 0x3d0   : > { %2983 = vst.msk [vmem:[%s5568_s13 + $0x60] sm:$0xff] %vm2171_vm2, %v2951_v4 }
 0x3ef   : > { %v2922_v45 = vpop.permute.xlu1 %2921 }
 0x3f0   : > { %v2967_v6 = vmul.f32 %v2922_v45, %v5825_v28 }
 0x3f2   : > { %2999 = vst.msk [vmem:[%s5568_s13 + $0xe0] sm:$0xff] %vm2171_vm2, %v2967_v6 }
 0x3f3   : > { %v2932_v59 = vpop.permute.xlu1 %2931 }
 0x3f4   : > { %v2847_v52 = vpop.permute.xlu0 %2846  ;;  %v2969_v47 = vmul.f32 %v2932_v59, %v5826_v46 }
 0x3f5   : > { %v2952_v0 = vmul.f32 %v2847_v52, %v5827_v21 }
 0x3f6   : > { %3001 = vst.msk [vmem:[%s5568_s13 + $0xf0] sm:$0xff] %vm2171_vm2, %v2969_v47 }
 0x3f7   : > { %2984 = vst.msk [vmem:[%s5568_s13 + $0x68] sm:$0xff] %vm2171_vm2, %v2952_v0 }
 0x3f8   : > { %v2927_v34 = vpop.permute.xlu0 %2926 }
 0x3f9   : > { %v2968_v60 = vmul.f32 %v2927_v34, %v5828_v11 }
 0x3fb   : > { %3000 = vst.msk [vmem:[%s5568_s13 + $0xe8] sm:$0xff] %vm2171_vm2, %v2968_v60 }
 0x3fc   : > { %v2937_v49 = vpop.permute.xlu0 %2936 }
 0x3fd   : > { %v2970_v3 = vmul.f32 %v2937_v49, %v5829_v54 }
 0x3ff   : > { %3002 = vst.msk [vmem:[%s5568_s13 + $0xf8] sm:$0xff] %vm2171_vm2, %v2970_v3 }
 0x400   : > { %3703 = shalt.err (!%p3700_p3)
}
 0x401   : > { %s3704_s27 = scalar_lea.hbm %s5695_s12, 4096  ;;  %s3708_s2 = scalar_lea.hbm %s5751_s6, 8192 }
 0x402   : > { %p3705_p9 = scmp.ne.s32.totalorder %s5695_s12, %s3704_s27  ;;  %p3709_p7 = scmp.lt.u32.totalorder %s5695_s12, %s5751_s6 }
 0x403   : > { %p3710_p12 = scmp.lt.u32.totalorder %s3708_s2, %s3704_s27  ;;  %p3712_p2 = scmp.lt.u32.totalorder %s3704_s27, %s5695_s12 }
 0x404   : > { %p3706_p13 = pnand %p3705_p9, %p3970_p5 }
 0x405   : > { %p3711_p1 = por %p3710_p12, %p3709_p7 }
 0x406   : > { %p3707_p11 = pneg %p3706_p13 }
 0x407   : > { %p3713_p4 = por %p3712_p2, %p3711_p1 }
 0x409   : > { %p3714_p0 = pnand %p3713_p4, %p3707_p11 }
 0x40b   : > { %3717 = shalt.err (!%p3714_p0)
}
 0x40c   : > { %s3781_s11 = smov 128   ;;  %s3782_s28 = smov 8  }
 0x40d   : > { %3339 = dma.vmem_to_hbm [thread:$0]  (%p3970_p5), %s5697_s9, 4096, %s5695_s12, %s3004_s5, %s3781_s11, %s3781_s11, %s3782_s28  }
 0x40e PF: > { %s3032_s13 = sand.u32 1, %s3756_s23   ;;  %p5830_p8 = scmp.ne.s32.totalorder %s5786_s29, 0 }
 0x40f   : > { %p5831_p6 = scmp.ge.s32.totalorder %s3768_s26, 2  ;;  %s3033_s10 = scalar_lea.sflag [#allocation5], %s3032_s13 }
 0x411   : > { %p3359_p10 = pnand %p5831_p6, %p5830_p8 }
 0x413   : > { %3751 = dma.done.wait (!%p3359_p10), %s3033_s10, 4096  }
 0x414   : > { %3753 = vsyncadd (!%p3359_p10), %s3033_s10, 4294963200  ;;  %p25_p3 = scmp.ge.s32.totalorder %s3956_s19, 4   ;;  %s5832_s23 = smov %s3760_s24 }
 0x415   : > { %s5833_s24 = smov %s3764_s25  ;;  %s5834_s25 = smov %s3966_s14 }
 0x416   : > { %s5835_s26 = smov %s3956_s19  ;;  %27 = sbr.rel (!%p25_p3) target bundleno = 12 (0xc), region = 114 }
 0x41d   :  { %3038 = vsyncpa [#allocation4], 1 }
 0x41e   :  { %3040 = vsyncpa [#allocation4 + $0x1], 1 }
 0x41f   :  { %3041 = vsyncpa [#allocation7], 1 }
 0x420   :  { %3043 = vsyncpa [#allocation7 + $0x1], 1 }
 0x421   :  { %3044 = vsyncpa [#allocation10], 1 }
 0x422   :  { %3045 = vsyncpa [#allocation5], 1 }
 0x423   :  { %3047 = vsyncpa [#allocation5 + $0x1], 1 }

// kernel: unet_up_origin_forward.7
= control target key start
LH: loop header
LB: loop body
LE: loop exit
PB: predicated region body
PF: predicated region fallthrough
CT: control target
= control target key end

     0   :  { %s8755_s0 = inlined_call_operand.hbm [shape: bf16[2,18,18,32], index: 0, kind: input, shape index: {}]   ;;  %s8756_s1 = inlined_call_operand.hbm [shape: bf16[2,18,18,32], index: 1, kind: input, shape index: {}]   ;;  %s8757_s2 = inlined_call_operand.hbm [shape: f32[2,9,64], index: 2, kind: input, shape index: {}]   ;;  %s8758_s3 = inlined_call_operand.hbm [shape: bf16[32,32], index: 3, kind: input, shape index: {}]   ;;  %s8759_s4 = inlined_call_operand.hbm [shape: bf16[32,32], index: 4, kind: input, shape index: {}]   ;;  %s8760_s5 = inlined_call_operand.hbm [shape: f32[1,32], index: 5, kind: input, shape index: {}]   ;;  %s8761_s6 = inlined_call_operand.hbm [shape: bf16[2,16,16,32], index: 6, kind: output, shape index: {0}]   ;;  %s8762_s7 = inlined_call_operand.hbm [shape: f32[2,1,32], index: 7, kind: output, shape index: {1}]  }
   0x1   :  { %8813 = sst [smem:[#allocation51_spill]] %s8756_s1 }
   0x2   :  { %8814 = sst [smem:[#allocation52_spill]] %s8758_s3 }
   0x3   :  { %8815 = sst [smem:[#allocation53_spill]] %s8761_s6 }
   0x4   :  { %8816 = sst [smem:[#allocation54_spill]] %s8762_s7 }
   0x5   :  { %13 = vsyncpa [#allocation3], 0 }
   0x6   :  { %15 = vsyncpa [#allocation3 + $0x1], 0 }
   0x7   :  { %16 = vsyncpa [#allocation6], 0 }
   0x8   :  { %18 = vsyncpa [#allocation6 + $0x1], 0 }
   0x9   :  { %19 = vsyncpa [#allocation9], 0 }
   0xa   :  { %20 = vsyncpa [#allocation12], 0 }
   0xb   :  { %21 = vsyncpa [#allocation4], 0 }
   0xc   :  { %23 = vsyncpa [#allocation4 + $0x1], 0 }
   0xd   :  { %24 = vsyncpa [#allocation15], 0 }
   0xe   :  { %26 = vsyncpa [#allocation15 + $0x1], 0  ;;  %s5780_s24 = smov 0   ;;  %s5782_s25 = smov 0  }
   0xf   :  { %s5784_s26 = smov 0   ;;  %s5786_s27 = smov 0  }
  0x10 LB: > { %8817 = sst [smem:[#allocation22_spill]] %s5711_s24  ;;  %s5801_s28 = sadd.s32 4294967295, %s5723_s27   ;;  %s5723_s27 = sphi %s5786_s27, %s8937_s27   ;;  %s5719_s26 = sphi %s5784_s26, %s8939_s26   ;;  %s5715_s25 = sphi %s5782_s25, %s8941_s25   ;;  %s5711_s24 = sphi %s5780_s24, %s8940_s24  }
  0x11   : > { %8818 = sst [smem:[#allocation23_spill]] %s5719_s26  ;;  %s4973_s29 = sadd.s32 4294967294, %s5723_s27  }
  0x12   : > { %s5805_s30 = sadd.s32 1, %s5723_s27   ;;  %s39_s8 = sadd.s32 1, %s5719_s26 }
  0x13   : > { %8819 = sst [smem:[#allocation24_spill]] %s5805_s30  ;;  %s36_s9 = ssub.s32 %s5723_s27, %s5805_s30 }
  0x14   : > { %p46_p0 = scmp.ne.s32.totalorder %s5719_s26, %s5715_s25  ;;  %p37_p1 = scmp.eq.s32.totalorder %s36_s9, 0 }
  0x15   : > { %p47_p2 = scmp.eq.s32.totalorder %s5723_s27, 0  ;;  %p52_p3 = scmp.ne.s32.totalorder %s5715_s25, %s5711_s24 }
  0x16   : > { %p8763_p4 = scmp.eq.s32.totalorder %s5801_s28, 0  ;;  %p191_p7 = scmp.eq.s32.totalorder %s5801_s28, 1 }
  0x17   : > { %s5817_s10 = scalar_select %p37_p1, %s5719_s26, %s39_s8  }
  0x18   : > { %p5819_p5 = por %p47_p2, %p46_p0  ;;  %p5825_p6 = por %p8763_p4, %p52_p3 }
  0x19   : > { %8820 = sst [smem:[#allocation25_spill]] %s5817_s10  ;;  %p197_p8 = scmp.eq.s32.totalorder %s4973_s29, 1 }
  0x1a   : > { %s8821_s11 = scalar_select %p5819_p5, 1, 0 }
  0x1b   : > { %s8822_s12 = scalar_select %p5825_p6, 1, 0 }
  0x1c   : > { %p4974_p9 = scmp.ge.s32.totalorder %s5723_s27, 1  ;;  %p230_p10 = scmp.lt.s32.totalorder %s5723_s27, 3 }
  0x1d   : > { %p5832_p11 = por %p191_p7, %p46_p0  ;;  %p5836_p12 = por %p197_p8, %p52_p3 }
  0x1e   : > { %p5840_p13 = pnand %p4974_p9, %p230_p10  ;;  %s5725_s16 = smov [#allocation8]  }
  0x1f   : > { %s8823_s13 = scalar_select %p5832_p11, 1, 0 }
  0x20   : > { %s8824_s14 = scalar_select %p5836_p12, 1, 0 }
  0x21   : > { %s8826_s15 = scalar_select %p5840_p13, 1, 0 }
  0x22   : > { %8825 = sst [smem:[#allocation26_spill]] %s8824_s14  ;;  %p5355_p1 = pneg %p5840_p13 }
  0x23   : > { %s242_s17 = sshll.u32 %s5725_s16, 4  ;;  %s5855_s19 = sand.u32 1, %s5719_s26   ;;  %s243_s17 = int_to_ptr.vmem [resolvable:$true] %s242_s17 }
  0x24   : > { %p5848_p2 = pnand %p5355_p1, %p8763_p4  ;;  %s8828_s3 = sld [smem:[#allocation52_spill]] }
  0x26   : > { %s8827_s18 = scalar_select %p5848_p2, 1, 0 }
  0x27   : > { %p5866_p8 = pneg %p5848_p2 }
  0x29   : > { %s8829_s9 = scalar_select %p5866_p8, 1, 0 }
  0x2a   : > { %s5439_s23 = scalar_lea.hbm %s8828_s3, 256 }
  0x2b   : > { %p5440_p7 = scmp.ne.s32.totalorder %s8828_s3, %s5439_s23  ;;  %p5446_p1 = scmp.lt.u32.totalorder %s5439_s23, %s8828_s3 }
  0x2d   : > { %p5442_p9 = pnand %p5866_p8, %p5440_p7 }
  0x2f   : > { %p5443_p10 = pneg %p5442_p9 }
  0x31   : > { %p5448_p0 = pnand %p5446_p1, %p5443_p10 }
  0x33   : > { %5451 = shalt.err (!%p5448_p0)
}
  0x34   : > { %s5452_s21 = scalar_lea.vmem %s243_s17, 256  ;;  %p5460_p11 = scmp.lt.s32.totalorder %s243_s17, %s243_s17 }
  0x35   : > { %p5453_p4 = scmp.ne.s32.totalorder %s243_s17, %s5452_s21  ;;  %p5461_p6 = scmp.lt.s32.totalorder %s5452_s21, %s5452_s21 }
  0x37   : > { %p5455_p3 = pnand %p5453_p4, %p5866_p8  ;;  %p5462_p13 = por %p5461_p6, %p5460_p11 }
  0x39   : > { %p5456_p12 = pneg %p5455_p3 }
  0x3b   : > { %p5463_p5 = pnand %p5462_p13, %p5456_p12 }
  0x3d   : > { %5466 = shalt.err (!%p5463_p5)
}
  0x3e   : > { %s8771_s22 = smov 64   ;;  %s5727_s10 = smov 4  }
  0x3f   : > { %5358 = dma.hbm_to_vmem [thread:$0]  (!%p5848_p2), %s8828_s3, 256, %s243_s17, [#allocation9], %s8771_s22, %s8771_s22, %s5727_s10  }
  0x40   : > { %s8773_s8 = smul.u32 3456, %s5723_s27  ;;  %p8830_p4 = scmp.ne.s32.totalorder %s8821_s11, 0 }
  0x41   : > { %p8831_p5 = scmp.lt.s32.totalorder %s5723_s27, 2  ;;  %s301_s21 = sand.u32 1, %s5723_s27  }
  0x42   : > { %s8833_s1 = sld [smem:[#allocation51_spill]]  ;;  %s8834_s14 = smul.u32 216, %s5855_s19 }
  0x43   : > { %p5890_p6 = pnand %p8831_p5, %p8830_p4  ;;  %s5906_s23 = scalar_lea.sflag [#allocation6], %s301_s21 }
  0x44   : > { %s305_s17 = scalar_lea.vmem [#allocation5], %s8834_s14 }
  0x45   : > { %s8832_s16 = scalar_select %p5890_p6, 1, 0 }
  0x46   : > { %s312_s11 = sshll.u32 %s305_s17, 4  ;;  %p5912_p12 = pneg %p5890_p6  ;;  %s5904_s11 = int_to_ptr.vmem [resolvable:$true] %s312_s11 }
  0x48   : > { %s5900_s30 = scalar_lea.hbm %s8833_s1, %s8773_s8  ;;  %s5472_s14 = scalar_lea.hbm %s8833_s1, 6912 }
  0x49   : > { %s5467_s29 = scalar_lea.hbm %s5900_s30, 3456  ;;  %p5473_p3 = scmp.lt.u32.totalorder %s5900_s30, %s8833_s1 }
  0x4a   : > { %p5468_p11 = scmp.ne.s32.totalorder %s5900_s30, %s5467_s29  ;;  %p5474_p7 = scmp.lt.u32.totalorder %s5472_s14, %s5467_s29 }
  0x4b   : > { %s8835_s22 = scalar_select %p5912_p12, 1, 0 }
  0x4c   : > { %p5470_p13 = pnand %p5912_p12, %p5468_p11  ;;  %p5475_p9 = por %p5474_p7, %p5473_p3 }
  0x4d   : > { %p5476_p10 = scmp.lt.u32.totalorder %s5467_s29, %s5900_s30 }
  0x4e   : > { %p5471_p0 = pneg %p5470_p13 }
  0x4f   : > { %p5477_p1 = por %p5476_p10, %p5475_p9 }
  0x51   : > { %p5478_p4 = pnand %p5477_p1, %p5471_p0 }
  0x53   : > { %5481 = shalt.err (!%p5478_p4)
}
  0x54   : > { %s5482_s21 = scalar_lea.vmem %s5904_s11, 3456  ;;  %s5728_s26 = smov [#allocation5]  }
  0x55   : > { %p5483_p5 = scmp.ne.s32.totalorder %s5904_s11, %s5482_s21  ;;  %s5487_s20 = sshll.u32 %s5728_s26, 4  ;;  %s5488_s20 = int_to_ptr.vmem [resolvable:$false] %s5487_s20 }
  0x56   : > { %s5489_s8 = scalar_lea.vmem %s5488_s20, 6912  ;;  %p5490_p2 = scmp.lt.s32.totalorder %s5904_s11, %s5488_s20 }
  0x57   : > { %p5485_p11 = pnand %p5483_p5, %p5912_p12  ;;  %p5491_p8 = scmp.lt.s32.totalorder %s5489_s8, %s5482_s21 }
  0x59   : > { %p5486_p13 = pneg %p5485_p11  ;;  %p5492_p3 = por %p5491_p8, %p5490_p2 }
  0x5b   : > { %p5493_p7 = pnand %p5492_p3, %p5486_p13 }
  0x5d   : > { %5496 = shalt.err (!%p5493_p7)
}
  0x5e   : > { %s8836_s29 = smov 64   ;;  %s5729_s14 = smov [#allocation10]  }
  0x5f   : > { %5371 = dma.hbm_to_vmem [thread:$0]  (!%p5890_p6), %s5900_s30, 3456, %s5904_s11, %s5906_s23, %s8836_s29, %s8836_s29, %s5727_s10  }
  0x60   : > { %s255_s17 = sshll.u32 %s5729_s14, 4  ;;  %s5730_s26 = smov [#allocation11]   ;;  %s256_s17 = int_to_ptr.vmem [resolvable:$true] %s255_s17 }
  0x61   : > { %s269_s1 = sshll.u32 %s5730_s26, 4  ;;  %s5497_s8 = scalar_lea.hbm %s8759_s4, 256  ;;  %s270_s1 = int_to_ptr.vmem [resolvable:$true] %s269_s1 }
  0x62   : > { %p5498_p2 = scmp.ne.s32.totalorder %s8759_s4, %s5497_s8  ;;  %p8837_p8 = scmp.ne.s32.totalorder %s8829_s9, 0 }
  0x63   : > { %p5504_p10 = scmp.lt.u32.totalorder %s5497_s8, %s8759_s4 }
  0x64   : > { %p5500_p0 = pnand %p5498_p2, %p8837_p8 }
  0x66   : > { %p5501_p9 = pneg %p5500_p0 }
  0x68   : > { %p5506_p1 = pnand %p5504_p10, %p5501_p9 }
  0x6a   : > { %5509 = shalt.err (!%p5506_p1)
}
  0x6b   : > { %s5510_s30 = scalar_lea.vmem %s256_s17, 256  ;;  %p5518_p13 = scmp.lt.s32.totalorder %s256_s17, %s256_s17 }
  0x6c   : > { %p5511_p4 = scmp.ne.s32.totalorder %s256_s17, %s5510_s30  ;;  %p5519_p3 = scmp.lt.s32.totalorder %s5510_s30, %s5510_s30 }
  0x6e   : > { %p5513_p5 = pnand %p5511_p4, %p8837_p8  ;;  %p5520_p7 = por %p5519_p3, %p5518_p13 }
  0x70   : > { %p5514_p11 = pneg %p5513_p5 }
  0x72   : > { %p5521_p6 = pnand %p5520_p7, %p5514_p11 }
  0x74   : > { %5524 = shalt.err (!%p5521_p6)
}
  0x75   : > { %p8838_p2 = scmp.ne.s32.totalorder %s8827_s18, 0  ;;  %s5525_s11 = scalar_lea.hbm %s8760_s5, 16 }
  0x76   : > { %p5526_p0 = scmp.ne.s32.totalorder %s8760_s5, %s5525_s11  ;;  %p5532_p10 = scmp.lt.u32.totalorder %s5525_s11, %s8760_s5 }
  0x77   : > { %5361 = dma.hbm_to_vmem [thread:$0]  (!%p8838_p2), %s8759_s4, 256, %s256_s17, [#allocation9], %s8836_s29, %s8836_s29, %s5727_s10  }
  0x78   : > { %p5528_p6 = pnand %p5526_p0, %p8837_p8 }
  0x7a   : > { %p5529_p9 = pneg %p5528_p6 }
  0x7c   : > { %p5534_p1 = pnand %p5532_p10, %p5529_p9 }
  0x7e   : > { %5537 = shalt.err (!%p5534_p1)
}
  0x7f   : > { %s5538_s8 = scalar_lea.vmem %s270_s1, 16  ;;  %s5545_s17 = scalar_lea.vmem %s270_s1, 32 }
  0x80   : > { %p5539_p4 = scmp.ne.s32.totalorder %s270_s1, %s5538_s8  ;;  %p5546_p13 = scmp.lt.s32.totalorder %s270_s1, %s270_s1 }
  0x81   : > { %p5547_p3 = scmp.lt.s32.totalorder %s5545_s17, %s5538_s8 }
  0x82   : > { %p5541_p5 = pnand %p5539_p4, %p8837_p8 }
  0x83   : > { %p5548_p7 = por %p5547_p3, %p5546_p13 }
  0x84   : > { %p5542_p11 = pneg %p5541_p5 }
  0x86   : > { %p5549_p12 = pnand %p5548_p7, %p5542_p11 }
  0x88   : > { %5552 = shalt.err (!%p5549_p12)
}
  0x89   : > { %5364 = dma.hbm_to_vmem [thread:$0]  (!%p8838_p2), %s8760_s5, 16, %s270_s1, [#allocation12]  }
  0x8a   : > { %s8839_s9 = smul.u32 3456, %s5723_s27  ;;  %s4981_s26 = sshll.u32 %s5855_s19, 4 }
  0x8b   : > { %s8840_s11 = smul.u32 216, %s5855_s19  ;;  %s281_s20 = scalar_lea.sflag [#allocation3], %s5855_s19 }
  0x8c   : > { %s5983_s24 = scalar_lea.hbm %s8755_s0, %s8839_s9  ;;  %p8841_p8 = scmp.ne.s32.totalorder %s8835_s22, 0 }
  0x8d   : > { %s284_s18 = scalar_lea.vmem [#allocation2], %s8840_s11  ;;  %s5553_s21 = scalar_lea.hbm %s5983_s24, 3456 }
  0x8e   : > { %s291_s14 = sshll.u32 %s284_s18, 4  ;;  %p5554_p12 = scmp.ne.s32.totalorder %s5983_s24, %s5553_s21  ;;  %s5988_s14 = int_to_ptr.vmem [resolvable:$true] %s291_s14 }
  0x8f   : > { %s5558_s17 = scalar_lea.hbm %s8755_s0, 6912  ;;  %p5559_p6 = scmp.lt.u32.totalorder %s5983_s24, %s8755_s0 }
  0x90   : > { %p5556_p2 = pnand %p5554_p12, %p8841_p8  ;;  %p5560_p9 = scmp.lt.u32.totalorder %s5558_s17, %s5553_s21 }
  0x91   : > { %p5562_p1 = scmp.lt.u32.totalorder %s5553_s21, %s5983_s24 }
  0x92   : > { %p5557_p0 = pneg %p5556_p2  ;;  %p5561_p10 = por %p5560_p9, %p5559_p6 }
  0x94   : > { %p5563_p4 = por %p5562_p1, %p5561_p10 }
  0x96   : > { %p5564_p5 = pnand %p5563_p4, %p5557_p0 }
  0x98   : > { %5567 = shalt.err (!%p5564_p5)
}
  0x99   : > { %s5568_s9 = scalar_lea.vmem %s5988_s14, 3456  ;;  %s5731_s6 = smov [#allocation2]  }
  0x9a   : > { %p5569_p11 = scmp.ne.s32.totalorder %s5988_s14, %s5568_s9  ;;  %s5573_s7 = sshll.u32 %s5731_s6, 4  ;;  %s5574_s7 = int_to_ptr.vmem [resolvable:$false] %s5573_s7 }
  0x9b   : > { %s5575_s11 = scalar_lea.vmem %s5574_s7, 6912  ;;  %p5576_p7 = scmp.lt.s32.totalorder %s5988_s14, %s5574_s7 }
  0x9c   : > { %p5571_p13 = pnand %p5569_p11, %p8841_p8  ;;  %p5577_p12 = scmp.lt.s32.totalorder %s5575_s11, %s5568_s9 }
  0x9e   : > { %p5572_p3 = pneg %p5571_p13  ;;  %p5578_p2 = por %p5577_p12, %p5576_p7 }
  0xa0   : > { %p5579_p6 = pnand %p5578_p2, %p5572_p3 }
  0xa2   : > { %5582 = shalt.err (!%p5579_p6)
}
  0xa3   : > { %p8842_p0 = scmp.ne.s32.totalorder %s8832_s16, 0  ;;  %s5066_s18 = sshll.u32 %s5723_s27, 8 }
  0xa4   : > { %s326_s21 = scalar_lea.vmem [#allocation7], %s4981_s26  ;;  %s6023_s30 = scalar_lea.hbm %s8757_s2, %s5066_s18 }
  0xa5   : > { %5368 = dma.hbm_to_vmem [thread:$0]  (!%p8842_p0), %s5983_s24, 3456, %s5988_s14, %s281_s20, %s8836_s29, %s8836_s29, %s5727_s10  }
  0xa6   : > { %s333_s1 = sshll.u32 %s326_s21, 4  ;;  %s5583_s3 = scalar_lea.hbm %s6023_s30, 256  ;;  %s6025_s1 = int_to_ptr.vmem [resolvable:$true] %s333_s1 }
  0xa7   : > { %p5584_p9 = scmp.ne.s32.totalorder %s6023_s30, %s5583_s3  ;;  %s5588_s29 = scalar_lea.hbm %s8757_s2, 512 }
  0xa8   : > { %p5589_p4 = scmp.lt.u32.totalorder %s6023_s30, %s8757_s2  ;;  %p5590_p5 = scmp.lt.u32.totalorder %s5588_s29, %s5583_s3 }
  0xa9   : > { %p5586_p10 = pnand %p5584_p9, %p8841_p8  ;;  %p5592_p13 = scmp.lt.u32.totalorder %s5583_s3, %s6023_s30 }
  0xaa   : > { %p5591_p11 = por %p5590_p5, %p5589_p4 }
  0xab   : > { %p5587_p1 = pneg %p5586_p10 }
  0xac   : > { %p5593_p3 = por %p5592_p13, %p5591_p11 }
  0xae   : > { %p5594_p7 = pnand %p5593_p3, %p5587_p1 }
  0xb0   : > { %5597 = shalt.err (!%p5594_p7)
}
  0xb1   : > { %s5598_s26 = scalar_lea.vmem %s6025_s1, 256  ;;  %s5732_s20 = smov [#allocation7]  }
  0xb2   : > { %p5599_p12 = scmp.ne.s32.totalorder %s6025_s1, %s5598_s26  ;;  %s5603_s9 = sshll.u32 %s5732_s20, 4  ;;  %s5604_s9 = int_to_ptr.vmem [resolvable:$false] %s5603_s9 }
  0xb3   : > { %s5605_s6 = scalar_lea.vmem %s5604_s9, 512  ;;  %p5606_p9 = scmp.lt.s32.totalorder %s6025_s1, %s5604_s9 }
  0xb4   : > { %p5601_p2 = pnand %p5599_p12, %p8841_p8  ;;  %p5607_p10 = scmp.lt.s32.totalorder %s5605_s6, %s5598_s26 }
  0xb6   : > { %p5602_p6 = pneg %p5601_p2  ;;  %p5608_p4 = por %p5607_p10, %p5606_p9 }
  0xb8   : > { %p5609_p5 = pnand %p5608_p4, %p5602_p6 }
  0xba   : > { %5612 = shalt.err (!%p5609_p5)
}
  0xbb   : > { %s5733_s7 = smov 128   ;;  %s5734_s11 = smov 8  }
  0xbc   : > { %5374 = dma.hbm_to_vmem [thread:$0]  (!%p8842_p0), %s6023_s30, 256, %s6025_s1, %s5906_s23, %s5733_s7, %s5733_s7, %s5734_s11  }
  0xbd   : > { %p8843_p8 = scmp.ne.s32.totalorder %s8826_s15, 0 }
  0xbf   : > { %345 = sbr.rel (%p8843_p8) target bundleno = 1088 (0x440), region = 44 }
  0xc6   : > { %s6052_s22 = sand.u32 1, %s5715_s25   ;;  %p8844_p1 = scmp.ne.s32.totalorder %s8822_s12, 0 }
  0xc7   : > { %s5332_s18 = smul.u32 216, %s6052_s22  ;;  %s348_s21 = scalar_lea.sflag [#allocation3], %s6052_s22 }
  0xc9   : > { %s6056_s8 = scalar_lea.vmem [#allocation2], %s5332_s18 }
  0xca   : > { %5686 = dma.done.wait (%p8844_p1), %s348_s21, 3456  }
  0xcb   : > { %5688 = vsyncadd (%p8844_p1), %s348_s21, 4294963840  ;;  %s356_s16 = sand.u32 1, %s5801_s28   ;;  %s6063_s23 = scalar_lea.vmem [#allocation5], %s5332_s18 }
  0xcc   : > { %s357_s15 = scalar_lea.sflag [#allocation6], %s356_s16 }
  0xcd   : > { %5690 = dma.done.wait (%p8844_p1), %s357_s15, 3712  }
  0xce   : > { %5692 = vsyncadd (%p8844_p1), %s357_s15, 4294963584  ;;  %s4985_s1 = sshll.u32 %s6052_s22, 4  ;;  %p8845_p0 = scmp.eq.s32.totalorder %s5801_s28, 0 }
  0xcf   : > { %s6070_s17 = scalar_lea.vmem [#allocation7], %s4985_s1 }
  0xd0   : > { %5694 = dma.done.wait (%p8845_p0), [#allocation9], 512   ;;  %p8846_p11 = pmov %p8845_p0 }
  0xd1   : > { %p8847_p13 = pmov %p8845_p0 }
  0xd2   : > { %5696 = vsyncadd (%p8846_p11), [#allocation9], 4294966784 }
  0xd3   : > { %5698 = dma.done.wait (%p8847_p13), [#allocation12], 16   ;;  %p8848_p3 = pmov %p8845_p0 }
  0xd4   : > { %v537_v0 = vlaneseq  ;;  %v427_v8 = vld [vmem:[%s6070_s17] sm:$0xff]  ;;  %vm705_vm0 = vcmask 1046528   ;;  %s5735_s12 = smov 96   ;;  %vm950_vm1 = vcmask 1045504   ;;  %v431_v23 = vld [vmem:[%s6056_s8 + $0x8] sm:$0x1] }
  0xd5   : > { %5700 = vsyncadd (%p8848_p3), [#allocation12], 4294967280  ;;  %v5432_v13 = vld [vmem:[#allocation8] sm:$0xff]   ;;  %v434_v25 = vld [vmem:[%s6056_s8 + $0x14] sm:$0x1]  ;;  %v519_v30 = vunpack.c.l.bf16 %v431_v23  ;;  %vm4035_vm2 = vcmask 261120  }
  0xd6   : > { %v538_v1 = vshrl.u32 %v537_v0, 7  ;;  %v5101_v18 = vld [vmem:[%s6056_s8] sm:$0xff]   ;;  %5260 = vmatprep.subr.bf16.mxu0 %v5432_v13  ;;  %v432_v24 = vld [vmem:[%s6056_s8 + $0xc] sm:$0xff]   ;;  %v6109_v31 = vunpack.c.l.bf16 %v434_v25  ;;  %v5172_v33 = vld [vmem:[%s6056_s8 + $0x18] sm:$0xff]   ;;  %s4989_s30 = sshll.u32 %s6052_s22, 7  ;;  %vm4736_vm3 = vcmask 257024  }
  0xd7   : > { %v5102_v21 = vunpack.c.l.bf16 %v5101_v18  ;;  %v5103_v22 = vunpack.c.h.bf16 %v5101_v18  ;;  %5261 = vmatpush3.bf16.msra.mxu0 %v5432_v13  ;;  %v5433_v26 = vld [vmem:[#allocation10] sm:$0xff]   ;;  %v5434_v27 = vld [vmem:[#allocation8 + $0x8] sm:$0xff]   ;;  %v6105_v28 = vunpack.c.l.bf16 %v432_v24  ;;  %v6107_v29 = vunpack.c.h.bf16 %v432_v24  ;;  %v5435_v32 = vld [vmem:[#allocation10 + $0x8] sm:$0xff]   ;;  %s8520_s3 = scalar_lea.vmem [#allocation13], %s4989_s30  ;;  %s5099_s10 = sshll.u32 %s5801_s28, 11 }
  0xd8   : > { %v607_v2 = vsub.s32 1, %v538_v1  ;;  %v539_v3 = vsub.s32 0, %v538_v1  ;;  %v852_v4 = vsub.s32 2, %v538_v1  ;;  %v1165_v5 = vsub.s32 4, %v538_v1  ;;  %v437_v34 = vld [vmem:[%s6056_s8 + $0x20] sm:$0x1]  ;;  %5224 = vmatprep.subr.bf16.mxu1 %v5433_v26  ;;  %5262 = vmatprep.subr.bf16.mxu0 %v5434_v27 }
  0xd9   : > { %v1097_v6 = vsub.s32 3, %v538_v1  ;;  %v1409_v7 = vsub.s32 5, %v538_v1  ;;  %v1721_v9 = vsub.s32 7, %v538_v1  ;;  %v1653_v10 = vsub.s32 6, %v538_v1  ;;  %5225 = vmatpush3.bf16.msra.mxu1 %v5433_v26  ;;  %v6163_v13 = vld [vmem:[%s6070_s17 + $0x8] ss:$0 sm:$0xff] }
  0xda   : > { %v6081_v11 = vrot.slane %v427_v8, %v607_v2  ;;  %v6083_v12 = vrot.slane %v427_v8, %v539_v3  ;;  %v6085_v14 = vrot.slane %v427_v8, %v852_v4  ;;  %v6091_v15 = vrot.slane %v427_v8, %v1165_v5  ;;  %5226 = vmatprep.subr.bf16.mxu1 %v5435_v32  ;;  %s4787_s19 = sshll.u32 %s8520_s3, 4  ;;  %s8929_s14 = sld [smem:[#allocation53_spill]]  ;;  %s8671_s19 = int_to_ptr.vmem [resolvable:$true] %s4787_s19 }
  0xdb   : > { %v6093_v16 = vrot.slane %v427_v8, %v1097_v6  ;;  %v6095_v17 = vrot.slane %v427_v8, %v1409_v7  ;;  %v6098_v19 = vrot.slane %v427_v8, %v1721_v9  ;;  %v6100_v20 = vrot.slane %v427_v8, %v1653_v10  ;;  %5263 = vmatpush3.bf16.msra.mxu0 %v5434_v27  ;;  %s4770_s20 = scalar_lea.sflag [#allocation4], %s6052_s22  ;;  %s5613_s9 = scalar_lea.vmem %s8671_s19, 2048 }
  0xdc   : > { %8849 = vst [vmem:[#allocation27_spill] sm:$0xff] %v6081_v11  ;;  %8850 = vst [vmem:[#allocation28_spill] sm:$0xff] %v6083_v12  ;;  %2404 = vrot.lane.b32.xlu0 %v6081_v11, %s5735_s12  ;;  %2336 = vrot.lane.b32.xlu1 %v6083_v12, %s5735_s12  ;;  %v541_v35 = vmul.f32 %v5102_v21, %v6083_v12  ;;  %v542_v36 = vmul.f32 %v5103_v22, %v6083_v12  ;;  %v6121_v39 = vunpack.c.l.bf16 %v5172_v33  ;;  %p5614_p7 = scmp.ne.s32.totalorder %s8671_s19, %s5613_s9  ;;  %p8930_p12 = scmp.ne.s32.totalorder %s8823_s13, 0 }
  0xdd   : > { %8851 = vst [vmem:[#allocation29_spill] sm:$0xff] %v6085_v14  ;;  %8852 = vst [vmem:[#allocation30_spill] sm:$0xff] %v6091_v15  ;;  %v609_v37 = vmul.f32 %v5102_v21, %v6081_v11  ;;  %v610_v38 = vmul.f32 %v5103_v22, %v6081_v11  ;;  %v6123_v40 = vunpack.c.h.bf16 %v5172_v33  ;;  %v6125_v41 = vunpack.c.l.bf16 %v437_v34  ;;  %5227 = vmatpush3.bf16.msra.mxu1 %v5435_v32  ;;  %s5736_s6 = smov [#allocation13]  }
  0xde   : > { %8853 = vst [vmem:[#allocation31_spill] sm:$0xff] %v6093_v16  ;;  %8854 = vst [vmem:[#allocation32_spill] sm:$0xff] %v6095_v17  ;;  %v611_v42 = vmul.f32 %v6081_v11, %v519_v30  ;;  %v854_v45 = vmul.f32 %v5102_v21, %v6085_v14  ;;  %v855_v46 = vmul.f32 %v5103_v22, %v6085_v14  ;;  %p5615_p2 = pnand %p5614_p7, %p8930_p12  ;;  %s5617_s7 = sshll.u32 %s5736_s6, 4  ;;  %s5618_s7 = int_to_ptr.vmem [resolvable:$false] %s5617_s7 }
  0xdf   : > { %8855 = vst [vmem:[#allocation33_spill] sm:$0xff] %v6098_v19  ;;  %8856 = vst [vmem:[#allocation34_spill] sm:$0xff] %v6100_v20  ;;  %v706_v43 = vrot.slane %v609_v37, 1  ;;  %v707_v44 = vrot.slane %v610_v38, 1  ;;  %v856_v48 = vmul.f32 %v6085_v14, %v519_v30  ;;  %v1099_v49 = vmul.f32 %v6093_v16, %v6105_v28  ;;  %s5619_s11 = scalar_lea.vmem %s5618_s7, 4096  ;;  %p5620_p9 = scmp.lt.s32.totalorder %s8671_s19, %s5618_s7 }
  0xe0   : > { %2648 = vrot.lane.b32.xlu0 %v6085_v14, %s5735_s12  ;;  %2960 = vrot.lane.b32.xlu1 %v6091_v15, %s5735_s12  ;;  %v709_v47 = vrot.slane %v611_v42, 1  ;;  %v1100_v50 = vmul.f32 %v6093_v16, %v6107_v29  ;;  %v951_v52 = vrot.slane %v854_v45, 2  ;;  %v952_v53 = vrot.slane %v855_v46, 2  ;;  %v438_v46 = vld [vmem:[%s6056_s8 + $0x24] sm:$0xff]   ;;  %s8669_s26 = scalar_lea.hbm %s8929_s14, %s5099_s10  ;;  %p5616_p6 = pneg %p5615_p2 }
  0xe1   : > { %v708_v51 = vsel %vm705_vm0, %v706_v43, %v707_v44  ;;  %v1167_v54 = vmul.f32 %v6091_v15, %v6105_v28  ;;  %v954_v57 = vrot.slane %v856_v48, 2  ;;  %v1168_v58 = vmul.f32 %v6091_v15, %v6107_v29  ;;  %p5621_p10 = scmp.lt.s32.totalorder %s5619_s11, %s5613_s9 }
  0xe2   : > { %v710_v55 = vsel %vm705_vm0, %v707_v44, %v709_v47  ;;  %v818_v56 = vadd.f32 %v708_v51, %v541_v35  ;;  %v953_v60 = vsel %vm950_vm1, %v951_v52, %v952_v53  ;;  %v1169_v61 = vmul.f32 %v6091_v15, %v6109_v31  ;;  %v440_v47 = vld [vmem:[%s6056_s8 + $0x2c] sm:$0x1] }
  0xe3   : > { %v819_v59 = vadd.f32 %v710_v55, %v542_v36  ;;  %v1263_v62 = vrot.slane %v1167_v54, 1  ;;  %v955_v63 = vsel %vm950_vm1, %v952_v53, %v954_v57  ;;  %v1264_v1 = vrot.slane %v1168_v58, 1  ;;  %p5622_p4 = por %p5621_p10, %p5620_p9 }
  0xe4   : > { %2892 = vrot.lane.b32.xlu0 %v6093_v16, %s5735_s12  ;;  %3204 = vrot.lane.b32.xlu1 %v6095_v17, %s5735_s12  ;;  %v1063_v0 = vadd.f32 %v953_v60, %v818_v56  ;;  %v1411_v2 = vmul.f32 %v6095_v17, %v6105_v28  ;;  %v1266_v4 = vrot.slane %v1169_v61, 1  ;;  %v1412_v5 = vmul.f32 %v6095_v17, %v6107_v29 }
  0xe5   : > { %v1064_v3 = vadd.f32 %v955_v63, %v819_v59  ;;  %v1413_v6 = vmul.f32 %v6095_v17, %v6109_v31  ;;  %v1265_v8 = vsel %vm705_vm0, %v1263_v62, %v1264_v1  ;;  %v1655_v10 = vmul.f32 %v6121_v39, %v6100_v20  ;;  %p5623_p5 = pnand %p5622_p4, %p5616_p6 }
  0xe6   : > { %v1131_v7 = vadd.f32 %v1099_v49, %v1063_v0  ;;  %v1507_v9 = vrot.slane %v1411_v2, 2  ;;  %v1267_v21 = vsel %vm705_vm0, %v1264_v1, %v1266_v4  ;;  %v1508_v22 = vrot.slane %v1412_v5, 2 }
  0xe7   : > { %v1132_v18 = vadd.f32 %v1100_v50, %v1064_v3  ;;  %v1510_v23 = vrot.slane %v1413_v6, 2  ;;  %v1656_v25 = vmul.f32 %v6123_v40, %v6100_v20  ;;  %v1723_v26 = vmul.f32 %v6121_v39, %v6098_v19 }
  0xe8   : > { %3516 = vrot.lane.b32.xlu0 %v6098_v19, %s5735_s12  ;;  %3448 = vrot.lane.b32.xlu1 %v6100_v20, %s5735_s12  ;;  %v1375_v24 = vadd.f32 %v1265_v8, %v1131_v7  ;;  %v1724_v27 = vmul.f32 %v6123_v40, %v6098_v19  ;;  %v1509_v32 = vsel %vm950_vm1, %v1507_v9, %v1508_v22  ;;  %v6188_v56 = vunpack.c.l.bf16 %v438_v46 }
  0xe9   : > { %v1376_v30 = vadd.f32 %v1267_v21, %v1132_v18  ;;  %v1511_v33 = vsel %vm950_vm1, %v1508_v22, %v1510_v23  ;;  %v1725_v34 = vmul.f32 %v6098_v19, %v6125_v41  ;;  %v1819_v36 = vrot.slane %v1723_v26, 1 }
  0xea   : > { %v1619_v35 = vadd.f32 %v1509_v32, %v1375_v24  ;;  %v1820_v37 = vrot.slane %v1724_v27, 1  ;;  %v1967_v38 = vmul.f32 %v6121_v39, %v6163_v13  ;;  %v1968_v44 = vmul.f32 %v6123_v40, %v6163_v13 }
  0xeb   : > { %v1620_v42 = vadd.f32 %v1511_v33, %v1376_v30  ;;  %v1822_v43 = vrot.slane %v1725_v34, 1  ;;  %v1969_v45 = vmul.f32 %v6163_v13, %v6125_v41  ;;  %v6190_v57 = vunpack.c.h.bf16 %v438_v46 }
  0xec   : > { %3760 = vrot.lane.b32.xlu0 %v6163_v13, %s5735_s12  ;;  %v1687_v48 = vadd.f32 %v1655_v10, %v1619_v35  ;;  %v1821_v49 = vsel %vm705_vm0, %v1819_v36, %v1820_v37  ;;  %v2063_v50 = vrot.slane %v1967_v38, 2  ;;  %v2064_v53 = vrot.slane %v1968_v44, 2 }
  0xed   : > { %v1688_v51 = vadd.f32 %v1656_v25, %v1620_v42  ;;  %v1823_v52 = vsel %vm705_vm0, %v1820_v37, %v1822_v43  ;;  %v2066_v54 = vrot.slane %v1969_v45, 2  ;;  %v6192_v58 = vunpack.c.l.bf16 %v440_v47 }
  0xee   : > { %v1931_v55 = vadd.f32 %v1821_v49, %v1687_v48  ;;  %v2065_v60 = vsel %vm950_vm1, %v2063_v50, %v2064_v53  ;;  %v543_v62 = vmul.f32 %v6083_v12, %v6105_v28  ;;  %v544_v0 = vmul.f32 %v6083_v12, %v6107_v29 }
  0xef   : > { %v1932_v59 = vadd.f32 %v1823_v52, %v1688_v51  ;;  %v2067_v61 = vsel %vm950_vm1, %v2064_v53, %v2066_v54  ;;  %v612_v1 = vmul.f32 %v6081_v11, %v6105_v28  ;;  %v613_v2 = vmul.f32 %v6081_v11, %v6107_v29 }
  0xf0   : > { %v2175_v63 = vadd.f32 %v2065_v60, %v1931_v55  ;;  %v614_v4 = vmul.f32 %v6081_v11, %v6109_v31  ;;  %v857_v5 = vmul.f32 %v6085_v14, %v6105_v28  ;;  %v858_v6 = vmul.f32 %v6085_v14, %v6107_v29 }
  0xf1   : > { %v2176_v3 = vadd.f32 %v2067_v61, %v1932_v59  ;;  %v711_v7 = vrot.slane %v612_v1, 1  ;;  %v712_v8 = vrot.slane %v613_v2, 1  ;;  %v859_v9 = vmul.f32 %v6085_v14, %v6109_v31  ;;  %v5137_v2 = vld [vmem:[%s6063_s23] sm:$0xff]  }
  0xf2   : > { %v1101_v10 = vmul.f32 %v6121_v39, %v6093_v16  ;;  %v714_v21 = vrot.slane %v614_v4, 1  ;;  %v956_v22 = vrot.slane %v857_v5, 2  ;;  %v957_v23 = vrot.slane %v858_v6, 2 }
  0xf3   : > { %v2207_v18 = vpack.c.bf16 %v2176_v3, %v2175_v63  ;;  %v713_v24 = vsel %vm705_vm0, %v711_v7, %v712_v8  ;;  %v959_v25 = vrot.slane %v859_v9, 2  ;;  %v1102_v28 = vmul.f32 %v6123_v40, %v6093_v16 }
  0xf4   : > { %v1170_v29 = vmul.f32 %v6121_v39, %v6091_v15  ;;  %v715_v31 = vsel %vm705_vm0, %v712_v8, %v714_v21  ;;  %v820_v26 = vadd.f32 %v713_v24, %v543_v62  ;;  %v958_v27 = vsel %vm950_vm1, %v956_v22, %v957_v23 }
  0xf5   : > { %5264 = vmatprep.mubr.msk.bf16.mxu0 %vm4035_vm2, %v2207_v18  ;;  %v1171_v30 = vmul.f32 %v6123_v40, %v6091_v15  ;;  %v821_v32 = vadd.f32 %v715_v31, %v544_v0  ;;  %v960_v33 = vsel %vm950_vm1, %v957_v23, %v959_v25  ;;  %v1172_v34 = vmul.f32 %v6091_v15, %v6125_v41  ;;  %v5180_v18 = vld [vmem:[%s6063_s23 + $0x18] sm:$0xff]   ;;  %v6259_v25 = vld [vmem:[%s6063_s23 + $0x8] sm:$0x1] }
  0xf6   : > { %v1268_v35 = vrot.slane %v1170_v29, 1  ;;  %v1065_v36 = vadd.f32 %v958_v27, %v820_v26  ;;  %v1414_v38 = vmul.f32 %v6121_v39, %v6095_v17  ;;  %v1415_v42 = vmul.f32 %v6123_v40, %v6095_v17 }
  0xf7   : > { %v1269_v37 = vrot.slane %v1171_v30, 1  ;;  %v1066_v43 = vadd.f32 %v960_v33, %v821_v32  ;;  %v1271_v44 = vrot.slane %v1172_v34, 1  ;;  %v1416_v45 = vmul.f32 %v6095_v17, %v6125_v41  ;;  %v2232_v30 = vld [vmem:[%s6063_s23 + $0x14] sm:$0x1]  ;;  %v2235_v32 = vld [vmem:[%s6063_s23 + $0x20] sm:$0x1] }
  0xf8   : > { %v1657_v46 = vmul.f32 %v6100_v20, %v6188_v56  ;;  %v1133_v47 = vadd.f32 %v1101_v10, %v1065_v36  ;;  %v1512_v49 = vrot.slane %v1414_v38, 2  ;;  %v1513_v50 = vrot.slane %v1415_v42, 2  ;;  %v2238_v38 = vld [vmem:[%s6063_s23 + $0x2c] sm:$0x1] }
  0xf9   : > { %v1270_v48 = vsel %vm705_vm0, %v1268_v35, %v1269_v37  ;;  %v1134_v51 = vadd.f32 %v1102_v28, %v1066_v43  ;;  %v1272_v52 = vsel %vm705_vm0, %v1269_v37, %v1271_v44  ;;  %v1515_v53 = vrot.slane %v1416_v45, 2  ;;  %v2230_v28 = vld [vmem:[%s6063_s23 + $0xc] sm:$0xff]   ;;  %v2236_v37 = vld [vmem:[%s6063_s23 + $0x24] sm:$0xff]  }
  0xfa   : > { %v1658_v54 = vmul.f32 %v6100_v20, %v6190_v57  ;;  %v1377_v55 = vadd.f32 %v1270_v48, %v1133_v47  ;;  %v1514_v59 = vsel %vm950_vm1, %v1512_v49, %v1513_v50  ;;  %v1726_v60 = vmul.f32 %v6098_v19, %v6188_v56  ;;  %v2241_v47 = vld [vmem:[%s6063_s23 + $0x38] sm:$0x1]  ;;  %v5173_v48 = vld [vmem:[%s6056_s8 + $0x30] sm:$0xff]  }
  0xfb   : > { %v1727_v61 = vmul.f32 %v6098_v19, %v6190_v57  ;;  %v1378_v62 = vadd.f32 %v1272_v52, %v1134_v51  ;;  %v1516_v63 = vsel %vm950_vm1, %v1513_v50, %v1515_v53  ;;  %v1728_v0 = vmul.f32 %v6098_v19, %v6192_v58  ;;  %v443_v53 = vld [vmem:[%s6056_s8 + $0x38] sm:$0x1] }
  0xfc   : > { %v1970_v1 = vmul.f32 %v6163_v13, %v6188_v56  ;;  %v1621_v3 = vadd.f32 %v1514_v59, %v1377_v55  ;;  %v1824_v4 = vrot.slane %v1726_v60, 1  ;;  %v1971_v6 = vmul.f32 %v6163_v13, %v6190_v57 }
  0xfd   : > { %v1825_v5 = vrot.slane %v1727_v61, 1  ;;  %v1622_v7 = vadd.f32 %v1516_v63, %v1378_v62  ;;  %v1827_v8 = vrot.slane %v1728_v0, 1  ;;  %v1972_v9 = vmul.f32 %v6163_v13, %v6192_v58 }
  0xfe   : > { %v2068_v10 = vrot.slane %v1970_v1, 2  ;;  %v1689_v21 = vadd.f32 %v1657_v46, %v1621_v3  ;;  %v2069_v23 = vrot.slane %v1971_v6, 2  ;;  %v6256_v24 = vunpack.c.l.bf16 %v5137_v2  ;;  %v5181_v46 = vld [vmem:[%s6063_s23 + $0x30] sm:$0xff]  }
  0xff   : > { %v1826_v22 = vsel %vm705_vm0, %v1824_v4, %v1825_v5  ;;  %v1690_v29 = vadd.f32 %v1658_v54, %v1622_v7  ;;  %v1828_v31 = vsel %vm705_vm0, %v1825_v5, %v1827_v8  ;;  %v2071_v26 = vrot.slane %v1972_v9, 2 }
 0x100   : > { %v6263_v27 = vunpack.c.h.bf16 %v5137_v2  ;;  %v1933_v33 = vadd.f32 %v1826_v22, %v1689_v21  ;;  %v2070_v34 = vsel %vm950_vm1, %v2068_v10, %v2069_v23  ;;  %v6268_v35 = vunpack.c.l.bf16 %v5180_v18 }
 0x101   : > { %v6270_v36 = vunpack.c.h.bf16 %v5180_v18  ;;  %v1934_v42 = vadd.f32 %v1828_v31, %v1690_v29  ;;  %v2072_v43 = vsel %vm950_vm1, %v2069_v23, %v2071_v26  ;;  %v6275_v44 = vunpack.c.l.bf16 %v2230_v28 }
 0x102   : > { %v6277_v45 = vunpack.c.h.bf16 %v2230_v28  ;;  %v2177_v49 = vadd.f32 %v2070_v34, %v1933_v33  ;;  %v8785_v50 = vunpack.c.l.bf16 %v6259_v25  ;;  %v6283_v51 = vunpack.c.l.bf16 %v2232_v30 }
 0x103   : > { %v6285_v52 = vunpack.c.l.bf16 %v2235_v32  ;;  %v2178_v54 = vadd.f32 %v2072_v43, %v1934_v42  ;;  %v6288_v55 = vunpack.c.l.bf16 %v2236_v37  ;;  %v6290_v59 = vunpack.c.h.bf16 %v2236_v37 }
 0x104   : > { %v6292_v60 = vunpack.c.l.bf16 %v2238_v38  ;;  %v6294_v61 = vunpack.c.l.bf16 %v5181_v46  ;;  %v6296_v62 = vunpack.c.h.bf16 %v5181_v46  ;;  %v6298_v63 = vunpack.c.l.bf16 %v2241_v47 }
 0x105   : > { %v6300_v0 = vunpack.c.l.bf16 %v5173_v48  ;;  %v2208_v1 = vpack.c.bf16 %v2178_v54, %v2177_v49  ;;  %v6302_v2 = vunpack.c.h.bf16 %v5173_v48  ;;  %v6304_v3 = vunpack.c.l.bf16 %v443_v53 }
 0x106   : > { %v545_v4 = vmul.f32 %v6121_v39, %v6083_v12  ;;  %v546_v5 = vmul.f32 %v6123_v40, %v6083_v12  ;;  %v615_v6 = vmul.f32 %v6121_v39, %v6081_v11  ;;  %v616_v7 = vmul.f32 %v6123_v40, %v6081_v11 }
 0x107   : > { %v617_v8 = vmul.f32 %v6081_v11, %v6125_v41  ;;  %5265 = vmatmul.mubr.msk.bf16.vlgmr.msra.gmra.mrb[0].mxu0 %vm4035_vm2, %v2208_v1  ;;  %v860_v9 = vmul.f32 %v6121_v39, %v6085_v14  ;;  %v861_v10 = vmul.f32 %v6123_v40, %v6085_v14  ;;  %v862_v18 = vmul.f32 %v6085_v14, %v6125_v41 }
 0x108   : > { %v1103_v21 = vmul.f32 %v6093_v16, %v6188_v56  ;;  %v716_v22 = vrot.slane %v615_v6, 1  ;;  %v717_v23 = vrot.slane %v616_v7, 1  ;;  %v1104_v29 = vmul.f32 %v6093_v16, %v6190_v57 }
 0x109   : > { %v719_v28 = vrot.slane %v617_v8, 1  ;;  %v961_v31 = vrot.slane %v860_v9, 2  ;;  %v962_v26 = vrot.slane %v861_v10, 2  ;;  %v964_v30 = vrot.slane %v862_v18, 2 }
 0x10a   : > { %v1173_v39 = vmul.f32 %v6091_v15, %v6188_v56  ;;  %v718_v40 = vsel %vm705_vm0, %v716_v22, %v717_v23  ;;  %v1174_v41 = vmul.f32 %v6091_v15, %v6190_v57  ;;  %v1175_v33 = vmul.f32 %v6091_v15, %v6192_v58 }
 0x10b   : > { %v720_v32 = vsel %vm705_vm0, %v717_v23, %v719_v28  ;;  %v822_v34 = vadd.f32 %v718_v40, %v545_v4  ;;  %v963_v38 = vsel %vm950_vm1, %v961_v31, %v962_v26  ;;  %v965_v42 = vsel %vm950_vm1, %v962_v26, %v964_v30 }
 0x10c   : > { %v823_v37 = vadd.f32 %v720_v32, %v546_v5  ;;  %v1273_v43 = vrot.slane %v1173_v39, 1  ;;  %v1274_v46 = vrot.slane %v1174_v41, 1  ;;  %v1276_v47 = vrot.slane %v1175_v33, 1  ;;  %v444_v39 = vld [vmem:[%s6056_s8 + $0x3c] sm:$0xff]  }
 0x10d   : > { %v1417_v48 = vmul.f32 %v6095_v17, %v6188_v56  ;;  %v1067_v49 = vadd.f32 %v963_v38, %v822_v34  ;;  %v1418_v54 = vmul.f32 %v6095_v17, %v6190_v57  ;;  %v1419_v1 = vmul.f32 %v6095_v17, %v6192_v58 }
 0x10e   : > { %v1068_v53 = vadd.f32 %v965_v42, %v823_v37  ;;  %v1275_v4 = vsel %vm705_vm0, %v1273_v43, %v1274_v46  ;;  %v1277_v5 = vsel %vm705_vm0, %v1274_v46, %v1276_v47  ;;  %v1659_v7 = vmul.f32 %v6300_v0, %v6100_v20  ;;  %v446_v43 = vld [vmem:[%s6056_s8 + $0x44] sm:$0x1] }
 0x10f   : > { %v1517_v6 = vrot.slane %v1417_v48, 2  ;;  %v1135_v8 = vadd.f32 %v1103_v21, %v1067_v49  ;;  %v1518_v10 = vrot.slane %v1418_v54, 2  ;;  %v1520_v18 = vrot.slane %v1419_v1, 2 }
 0x110   : > { %v1136_v9 = vadd.f32 %v1104_v29, %v1068_v53  ;;  %v1660_v22 = vmul.f32 %v6302_v2, %v6100_v20  ;;  %v1729_v23 = vmul.f32 %v6300_v0, %v6098_v19  ;;  %v1730_v28 = vmul.f32 %v6302_v2, %v6098_v19 }
 0x111   : > { %v1731_v31 = vmul.f32 %v6098_v19, %v6304_v3  ;;  %v1379_v26 = vadd.f32 %v1275_v4, %v1135_v8  ;;  %v1519_v21 = vsel %vm950_vm1, %v1517_v6, %v1518_v10  ;;  %v1521_v29 = vsel %vm950_vm1, %v1518_v10, %v1520_v18 }
 0x112   : > { %v1380_v30 = vadd.f32 %v1277_v5, %v1136_v9  ;;  %v1829_v40 = vrot.slane %v1729_v23, 1  ;;  %v1830_v32 = vrot.slane %v1730_v28, 1  ;;  %v1973_v33 = vmul.f32 %v6300_v0, %v6163_v13 }
 0x113   : > { %v1832_v41 = vrot.slane %v1731_v31, 1  ;;  %v1623_v34 = vadd.f32 %v1519_v21, %v1379_v26  ;;  %v1974_v38 = vmul.f32 %v6302_v2, %v6163_v13  ;;  %v1975_v42 = vmul.f32 %v6163_v13, %v6304_v3 }
 0x114   : > { %v1624_v37 = vadd.f32 %v1521_v29, %v1380_v30  ;;  %v1831_v46 = vsel %vm705_vm0, %v1829_v40, %v1830_v32  ;;  %v2073_v48 = vrot.slane %v1973_v33, 2  ;;  %v6367_v49 = vunpack.c.l.bf16 %v444_v39 }
 0x115   : > { %v1833_v47 = vsel %vm705_vm0, %v1830_v32, %v1832_v41  ;;  %v1691_v53 = vadd.f32 %v1659_v7, %v1623_v34  ;;  %v2074_v1 = vrot.slane %v1974_v38, 2  ;;  %v2076_v4 = vrot.slane %v1975_v42, 2 }
 0x116   : > { %v1692_v54 = vadd.f32 %v1660_v22, %v1624_v37  ;;  %v6369_v5 = vunpack.c.h.bf16 %v444_v39  ;;  %v6371_v6 = vunpack.c.l.bf16 %v446_v43  ;;  %v547_v8 = vmul.f32 %v6083_v12, %v6188_v56 }
 0x117   : > { %v548_v9 = vmul.f32 %v6083_v12, %v6190_v57  ;;  %v1935_v10 = vadd.f32 %v1831_v46, %v1691_v53  ;;  %v2075_v23 = vsel %vm950_vm1, %v2073_v48, %v2074_v1  ;;  %v2077_v28 = vsel %vm950_vm1, %v2074_v1, %v2076_v4 }
 0x118   : > { %v1936_v18 = vadd.f32 %v1833_v47, %v1692_v54  ;;  %v618_v7 = vmul.f32 %v6081_v11, %v6188_v56  ;;  %v619_v22 = vmul.f32 %v6081_v11, %v6190_v57  ;;  %v620_v31 = vmul.f32 %v6081_v11, %v6192_v58 }
 0x119   : > { %v863_v26 = vmul.f32 %v6085_v14, %v6188_v56  ;;  %v2179_v30 = vadd.f32 %v2075_v23, %v1935_v10  ;;  %v864_v29 = vmul.f32 %v6085_v14, %v6190_v57  ;;  %v865_v39 = vmul.f32 %v6085_v14, %v6192_v58 }
 0x11a   : > { %v2180_v21 = vadd.f32 %v2077_v28, %v1936_v18  ;;  %v721_v40 = vrot.slane %v618_v7, 1  ;;  %v722_v32 = vrot.slane %v619_v22, 1  ;;  %v724_v41 = vrot.slane %v620_v31, 1 }
 0x11b   : > { %v966_v33 = vrot.slane %v863_v26, 2  ;;  %v967_v37 = vrot.slane %v864_v29, 2  ;;  %v969_v38 = vrot.slane %v865_v39, 2  ;;  %v1105_v42 = vmul.f32 %v6300_v0, %v6093_v16 }
 0x11c   : > { %v2209_v34 = vpack.c.bf16 %v2180_v21, %v2179_v30  ;;  %v723_v56 = vsel %vm705_vm0, %v721_v40, %v722_v32  ;;  %v725_v43 = vsel %vm705_vm0, %v722_v32, %v724_v41  ;;  %v1106_v57 = vmul.f32 %v6302_v2, %v6093_v16 }
 0x11d   : > { %v1176_v58 = vmul.f32 %v6300_v0, %v6091_v15  ;;  %v824_v46 = vadd.f32 %v723_v56, %v547_v8  ;;  %v825_v47 = vadd.f32 %v725_v43, %v548_v9  ;;  %v968_v48 = vsel %vm950_vm1, %v966_v33, %v967_v37 }
 0x11e   : > { %5268 = vmatprep.mubr.msk.bf16.mxu0 %vm4035_vm2, %v2209_v34  ;;  %v970_v53 = vsel %vm950_vm1, %v967_v37, %v969_v38  ;;  %v1177_v54 = vmul.f32 %v6302_v2, %v6091_v15  ;;  %v1178_v1 = vmul.f32 %v6091_v15, %v6304_v3  ;;  %v1420_v10 = vmul.f32 %v6300_v0, %v6095_v17 }
 0x11f   : > { %v1278_v4 = vrot.slane %v1176_v58, 1  ;;  %v1069_v18 = vadd.f32 %v968_v48, %v824_v46  ;;  %v1070_v23 = vadd.f32 %v970_v53, %v825_v47  ;;  %v1421_v8 = vmul.f32 %v6302_v2, %v6095_v17 }
 0x120   : > { %v1422_v9 = vmul.f32 %v6095_v17, %v6304_v3  ;;  %v1279_v28 = vrot.slane %v1177_v54, 1  ;;  %v1281_v7 = vrot.slane %v1178_v1, 1  ;;  %v1522_v22 = vrot.slane %v1420_v10, 2  ;;  %v2244_v54 = vld [vmem:[%s6063_s23 + $0x44] sm:$0x1] }
 0x121   : > { %v1661_v31 = vmul.f32 %v6100_v20, %v6367_v49  ;;  %v1137_v26 = vadd.f32 %v1105_v42, %v1069_v18  ;;  %v1138_v30 = vadd.f32 %v1106_v57, %v1070_v23  ;;  %v1523_v21 = vrot.slane %v1421_v8, 2  ;;  %v2242_v42 = vld [vmem:[%s6063_s23 + $0x3c] sm:$0xff]  }
 0x122   : > { %v1525_v29 = vrot.slane %v1422_v9, 2  ;;  %v1280_v39 = vsel %vm705_vm0, %v1278_v4, %v1279_v28  ;;  %v1282_v40 = vsel %vm705_vm0, %v1279_v28, %v1281_v7  ;;  %v1662_v32 = vmul.f32 %v6100_v20, %v6369_v5  ;;  %v5182_v7 = vld [vmem:[%s6063_s23 + $0x48] sm:$0xff]  }
 0x123   : > { %v1732_v41 = vmul.f32 %v6098_v19, %v6367_v49  ;;  %v1381_v33 = vadd.f32 %v1280_v39, %v1137_v26  ;;  %v1382_v34 = vadd.f32 %v1282_v40, %v1138_v30  ;;  %v1524_v37 = vsel %vm950_vm1, %v1522_v22, %v1523_v21  ;;  %v2247_v22 = vld [vmem:[%s6063_s23 + $0x50] sm:$0x1]  ;;  %v5174_v26 = vld [vmem:[%s6056_s8 + $0x48] sm:$0xff]   ;;  %v449_v40 = vld [vmem:[%s6056_s8 + $0x50] sm:$0x1] }
 0x124   : > { %v1526_v38 = vsel %vm950_vm1, %v1523_v21, %v1525_v29  ;;  %v1733_v56 = vmul.f32 %v6098_v19, %v6369_v5  ;;  %v1734_v43 = vmul.f32 %v6098_v19, %v6371_v6  ;;  %v1976_v58 = vmul.f32 %v6163_v13, %v6367_v49 }
 0x125   : > { %v1834_v57 = vrot.slane %v1732_v41, 1  ;;  %v1625_v46 = vadd.f32 %v1524_v37, %v1381_v33  ;;  %v1626_v47 = vadd.f32 %v1526_v38, %v1382_v34  ;;  %v1977_v48 = vmul.f32 %v6163_v13, %v6369_v5 }
 0x126   : > { %v1978_v53 = vmul.f32 %v6163_v13, %v6371_v6  ;;  %v1835_v1 = vrot.slane %v1733_v56, 1  ;;  %v1837_v4 = vrot.slane %v1734_v43, 1  ;;  %v2078_v10 = vrot.slane %v1976_v58, 2 }
 0x127   : > { %v6434_v18 = vunpack.c.l.bf16 %v2242_v42  ;;  %v1693_v23 = vadd.f32 %v1661_v31, %v1625_v46  ;;  %v1694_v8 = vadd.f32 %v1662_v32, %v1626_v47  ;;  %v2079_v9 = vrot.slane %v1977_v48, 2 }
 0x128   : > { %v2081_v28 = vrot.slane %v1978_v53, 2  ;;  %v1836_v30 = vsel %vm705_vm0, %v1834_v57, %v1835_v1  ;;  %v1838_v21 = vsel %vm705_vm0, %v1835_v1, %v1837_v4  ;;  %v6441_v29 = vunpack.c.h.bf16 %v2242_v42 }
 0x129   : > { %v6443_v39 = vunpack.c.l.bf16 %v2244_v54  ;;  %v1937_v41 = vadd.f32 %v1836_v30, %v1693_v23  ;;  %v1938_v33 = vadd.f32 %v1838_v21, %v1694_v8  ;;  %v2080_v34 = vsel %vm950_vm1, %v2078_v10, %v2079_v9 }
 0x12a   : > { %v2082_v31 = vsel %vm950_vm1, %v2079_v9, %v2081_v28  ;;  %v6448_v32 = vunpack.c.l.bf16 %v5182_v7  ;;  %v6450_v37 = vunpack.c.h.bf16 %v5182_v7  ;;  %v6452_v38 = vunpack.c.l.bf16 %v2247_v22 }
 0x12b   : > { %v6454_v56 = vunpack.c.l.bf16 %v5174_v26  ;;  %v2181_v43 = vadd.f32 %v2080_v34, %v1937_v41  ;;  %v2182_v42 = vadd.f32 %v2082_v31, %v1938_v33  ;;  %v6456_v57 = vunpack.c.h.bf16 %v5174_v26 }
 0x12c   : > { %v6458_v58 = vunpack.c.l.bf16 %v449_v40  ;;  %v549_v46 = vmul.f32 %v6300_v0, %v6083_v12  ;;  %v550_v47 = vmul.f32 %v6302_v2, %v6083_v12  ;;  %v621_v48 = vmul.f32 %v6300_v0, %v6081_v11 }
 0x12d   : > { %8857 = vst [vmem:[#allocation35_spill] sm:$0xff] %v6454_v56  ;;  %8858 = vst [vmem:[#allocation36_spill] sm:$0xff] %v6456_v57  ;;  %v622_v53 = vmul.f32 %v6302_v2, %v6081_v11  ;;  %v2210_v54 = vpack.c.bf16 %v2182_v42, %v2181_v43  ;;  %v623_v1 = vmul.f32 %v6081_v11, %v6304_v3 }
 0x12e   : > { %8859 = vst [vmem:[#allocation37_spill] sm:$0xff] %v6458_v58  ;;  %v866_v4 = vmul.f32 %v6300_v0, %v6085_v14  ;;  %v867_v10 = vmul.f32 %v6302_v2, %v6085_v14  ;;  %v726_v23 = vrot.slane %v621_v48, 1  ;;  %v868_v9 = vmul.f32 %v6085_v14, %v6304_v3 }
 0x12f   : > { %v727_v8 = vrot.slane %v622_v53, 1  ;;  %v1107_v28 = vmul.f32 %v6093_v16, %v6367_v49  ;;  %5269 = vmatmul.mubr.msk.bf16.gmra.mrb[4].mxu0 %vm4035_vm2, %v2210_v54  ;;  %v729_v7 = vrot.slane %v623_v1, 1  ;;  %v1108_v30 = vmul.f32 %v6093_v16, %v6369_v5 }
 0x130   : > { %v971_v22 = vrot.slane %v866_v4, 2  ;;  %v972_v26 = vrot.slane %v867_v10, 2  ;;  %v974_v21 = vrot.slane %v868_v9, 2  ;;  %v1179_v2 = vmul.f32 %v6091_v15, %v6367_v49 }
 0x131   : > { %v728_v0 = vsel %vm705_vm0, %v726_v23, %v727_v8  ;;  %v1180_v3 = vmul.f32 %v6091_v15, %v6369_v5  ;;  %v730_v40 = vsel %vm705_vm0, %v727_v8, %v729_v7  ;;  %v1181_v34 = vmul.f32 %v6091_v15, %v6371_v6 }
 0x132   : > { %v826_v41 = vadd.f32 %v728_v0, %v549_v46  ;;  %v973_v33 = vsel %vm950_vm1, %v971_v22, %v972_v26  ;;  %v827_v31 = vadd.f32 %v730_v40, %v550_v47  ;;  %v975_v43 = vsel %vm950_vm1, %v972_v26, %v974_v21 }
 0x133   : > { %v1283_v42 = vrot.slane %v1179_v2, 1  ;;  %v1284_v48 = vrot.slane %v1180_v3, 1  ;;  %v1286_v54 = vrot.slane %v1181_v34, 1  ;;  %v1423_v1 = vmul.f32 %v6095_v17, %v6367_v49 }
 0x134   : > { %v1071_v53 = vadd.f32 %v973_v33, %v826_v41  ;;  %v1424_v4 = vmul.f32 %v6095_v17, %v6369_v5  ;;  %v1072_v10 = vadd.f32 %v975_v43, %v827_v31  ;;  %v1425_v23 = vmul.f32 %v6095_v17, %v6371_v6  ;;  %v450_v33 = vld [vmem:[%s6056_s8 + $0x54] sm:$0xff]  }
 0x135   : > { %v1285_v46 = vsel %vm705_vm0, %v1283_v42, %v1284_v48  ;;  %v1663_v47 = vmul.f32 %v6454_v56, %v6100_v20  ;;  %v1287_v9 = vsel %vm705_vm0, %v1284_v48, %v1286_v54  ;;  %v1527_v7 = vrot.slane %v1423_v1, 2  ;;  %v452_v1 = vld [vmem:[%s6056_s8 + $0x5c] sm:$0x1] }
 0x136   : > { %v1139_v8 = vadd.f32 %v1107_v28, %v1071_v53  ;;  %v1528_v22 = vrot.slane %v1424_v4, 2  ;;  %v1140_v26 = vadd.f32 %v1108_v30, %v1072_v10  ;;  %v1530_v0 = vrot.slane %v1425_v23, 2 }
 0x137   : > { %v1664_v21 = vmul.f32 %v6456_v57, %v6100_v20  ;;  %v1735_v2 = vmul.f32 %v6454_v56, %v6098_v19  ;;  %v1736_v41 = vmul.f32 %v6456_v57, %v6098_v19  ;;  %v1737_v28 = vmul.f32 %v6098_v19, %v6458_v58 }
 0x138   : > { %v1383_v3 = vadd.f32 %v1285_v46, %v1139_v8  ;;  %v1529_v40 = vsel %vm950_vm1, %v1527_v7, %v1528_v22  ;;  %v1384_v34 = vadd.f32 %v1287_v9, %v1140_v26  ;;  %v1531_v30 = vsel %vm950_vm1, %v1528_v22, %v1530_v0 }
 0x139   : > { %v1839_v31 = vrot.slane %v1735_v2, 1  ;;  %v1979_v43 = vmul.f32 %v6454_v56, %v6163_v13  ;;  %v1840_v48 = vrot.slane %v1736_v41, 1  ;;  %v1842_v53 = vrot.slane %v1737_v28, 1 }
 0x13a   : > { %v1627_v42 = vadd.f32 %v1529_v40, %v1383_v3  ;;  %v1980_v54 = vmul.f32 %v6456_v57, %v6163_v13  ;;  %v1628_v4 = vadd.f32 %v1531_v30, %v1384_v34  ;;  %v1981_v10 = vmul.f32 %v6163_v13, %v6458_v58 }
 0x13b   : > { %v2083_v46 = vrot.slane %v1979_v43, 2  ;;  %v6519_v23 = vunpack.c.l.bf16 %v450_v33  ;;  %v1841_v9 = vsel %vm705_vm0, %v1839_v31, %v1840_v48  ;;  %v1843_v7 = vsel %vm705_vm0, %v1840_v48, %v1842_v53 }
 0x13c   : > { %v1695_v8 = vadd.f32 %v1663_v47, %v1627_v42  ;;  %v2084_v22 = vrot.slane %v1980_v54, 2  ;;  %v1696_v26 = vadd.f32 %v1664_v21, %v1628_v4  ;;  %v2086_v0 = vrot.slane %v1981_v10, 2 }
 0x13d   : > { %8860 = vst [vmem:[#allocation38_spill] sm:$0xff] %v6519_v23  ;;  %v6523_v2 = vunpack.c.h.bf16 %v450_v33  ;;  %v6525_v3 = vunpack.c.l.bf16 %v452_v1  ;;  %v551_v28 = vmul.f32 %v6083_v12, %v6367_v49  ;;  %v552_v47 = vmul.f32 %v6083_v12, %v6369_v5 }
 0x13e   : > { %v1939_v40 = vadd.f32 %v1841_v9, %v1695_v8  ;;  %v2085_v41 = vsel %vm950_vm1, %v2083_v46, %v2084_v22  ;;  %v1940_v34 = vadd.f32 %v1843_v7, %v1696_v26  ;;  %v2087_v30 = vsel %vm950_vm1, %v2084_v22, %v2086_v0 }
 0x13f   : > { %8861 = vst [vmem:[#allocation39_spill] sm:$0xff] %v6523_v2  ;;  %v624_v21 = vmul.f32 %v6081_v11, %v6367_v49  ;;  %v625_v33 = vmul.f32 %v6081_v11, %v6369_v5  ;;  %v626_v43 = vmul.f32 %v6081_v11, %v6371_v6  ;;  %v869_v42 = vmul.f32 %v6085_v14, %v6367_v49 }
 0x140   : > { %v2183_v31 = vadd.f32 %v2085_v41, %v1939_v40  ;;  %v870_v48 = vmul.f32 %v6085_v14, %v6369_v5  ;;  %v2184_v53 = vadd.f32 %v2087_v30, %v1940_v34  ;;  %v871_v4 = vmul.f32 %v6085_v14, %v6371_v6 }
 0x141   : > { %v731_v54 = vrot.slane %v624_v21, 1  ;;  %v732_v1 = vrot.slane %v625_v33, 1  ;;  %v734_v10 = vrot.slane %v626_v43, 1  ;;  %v976_v46 = vrot.slane %v869_v42, 2 }
 0x142   : > { %v977_v8 = vrot.slane %v870_v48, 2  ;;  %v1109_v9 = vmul.f32 %v6454_v56, %v6093_v16  ;;  %v2211_v7 = vpack.c.bf16 %v2184_v53, %v2183_v31  ;;  %v979_v26 = vrot.slane %v871_v4, 2 }
 0x143   : > { %v733_v22 = vsel %vm705_vm0, %v731_v54, %v732_v1  ;;  %v1110_v49 = vmul.f32 %v6456_v57, %v6093_v16  ;;  %v735_v5 = vsel %vm705_vm0, %v732_v1, %v734_v10  ;;  %v1182_v6 = vmul.f32 %v6454_v56, %v6091_v15 }
 0x144   : > { %v828_v0 = vadd.f32 %v733_v22, %v551_v28  ;;  %v978_v40 = vsel %vm950_vm1, %v976_v46, %v977_v8  ;;  %5272 = vmatprep.mubr.msk.bf16.mxu0 %vm4035_vm2, %v2211_v7  ;;  %v829_v41 = vadd.f32 %v735_v5, %v552_v47  ;;  %v980_v34 = vsel %vm950_vm1, %v977_v8, %v979_v26 }
 0x145   : > { %v1183_v30 = vmul.f32 %v6456_v57, %v6091_v15  ;;  %v1184_v21 = vmul.f32 %v6091_v15, %v6458_v58  ;;  %v1288_v31 = vrot.slane %v1182_v6, 1  ;;  %v1426_v28 = vmul.f32 %v6454_v56, %v6095_v17 }
 0x146   : > { %v1073_v33 = vadd.f32 %v978_v40, %v828_v0  ;;  %v1427_v43 = vmul.f32 %v6456_v57, %v6095_v17  ;;  %v1074_v42 = vadd.f32 %v980_v34, %v829_v41  ;;  %v1428_v47 = vmul.f32 %v6095_v17, %v6458_v58 }
 0x147   : > { %v1289_v48 = vrot.slane %v1183_v30, 1  ;;  %v1291_v53 = vrot.slane %v1184_v21, 1  ;;  %v1532_v1 = vrot.slane %v1426_v28, 2  ;;  %v6568_v10 = vmul.f32 %v6100_v20, %v6519_v23 }
 0x148   : > { %v1141_v54 = vadd.f32 %v1109_v9, %v1073_v33  ;;  %v1533_v4 = vrot.slane %v1427_v43, 2  ;;  %v1142_v46 = vadd.f32 %v1110_v49, %v1074_v42  ;;  %v1535_v22 = vrot.slane %v1428_v47, 2 }
 0x149   : > { %v1290_v8 = vsel %vm705_vm0, %v1288_v31, %v1289_v48  ;;  %v1292_v7 = vsel %vm705_vm0, %v1289_v48, %v1291_v53  ;;  %v6575_v0 = vmul.f32 %v6100_v20, %v6523_v2  ;;  %v6579_v9 = vmul.f32 %v6098_v19, %v6519_v23 }
 0x14a   : > { %v1385_v26 = vadd.f32 %v1290_v8, %v1141_v54  ;;  %v1534_v5 = vsel %vm950_vm1, %v1532_v1, %v1533_v4  ;;  %v6581_v40 = vadd.f32 %v1292_v7, %v1142_v46  ;;  %v6584_v49 = vsel %vm950_vm1, %v1533_v4, %v1535_v22 }
 0x14b   : > { %8862 = vst [vmem:[#allocation40_spill] sm:$0xff] %v6579_v9  ;;  %v6588_v6 = vmul.f32 %v6098_v19, %v6523_v2  ;;  %v6592_v41 = vmul.f32 %v6098_v19, %v6525_v3  ;;  %v6603_v31 = vmul.f32 %v6163_v13, %v6519_v23  ;;  %v6607_v28 = vmul.f32 %v6163_v13, %v6523_v2 }
 0x14c   : > { %v6598_v21 = vadd.f32 %v1534_v5, %v1385_v26  ;;  %v8864_v17 = vunpack.c.l.bf16 %v6259_v25 }
 0x14d   : > { %8863 = vst [vmem:[#allocation41_spill] sm:$0xff] %v6607_v28 }
 0x14e   : > { %v6594_v34 = vpop.permute.xlu0 %2404  ;;  %v6596_v30 = vpop.permute.xlu1 %2336 }
 0x14f   : > { %v2339_v43 = vmul.f32 %v6256_v24, %v6596_v30  ;;  %v2340_v42 = vmul.f32 %v6263_v27, %v6596_v30  ;;  %v2407_v48 = vmul.f32 %v6256_v24, %v6594_v34  ;;  %v2408_v53 = vmul.f32 %v6263_v27, %v6594_v34 }
 0x150   : > { %v2409_v47 = vmul.f32 %v6594_v34, %v8785_v50  ;;  %v6622_v13 = vmul.f32 %v6596_v30, %v6275_v44  ;;  %v6626_v54 = vmul.f32 %v6596_v30, %v6277_v45  ;;  %v2410_v1 = vmul.f32 %v6594_v34, %v6275_v44 }
 0x151   : > { %v2503_v4 = vrot.slane %v2407_v48, 1  ;;  %v2504_v46 = vrot.slane %v2408_v53, 1  ;;  %v2411_v8 = vmul.f32 %v6594_v34, %v6277_v45  ;;  %v2412_v7 = vmul.f32 %v6594_v34, %v6283_v51 }
 0x152   : > { %v6634_v22 = vpop.permute.xlu0 %2648  ;;  %v6636_v26 = vpop.permute.xlu1 %2960  ;;  %v2506_v5 = vrot.slane %v2409_v47, 1  ;;  %v2508_v33 = vrot.slane %v2410_v1, 1  ;;  %v6640_v50 = vmul.f32 %v6268_v35, %v6596_v30  ;;  %v6644_v48 = vmul.f32 %v6270_v36, %v6596_v30 }
 0x153   : > { %v2505_v53 = vsel %vm705_vm0, %v2503_v4, %v2504_v46  ;;  %v2651_v19 = vmul.f32 %v6256_v24, %v6634_v22  ;;  %v2652_v20 = vmul.f32 %v6263_v27, %v6634_v22  ;;  %v2653_v47 = vmul.f32 %v6634_v22, %v8864_v17 }
 0x154   : > { %v2507_v1 = vsel %vm705_vm0, %v2504_v46, %v2506_v5  ;;  %v2615_v15 = vadd.f32 %v2505_v53, %v2339_v43  ;;  %v2963_v2 = vmul.f32 %v6636_v26, %v6275_v44  ;;  %v2964_v16 = vmul.f32 %v6636_v26, %v6277_v45 }
 0x155   : > { %v2616_v4 = vadd.f32 %v2507_v1, %v2340_v42  ;;  %v2747_v23 = vrot.slane %v2651_v19, 2  ;;  %v2748_v14 = vrot.slane %v2652_v20, 2  ;;  %v2750_v24 = vrot.slane %v2653_v47, 2 }
 0x156   : > { %v6659_v58 = vpop.permute.xlu0 %2892  ;;  %v6661_v27 = vpop.permute.xlu1 %3204  ;;  %v2965_v17 = vmul.f32 %v6636_v26, %v6283_v51  ;;  %v3059_v25 = vrot.slane %v2963_v2, 1  ;;  %v3060_v46 = vrot.slane %v2964_v16, 1  ;;  %v2509_v43 = vrot.slane %v2411_v8, 1 }
 0x157   : > { %v2749_v5 = vsel %vm950_vm1, %v2747_v23, %v2748_v14  ;;  %v2751_v53 = vsel %vm950_vm1, %v2748_v14, %v2750_v24  ;;  %v2895_v42 = vmul.f32 %v6659_v58, %v6275_v44  ;;  %v2896_v19 = vmul.f32 %v6659_v58, %v6277_v45 }
 0x158   : > { %v2859_v20 = vadd.f32 %v2749_v5, %v2615_v15  ;;  %v2860_v47 = vadd.f32 %v2751_v53, %v2616_v4  ;;  %v3061_v1 = vsel %vm705_vm0, %v3059_v25, %v3060_v46  ;;  %v3062_v11 = vrot.slane %v2965_v17, 1 }
 0x159   : > { %v3207_v2 = vmul.f32 %v6661_v27, %v6275_v44  ;;  %v3208_v16 = vmul.f32 %v6661_v27, %v6277_v45  ;;  %v3209_v14 = vmul.f32 %v6661_v27, %v6283_v51  ;;  %v2510_v23 = vsel %vm705_vm0, %v2508_v33, %v2509_v43 }
 0x15a   : > { %v6679_v8 = vpop.permute.xlu0 %3516  ;;  %v6681_v24 = vpop.permute.xlu1 %3448  ;;  %v2927_v15 = vadd.f32 %v2895_v42, %v2859_v20  ;;  %v2928_v4 = vadd.f32 %v2896_v19, %v2860_v47  ;;  %v3063_v25 = vsel %vm705_vm0, %v3060_v46, %v3062_v11  ;;  %v2511_v17 = vrot.slane %v2412_v7, 1 }
 0x15b   : > { %v3303_v5 = vrot.slane %v3207_v2, 2  ;;  %v3304_v53 = vrot.slane %v3208_v16, 2  ;;  %v3306_v57 = vrot.slane %v3209_v14, 2  ;;  %v3451_v56 = vmul.f32 %v6268_v35, %v6681_v24 }
 0x15c   : > { %v3171_v12 = vadd.f32 %v3061_v1, %v2927_v15  ;;  %v3172_v28 = vadd.f32 %v3063_v25, %v2928_v4  ;;  %v3452_v33 = vmul.f32 %v6270_v36, %v6681_v24  ;;  %v3519_v9 = vmul.f32 %v6268_v35, %v6679_v8 }
 0x15d   : > { %v3305_v42 = vsel %vm950_vm1, %v3303_v5, %v3304_v53  ;;  %v3307_v19 = vsel %vm950_vm1, %v3304_v53, %v3306_v57  ;;  %v3520_v11 = vmul.f32 %v6270_v36, %v6679_v8  ;;  %v3521_v7 = vmul.f32 %v6679_v8, %v6285_v52 }
 0x15e   : > { %v6696_v46 = vpop.permute.xlu0 %3760  ;;  %v3415_v20 = vadd.f32 %v3305_v42, %v3171_v12  ;;  %v3416_v47 = vadd.f32 %v3307_v19, %v3172_v28  ;;  %v3615_v1 = vrot.slane %v3519_v9, 1  ;;  %v2512_v2 = vsel %vm705_vm0, %v2509_v43, %v2511_v17 }
 0x15f   : > { %v3616_v16 = vrot.slane %v3520_v11, 1  ;;  %v3618_v14 = vrot.slane %v3521_v7, 1  ;;  %v3763_v15 = vmul.f32 %v6268_v35, %v6696_v46  ;;  %v3764_v57 = vmul.f32 %v6270_v36, %v6696_v46 }
 0x160   : > { %v3483_v4 = vadd.f32 %v3451_v56, %v3415_v20  ;;  %v3484_v25 = vadd.f32 %v3452_v33, %v3416_v47  ;;  %v3765_v5 = vmul.f32 %v6696_v46, %v6285_v52  ;;  %v2617_v53 = vadd.f32 %v2510_v23, %v6622_v13 }
 0x161   : > { %v3617_v12 = vsel %vm705_vm0, %v3615_v1, %v3616_v16  ;;  %v3619_v9 = vsel %vm705_vm0, %v3616_v16, %v3618_v14  ;;  %v3859_v28 = vrot.slane %v3763_v15, 2  ;;  %v3860_v43 = vrot.slane %v3764_v57, 2 }
 0x162   : > { %v3727_v17 = vadd.f32 %v3617_v12, %v3483_v4  ;;  %v3728_v42 = vadd.f32 %v3619_v9, %v3484_v25  ;;  %v3862_v19 = vrot.slane %v3765_v5, 2  ;;  %v2618_v11 = vadd.f32 %v2512_v2, %v6626_v54 }
 0x163   : > { %v3861_v7 = vsel %vm950_vm1, %v3859_v28, %v3860_v43  ;;  %v2654_v56 = vmul.f32 %v6634_v22, %v6275_v44  ;;  %v2655_v33 = vmul.f32 %v6634_v22, %v6277_v45  ;;  %v2656_v13 = vmul.f32 %v6634_v22, %v6283_v51 }
 0x164   : > { %v3863_v23 = vsel %vm950_vm1, %v3860_v43, %v3862_v19  ;;  %v3971_v20 = vadd.f32 %v3861_v7, %v3727_v17  ;;  %v2897_v47 = vmul.f32 %v6268_v35, %v6659_v58  ;;  %v2898_v54 = vmul.f32 %v6270_v36, %v6659_v58 }
 0x165   : > { %v3972_v1 = vadd.f32 %v3863_v23, %v3728_v42  ;;  %v2752_v2 = vrot.slane %v2654_v56, 2  ;;  %v2753_v16 = vrot.slane %v2655_v33, 2  ;;  %v2755_v14 = vrot.slane %v2656_v13, 2 }
 0x166   : > { %v2966_v44 = vmul.f32 %v6268_v35, %v6636_v26  ;;  %v2967_v45 = vmul.f32 %v6270_v36, %v6636_v26  ;;  %v2968_v51 = vmul.f32 %v6636_v26, %v6285_v52  ;;  %v3210_v15 = vmul.f32 %v6268_v35, %v6661_v27 }
 0x167   : > { %v4003_v57 = vpack.c.bf16 %v3972_v1, %v3971_v20  ;;  %v2754_v4 = vsel %vm950_vm1, %v2752_v2, %v2753_v16  ;;  %v2756_v25 = vsel %vm950_vm1, %v2753_v16, %v2755_v14  ;;  %v3211_v5 = vmul.f32 %v6270_v36, %v6661_v27 }
 0x168   : > { %v2861_v12 = vadd.f32 %v2754_v4, %v2617_v53  ;;  %v2862_v9 = vadd.f32 %v2756_v25, %v2618_v11  ;;  %v3064_v28 = vrot.slane %v2966_v44, 1  ;;  %v3065_v43 = vrot.slane %v2967_v45, 1 }
 0x169   : > { %5228 = vmatprep.mubr.msk.bf16.mxu1 %vm4035_vm2, %v4003_v57  ;;  %v3067_v17 = vrot.slane %v2968_v51, 1  ;;  %v3212_v42 = vmul.f32 %v6661_v27, %v6285_v52  ;;  %v3308_v19 = vrot.slane %v3210_v15, 2  ;;  %v3309_v7 = vrot.slane %v3211_v5, 2 }
 0x16a   : > { %v2929_v56 = vadd.f32 %v2897_v47, %v2861_v12  ;;  %v2930_v33 = vadd.f32 %v2898_v54, %v2862_v9  ;;  %v3066_v13 = vsel %vm705_vm0, %v3064_v28, %v3065_v43  ;;  %v3453_v23 = vmul.f32 %v6681_v24, %v6288_v55 }
 0x16b   : > { %v3068_v53 = vsel %vm705_vm0, %v3065_v43, %v3067_v17  ;;  %v3310_v11 = vsel %vm950_vm1, %v3308_v19, %v3309_v7  ;;  %v3311_v20 = vrot.slane %v3212_v42, 2  ;;  %v3454_v1 = vmul.f32 %v6681_v24, %v6290_v59 }
 0x16c   : > { %v3173_v2 = vadd.f32 %v3066_v13, %v2929_v56  ;;  %v3174_v16 = vadd.f32 %v3068_v53, %v2930_v33  ;;  %v3522_v14 = vmul.f32 %v6679_v8, %v6288_v55  ;;  %v3523_v47 = vmul.f32 %v6679_v8, %v6290_v59 }
 0x16d   : > { %v3312_v54 = vsel %vm950_vm1, %v3309_v7, %v3311_v20  ;;  %v3524_v44 = vmul.f32 %v6679_v8, %v6292_v60  ;;  %v3766_v45 = vmul.f32 %v6696_v46, %v6288_v55  ;;  %v3767_v51 = vmul.f32 %v6696_v46, %v6290_v59 }
 0x16e   : > { %v3417_v15 = vadd.f32 %v3310_v11, %v3173_v2  ;;  %v3418_v57 = vadd.f32 %v3312_v54, %v3174_v16  ;;  %v3620_v4 = vrot.slane %v3522_v14, 1  ;;  %v3621_v25 = vrot.slane %v3523_v47, 1 }
 0x16f   : > { %v3623_v5 = vrot.slane %v3524_v44, 1  ;;  %v3768_v12 = vmul.f32 %v6696_v46, %v6292_v60  ;;  %v3864_v9 = vrot.slane %v3766_v45, 2  ;;  %v3865_v28 = vrot.slane %v3767_v51, 2 }
 0x170   : > { %v3485_v43 = vadd.f32 %v3453_v23, %v3417_v15  ;;  %v3486_v17 = vadd.f32 %v3454_v1, %v3418_v57  ;;  %v3622_v42 = vsel %vm705_vm0, %v3620_v4, %v3621_v25  ;;  %v2413_v19 = vmul.f32 %v6268_v35, %v6594_v34 }
 0x171   : > { %v3624_v7 = vsel %vm705_vm0, %v3621_v25, %v3623_v5  ;;  %v3866_v56 = vsel %vm950_vm1, %v3864_v9, %v3865_v28  ;;  %v3867_v33 = vrot.slane %v3768_v12, 2  ;;  %v2414_v13 = vmul.f32 %v6270_v36, %v6594_v34 }
 0x172   : > { %v3729_v53 = vadd.f32 %v3622_v42, %v3485_v43  ;;  %v3730_v11 = vadd.f32 %v3624_v7, %v3486_v17  ;;  %v2415_v20 = vmul.f32 %v6594_v34, %v6285_v52  ;;  %v2513_v23 = vrot.slane %v2413_v19, 1 }
 0x173   : > { %v3868_v1 = vsel %vm950_vm1, %v3865_v28, %v3867_v33  ;;  %v2514_v2 = vrot.slane %v2414_v13, 1  ;;  %v2657_v16 = vmul.f32 %v6268_v35, %v6634_v22  ;;  %v2658_v14 = vmul.f32 %v6270_v36, %v6634_v22 }
 0x174   : > { %v3973_v47 = vadd.f32 %v3866_v56, %v3729_v53  ;;  %v3974_v54 = vadd.f32 %v3868_v1, %v3730_v11  ;;  %v2516_v44 = vrot.slane %v2415_v20, 1  ;;  %v2659_v45 = vmul.f32 %v6634_v22, %v6285_v52 }
 0x175   : > { %v2515_v51 = vsel %vm705_vm0, %v2513_v23, %v2514_v2  ;;  %v2757_v15 = vrot.slane %v2657_v16, 2  ;;  %v2758_v57 = vrot.slane %v2658_v14, 2  ;;  %v2899_v4 = vmul.f32 %v6659_v58, %v6288_v55 }
 0x176   : > { %v4004_v25 = vpack.c.bf16 %v3974_v54, %v3973_v47  ;;  %v2517_v5 = vsel %vm705_vm0, %v2514_v2, %v2516_v44  ;;  %v2619_v35 = vadd.f32 %v2515_v51, %v6640_v50  ;;  %v2760_v12 = vrot.slane %v2659_v45, 2 }
 0x177   : > { %v2620_v36 = vadd.f32 %v2517_v5, %v6644_v48  ;;  %v2759_v9 = vsel %vm950_vm1, %v2757_v15, %v2758_v57  ;;  %v2900_v52 = vmul.f32 %v6659_v58, %v6290_v59  ;;  %v2969_v28 = vmul.f32 %v6636_v26, %v6288_v55 }
 0x178   : > { %5229 = vmatmul.mubr.msk.bf16.vlgmr.msra.gmra.mrb[0].mxu1 %vm4035_vm2, %v4004_v25  ;;  %v2761_v43 = vsel %vm950_vm1, %v2758_v57, %v2760_v12  ;;  %v2863_v17 = vadd.f32 %v2759_v9, %v2619_v35  ;;  %v2970_v42 = vmul.f32 %v6636_v26, %v6290_v59  ;;  %v2971_v50 = vmul.f32 %v6636_v26, %v6292_v60 }
 0x179   : > { %v2864_v48 = vadd.f32 %v2761_v43, %v2620_v36  ;;  %v3069_v19 = vrot.slane %v2969_v28, 1  ;;  %v3213_v7 = vmul.f32 %v6661_v27, %v6288_v55  ;;  %v3214_v56 = vmul.f32 %v6661_v27, %v6290_v59 }
 0x17a   : > { %v2931_v33 = vadd.f32 %v2899_v4, %v2863_v17  ;;  %v3070_v13 = vrot.slane %v2970_v42, 1  ;;  %v3072_v53 = vrot.slane %v2971_v50, 1  ;;  %v3215_v11 = vmul.f32 %v6661_v27, %v6292_v60 }
 0x17b   : > { %v2932_v20 = vadd.f32 %v2900_v52, %v2864_v48  ;;  %v3313_v23 = vrot.slane %v3213_v7, 2  ;;  %v3314_v1 = vrot.slane %v3214_v56, 2  ;;  %v3455_v2 = vmul.f32 %v6294_v61, %v6681_v24 }
 0x17c   : > { %v3071_v16 = vsel %vm705_vm0, %v3069_v19, %v3070_v13  ;;  %v3073_v14 = vsel %vm705_vm0, %v3070_v13, %v3072_v53  ;;  %v3316_v47 = vrot.slane %v3215_v11, 2  ;;  %v3456_v54 = vmul.f32 %v6296_v62, %v6681_v24 }
 0x17d   : > { %v3175_v44 = vadd.f32 %v3071_v16, %v2931_v33  ;;  %v3176_v45 = vadd.f32 %v3073_v14, %v2932_v20  ;;  %v3315_v51 = vsel %vm950_vm1, %v3313_v23, %v3314_v1  ;;  %v3525_v15 = vmul.f32 %v6294_v61, %v6679_v8 }
 0x17e   : > { %v3317_v57 = vsel %vm950_vm1, %v3314_v1, %v3316_v47  ;;  %v3526_v4 = vmul.f32 %v6296_v62, %v6679_v8  ;;  %v3527_v25 = vmul.f32 %v6679_v8, %v6298_v63  ;;  %v3769_v5 = vmul.f32 %v6294_v61, %v6696_v46 }
 0x17f   : > { %v3419_v35 = vadd.f32 %v3315_v51, %v3175_v44  ;;  %v3420_v12 = vadd.f32 %v3317_v57, %v3176_v45  ;;  %v3625_v36 = vrot.slane %v3525_v15, 1  ;;  %v3770_v9 = vmul.f32 %v6296_v62, %v6696_v46 }
 0x180   : > { %v3626_v52 = vrot.slane %v3526_v4, 1  ;;  %v3628_v28 = vrot.slane %v3527_v25, 1  ;;  %v3771_v43 = vmul.f32 %v6696_v46, %v6298_v63  ;;  %v3869_v17 = vrot.slane %v3769_v5, 2 }
 0x181   : > { %v3487_v42 = vadd.f32 %v3455_v2, %v3419_v35  ;;  %v3488_v50 = vadd.f32 %v3456_v54, %v3420_v12  ;;  %v3870_v48 = vrot.slane %v3770_v9, 2  ;;  %v2345_v19 = vmul.f32 %v6596_v30, %v6288_v55 }
 0x182   : > { %v3627_v7 = vsel %vm705_vm0, %v3625_v36, %v3626_v52  ;;  %v3629_v56 = vsel %vm705_vm0, %v3626_v52, %v3628_v28  ;;  %v3872_v33 = vrot.slane %v3771_v43, 2  ;;  %v2346_v13 = vmul.f32 %v6596_v30, %v6290_v59 }
 0x183   : > { %v3731_v53 = vadd.f32 %v3627_v7, %v3487_v42  ;;  %v3732_v11 = vadd.f32 %v3629_v56, %v3488_v50  ;;  %v3871_v20 = vsel %vm950_vm1, %v3869_v17, %v3870_v48  ;;  %v2416_v23 = vmul.f32 %v6594_v34, %v6288_v55 }
 0x184   : > { %v3873_v1 = vsel %vm950_vm1, %v3870_v48, %v3872_v33  ;;  %v2417_v2 = vmul.f32 %v6594_v34, %v6290_v59  ;;  %v2418_v16 = vmul.f32 %v6594_v34, %v6292_v60  ;;  %v2660_v14 = vmul.f32 %v6634_v22, %v6288_v55 }
 0x185   : > { %v3975_v47 = vadd.f32 %v3871_v20, %v3731_v53  ;;  %v3976_v54 = vadd.f32 %v3873_v1, %v3732_v11  ;;  %v2518_v44 = vrot.slane %v2416_v23, 1  ;;  %v2661_v45 = vmul.f32 %v6634_v22, %v6290_v59 }
 0x186   : > { %v2519_v51 = vrot.slane %v2417_v2, 1  ;;  %v2521_v15 = vrot.slane %v2418_v16, 1  ;;  %v2662_v57 = vmul.f32 %v6634_v22, %v6292_v60  ;;  %v2762_v4 = vrot.slane %v2660_v14, 2 }
 0x187   : > { %v4005_v25 = vpack.c.bf16 %v3976_v54, %v3975_v47  ;;  %v2763_v5 = vrot.slane %v2661_v45, 2  ;;  %v2901_v35 = vmul.f32 %v6294_v61, %v6659_v58  ;;  %v2902_v55 = vmul.f32 %v6296_v62, %v6659_v58 }
 0x188   : > { %v2520_v12 = vsel %vm705_vm0, %v2518_v44, %v2519_v51  ;;  %v2522_v36 = vsel %vm705_vm0, %v2519_v51, %v2521_v15  ;;  %v2765_v9 = vrot.slane %v2662_v57, 2  ;;  %v2972_v59 = vmul.f32 %v6294_v61, %v6636_v26 }
 0x189   : > { %5232 = vmatprep.mubr.msk.bf16.mxu1 %vm4035_vm2, %v4005_v25  ;;  %v2621_v60 = vadd.f32 %v2520_v12, %v2345_v19  ;;  %v2622_v52 = vadd.f32 %v2522_v36, %v2346_v13  ;;  %v2764_v28 = vsel %vm950_vm1, %v2762_v4, %v2763_v5  ;;  %v2973_v43 = vmul.f32 %v6296_v62, %v6636_v26 }
 0x18a   : > { %v2766_v17 = vsel %vm950_vm1, %v2763_v5, %v2765_v9  ;;  %v2974_v42 = vmul.f32 %v6636_v26, %v6298_v63  ;;  %v3074_v50 = vrot.slane %v2972_v59, 1  ;;  %v3216_v48 = vmul.f32 %v6294_v61, %v6661_v27 }
 0x18b   : > { %v2865_v7 = vadd.f32 %v2764_v28, %v2621_v60  ;;  %v2866_v56 = vadd.f32 %v2766_v17, %v2622_v52  ;;  %v3075_v33 = vrot.slane %v2973_v43, 1  ;;  %v3217_v19 = vmul.f32 %v6296_v62, %v6661_v27 }
 0x18c   : > { %v3077_v13 = vrot.slane %v2974_v42, 1  ;;  %v3218_v53 = vmul.f32 %v6661_v27, %v6298_v63  ;;  %v3318_v11 = vrot.slane %v3216_v48, 2  ;;  %v3457_v20 = vmul.f32 %v6681_v24, %v6434_v18 }
 0x18d   : > { %v2933_v23 = vadd.f32 %v2901_v35, %v2865_v7  ;;  %v2934_v1 = vadd.f32 %v2902_v55, %v2866_v56  ;;  %v3076_v2 = vsel %vm705_vm0, %v3074_v50, %v3075_v33  ;;  %v3319_v16 = vrot.slane %v3217_v19, 2 }
 0x18e   : > { %v3078_v14 = vsel %vm705_vm0, %v3075_v33, %v3077_v13  ;;  %v3321_v47 = vrot.slane %v3218_v53, 2  ;;  %v3458_v54 = vmul.f32 %v6681_v24, %v6441_v29  ;;  %v3528_v44 = vmul.f32 %v6679_v8, %v6434_v18 }
 0x18f   : > { %v3177_v45 = vadd.f32 %v3076_v2, %v2933_v23  ;;  %v3178_v51 = vadd.f32 %v3078_v14, %v2934_v1  ;;  %v3320_v15 = vsel %vm950_vm1, %v3318_v11, %v3319_v16  ;;  %v3529_v57 = vmul.f32 %v6679_v8, %v6441_v29 }
 0x190   : > { %v3322_v4 = vsel %vm950_vm1, %v3319_v16, %v3321_v47  ;;  %v3530_v25 = vmul.f32 %v6679_v8, %v6443_v39  ;;  %v3630_v5 = vrot.slane %v3528_v44, 1  ;;  %v3772_v35 = vmul.f32 %v6696_v46, %v6434_v18 }
 0x191   : > { %v3421_v55 = vadd.f32 %v3320_v15, %v3177_v45  ;;  %v3422_v12 = vadd.f32 %v3322_v4, %v3178_v51  ;;  %v3631_v36 = vrot.slane %v3529_v57, 1  ;;  %v3773_v9 = vmul.f32 %v6696_v46, %v6441_v29 }
 0x192   : > { %v3633_v59 = vrot.slane %v3530_v25, 1  ;;  %v3774_v60 = vmul.f32 %v6696_v46, %v6443_v39  ;;  %v3874_v52 = vrot.slane %v3772_v35, 2  ;;  %v2347_v28 = vmul.f32 %v6294_v61, %v6596_v30 }
 0x193   : > { %v3489_v43 = vadd.f32 %v3457_v20, %v3421_v55  ;;  %v3490_v17 = vadd.f32 %v3458_v54, %v3422_v12  ;;  %v3632_v42 = vsel %vm705_vm0, %v3630_v5, %v3631_v36  ;;  %v3875_v50 = vrot.slane %v3773_v9, 2 }
 0x194   : > { %v3634_v48 = vsel %vm705_vm0, %v3631_v36, %v3633_v59  ;;  %v3877_v7 = vrot.slane %v3774_v60, 2  ;;  %v2348_v56 = vmul.f32 %v6296_v62, %v6596_v30  ;;  %v2419_v33 = vmul.f32 %v6294_v61, %v6594_v34 }
 0x195   : > { %v3733_v19 = vadd.f32 %v3632_v42, %v3489_v43  ;;  %v3734_v13 = vadd.f32 %v3634_v48, %v3490_v17  ;;  %v3876_v53 = vsel %vm950_vm1, %v3874_v52, %v3875_v50  ;;  %v2420_v11 = vmul.f32 %v6296_v62, %v6594_v34 }
 0x196   : > { %v3878_v20 = vsel %vm950_vm1, %v3875_v50, %v3877_v7  ;;  %v2421_v23 = vmul.f32 %v6594_v34, %v6298_v63  ;;  %v2523_v1 = vrot.slane %v2419_v33, 1  ;;  %v2663_v2 = vmul.f32 %v6294_v61, %v6634_v22 }
 0x197   : > { %v3977_v16 = vadd.f32 %v3876_v53, %v3733_v19  ;;  %v3978_v14 = vadd.f32 %v3878_v20, %v3734_v13  ;;  %v2524_v47 = vrot.slane %v2420_v11, 1  ;;  %v2664_v54 = vmul.f32 %v6296_v62, %v6634_v22 }
 0x198   : > { %v2526_v44 = vrot.slane %v2421_v23, 1  ;;  %v2665_v45 = vmul.f32 %v6634_v22, %v6298_v63  ;;  %v2767_v51 = vrot.slane %v2663_v2, 2  ;;  %v2903_v15 = vmul.f32 %v6659_v58, %v6434_v18 }
 0x199   : > { %v4006_v57 = vpack.c.bf16 %v3978_v14, %v3977_v16  ;;  %v2525_v4 = vsel %vm705_vm0, %v2523_v1, %v2524_v47  ;;  %v2768_v25 = vrot.slane %v2664_v54, 2  ;;  %v2904_v61 = vmul.f32 %v6659_v58, %v6441_v29 }
 0x19a   : > { %v2527_v5 = vsel %vm705_vm0, %v2524_v47, %v2526_v44  ;;  %v2623_v35 = vadd.f32 %v2525_v4, %v2347_v28  ;;  %v2770_v55 = vrot.slane %v2665_v45, 2  ;;  %v2975_v62 = vmul.f32 %v6636_v26, %v6434_v18 }
 0x19b   : > { %5233 = vmatmul.mubr.msk.bf16.gmra.mrb[4].mxu1 %vm4035_vm2, %v4006_v57  ;;  %v2624_v63 = vadd.f32 %v2527_v5, %v2348_v56  ;;  %v2769_v12 = vsel %vm950_vm1, %v2767_v51, %v2768_v25  ;;  %v2976_v36 = vmul.f32 %v6636_v26, %v6441_v29  ;;  %v2977_v9 = vmul.f32 %v6636_v26, %v6443_v39 }
 0x19c   : > { %v2771_v59 = vsel %vm950_vm1, %v2768_v25, %v2770_v55  ;;  %v2867_v60 = vadd.f32 %v2769_v12, %v2623_v35  ;;  %v3079_v52 = vrot.slane %v2975_v62, 1  ;;  %v3219_v28 = vmul.f32 %v6661_v27, %v6434_v18 }
 0x19d   : > { %v2868_v43 = vadd.f32 %v2771_v59, %v2624_v63  ;;  %v3080_v17 = vrot.slane %v2976_v36, 1  ;;  %v3082_v42 = vrot.slane %v2977_v9, 1  ;;  %v3220_v50 = vmul.f32 %v6661_v27, %v6441_v29 }
 0x19e   : > { %v2935_v48 = vadd.f32 %v2903_v15, %v2867_v60  ;;  %v3221_v7 = vmul.f32 %v6661_v27, %v6443_v39  ;;  %v3323_v56 = vrot.slane %v3219_v28, 2  ;;  %v3459_v33 = vmul.f32 %v6448_v32, %v6681_v24 }
 0x19f   : > { %v2936_v19 = vadd.f32 %v2904_v61, %v2868_v43  ;;  %v3081_v13 = vsel %vm705_vm0, %v3079_v52, %v3080_v17  ;;  %v3083_v53 = vsel %vm705_vm0, %v3080_v17, %v3082_v42  ;;  %v3324_v11 = vrot.slane %v3220_v50, 2  ;;  %v2248_v42 = vld [vmem:[%s6063_s23 + $0x54] sm:$0xff]  }
 0x1a0   : > { %v3179_v20 = vadd.f32 %v3081_v13, %v2935_v48  ;;  %v3326_v23 = vrot.slane %v3221_v7, 2  ;;  %v3460_v1 = vmul.f32 %v6450_v37, %v6681_v24  ;;  %v3531_v2 = vmul.f32 %v6448_v32, %v6679_v8  ;;  %v6950_v7 = vld [vmem:[%s6070_s17 + $0x8] ss:$0 sm:$0xff] }
 0x1a1   : > { %v3180_v16 = vadd.f32 %v3083_v53, %v2936_v19  ;;  %v3325_v14 = vsel %vm950_vm1, %v3323_v56, %v3324_v11  ;;  %v3532_v47 = vmul.f32 %v6450_v37, %v6679_v8  ;;  %v3533_v54 = vmul.f32 %v6679_v8, %v6452_v38 }
 0x1a2   : > { %v3327_v44 = vsel %vm950_vm1, %v3324_v11, %v3326_v23  ;;  %v3423_v45 = vadd.f32 %v3325_v14, %v3179_v20  ;;  %v3635_v51 = vrot.slane %v3531_v2, 1  ;;  %v3775_v15 = vmul.f32 %v6448_v32, %v6696_v46 }
 0x1a3   : > { %v3424_v57 = vadd.f32 %v3327_v44, %v3180_v16  ;;  %v3636_v4 = vrot.slane %v3532_v47, 1  ;;  %v3638_v25 = vrot.slane %v3533_v54, 1  ;;  %v3776_v61 = vmul.f32 %v6450_v37, %v6696_v46 }
 0x1a4   : > { %v3491_v5 = vadd.f32 %v3459_v33, %v3423_v45  ;;  %v3777_v35 = vmul.f32 %v6696_v46, %v6452_v38  ;;  %v3879_v55 = vrot.slane %v3775_v15, 2  ;;  %v1630_v62 = vadd.f32 %v6584_v49, %v6581_v40  ;;  %v8865_v33 = vld [vmem:[#allocation40_spill] sm:$0xff] }
 0x1a5   : > { %v3492_v63 = vadd.f32 %v3460_v1, %v3424_v57  ;;  %v3637_v12 = vsel %vm705_vm0, %v3635_v51, %v3636_v4  ;;  %v3639_v36 = vsel %vm705_vm0, %v3636_v4, %v3638_v25  ;;  %v3880_v9 = vrot.slane %v3776_v61, 2 }
 0x1a6   : > { %v3735_v59 = vadd.f32 %v3637_v12, %v3491_v5  ;;  %v3882_v60 = vrot.slane %v3777_v35, 2  ;;  %v1697_v52 = vadd.f32 %v6568_v10, %v6598_v21  ;;  %v1698_v28 = vadd.f32 %v6575_v0, %v1630_v62  ;;  %v2250_v21 = vld [vmem:[%s6063_s23 + $0x5c] sm:$0x1] }
 0x1a7   : > { %v3736_v43 = vadd.f32 %v3639_v36, %v3492_v63  ;;  %v3881_v17 = vsel %vm950_vm1, %v3879_v55, %v3880_v9  ;;  %v1845_v40 = vrot.slane %v6588_v6, 1  ;;  %v1847_v49 = vrot.slane %v6592_v41, 1  ;;  %v8867_v41 = vld [vmem:[#allocation41_spill] sm:$0xff] }
 0x1a8   : > { %v3883_v50 = vsel %vm950_vm1, %v3880_v9, %v3882_v60  ;;  %v3979_v48 = vadd.f32 %v3881_v17, %v3735_v59  ;;  %v1984_v56 = vmul.f32 %v6950_v7, %v6525_v3  ;;  %v2088_v10 = vrot.slane %v6603_v31, 2 }
 0x1a9   : > { %v3980_v0 = vadd.f32 %v3883_v50, %v3736_v43  ;;  %v8866_v19 = vrot.slane %v8865_v33, 1  ;;  %v1848_v6 = vsel %vm705_vm0, %v1845_v40, %v1847_v49  ;;  %v2089_v53 = vrot.slane %v8867_v41, 2 }
 0x1aa   : > { %v1942_v20 = vadd.f32 %v1848_v6, %v1698_v28  ;;  %v2091_v23 = vrot.slane %v1984_v56, 2  ;;  %v6961_v1 = vunpack.c.l.bf16 %v2248_v42  ;;  %v6964_v14 = vunpack.c.h.bf16 %v2248_v42 }
 0x1ab   : > { %v1846_v13 = vsel %vm705_vm0, %v8866_v19, %v1845_v40  ;;  %v4007_v2 = vpack.c.bf16 %v3980_v0, %v3979_v48  ;;  %v2090_v16 = vsel %vm950_vm1, %v2088_v10, %v2089_v53  ;;  %v6966_v31 = vunpack.c.l.bf16 %v2250_v21 }
 0x1ac   : > { %v1941_v11 = vadd.f32 %v1846_v13, %v1697_v52  ;;  %v2092_v47 = vsel %vm950_vm1, %v2089_v53, %v2091_v23  ;;  %v2349_v44 = vmul.f32 %v6596_v30, %v6434_v18  ;;  %v2350_v45 = vmul.f32 %v6596_v30, %v6441_v29 }
 0x1ad   : > { %5236 = vmatprep.mubr.msk.bf16.mxu1 %vm4035_vm2, %v4007_v2  ;;  %v2186_v51 = vadd.f32 %v2092_v47, %v1942_v20  ;;  %v2422_v15 = vmul.f32 %v6594_v34, %v6434_v18  ;;  %v2423_v57 = vmul.f32 %v6594_v34, %v6441_v29  ;;  %v2424_v4 = vmul.f32 %v6594_v34, %v6443_v39 }
 0x1ae   : > { %v2185_v54 = vadd.f32 %v2090_v16, %v1941_v11  ;;  %v2666_v25 = vmul.f32 %v6634_v22, %v6434_v18  ;;  %v2667_v61 = vmul.f32 %v6634_v22, %v6441_v29  ;;  %v2668_v5 = vmul.f32 %v6634_v22, %v6443_v39 }
 0x1af   : > { %v2905_v35 = vmul.f32 %v6448_v32, %v6659_v58  ;;  %v2528_v62 = vrot.slane %v2422_v15, 1  ;;  %v2529_v63 = vrot.slane %v2423_v57, 1  ;;  %v2531_v12 = vrot.slane %v2424_v4, 1  ;;  %v5183_v15 = vld [vmem:[%s6063_s23 + $0x60] sm:$0xff]  }
 0x1b0   : > { %v2212_v55 = vpack.c.bf16 %v2186_v51, %v2185_v54  ;;  %v2772_v36 = vrot.slane %v2666_v25, 2  ;;  %v2773_v9 = vrot.slane %v2667_v61, 2  ;;  %v2775_v59 = vrot.slane %v2668_v5, 2 }
 0x1b1   : > { %v2906_v60 = vmul.f32 %v6450_v37, %v6659_v58  ;;  %v2530_v18 = vsel %vm705_vm0, %v2528_v62, %v2529_v63  ;;  %v2532_v29 = vsel %vm705_vm0, %v2529_v63, %v2531_v12  ;;  %v2978_v39 = vmul.f32 %v6448_v32, %v6636_v26  ;;  %v2253_v63 = vld [vmem:[%s6063_s23 + $0x68] sm:$0x1] }
 0x1b2   : > { %5273 = vmatmul.mubr.msk.bf16.gmra.mrb[8].mxu0 %vm4035_vm2, %v2212_v55  ;;  %v2979_v52 = vmul.f32 %v6450_v37, %v6636_v26  ;;  %v2625_v28 = vadd.f32 %v2530_v18, %v2349_v44  ;;  %v2626_v43 = vadd.f32 %v2532_v29, %v2350_v45  ;;  %v2774_v17 = vsel %vm950_vm1, %v2772_v36, %v2773_v9 }
 0x1b3   : > { %v2776_v40 = vsel %vm950_vm1, %v2773_v9, %v2775_v59  ;;  %v2980_v49 = vmul.f32 %v6636_v26, %v6452_v38  ;;  %v3084_v42 = vrot.slane %v2978_v39, 1  ;;  %v3222_v48 = vmul.f32 %v6448_v32, %v6661_v27 }
 0x1b4   : > { %v3085_v50 = vrot.slane %v2979_v52, 1  ;;  %v2869_v56 = vadd.f32 %v2774_v17, %v2625_v28  ;;  %v2870_v10 = vadd.f32 %v2776_v40, %v2626_v43  ;;  %v3223_v21 = vmul.f32 %v6450_v37, %v6661_v27 }
 0x1b5   : > { %v3224_v0 = vmul.f32 %v6661_v27, %v6452_v38  ;;  %v3087_v19 = vrot.slane %v2980_v49, 1  ;;  %v3328_v13 = vrot.slane %v3222_v48, 2  ;;  %v3461_v6 = vmul.f32 %v6681_v24, %v6961_v1 }
 0x1b6   : > { %v3086_v33 = vsel %vm705_vm0, %v3084_v42, %v3085_v50  ;;  %v2937_v41 = vadd.f32 %v2905_v35, %v2869_v56  ;;  %v2938_v53 = vadd.f32 %v2906_v60, %v2870_v10  ;;  %v3329_v11 = vrot.slane %v3223_v21, 2 }
 0x1b7   : > { %v3331_v20 = vrot.slane %v3224_v0, 2  ;;  %v3088_v23 = vsel %vm705_vm0, %v3085_v50, %v3087_v19  ;;  %v3462_v2 = vmul.f32 %v6681_v24, %v6964_v14  ;;  %v3534_v16 = vmul.f32 %v6679_v8, %v6961_v1 }
 0x1b8   : > { %v3535_v47 = vmul.f32 %v6679_v8, %v6964_v14  ;;  %v3181_v54 = vadd.f32 %v3086_v33, %v2937_v41  ;;  %v3182_v44 = vadd.f32 %v3088_v23, %v2938_v53  ;;  %v3330_v45 = vsel %vm950_vm1, %v3328_v13, %v3329_v11 }
 0x1b9   : > { %v3332_v51 = vsel %vm950_vm1, %v3329_v11, %v3331_v20  ;;  %v3536_v57 = vmul.f32 %v6679_v8, %v6966_v31  ;;  %v3640_v4 = vrot.slane %v3534_v16, 1  ;;  %v3778_v61 = vmul.f32 %v6696_v46, %v6961_v1 }
 0x1ba   : > { %v3641_v25 = vrot.slane %v3535_v47, 1  ;;  %v3425_v5 = vadd.f32 %v3330_v45, %v3181_v54  ;;  %v3426_v35 = vadd.f32 %v3332_v51, %v3182_v44  ;;  %v3779_v55 = vmul.f32 %v6696_v46, %v6964_v14 }
 0x1bb   : > { %v3780_v62 = vmul.f32 %v6696_v46, %v6966_v31  ;;  %v3643_v36 = vrot.slane %v3536_v57, 1  ;;  %v3884_v9 = vrot.slane %v3778_v61, 2  ;;  %v7030_v59 = vunpack.c.l.bf16 %v5183_v15 }
 0x1bc   : > { %v3642_v12 = vsel %vm705_vm0, %v3640_v4, %v3641_v25  ;;  %v3493_v60 = vadd.f32 %v3461_v6, %v3425_v5  ;;  %v3494_v18 = vadd.f32 %v3462_v2, %v3426_v35  ;;  %v3885_v29 = vrot.slane %v3779_v55, 2 }
 0x1bd   : > { %v3887_v39 = vrot.slane %v3780_v62, 2  ;;  %v3644_v52 = vsel %vm705_vm0, %v3641_v25, %v3643_v36  ;;  %v7033_v28 = vunpack.c.h.bf16 %v5183_v15  ;;  %v7035_v43 = vunpack.c.l.bf16 %v2253_v63 }
 0x1be   : > { %v2351_v17 = vmul.f32 %v6448_v32, %v6596_v30  ;;  %v3737_v40 = vadd.f32 %v3642_v12, %v3493_v60  ;;  %v3738_v49 = vadd.f32 %v3644_v52, %v3494_v18  ;;  %v3886_v42 = vsel %vm950_vm1, %v3884_v9, %v3885_v29 }
 0x1bf   : > { %v3888_v50 = vsel %vm950_vm1, %v3885_v29, %v3887_v39  ;;  %v2352_v48 = vmul.f32 %v6450_v37, %v6596_v30  ;;  %v2425_v56 = vmul.f32 %v6448_v32, %v6594_v34  ;;  %v2426_v10 = vmul.f32 %v6450_v37, %v6594_v34 }
 0x1c0   : > { %v2427_v21 = vmul.f32 %v6594_v34, %v6452_v38  ;;  %v3981_v0 = vadd.f32 %v3886_v42, %v3737_v40  ;;  %v3982_v33 = vadd.f32 %v3888_v50, %v3738_v49  ;;  %v2669_v19 = vmul.f32 %v6448_v32, %v6634_v22 }
 0x1c1   : > { %v2670_v13 = vmul.f32 %v6450_v37, %v6634_v22  ;;  %v2533_v6 = vrot.slane %v2425_v56, 1  ;;  %v2534_v41 = vrot.slane %v2426_v10, 1  ;;  %v2671_v11 = vmul.f32 %v6634_v22, %v6452_v38 }
 0x1c2   : > { %v2536_v53 = vrot.slane %v2427_v21, 1  ;;  %v4008_v20 = vpack.c.bf16 %v3982_v33, %v3981_v0  ;;  %v2777_v23 = vrot.slane %v2669_v19, 2  ;;  %v2907_v16 = vmul.f32 %v6659_v58, %v6961_v1  ;;  %v5175_v33 = vld [vmem:[%s6056_s8 + $0x60] sm:$0xff]  }
 0x1c3   : > { %v2778_v2 = vrot.slane %v2670_v13, 2  ;;  %v2535_v47 = vsel %vm705_vm0, %v2533_v6, %v2534_v41  ;;  %v2780_v32 = vrot.slane %v2671_v11, 2  ;;  %v2908_v37 = vmul.f32 %v6659_v58, %v6964_v14 }
 0x1c4   : > { %v2537_v54 = vsel %vm705_vm0, %v2534_v41, %v2536_v53  ;;  %5237 = vmatmul.mubr.msk.bf16.gmra.mrb[8].mxu1 %vm4035_vm2, %v4008_v20  ;;  %v2627_v44 = vadd.f32 %v2535_v47, %v2351_v17  ;;  %v2981_v51 = vmul.f32 %v6636_v26, %v6961_v1  ;;  %v2982_v57 = vmul.f32 %v6636_v26, %v6964_v14 }
 0x1c5   : > { %v2628_v45 = vadd.f32 %v2537_v54, %v2352_v48  ;;  %v2779_v38 = vsel %vm950_vm1, %v2777_v23, %v2778_v2  ;;  %v2781_v15 = vsel %vm950_vm1, %v2778_v2, %v2780_v32  ;;  %v2983_v4 = vmul.f32 %v6636_v26, %v6966_v31  ;;  %v455_v2 = vld [vmem:[%s6056_s8 + $0x68] sm:$0x1] }
 0x1c6   : > { %v3225_v25 = vmul.f32 %v6661_v27, %v6961_v1  ;;  %v2871_v61 = vadd.f32 %v2779_v38, %v2627_v44  ;;  %v3089_v35 = vrot.slane %v2981_v51, 1  ;;  %v3226_v55 = vmul.f32 %v6661_v27, %v6964_v14 }
 0x1c7   : > { %v2872_v5 = vadd.f32 %v2781_v15, %v2628_v45  ;;  %v3090_v62 = vrot.slane %v2982_v57, 1  ;;  %v3092_v63 = vrot.slane %v2983_v4, 1  ;;  %v3227_v12 = vmul.f32 %v6661_v27, %v6966_v31 }
 0x1c8   : > { %v3333_v36 = vrot.slane %v3225_v25, 2  ;;  %v2939_v9 = vadd.f32 %v2907_v16, %v2871_v61  ;;  %v3334_v18 = vrot.slane %v3226_v55, 2  ;;  %v3463_v29 = vmul.f32 %v7030_v59, %v6681_v24  ;;  %v8868_v61 = vld [vmem:[#allocation28_spill] sm:$0xff] }
 0x1c9   : > { %v2940_v60 = vadd.f32 %v2908_v37, %v2872_v5  ;;  %v3091_v39 = vsel %vm705_vm0, %v3089_v35, %v3090_v62  ;;  %v3093_v52 = vsel %vm705_vm0, %v3090_v62, %v3092_v63  ;;  %v3336_v17 = vrot.slane %v3227_v12, 2  ;;  %v8869_v5 = vld [vmem:[#allocation35_spill] sm:$0xff]  ;;  %v8870_v55 = vld [vmem:[#allocation36_spill] sm:$0xff] }
 0x1ca   : > { %v3464_v40 = vmul.f32 %v7033_v28, %v6681_v24  ;;  %v3183_v49 = vadd.f32 %v3091_v39, %v2939_v9  ;;  %v3335_v50 = vsel %vm950_vm1, %v3333_v36, %v3334_v18  ;;  %v3537_v48 = vmul.f32 %v7030_v59, %v6679_v8  ;;  %v8871_v63 = vld [vmem:[#allocation27_spill] sm:$0xff] }
 0x1cb   : > { %v3184_v42 = vadd.f32 %v3093_v52, %v2940_v60  ;;  %v3337_v56 = vsel %vm950_vm1, %v3334_v18, %v3336_v17  ;;  %v3538_v10 = vmul.f32 %v7033_v28, %v6679_v8  ;;  %v3539_v21 = vmul.f32 %v6679_v8, %v7035_v43  ;;  %v8872_v18 = vld [vmem:[#allocation37_spill] sm:$0xff] }
 0x1cc   : > { %v3781_v0 = vmul.f32 %v7030_v59, %v6696_v46  ;;  %v3427_v19 = vadd.f32 %v3335_v50, %v3183_v49  ;;  %v3645_v6 = vrot.slane %v3537_v48, 1  ;;  %v3782_v41 = vmul.f32 %v7033_v28, %v6696_v46  ;;  %v8873_v52 = vld [vmem:[#allocation29_spill] sm:$0xff] }
 0x1cd   : > { %v3428_v13 = vadd.f32 %v3337_v56, %v3184_v42  ;;  %v3646_v53 = vrot.slane %v3538_v10, 1  ;;  %v3648_v11 = vrot.slane %v3539_v21, 1  ;;  %v3783_v20 = vmul.f32 %v6696_v46, %v7035_v43  ;;  %v8874_v56 = vld [vmem:[#allocation38_spill] sm:$0xff]  ;;  %v8875_v10 = vld [vmem:[#allocation31_spill] sm:$0xff] }
 0x1ce   : > { %v3889_v23 = vrot.slane %v3781_v0, 2  ;;  %v3495_v16 = vadd.f32 %v3463_v29, %v3427_v19  ;;  %v3890_v54 = vrot.slane %v3782_v41, 2  ;;  %v7098_v32 = vunpack.c.l.bf16 %v5175_v33 }
 0x1cf   : > { %v3496_v47 = vadd.f32 %v3464_v40, %v3428_v13  ;;  %v3647_v37 = vsel %vm705_vm0, %v3645_v6, %v3646_v53  ;;  %v3649_v44 = vsel %vm705_vm0, %v3646_v53, %v3648_v11  ;;  %v3892_v45 = vrot.slane %v3783_v20, 2  ;;  %v8876_v13 = vld [vmem:[#allocation39_spill] sm:$0xff]  ;;  %v8877_v11 = vld [vmem:[#allocation30_spill] sm:$0xff] }
 0x1d0   : > { %v7102_v38 = vunpack.c.h.bf16 %v5175_v33  ;;  %v3739_v51 = vadd.f32 %v3647_v37, %v3495_v16  ;;  %v3891_v57 = vsel %vm950_vm1, %v3889_v23, %v3890_v54  ;;  %v7105_v4 = vunpack.c.l.bf16 %v455_v2 }
 0x1d1   : > { %v3740_v15 = vadd.f32 %v3649_v44, %v3496_v47  ;;  %v3893_v25 = vsel %vm950_vm1, %v3890_v54, %v3892_v45  ;;  %v553_v35 = vmul.f32 %v8869_v5, %v8868_v61  ;;  %v554_v62 = vmul.f32 %v8870_v55, %v8868_v61 }
 0x1d2   : > { %v627_v12 = vmul.f32 %v8869_v5, %v8871_v63  ;;  %v3983_v36 = vadd.f32 %v3891_v57, %v3739_v51  ;;  %v628_v60 = vmul.f32 %v8870_v55, %v8871_v63  ;;  %v629_v29 = vmul.f32 %v8871_v63, %v8872_v18  ;;  %v8878_v51 = vld [vmem:[#allocation32_spill] sm:$0xff] }
 0x1d3   : > { %v3984_v9 = vadd.f32 %v3893_v25, %v3740_v15  ;;  %v872_v17 = vmul.f32 %v8869_v5, %v8873_v52  ;;  %v873_v40 = vmul.f32 %v8870_v55, %v8873_v52  ;;  %v874_v49 = vmul.f32 %v8873_v52, %v8872_v18 }
 0x1d4   : > { %v736_v39 = vrot.slane %v627_v12, 1  ;;  %v737_v50 = vrot.slane %v628_v60, 1  ;;  %v739_v48 = vrot.slane %v629_v29, 1  ;;  %v1111_v21 = vmul.f32 %v8875_v10, %v8874_v56 }
 0x1d5   : > { %v4009_v42 = vpack.c.bf16 %v3984_v9, %v3983_v36  ;;  %v981_v0 = vrot.slane %v872_v17, 2  ;;  %v982_v33 = vrot.slane %v873_v40, 2  ;;  %v984_v19 = vrot.slane %v874_v49, 2  ;;  %v8879_v36 = vld [vmem:[#allocation34_spill] sm:$0xff]  ;;  %v8880_v49 = vld [vmem:[#allocation33_spill] sm:$0xff] }
 0x1d6   : > { %v1112_v6 = vmul.f32 %v8875_v10, %v8876_v13  ;;  %v738_v41 = vsel %vm705_vm0, %v736_v39, %v737_v50  ;;  %v740_v53 = vsel %vm705_vm0, %v737_v50, %v739_v48  ;;  %v1185_v20 = vmul.f32 %v8877_v11, %v8874_v56 }
 0x1d7   : > { %5240 = vmatprep.mubr.msk.bf16.mxu1 %vm4035_vm2, %v4009_v42  ;;  %v1186_v23 = vmul.f32 %v8877_v11, %v8876_v13  ;;  %v830_v2 = vadd.f32 %v738_v41, %v553_v35  ;;  %v831_v16 = vadd.f32 %v740_v53, %v554_v62  ;;  %v983_v47 = vsel %vm950_vm1, %v981_v0, %v982_v33 }
 0x1d8   : > { %v985_v54 = vsel %vm950_vm1, %v982_v33, %v984_v19  ;;  %v1187_v37 = vmul.f32 %v8877_v11, %v6525_v3  ;;  %v1293_v44 = vrot.slane %v1185_v20, 1  ;;  %v1429_v15 = vmul.f32 %v8878_v51, %v8874_v56  ;;  %v456_v19 = vld [vmem:[%s6056_s8 + $0x6c] sm:$0xff]  }
 0x1d9   : > { %v1294_v45 = vrot.slane %v1186_v23, 1  ;;  %v1075_v57 = vadd.f32 %v983_v47, %v830_v2  ;;  %v1076_v25 = vadd.f32 %v985_v54, %v831_v16  ;;  %v1430_v5 = vmul.f32 %v8878_v51, %v8876_v13  ;;  %v458_v54 = vld [vmem:[%s6056_s8 + $0x74] sm:$0x1] }
 0x1da   : > { %v1431_v35 = vmul.f32 %v8878_v51, %v6525_v3  ;;  %v1296_v62 = vrot.slane %v1187_v37, 1  ;;  %v1537_v12 = vrot.slane %v1429_v15, 2  ;;  %v1667_v9 = vmul.f32 %v7098_v32, %v8879_v36 }
 0x1db   : > { %v1295_v55 = vsel %vm705_vm0, %v1293_v44, %v1294_v45  ;;  %v1143_v60 = vadd.f32 %v1111_v21, %v1075_v57  ;;  %v1144_v18 = vadd.f32 %v1112_v6, %v1076_v25  ;;  %v1538_v29 = vrot.slane %v1430_v5, 2 }
 0x1dc   : > { %v1540_v39 = vrot.slane %v1431_v35, 2  ;;  %v1297_v17 = vsel %vm705_vm0, %v1294_v45, %v1296_v62  ;;  %v1668_v40 = vmul.f32 %v7102_v38, %v8879_v36  ;;  %v1741_v42 = vmul.f32 %v7098_v32, %v8880_v49 }
 0x1dd   : > { %v1742_v50 = vmul.f32 %v7102_v38, %v8880_v49  ;;  %v1387_v48 = vadd.f32 %v1295_v55, %v1143_v60  ;;  %v1388_v0 = vadd.f32 %v1297_v17, %v1144_v18  ;;  %v1539_v33 = vsel %vm950_vm1, %v1537_v12, %v1538_v29 }
 0x1de   : > { %v1541_v21 = vsel %vm950_vm1, %v1538_v29, %v1540_v39  ;;  %v1743_v6 = vmul.f32 %v8880_v49, %v7105_v4  ;;  %v1849_v41 = vrot.slane %v1741_v42, 1  ;;  %v1985_v20 = vmul.f32 %v6950_v7, %v7098_v32 }
 0x1df   : > { %v1850_v53 = vrot.slane %v1742_v50, 1  ;;  %v1631_v23 = vadd.f32 %v1539_v33, %v1387_v48  ;;  %v1632_v2 = vadd.f32 %v1541_v21, %v1388_v0  ;;  %v1986_v16 = vmul.f32 %v6950_v7, %v7102_v38 }
 0x1e0   : > { %v1987_v47 = vmul.f32 %v6950_v7, %v7105_v4  ;;  %v1852_v44 = vrot.slane %v1743_v6, 1  ;;  %v2093_v45 = vrot.slane %v1985_v20, 2  ;;  %v7168_v15 = vunpack.c.l.bf16 %v456_v19 }
 0x1e1   : > { %v1851_v37 = vsel %vm705_vm0, %v1849_v41, %v1850_v53  ;;  %v1699_v57 = vadd.f32 %v1667_v9, %v1631_v23  ;;  %v1700_v25 = vadd.f32 %v1668_v40, %v1632_v2  ;;  %v2094_v5 = vrot.slane %v1986_v16, 2 }
 0x1e2   : > { %v2096_v35 = vrot.slane %v1987_v47, 2  ;;  %v1853_v55 = vsel %vm705_vm0, %v1850_v53, %v1852_v44  ;;  %v7171_v62 = vunpack.c.h.bf16 %v456_v19  ;;  %v7173_v12 = vunpack.c.l.bf16 %v458_v54 }
 0x1e3   : > { %v555_v60 = vmul.f32 %v8868_v61, %v8874_v56  ;;  %v1943_v18 = vadd.f32 %v1851_v37, %v1699_v57  ;;  %v1944_v29 = vadd.f32 %v1853_v55, %v1700_v25  ;;  %v2095_v39 = vsel %vm950_vm1, %v2093_v45, %v2094_v5 }
 0x1e4   : > { %v2097_v17 = vsel %vm950_vm1, %v2094_v5, %v2096_v35  ;;  %v556_v9 = vmul.f32 %v8868_v61, %v8876_v13  ;;  %v630_v40 = vmul.f32 %v8871_v63, %v8874_v56  ;;  %v631_v42 = vmul.f32 %v8871_v63, %v8876_v13 }
 0x1e5   : > { %v632_v50 = vmul.f32 %v8871_v63, %v6525_v3  ;;  %v2187_v48 = vadd.f32 %v2095_v39, %v1943_v18  ;;  %v2188_v0 = vadd.f32 %v2097_v17, %v1944_v29  ;;  %v875_v33 = vmul.f32 %v8873_v52, %v8874_v56 }
 0x1e6   : > { %v876_v21 = vmul.f32 %v8873_v52, %v8876_v13  ;;  %v741_v19 = vrot.slane %v630_v40, 1  ;;  %v742_v6 = vrot.slane %v631_v42, 1  ;;  %v877_v53 = vmul.f32 %v8873_v52, %v6525_v3 }
 0x1e7   : > { %v744_v41 = vrot.slane %v632_v50, 1  ;;  %v2213_v20 = vpack.c.bf16 %v2188_v0, %v2187_v48  ;;  %v986_v23 = vrot.slane %v875_v33, 2  ;;  %v1113_v16 = vmul.f32 %v7098_v32, %v8875_v10 }
 0x1e8   : > { %v987_v2 = vrot.slane %v876_v21, 2  ;;  %v743_v47 = vsel %vm705_vm0, %v741_v19, %v742_v6  ;;  %v989_v56 = vrot.slane %v877_v53, 2  ;;  %v1114_v13 = vmul.f32 %v7102_v38, %v8875_v10 }
 0x1e9   : > { %v745_v54 = vsel %vm705_vm0, %v742_v6, %v744_v41  ;;  %5276 = vmatprep.mubr.msk.bf16.mxu0 %vm4035_vm2, %v2213_v20  ;;  %v832_v37 = vadd.f32 %v743_v47, %v555_v60  ;;  %v1188_v45 = vmul.f32 %v7098_v32, %v8877_v11  ;;  %v1189_v25 = vmul.f32 %v7102_v38, %v8877_v11 }
 0x1ea   : > { %v833_v44 = vadd.f32 %v745_v54, %v556_v9  ;;  %v988_v3 = vsel %vm950_vm1, %v986_v23, %v987_v2  ;;  %v990_v57 = vsel %vm950_vm1, %v987_v2, %v989_v56  ;;  %v1190_v5 = vmul.f32 %v8877_v11, %v7105_v4  ;;  %v2254_v56 = vld [vmem:[%s6063_s23 + $0x6c] sm:$0xff]  }
 0x1eb   : > { %v1432_v35 = vmul.f32 %v7098_v32, %v8878_v51  ;;  %v1077_v55 = vadd.f32 %v988_v3, %v832_v37  ;;  %v1298_v60 = vrot.slane %v1188_v45, 1  ;;  %v1433_v29 = vmul.f32 %v7102_v38, %v8878_v51 }
 0x1ec   : > { %v1078_v18 = vadd.f32 %v990_v57, %v833_v44  ;;  %v1299_v39 = vrot.slane %v1189_v25, 1  ;;  %v1301_v17 = vrot.slane %v1190_v5, 1  ;;  %v1434_v9 = vmul.f32 %v8878_v51, %v7105_v4 }
 0x1ed   : > { %v1542_v40 = vrot.slane %v1432_v35, 2  ;;  %v1145_v42 = vadd.f32 %v1113_v16, %v1077_v55  ;;  %v1543_v48 = vrot.slane %v1433_v29, 2  ;;  %v1669_v0 = vmul.f32 %v8879_v36, %v7168_v15  ;;  %v2256_v35 = vld [vmem:[%s6063_s23 + $0x74] sm:$0x1] }
 0x1ee   : > { %v1146_v50 = vadd.f32 %v1114_v13, %v1078_v18  ;;  %v1300_v33 = vsel %vm705_vm0, %v1298_v60, %v1299_v39  ;;  %v1302_v21 = vsel %vm705_vm0, %v1299_v39, %v1301_v17  ;;  %v1545_v19 = vrot.slane %v1434_v9, 2 }
 0x1ef   : > { %v1670_v6 = vmul.f32 %v8879_v36, %v7171_v62  ;;  %v1389_v41 = vadd.f32 %v1300_v33, %v1145_v42  ;;  %v1544_v20 = vsel %vm950_vm1, %v1542_v40, %v1543_v48  ;;  %v1744_v23 = vmul.f32 %v8880_v49, %v7168_v15 }
 0x1f0   : > { %v1390_v53 = vadd.f32 %v1302_v21, %v1146_v50  ;;  %v1546_v2 = vsel %vm950_vm1, %v1543_v48, %v1545_v19  ;;  %v1745_v16 = vmul.f32 %v8880_v49, %v7171_v62  ;;  %v1746_v47 = vmul.f32 %v8880_v49, %v7173_v12 }
 0x1f1   : > { %v1988_v54 = vmul.f32 %v6950_v7, %v7168_v15  ;;  %v1633_v13 = vadd.f32 %v1544_v20, %v1389_v41  ;;  %v1854_v44 = vrot.slane %v1744_v23, 1  ;;  %v1989_v3 = vmul.f32 %v6950_v7, %v7171_v62 }
 0x1f2   : > { %v1634_v37 = vadd.f32 %v1546_v2, %v1390_v53  ;;  %v1855_v45 = vrot.slane %v1745_v16, 1  ;;  %v1857_v57 = vrot.slane %v1746_v47, 1  ;;  %v1990_v25 = vmul.f32 %v6950_v7, %v7173_v12 }
 0x1f3   : > { %v2098_v5 = vrot.slane %v1988_v54, 2  ;;  %v1701_v55 = vadd.f32 %v1669_v0, %v1633_v13  ;;  %v2099_v60 = vrot.slane %v1989_v3, 2  ;;  %v7236_v29 = vunpack.c.l.bf16 %v2254_v56 }
 0x1f4   : > { %v1702_v18 = vadd.f32 %v1670_v6, %v1634_v37  ;;  %v1856_v39 = vsel %vm705_vm0, %v1854_v44, %v1855_v45  ;;  %v1858_v17 = vsel %vm705_vm0, %v1855_v45, %v1857_v57  ;;  %v2101_v9 = vrot.slane %v1990_v25, 2 }
 0x1f5   : > { %v7240_v40 = vunpack.c.h.bf16 %v2254_v56  ;;  %v1945_v42 = vadd.f32 %v1856_v39, %v1701_v55  ;;  %v2100_v48 = vsel %vm950_vm1, %v2098_v5, %v2099_v60  ;;  %v7243_v33 = vunpack.c.l.bf16 %v2256_v35 }
 0x1f6   : > { %v1946_v50 = vadd.f32 %v1858_v17, %v1702_v18  ;;  %v2102_v7 = vsel %vm950_vm1, %v2099_v60, %v2101_v9  ;;  %v2353_v0 = vmul.f32 %v6596_v30, %v6961_v1  ;;  %v2354_v21 = vmul.f32 %v6596_v30, %v6964_v14 }
 0x1f7   : > { %v2428_v19 = vmul.f32 %v6594_v34, %v6961_v1  ;;  %v2189_v6 = vadd.f32 %v2100_v48, %v1945_v42  ;;  %v2429_v53 = vmul.f32 %v6594_v34, %v6964_v14  ;;  %v2430_v20 = vmul.f32 %v6594_v34, %v6966_v31 }
 0x1f8   : > { %v2190_v41 = vadd.f32 %v2102_v7, %v1946_v50  ;;  %v2672_v2 = vmul.f32 %v6634_v22, %v6961_v1  ;;  %v2673_v16 = vmul.f32 %v6634_v22, %v6964_v14  ;;  %v2674_v47 = vmul.f32 %v6634_v22, %v6966_v31 }
 0x1f9   : > { %v2538_v23 = vrot.slane %v2428_v19, 1  ;;  %v2539_v56 = vrot.slane %v2429_v53, 1  ;;  %v2541_v13 = vrot.slane %v2430_v20, 1  ;;  %v2909_v37 = vmul.f32 %v7030_v59, %v6659_v58 }
 0x1fa   : > { %v2214_v54 = vpack.c.bf16 %v2190_v41, %v2189_v6  ;;  %v2782_v44 = vrot.slane %v2672_v2, 2  ;;  %v2783_v3 = vrot.slane %v2673_v16, 2  ;;  %v2785_v45 = vrot.slane %v2674_v47, 2 }
 0x1fb   : > { %v2910_v57 = vmul.f32 %v7033_v28, %v6659_v58  ;;  %v2540_v1 = vsel %vm705_vm0, %v2538_v23, %v2539_v56  ;;  %v2542_v14 = vsel %vm705_vm0, %v2539_v56, %v2541_v13  ;;  %v2984_v31 = vmul.f32 %v7030_v59, %v6636_v26 }
 0x1fc   : > { %5277 = vmatmul.mubr.msk.bf16.gmra.mrb[12].mxu0 %vm4035_vm2, %v2214_v54  ;;  %v2985_v25 = vmul.f32 %v7033_v28, %v6636_v26  ;;  %v2629_v5 = vadd.f32 %v2540_v1, %v2353_v0  ;;  %v2630_v35 = vadd.f32 %v2542_v14, %v2354_v21  ;;  %v2784_v55 = vsel %vm950_vm1, %v2782_v44, %v2783_v3 }
 0x1fd   : > { %v2786_v18 = vsel %vm950_vm1, %v2783_v3, %v2785_v45  ;;  %v2986_v60 = vmul.f32 %v6636_v26, %v7035_v43  ;;  %v3094_v39 = vrot.slane %v2984_v31, 1  ;;  %v3228_v9 = vmul.f32 %v7030_v59, %v6661_v27  ;;  %v5184_v3 = vld [vmem:[%s6063_s23 + $0x78] sm:$0xff]  }
 0x1fe   : > { %v3095_v17 = vrot.slane %v2985_v25, 1  ;;  %v2873_v42 = vadd.f32 %v2784_v55, %v2629_v5  ;;  %v2874_v50 = vadd.f32 %v2786_v18, %v2630_v35  ;;  %v3229_v48 = vmul.f32 %v7033_v28, %v6661_v27  ;;  %v2259_v55 = vld [vmem:[%s6063_s23 + $0x80] sm:$0x1] }
 0x1ff   : > { %v3230_v7 = vmul.f32 %v6661_v27, %v7035_v43  ;;  %v3097_v21 = vrot.slane %v2986_v60, 1  ;;  %v3338_v19 = vrot.slane %v3228_v9, 2  ;;  %v3465_v6 = vmul.f32 %v6681_v24, %v7236_v29 }
 0x200   : > { %v3096_v0 = vsel %vm705_vm0, %v3094_v39, %v3095_v17  ;;  %v2941_v41 = vadd.f32 %v2909_v37, %v2873_v42  ;;  %v2942_v53 = vadd.f32 %v2910_v57, %v2874_v50  ;;  %v3339_v20 = vrot.slane %v3229_v48, 2 }
 0x201   : > { %v3341_v23 = vrot.slane %v3230_v7, 2  ;;  %v3098_v2 = vsel %vm705_vm0, %v3095_v17, %v3097_v21  ;;  %v3466_v16 = vmul.f32 %v6681_v24, %v7240_v40  ;;  %v3540_v47 = vmul.f32 %v6679_v8, %v7236_v29 }
 0x202   : > { %v3541_v54 = vmul.f32 %v6679_v8, %v7240_v40  ;;  %v3185_v56 = vadd.f32 %v3096_v0, %v2941_v41  ;;  %v3186_v13 = vadd.f32 %v3098_v2, %v2942_v53  ;;  %v3340_v44 = vsel %vm950_vm1, %v3338_v19, %v3339_v20 }
 0x203   : > { %v3342_v37 = vsel %vm950_vm1, %v3339_v20, %v3341_v23  ;;  %v3542_v45 = vmul.f32 %v6679_v8, %v7243_v33  ;;  %v3650_v57 = vrot.slane %v3540_v47, 1  ;;  %v3784_v14 = vmul.f32 %v6696_v46, %v7236_v29 }
 0x204   : > { %v3651_v1 = vrot.slane %v3541_v54, 1  ;;  %v3429_v31 = vadd.f32 %v3340_v44, %v3185_v56  ;;  %v3430_v25 = vadd.f32 %v3342_v37, %v3186_v13  ;;  %v3785_v5 = vmul.f32 %v6696_v46, %v7240_v40 }
 0x205   : > { %v3786_v35 = vmul.f32 %v6696_v46, %v7243_v33  ;;  %v3653_v60 = vrot.slane %v3542_v45, 1  ;;  %v3894_v39 = vrot.slane %v3784_v14, 2  ;;  %v7306_v17 = vunpack.c.l.bf16 %v5184_v3 }
 0x206   : > { %v3652_v18 = vsel %vm705_vm0, %v3650_v57, %v3651_v1  ;;  %v3497_v9 = vadd.f32 %v3465_v6, %v3429_v31  ;;  %v3498_v42 = vadd.f32 %v3466_v16, %v3430_v25  ;;  %v3895_v50 = vrot.slane %v3785_v5, 2 }
 0x207   : > { %v3897_v48 = vrot.slane %v3786_v35, 2  ;;  %v3654_v7 = vsel %vm705_vm0, %v3651_v1, %v3653_v60  ;;  %v7309_v0 = vunpack.c.h.bf16 %v5184_v3  ;;  %v7311_v21 = vunpack.c.l.bf16 %v2259_v55 }
 0x208   : > { %v2355_v19 = vmul.f32 %v7030_v59, %v6596_v30  ;;  %v3741_v41 = vadd.f32 %v3652_v18, %v3497_v9  ;;  %v3742_v53 = vadd.f32 %v3654_v7, %v3498_v42  ;;  %v3896_v20 = vsel %vm950_vm1, %v3894_v39, %v3895_v50 }
 0x209   : > { %v3898_v23 = vsel %vm950_vm1, %v3895_v50, %v3897_v48  ;;  %v2356_v6 = vmul.f32 %v7033_v28, %v6596_v30  ;;  %v2431_v2 = vmul.f32 %v7030_v59, %v6594_v34  ;;  %v2432_v16 = vmul.f32 %v7033_v28, %v6594_v34 }
 0x20a   : > { %v2433_v47 = vmul.f32 %v6594_v34, %v7035_v43  ;;  %v3985_v54 = vadd.f32 %v3896_v20, %v3741_v41  ;;  %v3986_v56 = vadd.f32 %v3898_v23, %v3742_v53  ;;  %v2675_v13 = vmul.f32 %v7030_v59, %v6634_v22 }
 0x20b   : > { %v2676_v44 = vmul.f32 %v7033_v28, %v6634_v22  ;;  %v2543_v37 = vrot.slane %v2431_v2, 1  ;;  %v2544_v3 = vrot.slane %v2432_v16, 1  ;;  %v2677_v57 = vmul.f32 %v6634_v22, %v7035_v43 }
 0x20c   : > { %v2546_v45 = vrot.slane %v2433_v47, 1  ;;  %v4010_v1 = vpack.c.bf16 %v3986_v56, %v3985_v54  ;;  %v2787_v14 = vrot.slane %v2675_v13, 2  ;;  %v2911_v25 = vmul.f32 %v6659_v58, %v7236_v29 }
 0x20d   : > { %v2788_v31 = vrot.slane %v2676_v44, 2  ;;  %v2545_v5 = vsel %vm705_vm0, %v2543_v37, %v2544_v3  ;;  %v2790_v59 = vrot.slane %v2677_v57, 2  ;;  %v2912_v28 = vmul.f32 %v6659_v58, %v7240_v40 }
 0x20e   : > { %v2547_v35 = vsel %vm705_vm0, %v2544_v3, %v2546_v45  ;;  %5241 = vmatmul.mubr.msk.bf16.gmra.mrb[12].mxu1 %vm4035_vm2, %v4010_v1  ;;  %v2631_v55 = vadd.f32 %v2545_v5, %v2355_v19  ;;  %v2987_v60 = vmul.f32 %v6636_v26, %v7236_v29  ;;  %v2988_v9 = vmul.f32 %v6636_v26, %v7240_v40 }
 0x20f   : > { %v2632_v18 = vadd.f32 %v2547_v35, %v2356_v6  ;;  %v2789_v43 = vsel %vm950_vm1, %v2787_v14, %v2788_v31  ;;  %v2791_v39 = vsel %vm950_vm1, %v2788_v31, %v2790_v59  ;;  %v2989_v42 = vmul.f32 %v6636_v26, %v7243_v33  ;;  %v5176_v35 = vld [vmem:[%s6056_s8 + $0x78] sm:$0xff]  }
 0x210   : > { %v3231_v50 = vmul.f32 %v6661_v27, %v7236_v29  ;;  %v2875_v48 = vadd.f32 %v2789_v43, %v2631_v55  ;;  %v3099_v19 = vrot.slane %v2987_v60, 1  ;;  %v3232_v41 = vmul.f32 %v6661_v27, %v7240_v40 }
 0x211   : > { %v2876_v7 = vadd.f32 %v2791_v39, %v2632_v18  ;;  %v3100_v53 = vrot.slane %v2988_v9, 1  ;;  %v3102_v20 = vrot.slane %v2989_v42, 1  ;;  %v3233_v23 = vmul.f32 %v6661_v27, %v7243_v33  ;;  %v461_v42 = vld [vmem:[%s6056_s8 + $0x80] sm:$0x1] }
 0x212   : > { %v3343_v6 = vrot.slane %v3231_v50, 2  ;;  %v2943_v2 = vadd.f32 %v2911_v25, %v2875_v48  ;;  %v3344_v47 = vrot.slane %v3232_v41, 2  ;;  %v3467_v54 = vmul.f32 %v7306_v17, %v6681_v24 }
 0x213   : > { %v2944_v16 = vadd.f32 %v2912_v28, %v2876_v7  ;;  %v3101_v56 = vsel %vm705_vm0, %v3099_v19, %v3100_v53  ;;  %v3103_v13 = vsel %vm705_vm0, %v3100_v53, %v3102_v20  ;;  %v3346_v44 = vrot.slane %v3233_v23, 2 }
 0x214   : > { %v3468_v37 = vmul.f32 %v7309_v0, %v6681_v24  ;;  %v3187_v3 = vadd.f32 %v3101_v56, %v2943_v2  ;;  %v3345_v57 = vsel %vm950_vm1, %v3343_v6, %v3344_v47  ;;  %v3543_v1 = vmul.f32 %v7306_v17, %v6679_v8 }
 0x215   : > { %v3188_v45 = vadd.f32 %v3103_v13, %v2944_v16  ;;  %v3347_v14 = vsel %vm950_vm1, %v3344_v47, %v3346_v44  ;;  %v3544_v31 = vmul.f32 %v7309_v0, %v6679_v8  ;;  %v3545_v25 = vmul.f32 %v6679_v8, %v7311_v21 }
 0x216   : > { %v3787_v5 = vmul.f32 %v7306_v17, %v6696_v46  ;;  %v3431_v59 = vadd.f32 %v3345_v57, %v3187_v3  ;;  %v3655_v55 = vrot.slane %v3543_v1, 1  ;;  %v3788_v18 = vmul.f32 %v7309_v0, %v6696_v46 }
 0x217   : > { %v3432_v28 = vadd.f32 %v3347_v14, %v3188_v45  ;;  %v3656_v43 = vrot.slane %v3544_v31, 1  ;;  %v3658_v60 = vrot.slane %v3545_v25, 1  ;;  %v3789_v39 = vmul.f32 %v6696_v46, %v7311_v21 }
 0x218   : > { %v3899_v9 = vrot.slane %v3787_v5, 2  ;;  %v3499_v50 = vadd.f32 %v3467_v54, %v3431_v59  ;;  %v3900_v7 = vrot.slane %v3788_v18, 2  ;;  %v7374_v19 = vunpack.c.l.bf16 %v5176_v35 }
 0x219   : > { %v3500_v48 = vadd.f32 %v3468_v37, %v3432_v28  ;;  %v3657_v41 = vsel %vm705_vm0, %v3655_v55, %v3656_v43  ;;  %v3659_v53 = vsel %vm705_vm0, %v3656_v43, %v3658_v60  ;;  %v3902_v20 = vrot.slane %v3789_v39, 2 }
 0x21a   : > { %v7378_v23 = vunpack.c.h.bf16 %v5176_v35  ;;  %v3743_v6 = vadd.f32 %v3657_v41, %v3499_v50  ;;  %v3901_v16 = vsel %vm950_vm1, %v3899_v9, %v3900_v7  ;;  %v7381_v47 = vunpack.c.l.bf16 %v461_v42 }
 0x21b   : > { %v3744_v2 = vadd.f32 %v3659_v53, %v3500_v48  ;;  %v3903_v56 = vsel %vm950_vm1, %v3900_v7, %v3902_v20  ;;  %v557_v54 = vmul.f32 %v7098_v32, %v8868_v61  ;;  %v558_v13 = vmul.f32 %v7102_v38, %v8868_v61 }
 0x21c   : > { %v633_v44 = vmul.f32 %v7098_v32, %v8871_v63  ;;  %v3987_v37 = vadd.f32 %v3901_v16, %v3743_v6  ;;  %v634_v45 = vmul.f32 %v7102_v38, %v8871_v63  ;;  %v635_v57 = vmul.f32 %v8871_v63, %v7105_v4 }
 0x21d   : > { %v3988_v3 = vadd.f32 %v3903_v56, %v3744_v2  ;;  %v878_v14 = vmul.f32 %v7098_v32, %v8873_v52  ;;  %v879_v31 = vmul.f32 %v7102_v38, %v8873_v52  ;;  %v880_v25 = vmul.f32 %v8873_v52, %v7105_v4 }
 0x21e   : > { %v746_v1 = vrot.slane %v633_v44, 1  ;;  %v747_v35 = vrot.slane %v634_v45, 1  ;;  %v749_v59 = vrot.slane %v635_v57, 1  ;;  %v1115_v28 = vmul.f32 %v8875_v10, %v7168_v15 }
 0x21f   : > { %v4011_v5 = vpack.c.bf16 %v3988_v3, %v3987_v37  ;;  %v991_v55 = vrot.slane %v878_v14, 2  ;;  %v992_v18 = vrot.slane %v879_v31, 2  ;;  %v994_v43 = vrot.slane %v880_v25, 2 }
 0x220   : > { %v1116_v60 = vmul.f32 %v8875_v10, %v7171_v62  ;;  %v748_v32 = vsel %vm705_vm0, %v746_v1, %v747_v35  ;;  %v750_v38 = vsel %vm705_vm0, %v747_v35, %v749_v59  ;;  %v1191_v4 = vmul.f32 %v8877_v11, %v7168_v15 }
 0x221   : > { %5244 = vmatprep.mubr.msk.bf16.mxu1 %vm4035_vm2, %v4011_v5  ;;  %v1192_v39 = vmul.f32 %v8877_v11, %v7171_v62  ;;  %v834_v9 = vadd.f32 %v748_v32, %v557_v54  ;;  %v835_v42 = vadd.f32 %v750_v38, %v558_v13  ;;  %v993_v50 = vsel %vm950_vm1, %v991_v55, %v992_v18  ;;  %v7437_v38 = vld [vmem:[%s6070_s17 + $0x8] ss:$0 sm:$0xff] }
 0x222   : > { %v995_v48 = vsel %vm950_vm1, %v992_v18, %v994_v43  ;;  %v1193_v7 = vmul.f32 %v8877_v11, %v7173_v12  ;;  %v1303_v41 = vrot.slane %v1191_v4, 1  ;;  %v1435_v20 = vmul.f32 %v8878_v51, %v7168_v15  ;;  %v462_v18 = vld [vmem:[%s6056_s8 + $0x84] sm:$0xff]  }
 0x223   : > { %v1304_v53 = vrot.slane %v1192_v39, 1  ;;  %v1079_v6 = vadd.f32 %v993_v50, %v834_v9  ;;  %v1080_v2 = vadd.f32 %v995_v48, %v835_v42  ;;  %v1436_v16 = vmul.f32 %v8878_v51, %v7171_v62  ;;  %v464_v48 = vld [vmem:[%s6056_s8 + $0x8c] sm:$0x1] }
 0x224   : > { %v1437_v56 = vmul.f32 %v8878_v51, %v7173_v12  ;;  %v1306_v13 = vrot.slane %v1193_v7, 1  ;;  %v1547_v44 = vrot.slane %v1435_v20, 2  ;;  %v1671_v37 = vmul.f32 %v7374_v19, %v8879_v36 }
 0x225   : > { %v1305_v54 = vsel %vm705_vm0, %v1303_v41, %v1304_v53  ;;  %v1147_v3 = vadd.f32 %v1115_v28, %v1079_v6  ;;  %v1148_v45 = vadd.f32 %v1116_v60, %v1080_v2  ;;  %v1548_v57 = vrot.slane %v1436_v16, 2 }
 0x226   : > { %v1550_v1 = vrot.slane %v1437_v56, 2  ;;  %v1307_v14 = vsel %vm705_vm0, %v1304_v53, %v1306_v13  ;;  %v1672_v31 = vmul.f32 %v7378_v23, %v8879_v36  ;;  %v1747_v25 = vmul.f32 %v7374_v19, %v8880_v49 }
 0x227   : > { %v1748_v5 = vmul.f32 %v7378_v23, %v8880_v49  ;;  %v1391_v35 = vadd.f32 %v1305_v54, %v1147_v3  ;;  %v1392_v59 = vadd.f32 %v1307_v14, %v1148_v45  ;;  %v1549_v28 = vsel %vm950_vm1, %v1547_v44, %v1548_v57 }
 0x228   : > { %v1551_v55 = vsel %vm950_vm1, %v1548_v57, %v1550_v1  ;;  %v1749_v43 = vmul.f32 %v8880_v49, %v7381_v47  ;;  %v1859_v60 = vrot.slane %v1747_v25, 1  ;;  %v1991_v4 = vmul.f32 %v7437_v38, %v7374_v19 }
 0x229   : > { %v1860_v32 = vrot.slane %v1748_v5, 1  ;;  %v1635_v39 = vadd.f32 %v1549_v28, %v1391_v35  ;;  %v1636_v9 = vadd.f32 %v1551_v55, %v1392_v59  ;;  %v1992_v42 = vmul.f32 %v7437_v38, %v7378_v23 }
 0x22a   : > { %v1993_v50 = vmul.f32 %v7437_v38, %v7381_v47  ;;  %v1862_v41 = vrot.slane %v1749_v43, 1  ;;  %v2103_v53 = vrot.slane %v1991_v4, 2  ;;  %v7447_v20 = vunpack.c.l.bf16 %v462_v18 }
 0x22b   : > { %v1861_v7 = vsel %vm705_vm0, %v1859_v60, %v1860_v32  ;;  %v1703_v6 = vadd.f32 %v1671_v37, %v1635_v39  ;;  %v1704_v2 = vadd.f32 %v1672_v31, %v1636_v9  ;;  %v2104_v16 = vrot.slane %v1992_v42, 2 }
 0x22c   : > { %v2106_v56 = vrot.slane %v1993_v50, 2  ;;  %v1863_v54 = vsel %vm705_vm0, %v1860_v32, %v1862_v41  ;;  %v7450_v13 = vunpack.c.h.bf16 %v462_v18  ;;  %v7452_v44 = vunpack.c.l.bf16 %v464_v48 }
 0x22d   : > { %v559_v3 = vmul.f32 %v8868_v61, %v7168_v15  ;;  %v1947_v45 = vadd.f32 %v1861_v7, %v1703_v6  ;;  %v1948_v57 = vadd.f32 %v1863_v54, %v1704_v2  ;;  %v2105_v1 = vsel %vm950_vm1, %v2103_v53, %v2104_v16 }
 0x22e   : > { %v2107_v14 = vsel %vm950_vm1, %v2104_v16, %v2106_v56  ;;  %v560_v37 = vmul.f32 %v8868_v61, %v7171_v62  ;;  %v636_v31 = vmul.f32 %v8871_v63, %v7168_v15  ;;  %v637_v25 = vmul.f32 %v8871_v63, %v7171_v62 }
 0x22f   : > { %v638_v5 = vmul.f32 %v8871_v63, %v7173_v12  ;;  %v2191_v35 = vadd.f32 %v2105_v1, %v1947_v45  ;;  %v2192_v59 = vadd.f32 %v2107_v14, %v1948_v57  ;;  %v881_v28 = vmul.f32 %v8873_v52, %v7168_v15 }
 0x230   : > { %v882_v55 = vmul.f32 %v8873_v52, %v7171_v62  ;;  %v751_v18 = vrot.slane %v636_v31, 1  ;;  %v752_v43 = vrot.slane %v637_v25, 1  ;;  %v883_v32 = vmul.f32 %v8873_v52, %v7173_v12 }
 0x231   : > { %v754_v60 = vrot.slane %v638_v5, 1  ;;  %v2215_v4 = vpack.c.bf16 %v2192_v59, %v2191_v35  ;;  %v996_v39 = vrot.slane %v881_v28, 2  ;;  %v1117_v42 = vmul.f32 %v7374_v19, %v8875_v10 }
 0x232   : > { %v997_v9 = vrot.slane %v882_v55, 2  ;;  %v753_v50 = vsel %vm705_vm0, %v751_v18, %v752_v43  ;;  %v999_v15 = vrot.slane %v883_v32, 2  ;;  %v1118_v62 = vmul.f32 %v7378_v23, %v8875_v10 }
 0x233   : > { %v755_v48 = vsel %vm705_vm0, %v752_v43, %v754_v60  ;;  %5280 = vmatprep.mubr.msk.bf16.mxu0 %vm4035_vm2, %v2215_v4  ;;  %v836_v7 = vadd.f32 %v753_v50, %v559_v3  ;;  %v1194_v53 = vmul.f32 %v7374_v19, %v8877_v11  ;;  %v1195_v2 = vmul.f32 %v7378_v23, %v8877_v11 }
 0x234   : > { %v837_v41 = vadd.f32 %v755_v48, %v560_v37  ;;  %v998_v12 = vsel %vm950_vm1, %v996_v39, %v997_v9  ;;  %v1000_v6 = vsel %vm950_vm1, %v997_v9, %v999_v15  ;;  %v1196_v16 = vmul.f32 %v8877_v11, %v7381_v47  ;;  %v2260_v15 = vld [vmem:[%s6063_s23 + $0x84] sm:$0xff]  }
 0x235   : > { %v1438_v56 = vmul.f32 %v7374_v19, %v8878_v51  ;;  %v1081_v54 = vadd.f32 %v998_v12, %v836_v7  ;;  %v1308_v3 = vrot.slane %v1194_v53, 1  ;;  %v1439_v57 = vmul.f32 %v7378_v23, %v8878_v51 }
 0x236   : > { %v1082_v45 = vadd.f32 %v1000_v6, %v837_v41  ;;  %v1309_v1 = vrot.slane %v1195_v2, 1  ;;  %v1311_v14 = vrot.slane %v1196_v16, 1  ;;  %v1440_v37 = vmul.f32 %v8878_v51, %v7381_v47 }
 0x237   : > { %v1552_v31 = vrot.slane %v1438_v56, 2  ;;  %v1149_v25 = vadd.f32 %v1117_v42, %v1081_v54  ;;  %v1553_v35 = vrot.slane %v1439_v57, 2  ;;  %v1673_v59 = vmul.f32 %v8879_v36, %v7447_v20  ;;  %v2262_v56 = vld [vmem:[%s6063_s23 + $0x8c] sm:$0x1] }
 0x238   : > { %v1150_v5 = vadd.f32 %v1118_v62, %v1082_v45  ;;  %v1310_v28 = vsel %vm705_vm0, %v1308_v3, %v1309_v1  ;;  %v1312_v55 = vsel %vm705_vm0, %v1309_v1, %v1311_v14  ;;  %v1555_v18 = vrot.slane %v1440_v37, 2 }
 0x239   : > { %v1674_v43 = vmul.f32 %v8879_v36, %v7450_v13  ;;  %v1393_v60 = vadd.f32 %v1310_v28, %v1149_v25  ;;  %v1554_v4 = vsel %vm950_vm1, %v1552_v31, %v1553_v35  ;;  %v1750_v39 = vmul.f32 %v8880_v49, %v7447_v20 }
 0x23a   : > { %v1394_v32 = vadd.f32 %v1312_v55, %v1150_v5  ;;  %v1556_v9 = vsel %vm950_vm1, %v1553_v35, %v1555_v18  ;;  %v1751_v42 = vmul.f32 %v8880_v49, %v7450_v13  ;;  %v1752_v50 = vmul.f32 %v8880_v49, %v7452_v44 }
 0x23b   : > { %v1994_v48 = vmul.f32 %v7437_v38, %v7447_v20  ;;  %v1637_v62 = vadd.f32 %v1554_v4, %v1393_v60  ;;  %v1864_v41 = vrot.slane %v1750_v39, 1  ;;  %v1995_v12 = vmul.f32 %v7437_v38, %v7450_v13 }
 0x23c   : > { %v1638_v7 = vadd.f32 %v1556_v9, %v1394_v32  ;;  %v1865_v53 = vrot.slane %v1751_v42, 1  ;;  %v1867_v6 = vrot.slane %v1752_v50, 1  ;;  %v1996_v2 = vmul.f32 %v7437_v38, %v7452_v44 }
 0x23d   : > { %v2108_v16 = vrot.slane %v1994_v48, 2  ;;  %v1705_v54 = vadd.f32 %v1673_v59, %v1637_v62  ;;  %v2109_v3 = vrot.slane %v1995_v12, 2  ;;  %v7515_v57 = vunpack.c.l.bf16 %v2260_v15 }
 0x23e   : > { %v1706_v45 = vadd.f32 %v1674_v43, %v1638_v7  ;;  %v1866_v1 = vsel %vm705_vm0, %v1864_v41, %v1865_v53  ;;  %v1868_v14 = vsel %vm705_vm0, %v1865_v53, %v1867_v6  ;;  %v2111_v37 = vrot.slane %v1996_v2, 2 }
 0x23f   : > { %v7519_v31 = vunpack.c.h.bf16 %v2260_v15  ;;  %v1949_v25 = vadd.f32 %v1866_v1, %v1705_v54  ;;  %v2110_v35 = vsel %vm950_vm1, %v2108_v16, %v2109_v3  ;;  %v7522_v28 = vunpack.c.l.bf16 %v2262_v56 }
 0x240   : > { %v1950_v5 = vadd.f32 %v1868_v14, %v1706_v45  ;;  %v2112_v55 = vsel %vm950_vm1, %v2109_v3, %v2111_v37  ;;  %v2357_v59 = vmul.f32 %v6596_v30, %v7236_v29  ;;  %v2358_v18 = vmul.f32 %v6596_v30, %v7240_v40 }
 0x241   : > { %v2434_v43 = vmul.f32 %v6594_v34, %v7236_v29  ;;  %v2193_v60 = vadd.f32 %v2110_v35, %v1949_v25  ;;  %v2435_v4 = vmul.f32 %v6594_v34, %v7240_v40  ;;  %v2436_v39 = vmul.f32 %v6594_v34, %v7243_v33 }
 0x242   : > { %v2194_v32 = vadd.f32 %v2112_v55, %v1950_v5  ;;  %v2678_v42 = vmul.f32 %v6634_v22, %v7236_v29  ;;  %v2679_v50 = vmul.f32 %v6634_v22, %v7240_v40  ;;  %v2680_v48 = vmul.f32 %v6634_v22, %v7243_v33 }
 0x243   : > { %v2548_v9 = vrot.slane %v2434_v43, 1  ;;  %v2549_v62 = vrot.slane %v2435_v4, 1  ;;  %v2551_v7 = vrot.slane %v2436_v39, 1  ;;  %v2913_v41 = vmul.f32 %v7306_v17, %v6659_v58 }
 0x244   : > { %v2216_v15 = vpack.c.bf16 %v2194_v32, %v2193_v60  ;;  %v2792_v12 = vrot.slane %v2678_v42, 2  ;;  %v2793_v53 = vrot.slane %v2679_v50, 2  ;;  %v2795_v6 = vrot.slane %v2680_v48, 2 }
 0x245   : > { %v2914_v2 = vmul.f32 %v7309_v0, %v6659_v58  ;;  %v2550_v29 = vsel %vm705_vm0, %v2548_v9, %v2549_v62  ;;  %v2552_v40 = vsel %vm705_vm0, %v2549_v62, %v2551_v7  ;;  %v2990_v33 = vmul.f32 %v7306_v17, %v6636_v26 }
 0x246   : > { %5281 = vmatmul.mubr.msk.bf16.gmra.mrb[16].mxu0 %vm4035_vm2, %v2216_v15  ;;  %v2991_v16 = vmul.f32 %v7309_v0, %v6636_v26  ;;  %v2633_v56 = vadd.f32 %v2550_v29, %v2357_v59  ;;  %v2634_v54 = vadd.f32 %v2552_v40, %v2358_v18  ;;  %v2794_v45 = vsel %vm950_vm1, %v2792_v12, %v2793_v53 }
 0x247   : > { %v2796_v3 = vsel %vm950_vm1, %v2793_v53, %v2795_v6  ;;  %v2992_v1 = vmul.f32 %v6636_v26, %v7311_v21  ;;  %v3104_v14 = vrot.slane %v2990_v33, 1  ;;  %v3234_v25 = vmul.f32 %v7306_v17, %v6661_v27  ;;  %v5185_v6 = vld [vmem:[%s6063_s23 + $0x90] sm:$0xff]  }
 0x248   : > { %v3105_v37 = vrot.slane %v2991_v16, 1  ;;  %v2877_v5 = vadd.f32 %v2794_v45, %v2633_v56  ;;  %v2878_v35 = vadd.f32 %v2796_v3, %v2634_v54  ;;  %v3235_v55 = vmul.f32 %v7309_v0, %v6661_v27  ;;  %v2265_v3 = vld [vmem:[%s6063_s23 + $0x98] sm:$0x1] }
 0x249   : > { %v3236_v59 = vmul.f32 %v6661_v27, %v7311_v21  ;;  %v3107_v43 = vrot.slane %v2992_v1, 1  ;;  %v3348_v60 = vrot.slane %v3234_v25, 2  ;;  %v3469_v32 = vmul.f32 %v6681_v24, %v7515_v57 }
 0x24a   : > { %v3106_v18 = vsel %vm705_vm0, %v3104_v14, %v3105_v37  ;;  %v2945_v4 = vadd.f32 %v2913_v41, %v2877_v5  ;;  %v2946_v39 = vadd.f32 %v2914_v2, %v2878_v35  ;;  %v3349_v9 = vrot.slane %v3235_v55, 2 }
 0x24b   : > { %v3351_v42 = vrot.slane %v3236_v59, 2  ;;  %v3108_v50 = vsel %vm705_vm0, %v3105_v37, %v3107_v43  ;;  %v3470_v48 = vmul.f32 %v6681_v24, %v7519_v31  ;;  %v3546_v15 = vmul.f32 %v6679_v8, %v7515_v57 }
 0x24c   : > { %v3547_v62 = vmul.f32 %v6679_v8, %v7519_v31  ;;  %v3189_v7 = vadd.f32 %v3106_v18, %v2945_v4  ;;  %v3190_v12 = vadd.f32 %v3108_v50, %v2946_v39  ;;  %v3350_v53 = vsel %vm950_vm1, %v3348_v60, %v3349_v9 }
 0x24d   : > { %v3352_v41 = vsel %vm950_vm1, %v3349_v9, %v3351_v42  ;;  %v3548_v2 = vmul.f32 %v6679_v8, %v7522_v28  ;;  %v3660_v29 = vrot.slane %v3546_v15, 1  ;;  %v3790_v33 = vmul.f32 %v6696_v46, %v7515_v57 }
 0x24e   : > { %v3661_v40 = vrot.slane %v3547_v62, 1  ;;  %v3433_v16 = vadd.f32 %v3350_v53, %v3189_v7  ;;  %v3434_v56 = vadd.f32 %v3352_v41, %v3190_v12  ;;  %v3791_v54 = vmul.f32 %v6696_v46, %v7519_v31 }
 0x24f   : > { %v3792_v45 = vmul.f32 %v6696_v46, %v7522_v28  ;;  %v3663_v14 = vrot.slane %v3548_v2, 1  ;;  %v3904_v37 = vrot.slane %v3790_v33, 2  ;;  %v7585_v25 = vunpack.c.l.bf16 %v5185_v6 }
 0x250   : > { %v3662_v1 = vsel %vm705_vm0, %v3660_v29, %v3661_v40  ;;  %v3501_v5 = vadd.f32 %v3469_v32, %v3433_v16  ;;  %v3502_v35 = vadd.f32 %v3470_v48, %v3434_v56  ;;  %v3905_v55 = vrot.slane %v3791_v54, 2 }
 0x251   : > { %v3907_v59 = vrot.slane %v3792_v45, 2  ;;  %v3664_v18 = vsel %vm705_vm0, %v3661_v40, %v3663_v14  ;;  %v7588_v43 = vunpack.c.h.bf16 %v5185_v6  ;;  %v7590_v60 = vunpack.c.l.bf16 %v2265_v3 }
 0x252   : > { %v2359_v4 = vmul.f32 %v7306_v17, %v6596_v30  ;;  %v3745_v39 = vadd.f32 %v3662_v1, %v3501_v5  ;;  %v3746_v9 = vadd.f32 %v3664_v18, %v3502_v35  ;;  %v3906_v42 = vsel %vm950_vm1, %v3904_v37, %v3905_v55 }
 0x253   : > { %v3908_v50 = vsel %vm950_vm1, %v3905_v55, %v3907_v59  ;;  %v2360_v32 = vmul.f32 %v7309_v0, %v6596_v30  ;;  %v2437_v48 = vmul.f32 %v7306_v17, %v6594_v34  ;;  %v2438_v15 = vmul.f32 %v7309_v0, %v6594_v34 }
 0x254   : > { %v2439_v62 = vmul.f32 %v6594_v34, %v7311_v21  ;;  %v3989_v7 = vadd.f32 %v3906_v42, %v3745_v39  ;;  %v3990_v12 = vadd.f32 %v3908_v50, %v3746_v9  ;;  %v2681_v53 = vmul.f32 %v7306_v17, %v6634_v22 }
 0x255   : > { %v2682_v41 = vmul.f32 %v7309_v0, %v6634_v22  ;;  %v2553_v6 = vrot.slane %v2437_v48, 1  ;;  %v2554_v2 = vrot.slane %v2438_v15, 1  ;;  %v2683_v40 = vmul.f32 %v6634_v22, %v7311_v21 }
 0x256   : > { %v2556_v29 = vrot.slane %v2439_v62, 1  ;;  %v4012_v33 = vpack.c.bf16 %v3990_v12, %v3989_v7  ;;  %v2797_v16 = vrot.slane %v2681_v53, 2  ;;  %v2915_v54 = vmul.f32 %v6659_v58, %v7515_v57 }
 0x257   : > { %v2798_v56 = vrot.slane %v2682_v41, 2  ;;  %v2555_v45 = vsel %vm705_vm0, %v2553_v6, %v2554_v2  ;;  %v2800_v17 = vrot.slane %v2683_v40, 2  ;;  %v2916_v0 = vmul.f32 %v6659_v58, %v7519_v31 }
 0x258   : > { %v2557_v3 = vsel %vm705_vm0, %v2554_v2, %v2556_v29  ;;  %5245 = vmatmul.mubr.msk.bf16.gmra.mrb[16].mxu1 %vm4035_vm2, %v4012_v33  ;;  %v2635_v1 = vadd.f32 %v2555_v45, %v2359_v4  ;;  %v2993_v37 = vmul.f32 %v6636_v26, %v7515_v57  ;;  %v2994_v35 = vmul.f32 %v6636_v26, %v7519_v31 }
 0x259   : > { %v2636_v14 = vadd.f32 %v2557_v3, %v2360_v32  ;;  %v2799_v21 = vsel %vm950_vm1, %v2797_v16, %v2798_v56  ;;  %v2801_v5 = vsel %vm950_vm1, %v2798_v56, %v2800_v17  ;;  %v2995_v55 = vmul.f32 %v6636_v26, %v7522_v28  ;;  %v5177_v17 = vld [vmem:[%s6056_s8 + $0x90] sm:$0xff]  }
 0x25a   : > { %v3237_v59 = vmul.f32 %v6661_v27, %v7515_v57  ;;  %v2879_v18 = vadd.f32 %v2799_v21, %v2635_v1  ;;  %v3109_v4 = vrot.slane %v2993_v37, 1  ;;  %v3238_v9 = vmul.f32 %v6661_v27, %v7519_v31 }
 0x25b   : > { %v2880_v39 = vadd.f32 %v2801_v5, %v2636_v14  ;;  %v3110_v42 = vrot.slane %v2994_v35, 1  ;;  %v3112_v50 = vrot.slane %v2995_v55, 1  ;;  %v3239_v32 = vmul.f32 %v6661_v27, %v7522_v28 }
 0x25c   : > { %v3353_v48 = vrot.slane %v3237_v59, 2  ;;  %v2947_v15 = vadd.f32 %v2915_v54, %v2879_v18  ;;  %v3354_v7 = vrot.slane %v3238_v9, 2  ;;  %v3471_v12 = vmul.f32 %v7585_v25, %v6681_v24  ;;  %v467_v59 = vld [vmem:[%s6056_s8 + $0x98] sm:$0x1] }
 0x25d   : > { %v2948_v62 = vadd.f32 %v2916_v0, %v2880_v39  ;;  %v3111_v53 = vsel %vm705_vm0, %v3109_v4, %v3110_v42  ;;  %v3113_v41 = vsel %vm705_vm0, %v3110_v42, %v3112_v50  ;;  %v3356_v6 = vrot.slane %v3239_v32, 2 }
 0x25e   : > { %v3472_v2 = vmul.f32 %v7588_v43, %v6681_v24  ;;  %v3191_v29 = vadd.f32 %v3111_v53, %v2947_v15  ;;  %v3355_v33 = vsel %vm950_vm1, %v3353_v48, %v3354_v7  ;;  %v3549_v16 = vmul.f32 %v7585_v25, %v6679_v8 }
 0x25f   : > { %v3192_v40 = vadd.f32 %v3113_v41, %v2948_v62  ;;  %v3357_v56 = vsel %vm950_vm1, %v3354_v7, %v3356_v6  ;;  %v3550_v54 = vmul.f32 %v7588_v43, %v6679_v8  ;;  %v3551_v45 = vmul.f32 %v6679_v8, %v7590_v60 }
 0x260   : > { %v3793_v3 = vmul.f32 %v7585_v25, %v6696_v46  ;;  %v3435_v0 = vadd.f32 %v3355_v33, %v3191_v29  ;;  %v3665_v14 = vrot.slane %v3549_v16, 1  ;;  %v3794_v21 = vmul.f32 %v7588_v43, %v6696_v46 }
 0x261   : > { %v3436_v1 = vadd.f32 %v3357_v56, %v3192_v40  ;;  %v3666_v37 = vrot.slane %v3550_v54, 1  ;;  %v3668_v5 = vrot.slane %v3551_v45, 1  ;;  %v3795_v35 = vmul.f32 %v6696_v46, %v7590_v60 }
 0x262   : > { %v3909_v55 = vrot.slane %v3793_v3, 2  ;;  %v3503_v18 = vadd.f32 %v3471_v12, %v3435_v0  ;;  %v3910_v4 = vrot.slane %v3794_v21, 2  ;;  %v7653_v9 = vunpack.c.l.bf16 %v5177_v17 }
 0x263   : > { %v3504_v39 = vadd.f32 %v3472_v2, %v3436_v1  ;;  %v3667_v42 = vsel %vm705_vm0, %v3665_v14, %v3666_v37  ;;  %v3669_v50 = vsel %vm705_vm0, %v3666_v37, %v3668_v5  ;;  %v3912_v32 = vrot.slane %v3795_v35, 2 }
 0x264   : > { %v7657_v48 = vunpack.c.h.bf16 %v5177_v17  ;;  %v3747_v15 = vadd.f32 %v3667_v42, %v3503_v18  ;;  %v3911_v7 = vsel %vm950_vm1, %v3909_v55, %v3910_v4  ;;  %v7660_v53 = vunpack.c.l.bf16 %v467_v59 }
 0x265   : > { %v3748_v62 = vadd.f32 %v3669_v50, %v3504_v39  ;;  %v3913_v41 = vsel %vm950_vm1, %v3910_v4, %v3912_v32  ;;  %v561_v12 = vmul.f32 %v7374_v19, %v8868_v61  ;;  %v562_v6 = vmul.f32 %v7378_v23, %v8868_v61 }
 0x266   : > { %v639_v2 = vmul.f32 %v7374_v19, %v8871_v63  ;;  %v3991_v29 = vadd.f32 %v3911_v7, %v3747_v15  ;;  %v640_v33 = vmul.f32 %v7378_v23, %v8871_v63  ;;  %v641_v16 = vmul.f32 %v8871_v63, %v7381_v47 }
 0x267   : > { %v3992_v40 = vadd.f32 %v3913_v41, %v3748_v62  ;;  %v884_v54 = vmul.f32 %v7374_v19, %v8873_v52  ;;  %v885_v45 = vmul.f32 %v7378_v23, %v8873_v52  ;;  %v886_v3 = vmul.f32 %v8873_v52, %v7381_v47 }
 0x268   : > { %v756_v56 = vrot.slane %v639_v2, 1  ;;  %v757_v0 = vrot.slane %v640_v33, 1  ;;  %v759_v1 = vrot.slane %v641_v16, 1  ;;  %v1119_v14 = vmul.f32 %v8875_v10, %v7447_v20 }
 0x269   : > { %v4013_v17 = vpack.c.bf16 %v3992_v40, %v3991_v29  ;;  %v1001_v21 = vrot.slane %v884_v54, 2  ;;  %v1002_v37 = vrot.slane %v885_v45, 2  ;;  %v1004_v5 = vrot.slane %v886_v3, 2 }
 0x26a   : > { %v1120_v35 = vmul.f32 %v8875_v10, %v7450_v13  ;;  %v758_v19 = vsel %vm705_vm0, %v756_v56, %v757_v0  ;;  %v760_v23 = vsel %vm705_vm0, %v757_v0, %v759_v1  ;;  %v1197_v47 = vmul.f32 %v8877_v11, %v7447_v20 }
 0x26b   : > { %5248 = vmatprep.mubr.msk.bf16.mxu1 %vm4035_vm2, %v4013_v17  ;;  %v1198_v55 = vmul.f32 %v8877_v11, %v7450_v13  ;;  %v838_v59 = vadd.f32 %v758_v19, %v561_v12  ;;  %v839_v18 = vadd.f32 %v760_v23, %v562_v6  ;;  %v1003_v39 = vsel %vm950_vm1, %v1001_v21, %v1002_v37 }
 0x26c   : > { %v1005_v4 = vsel %vm950_vm1, %v1002_v37, %v1004_v5  ;;  %v1199_v42 = vmul.f32 %v8877_v11, %v7452_v44  ;;  %v1313_v50 = vrot.slane %v1197_v47, 1  ;;  %v1441_v15 = vmul.f32 %v8878_v51, %v7447_v20  ;;  %v468_v5 = vld [vmem:[%s6056_s8 + $0x9c] sm:$0xff]  }
 0x26d   : > { %v1314_v32 = vrot.slane %v1198_v55, 1  ;;  %v1083_v62 = vadd.f32 %v1003_v39, %v838_v59  ;;  %v1084_v7 = vadd.f32 %v1005_v4, %v839_v18  ;;  %v1442_v41 = vmul.f32 %v8878_v51, %v7450_v13  ;;  %v470_v4 = vld [vmem:[%s6056_s8 + $0xa4] sm:$0x1] }
 0x26e   : > { %v1443_v12 = vmul.f32 %v8878_v51, %v7452_v44  ;;  %v1316_v2 = vrot.slane %v1199_v42, 1  ;;  %v1557_v29 = vrot.slane %v1441_v15, 2  ;;  %v1675_v40 = vmul.f32 %v7653_v9, %v8879_v36 }
 0x26f   : > { %v1315_v6 = vsel %vm705_vm0, %v1313_v50, %v1314_v32  ;;  %v1151_v33 = vadd.f32 %v1119_v14, %v1083_v62  ;;  %v1152_v16 = vadd.f32 %v1120_v35, %v1084_v7  ;;  %v1558_v56 = vrot.slane %v1442_v41, 2 }
 0x270   : > { %v1560_v54 = vrot.slane %v1443_v12, 2  ;;  %v1317_v45 = vsel %vm705_vm0, %v1314_v32, %v1316_v2  ;;  %v1676_v3 = vmul.f32 %v7657_v48, %v8879_v36  ;;  %v1753_v17 = vmul.f32 %v7653_v9, %v8880_v49 }
 0x271   : > { %v1754_v0 = vmul.f32 %v7657_v48, %v8880_v49  ;;  %v1395_v1 = vadd.f32 %v1315_v6, %v1151_v33  ;;  %v1396_v21 = vadd.f32 %v1317_v45, %v1152_v16  ;;  %v1559_v37 = vsel %vm950_vm1, %v1557_v29, %v1558_v56 }
 0x272   : > { %v1561_v14 = vsel %vm950_vm1, %v1558_v56, %v1560_v54  ;;  %v1755_v35 = vmul.f32 %v8880_v49, %v7660_v53  ;;  %v1869_v19 = vrot.slane %v1753_v17, 1  ;;  %v1997_v47 = vmul.f32 %v7437_v38, %v7653_v9 }
 0x273   : > { %v1870_v23 = vrot.slane %v1754_v0, 1  ;;  %v1639_v55 = vadd.f32 %v1559_v37, %v1395_v1  ;;  %v1640_v59 = vadd.f32 %v1561_v14, %v1396_v21  ;;  %v1998_v18 = vmul.f32 %v7437_v38, %v7657_v48 }
 0x274   : > { %v1999_v39 = vmul.f32 %v7437_v38, %v7660_v53  ;;  %v1872_v50 = vrot.slane %v1755_v35, 1  ;;  %v2113_v32 = vrot.slane %v1997_v47, 2  ;;  %v7723_v15 = vunpack.c.l.bf16 %v468_v5 }
 0x275   : > { %v1871_v42 = vsel %vm705_vm0, %v1869_v19, %v1870_v23  ;;  %v1707_v62 = vadd.f32 %v1675_v40, %v1639_v55  ;;  %v1708_v7 = vadd.f32 %v1676_v3, %v1640_v59  ;;  %v2114_v41 = vrot.slane %v1998_v18, 2 }
 0x276   : > { %v2116_v12 = vrot.slane %v1999_v39, 2  ;;  %v1873_v6 = vsel %vm705_vm0, %v1870_v23, %v1872_v50  ;;  %v7726_v2 = vunpack.c.h.bf16 %v468_v5  ;;  %v7728_v29 = vunpack.c.l.bf16 %v470_v4 }
 0x277   : > { %v563_v33 = vmul.f32 %v8868_v61, %v7447_v20  ;;  %v1951_v16 = vadd.f32 %v1871_v42, %v1707_v62  ;;  %v1952_v56 = vadd.f32 %v1873_v6, %v1708_v7  ;;  %v2115_v54 = vsel %vm950_vm1, %v2113_v32, %v2114_v41 }
 0x278   : > { %v2117_v45 = vsel %vm950_vm1, %v2114_v41, %v2116_v12  ;;  %v564_v40 = vmul.f32 %v8868_v61, %v7450_v13  ;;  %v642_v3 = vmul.f32 %v8871_v63, %v7447_v20  ;;  %v643_v17 = vmul.f32 %v8871_v63, %v7450_v13 }
 0x279   : > { %v644_v0 = vmul.f32 %v8871_v63, %v7452_v44  ;;  %v2195_v1 = vadd.f32 %v2115_v54, %v1951_v16  ;;  %v2196_v21 = vadd.f32 %v2117_v45, %v1952_v56  ;;  %v887_v37 = vmul.f32 %v8873_v52, %v7447_v20 }
 0x27a   : > { %v888_v14 = vmul.f32 %v8873_v52, %v7450_v13  ;;  %v761_v5 = vrot.slane %v642_v3, 1  ;;  %v762_v35 = vrot.slane %v643_v17, 1  ;;  %v889_v23 = vmul.f32 %v8873_v52, %v7452_v44 }
 0x27b   : > { %v764_v19 = vrot.slane %v644_v0, 1  ;;  %v2217_v47 = vpack.c.bf16 %v2196_v21, %v2195_v1  ;;  %v1006_v55 = vrot.slane %v887_v37, 2  ;;  %v1121_v18 = vmul.f32 %v7653_v9, %v8875_v10 }
 0x27c   : > { %v1007_v59 = vrot.slane %v888_v14, 2  ;;  %v763_v39 = vsel %vm705_vm0, %v761_v5, %v762_v35  ;;  %v1009_v20 = vrot.slane %v889_v23, 2  ;;  %v1122_v13 = vmul.f32 %v7657_v48, %v8875_v10 }
 0x27d   : > { %v765_v4 = vsel %vm705_vm0, %v762_v35, %v764_v19  ;;  %5284 = vmatprep.mubr.msk.bf16.mxu0 %vm4035_vm2, %v2217_v47  ;;  %v840_v42 = vadd.f32 %v763_v39, %v563_v33  ;;  %v1200_v32 = vmul.f32 %v7653_v9, %v8877_v11  ;;  %v1201_v7 = vmul.f32 %v7657_v48, %v8877_v11 }
 0x27e   : > { %v841_v50 = vadd.f32 %v765_v4, %v564_v40  ;;  %v1008_v44 = vsel %vm950_vm1, %v1006_v55, %v1007_v59  ;;  %v1010_v62 = vsel %vm950_vm1, %v1007_v59, %v1009_v20  ;;  %v1202_v41 = vmul.f32 %v8877_v11, %v7660_v53  ;;  %v2266_v20 = vld [vmem:[%s6063_s23 + $0x9c] sm:$0xff]  }
 0x27f   : > { %v1444_v12 = vmul.f32 %v7653_v9, %v8878_v51  ;;  %v1085_v6 = vadd.f32 %v1008_v44, %v840_v42  ;;  %v1318_v33 = vrot.slane %v1200_v32, 1  ;;  %v1445_v56 = vmul.f32 %v7657_v48, %v8878_v51 }
 0x280   : > { %v1086_v16 = vadd.f32 %v1010_v62, %v841_v50  ;;  %v1319_v54 = vrot.slane %v1201_v7, 1  ;;  %v1321_v45 = vrot.slane %v1202_v41, 1  ;;  %v1446_v40 = vmul.f32 %v8878_v51, %v7660_v53 }
 0x281   : > { %v1562_v3 = vrot.slane %v1444_v12, 2  ;;  %v1153_v17 = vadd.f32 %v1121_v18, %v1085_v6  ;;  %v1563_v1 = vrot.slane %v1445_v56, 2  ;;  %v1677_v21 = vmul.f32 %v8879_v36, %v7723_v15  ;;  %v2268_v12 = vld [vmem:[%s6063_s23 + $0xa4] sm:$0x1] }
 0x282   : > { %v1154_v0 = vadd.f32 %v1122_v13, %v1086_v16  ;;  %v1320_v37 = vsel %vm705_vm0, %v1318_v33, %v1319_v54  ;;  %v1322_v14 = vsel %vm705_vm0, %v1319_v54, %v1321_v45  ;;  %v1565_v5 = vrot.slane %v1446_v40, 2 }
 0x283   : > { %v1678_v35 = vmul.f32 %v8879_v36, %v7726_v2  ;;  %v1397_v19 = vadd.f32 %v1320_v37, %v1153_v17  ;;  %v1564_v47 = vsel %vm950_vm1, %v1562_v3, %v1563_v1  ;;  %v1756_v55 = vmul.f32 %v8880_v49, %v7723_v15 }
 0x284   : > { %v1398_v23 = vadd.f32 %v1322_v14, %v1154_v0  ;;  %v1566_v59 = vsel %vm950_vm1, %v1563_v1, %v1565_v5  ;;  %v1757_v18 = vmul.f32 %v8880_v49, %v7726_v2  ;;  %v1758_v39 = vmul.f32 %v8880_v49, %v7728_v29 }
 0x285   : > { %v2000_v4 = vmul.f32 %v7437_v38, %v7723_v15  ;;  %v1641_v13 = vadd.f32 %v1564_v47, %v1397_v19  ;;  %v1874_v50 = vrot.slane %v1756_v55, 1  ;;  %v2001_v44 = vmul.f32 %v7437_v38, %v7726_v2 }
 0x286   : > { %v1642_v42 = vadd.f32 %v1566_v59, %v1398_v23  ;;  %v1875_v32 = vrot.slane %v1757_v18, 1  ;;  %v1877_v62 = vrot.slane %v1758_v39, 1  ;;  %v2002_v7 = vmul.f32 %v7437_v38, %v7728_v29 }
 0x287   : > { %v2118_v41 = vrot.slane %v2000_v4, 2  ;;  %v1709_v6 = vadd.f32 %v1677_v21, %v1641_v13  ;;  %v2119_v33 = vrot.slane %v2001_v44, 2  ;;  %v7791_v56 = vunpack.c.l.bf16 %v2266_v20 }
 0x288   : > { %v1710_v16 = vadd.f32 %v1678_v35, %v1642_v42  ;;  %v1876_v54 = vsel %vm705_vm0, %v1874_v50, %v1875_v32  ;;  %v1878_v45 = vsel %vm705_vm0, %v1875_v32, %v1877_v62  ;;  %v2121_v40 = vrot.slane %v2002_v7, 2 }
 0x289   : > { %v7795_v3 = vunpack.c.h.bf16 %v2266_v20  ;;  %v1953_v17 = vadd.f32 %v1876_v54, %v1709_v6  ;;  %v2120_v1 = vsel %vm950_vm1, %v2118_v41, %v2119_v33  ;;  %v7798_v37 = vunpack.c.l.bf16 %v2268_v12 }
 0x28a   : > { %v1954_v0 = vadd.f32 %v1878_v45, %v1710_v16  ;;  %v2122_v38 = vsel %vm950_vm1, %v2119_v33, %v2121_v40  ;;  %v2361_v21 = vmul.f32 %v6596_v30, %v7515_v57  ;;  %v2362_v14 = vmul.f32 %v6596_v30, %v7519_v31 }
 0x28b   : > { %v2440_v5 = vmul.f32 %v6594_v34, %v7515_v57  ;;  %v2197_v35 = vadd.f32 %v2120_v1, %v1953_v17  ;;  %v2441_v23 = vmul.f32 %v6594_v34, %v7519_v31  ;;  %v2442_v47 = vmul.f32 %v6594_v34, %v7522_v28 }
 0x28c   : > { %v2198_v19 = vadd.f32 %v2122_v38, %v1954_v0  ;;  %v2684_v59 = vmul.f32 %v6634_v22, %v7515_v57  ;;  %v2685_v18 = vmul.f32 %v6634_v22, %v7519_v31  ;;  %v2686_v39 = vmul.f32 %v6634_v22, %v7522_v28 }
 0x28d   : > { %v2558_v55 = vrot.slane %v2440_v5, 1  ;;  %v2559_v20 = vrot.slane %v2441_v23, 1  ;;  %v2561_v13 = vrot.slane %v2442_v47, 1  ;;  %v2917_v42 = vmul.f32 %v7585_v25, %v6659_v58 }
 0x28e   : > { %v2218_v4 = vpack.c.bf16 %v2198_v19, %v2197_v35  ;;  %v2802_v50 = vrot.slane %v2684_v59, 2  ;;  %v2803_v44 = vrot.slane %v2685_v18, 2  ;;  %v2805_v32 = vrot.slane %v2686_v39, 2 }
 0x28f   : > { %v2918_v62 = vmul.f32 %v7588_v43, %v6659_v58  ;;  %v2560_v57 = vsel %vm705_vm0, %v2558_v55, %v2559_v20  ;;  %v2562_v31 = vsel %vm705_vm0, %v2559_v20, %v2561_v13  ;;  %v2996_v28 = vmul.f32 %v7585_v25, %v6636_v26 }
 0x290   : > { %5285 = vmatmul.mubr.msk.bf16.gmra.mrb[20].mxu0 %vm4035_vm2, %v2218_v4  ;;  %v2997_v7 = vmul.f32 %v7588_v43, %v6636_v26  ;;  %v2637_v41 = vadd.f32 %v2560_v57, %v2361_v21  ;;  %v2638_v12 = vadd.f32 %v2562_v31, %v2362_v14  ;;  %v2804_v6 = vsel %vm950_vm1, %v2802_v50, %v2803_v44 }
 0x291   : > { %v2806_v16 = vsel %vm950_vm1, %v2803_v44, %v2805_v32  ;;  %v2998_v33 = vmul.f32 %v6636_v26, %v7590_v60  ;;  %v3114_v54 = vrot.slane %v2996_v28, 1  ;;  %v3240_v40 = vmul.f32 %v7585_v25, %v6661_v27  ;;  %v5186_v44 = vld [vmem:[%s6063_s23 + $0xa8] sm:$0xff]  }
 0x292   : > { %v3115_v45 = vrot.slane %v2997_v7, 1  ;;  %v2881_v17 = vadd.f32 %v2804_v6, %v2637_v41  ;;  %v2882_v0 = vadd.f32 %v2806_v16, %v2638_v12  ;;  %v3241_v1 = vmul.f32 %v7588_v43, %v6661_v27  ;;  %v2271_v6 = vld [vmem:[%s6063_s23 + $0xb0] sm:$0x1] }
 0x293   : > { %v3242_v38 = vmul.f32 %v6661_v27, %v7590_v60  ;;  %v3117_v14 = vrot.slane %v2998_v33, 1  ;;  %v3358_v5 = vrot.slane %v3240_v40, 2  ;;  %v3473_v35 = vmul.f32 %v6681_v24, %v7791_v56 }
 0x294   : > { %v3116_v21 = vsel %vm705_vm0, %v3114_v54, %v3115_v45  ;;  %v2949_v19 = vadd.f32 %v2917_v42, %v2881_v17  ;;  %v2950_v23 = vadd.f32 %v2918_v62, %v2882_v0  ;;  %v3359_v47 = vrot.slane %v3241_v1, 2 }
 0x295   : > { %v3361_v55 = vrot.slane %v3242_v38, 2  ;;  %v3118_v59 = vsel %vm705_vm0, %v3115_v45, %v3117_v14  ;;  %v3474_v18 = vmul.f32 %v6681_v24, %v7795_v3  ;;  %v3552_v39 = vmul.f32 %v6679_v8, %v7791_v56 }
 0x296   : > { %v3553_v4 = vmul.f32 %v6679_v8, %v7795_v3  ;;  %v3193_v20 = vadd.f32 %v3116_v21, %v2949_v19  ;;  %v3194_v13 = vadd.f32 %v3118_v59, %v2950_v23  ;;  %v3360_v50 = vsel %vm950_vm1, %v3358_v5, %v3359_v47 }
 0x297   : > { %v3362_v42 = vsel %vm950_vm1, %v3359_v47, %v3361_v55  ;;  %v3554_v32 = vmul.f32 %v6679_v8, %v7798_v37  ;;  %v3670_v62 = vrot.slane %v3552_v39, 1  ;;  %v3796_v31 = vmul.f32 %v6696_v46, %v7791_v56 }
 0x298   : > { %v3671_v57 = vrot.slane %v3553_v4, 1  ;;  %v3437_v28 = vadd.f32 %v3360_v50, %v3193_v20  ;;  %v3438_v7 = vadd.f32 %v3362_v42, %v3194_v13  ;;  %v3797_v41 = vmul.f32 %v6696_v46, %v7795_v3 }
 0x299   : > { %v3798_v12 = vmul.f32 %v6696_v46, %v7798_v37  ;;  %v3673_v33 = vrot.slane %v3554_v32, 1  ;;  %v3914_v54 = vrot.slane %v3796_v31, 2  ;;  %v7861_v45 = vunpack.c.l.bf16 %v5186_v44 }
 0x29a   : > { %v3672_v16 = vsel %vm705_vm0, %v3670_v62, %v3671_v57  ;;  %v3505_v40 = vadd.f32 %v3473_v35, %v3437_v28  ;;  %v3506_v17 = vadd.f32 %v3474_v18, %v3438_v7  ;;  %v3915_v0 = vrot.slane %v3797_v41, 2 }
 0x29b   : > { %v3917_v1 = vrot.slane %v3798_v12, 2  ;;  %v3674_v38 = vsel %vm705_vm0, %v3671_v57, %v3673_v33  ;;  %v7864_v21 = vunpack.c.h.bf16 %v5186_v44  ;;  %v7866_v14 = vunpack.c.l.bf16 %v2271_v6 }
 0x29c   : > { %v2363_v5 = vmul.f32 %v7585_v25, %v6596_v30  ;;  %v3749_v19 = vadd.f32 %v3672_v16, %v3505_v40  ;;  %v3750_v23 = vadd.f32 %v3674_v38, %v3506_v17  ;;  %v3916_v47 = vsel %vm950_vm1, %v3914_v54, %v3915_v0 }
 0x29d   : > { %v3918_v55 = vsel %vm950_vm1, %v3915_v0, %v3917_v1  ;;  %v2364_v35 = vmul.f32 %v7588_v43, %v6596_v30  ;;  %v2443_v59 = vmul.f32 %v7585_v25, %v6594_v34  ;;  %v2444_v18 = vmul.f32 %v7588_v43, %v6594_v34 }
 0x29e   : > { %v2445_v39 = vmul.f32 %v6594_v34, %v7590_v60  ;;  %v3993_v4 = vadd.f32 %v3916_v47, %v3749_v19  ;;  %v3994_v20 = vadd.f32 %v3918_v55, %v3750_v23  ;;  %v2687_v13 = vmul.f32 %v7585_v25, %v6634_v22 }
 0x29f   : > { %v2688_v50 = vmul.f32 %v7588_v43, %v6634_v22  ;;  %v2563_v42 = vrot.slane %v2443_v59, 1  ;;  %v2564_v44 = vrot.slane %v2444_v18, 1  ;;  %v2689_v62 = vmul.f32 %v6634_v22, %v7590_v60 }
 0x2a0   : > { %v2566_v32 = vrot.slane %v2445_v39, 1  ;;  %v4014_v57 = vpack.c.bf16 %v3994_v20, %v3993_v4  ;;  %v2807_v31 = vrot.slane %v2687_v13, 2  ;;  %v2919_v7 = vmul.f32 %v6659_v58, %v7791_v56 }
 0x2a1   : > { %v2808_v28 = vrot.slane %v2688_v50, 2  ;;  %v2565_v41 = vsel %vm705_vm0, %v2563_v42, %v2564_v44  ;;  %v2810_v25 = vrot.slane %v2689_v62, 2  ;;  %v2920_v43 = vmul.f32 %v6659_v58, %v7795_v3 }
 0x2a2   : > { %v2567_v12 = vsel %vm705_vm0, %v2564_v44, %v2566_v32  ;;  %5249 = vmatmul.mubr.msk.bf16.gmra.mrb[20].mxu1 %vm4035_vm2, %v4014_v57  ;;  %v2639_v6 = vadd.f32 %v2565_v41, %v2363_v5  ;;  %v2999_v33 = vmul.f32 %v6636_v26, %v7791_v56  ;;  %v3000_v40 = vmul.f32 %v6636_v26, %v7795_v3 }
 0x2a3   : > { %v2640_v16 = vadd.f32 %v2567_v12, %v2364_v35  ;;  %v2809_v60 = vsel %vm950_vm1, %v2807_v31, %v2808_v28  ;;  %v2811_v54 = vsel %vm950_vm1, %v2808_v28, %v2810_v25  ;;  %v3001_v17 = vmul.f32 %v6636_v26, %v7798_v37  ;;  %v5178_v12 = vld [vmem:[%s6056_s8 + $0xa8] sm:$0xff]  }
 0x2a4   : > { %v3243_v0 = vmul.f32 %v6661_v27, %v7791_v56  ;;  %v2883_v1 = vadd.f32 %v2809_v60, %v2639_v6  ;;  %v3119_v5 = vrot.slane %v2999_v33, 1  ;;  %v3244_v19 = vmul.f32 %v6661_v27, %v7795_v3 }
 0x2a5   : > { %v2884_v38 = vadd.f32 %v2811_v54, %v2640_v16  ;;  %v3120_v23 = vrot.slane %v3000_v40, 1  ;;  %v3122_v47 = vrot.slane %v3001_v17, 1  ;;  %v3245_v55 = vmul.f32 %v6661_v27, %v7798_v37  ;;  %v473_v17 = vld [vmem:[%s6056_s8 + $0xb0] sm:$0x1] }
 0x2a6   : > { %v3363_v35 = vrot.slane %v3243_v0, 2  ;;  %v2951_v59 = vadd.f32 %v2919_v7, %v2883_v1  ;;  %v3364_v39 = vrot.slane %v3244_v19, 2  ;;  %v3475_v4 = vmul.f32 %v7861_v45, %v6681_v24 }
 0x2a7   : > { %v2952_v18 = vadd.f32 %v2920_v43, %v2884_v38  ;;  %v3121_v20 = vsel %vm705_vm0, %v3119_v5, %v3120_v23  ;;  %v3123_v13 = vsel %vm705_vm0, %v3120_v23, %v3122_v47  ;;  %v3366_v50 = vrot.slane %v3245_v55, 2 }
 0x2a8   : > { %v3476_v42 = vmul.f32 %v7864_v21, %v6681_v24  ;;  %v3195_v44 = vadd.f32 %v3121_v20, %v2951_v59  ;;  %v3365_v62 = vsel %vm950_vm1, %v3363_v35, %v3364_v39  ;;  %v3555_v57 = vmul.f32 %v7861_v45, %v6679_v8 }
 0x2a9   : > { %v3196_v32 = vadd.f32 %v3123_v13, %v2952_v18  ;;  %v3367_v31 = vsel %vm950_vm1, %v3364_v39, %v3366_v50  ;;  %v3556_v28 = vmul.f32 %v7864_v21, %v6679_v8  ;;  %v3557_v7 = vmul.f32 %v6679_v8, %v7866_v14 }
 0x2aa   : > { %v3799_v41 = vmul.f32 %v7861_v45, %v6696_v46  ;;  %v3439_v25 = vadd.f32 %v3365_v62, %v3195_v44  ;;  %v3675_v6 = vrot.slane %v3555_v57, 1  ;;  %v3800_v16 = vmul.f32 %v7864_v21, %v6696_v46 }
 0x2ab   : > { %v3440_v43 = vadd.f32 %v3367_v31, %v3196_v32  ;;  %v3676_v60 = vrot.slane %v3556_v28, 1  ;;  %v3678_v33 = vrot.slane %v3557_v7, 1  ;;  %v3801_v54 = vmul.f32 %v6696_v46, %v7866_v14 }
 0x2ac   : > { %v3919_v40 = vrot.slane %v3799_v41, 2  ;;  %v3507_v0 = vadd.f32 %v3475_v4, %v3439_v25  ;;  %v3920_v38 = vrot.slane %v3800_v16, 2  ;;  %v7929_v5 = vunpack.c.l.bf16 %v5178_v12 }
 0x2ad   : > { %v3508_v1 = vadd.f32 %v3476_v42, %v3440_v43  ;;  %v3677_v19 = vsel %vm705_vm0, %v3675_v6, %v3676_v60  ;;  %v3679_v23 = vsel %vm705_vm0, %v3676_v60, %v3678_v33  ;;  %v3922_v47 = vrot.slane %v3801_v54, 2 }
 0x2ae   : > { %v7933_v55 = vunpack.c.h.bf16 %v5178_v12  ;;  %v3751_v35 = vadd.f32 %v3677_v19, %v3507_v0  ;;  %v3921_v18 = vsel %vm950_vm1, %v3919_v40, %v3920_v38  ;;  %v7936_v39 = vunpack.c.l.bf16 %v473_v17 }
 0x2af   : > { %v3752_v59 = vadd.f32 %v3679_v23, %v3508_v1  ;;  %v3923_v20 = vsel %vm950_vm1, %v3920_v38, %v3922_v47  ;;  %v565_v4 = vmul.f32 %v7653_v9, %v8868_v61  ;;  %v566_v13 = vmul.f32 %v7657_v48, %v8868_v61 }
 0x2b0   : > { %v645_v50 = vmul.f32 %v7653_v9, %v8871_v63  ;;  %v3995_v42 = vadd.f32 %v3921_v18, %v3751_v35  ;;  %v646_v32 = vmul.f32 %v7657_v48, %v8871_v63  ;;  %v647_v62 = vmul.f32 %v8871_v63, %v7660_v53  ;;  %v7972_v35 = vpop.f32.mrb[0].mxu0 }
 0x2b1   : > { %v3996_v44 = vadd.f32 %v3923_v20, %v3752_v59  ;;  %v890_v31 = vmul.f32 %v7653_v9, %v8873_v52  ;;  %v891_v28 = vmul.f32 %v7657_v48, %v8873_v52  ;;  %v892_v7 = vmul.f32 %v8873_v52, %v7660_v53  ;;  %v7974_v59 = vpop.f32.mrb[0].mxu1 }
 0x2b2   : > { %v766_v57 = vrot.slane %v645_v50, 1  ;;  %v767_v12 = vrot.slane %v646_v32, 1  ;;  %v769_v25 = vrot.slane %v647_v62, 1  ;;  %v1123_v43 = vmul.f32 %v8875_v10, %v7723_v15  ;;  %v7980_v50 = vpop.f32.mrb[1].mxu0 }
 0x2b3   : > { %v4015_v41 = vpack.c.bf16 %v3996_v44, %v3995_v42  ;;  %v1011_v6 = vrot.slane %v890_v31, 2  ;;  %v1012_v16 = vrot.slane %v891_v28, 2  ;;  %v1014_v60 = vrot.slane %v892_v7, 2  ;;  %v7982_v42 = vpop.f32.mrb[1].mxu1  ;;  %v7987_v31 = vpop.f32.mrb[2].mxu0 }
 0x2b4   : > { %v1124_v33 = vmul.f32 %v8875_v10, %v7726_v2  ;;  %v768_v9 = vsel %vm705_vm0, %v766_v57, %v767_v12  ;;  %v770_v48 = vsel %vm705_vm0, %v767_v12, %v769_v25  ;;  %v1203_v53 = vmul.f32 %v8877_v11, %v7723_v15  ;;  %v7989_v28 = vpop.f32.mrb[2].mxu1 }
 0x2b5   : > { %5252 = vmatprep.mubr.msk.bf16.mxu1 %vm4035_vm2, %v4015_v41  ;;  %v1204_v54 = vmul.f32 %v8877_v11, %v7726_v2  ;;  %v842_v40 = vadd.f32 %v768_v9, %v565_v4  ;;  %v843_v17 = vadd.f32 %v770_v48, %v566_v13  ;;  %v1013_v0 = vsel %vm950_vm1, %v1011_v6, %v1012_v16  ;;  %v7991_v6 = vpop.f32.mrb[3].mxu0 }
 0x2b6   : > { %v1015_v1 = vsel %vm950_vm1, %v1012_v16, %v1014_v60  ;;  %v1205_v38 = vmul.f32 %v8877_v11, %v7728_v29  ;;  %v1323_v19 = vrot.slane %v1203_v53, 1  ;;  %v1447_v47 = vmul.f32 %v8878_v51, %v7723_v15  ;;  %v7993_v16 = vpop.f32.mrb[3].mxu1 }
 0x2b7   : > { %v1324_v23 = vrot.slane %v1204_v54, 1  ;;  %v1087_v18 = vadd.f32 %v1013_v0, %v842_v40  ;;  %v1088_v20 = vadd.f32 %v1015_v1, %v843_v17  ;;  %v1448_v4 = vmul.f32 %v8878_v51, %v7726_v2  ;;  %v474_v17 = vld [vmem:[%s6056_s8 + $0xb4] sm:$0xff]   ;;  %v8005_v0 = vpop.f32.mrb[4].mxu0  ;;  %v8007_v1 = vpop.f32.mrb[4].mxu1 }
 0x2b8   : > { %v1449_v13 = vmul.f32 %v8878_v51, %v7728_v29  ;;  %v1326_v32 = vrot.slane %v1205_v38, 1  ;;  %v1567_v62 = vrot.slane %v1447_v47, 2  ;;  %v1679_v57 = vmul.f32 %v7929_v5, %v8879_v36  ;;  %8881 = vst [vmem:[#allocation40_spill] sm:$0xff] %v8005_v0  ;;  %8882 = vst [vmem:[#allocation41_spill] sm:$0xff] %v8007_v1  ;;  %v8012_v47 = vld [vmem:[%s6070_s17 + $0x8] ss:$0 sm:$0xff] }
 0x2b9   : > { %v1325_v44 = vsel %vm705_vm0, %v1323_v19, %v1324_v23  ;;  %v1155_v7 = vadd.f32 %v1123_v43, %v1087_v18  ;;  %v1156_v41 = vadd.f32 %v1124_v33, %v1088_v20  ;;  %v1568_v12 = vrot.slane %v1448_v4, 2  ;;  %v8016_v20 = vpop.f32.mrb[5].mxu0  ;;  %v8018_v4 = vpop.f32.mrb[5].mxu1 }
 0x2ba   : > { %v1570_v25 = vrot.slane %v1449_v13, 2  ;;  %v1327_v60 = vsel %vm705_vm0, %v1324_v23, %v1326_v32  ;;  %v1680_v9 = vmul.f32 %v7933_v55, %v8879_v36  ;;  %v1759_v48 = vmul.f32 %v7929_v5, %v8880_v49  ;;  %8883 = vst [vmem:[#allocation28_spill] sm:$0xff] %v8016_v20  ;;  %8884 = vst [vmem:[#allocation35_spill] sm:$0xff] %v8018_v4 }
 0x2bb   : > { %v1760_v53 = vmul.f32 %v7933_v55, %v8880_v49  ;;  %v1399_v43 = vadd.f32 %v1325_v44, %v1155_v7  ;;  %v1400_v33 = vadd.f32 %v1327_v60, %v1156_v41  ;;  %v1569_v54 = vsel %vm950_vm1, %v1567_v62, %v1568_v12  ;;  %v476_v7 = vld [vmem:[%s6056_s8 + $0xbc] sm:$0x1]  ;;  %v8025_v41 = vpop.f32.mrb[6].mxu0 }
 0x2bc   : > { %v1571_v40 = vsel %vm950_vm1, %v1568_v12, %v1570_v25  ;;  %v1761_v38 = vmul.f32 %v8880_v49, %v7936_v39  ;;  %v1879_v19 = vrot.slane %v1759_v48, 1  ;;  %v2003_v18 = vmul.f32 %v8012_v47, %v7929_v5  ;;  %8885 = vst [vmem:[#allocation36_spill] sm:$0xff] %v8025_v41 }
 0x2bd   : > { %v1880_v23 = vrot.slane %v1760_v53, 1  ;;  %v1643_v13 = vadd.f32 %v1569_v54, %v1399_v43  ;;  %v1644_v44 = vadd.f32 %v1571_v40, %v1400_v33  ;;  %v2004_v32 = vmul.f32 %v8012_v47, %v7933_v55  ;;  %v8030_v53 = vpop.f32.mrb[7].mxu0  ;;  %v8032_v40 = vpop.f32.mrb[6].mxu1 }
 0x2be   : > { %v2005_v62 = vmul.f32 %v8012_v47, %v7936_v39  ;;  %v1882_v25 = vrot.slane %v1761_v38, 1  ;;  %v2123_v60 = vrot.slane %v2003_v18, 2  ;;  %v8028_v48 = vunpack.c.l.bf16 %v474_v17  ;;  %8886 = vst [vmem:[#allocation27_spill] sm:$0xff] %v8030_v53  ;;  %8887 = vst [vmem:[#allocation37_spill] sm:$0xff] %v8032_v40 }
 0x2bf   : > { %v1881_v12 = vsel %vm705_vm0, %v1879_v19, %v1880_v23  ;;  %v1711_v20 = vadd.f32 %v1679_v57, %v1643_v13  ;;  %v1712_v43 = vadd.f32 %v1680_v9, %v1644_v44  ;;  %v2124_v33 = vrot.slane %v2004_v32, 2  ;;  %v8041_v19 = vpop.f32.mrb[7].mxu1 }
 0x2c0   : > { %v2126_v54 = vrot.slane %v2005_v62, 2  ;;  %v1883_v4 = vsel %vm705_vm0, %v1880_v23, %v1882_v25  ;;  %v8035_v0 = vunpack.c.h.bf16 %v474_v17  ;;  %v8037_v1 = vunpack.c.l.bf16 %v476_v7  ;;  %8888 = vst [vmem:[#allocation29_spill] sm:$0xff] %v8041_v19  ;;  %v8057_v7 = vpop.f32.mrb[8].mxu0 }
 0x2c1   : > { %v567_v38 = vmul.f32 %v8868_v61, %v7723_v15  ;;  %v1955_v18 = vadd.f32 %v1881_v12, %v1711_v20  ;;  %v1956_v41 = vadd.f32 %v1883_v4, %v1712_v43  ;;  %v2125_v57 = vsel %vm950_vm1, %v2123_v60, %v2124_v33  ;;  %8889 = vst [vmem:[#allocation38_spill] sm:$0xff] %v8057_v7  ;;  %v8059_v12 = vpop.f32.mrb[8].mxu1 }
 0x2c2   : > { %v2127_v9 = vsel %vm950_vm1, %v2124_v33, %v2126_v54  ;;  %v568_v13 = vmul.f32 %v8868_v61, %v7726_v2  ;;  %v648_v17 = vmul.f32 %v8871_v63, %v7723_v15  ;;  %v649_v23 = vmul.f32 %v8871_v63, %v7726_v2  ;;  %8890 = vst [vmem:[#allocation31_spill] sm:$0xff] %v8059_v12  ;;  %v8063_v54 = vpop.f32.mrb[9].mxu0 }
 0x2c3   : > { %v650_v44 = vmul.f32 %v8871_v63, %v7728_v29  ;;  %v2199_v32 = vadd.f32 %v2125_v57, %v1955_v18  ;;  %v2200_v62 = vadd.f32 %v2127_v9, %v1956_v41  ;;  %v893_v20 = vmul.f32 %v8873_v52, %v7723_v15  ;;  %8891 = vst [vmem:[#allocation39_spill] sm:$0xff] %v8063_v54  ;;  %v8065_v18 = vpop.f32.mrb[9].mxu1  ;;  %v8069_v9 = vpop.f32.mrb[10].mxu0 }
 0x2c4   : > { %v894_v4 = vmul.f32 %v8873_v52, %v7726_v2  ;;  %v771_v25 = vrot.slane %v648_v17, 1  ;;  %v772_v60 = vrot.slane %v649_v23, 1  ;;  %v895_v33 = vmul.f32 %v8873_v52, %v7728_v29  ;;  %8892 = vst [vmem:[#allocation30_spill] sm:$0xff] %v8065_v18  ;;  %8893 = vst [vmem:[#allocation32_spill] sm:$0xff] %v8069_v9  ;;  %v8081_v9 = vpop.f32.mrb[10].mxu1 }
 0x2c5   : > { %v774_v43 = vrot.slane %v650_v44, 1  ;;  %v2219_v41 = vpack.c.bf16 %v2200_v62, %v2199_v32  ;;  %v1016_v57 = vrot.slane %v893_v20, 2  ;;  %v1125_v2 = vmul.f32 %v7929_v5, %v8875_v10  ;;  %v8075_v44 = vpop.f32.mrb[11].mxu0  ;;  %8895 = vst [vmem:[#allocation33_spill] sm:$0xff] %v8081_v9 }
 0x2c6   : > { %v1017_v15 = vrot.slane %v894_v4, 2  ;;  %v773_v7 = vsel %vm705_vm0, %v771_v25, %v772_v60  ;;  %v1019_v23 = vrot.slane %v895_v33, 2  ;;  %v1126_v29 = vmul.f32 %v7933_v55, %v8875_v10  ;;  %8894 = vst [vmem:[#allocation34_spill] sm:$0xff] %v8075_v44 }
 0x2c7   : > { %v775_v17 = vsel %vm705_vm0, %v772_v60, %v774_v43  ;;  %5288 = vmatprep.mubr.msk.bf16.mxu0 %vm4035_vm2, %v2219_v41  ;;  %v844_v32 = vadd.f32 %v773_v7, %v567_v38  ;;  %v1206_v4 = vmul.f32 %v7929_v5, %v8877_v11  ;;  %v1207_v60 = vmul.f32 %v7933_v55, %v8877_v11  ;;  %v8090_v38 = vpop.f32.mrb[11].mxu1 }
 0x2c8   : > { %v845_v62 = vadd.f32 %v775_v17, %v568_v13  ;;  %v1018_v20 = vsel %vm950_vm1, %v1016_v57, %v1017_v15  ;;  %v1020_v25 = vsel %vm950_vm1, %v1017_v15, %v1019_v23  ;;  %v1208_v43 = vmul.f32 %v8877_v11, %v7936_v39  ;;  %8896 = vst [vmem:[#allocation42_spill] sm:$0xff] %v8090_v38 }
 0x2c9   : > { %v1450_v33 = vmul.f32 %v7929_v5, %v8878_v51  ;;  %v1089_v13 = vadd.f32 %v1018_v20, %v844_v32  ;;  %v1328_v41 = vrot.slane %v1206_v4, 1  ;;  %v1451_v57 = vmul.f32 %v7933_v55, %v8878_v51 }
 0x2ca   : > { %v1090_v7 = vadd.f32 %v1020_v25, %v845_v62  ;;  %v1329_v17 = vrot.slane %v1207_v60, 1  ;;  %v1331_v44 = vrot.slane %v1208_v43, 1  ;;  %v1452_v15 = vmul.f32 %v8878_v51, %v7936_v39 }
 0x2cb   : > { %v1572_v23 = vrot.slane %v1450_v33, 2  ;;  %v1157_v9 = vadd.f32 %v1125_v2, %v1089_v13  ;;  %v1573_v18 = vrot.slane %v1451_v57, 2  ;;  %v1681_v12 = vmul.f32 %v8879_v36, %v8028_v48 }
 0x2cc   : > { %v1158_v54 = vadd.f32 %v1126_v29, %v1090_v7  ;;  %v1330_v32 = vsel %vm705_vm0, %v1328_v41, %v1329_v17  ;;  %v1332_v62 = vsel %vm705_vm0, %v1329_v17, %v1331_v44  ;;  %v1575_v20 = vrot.slane %v1452_v15, 2  ;;  %v2272_v7 = vld [vmem:[%s6063_s23 + $0xb4] sm:$0xff]  }
 0x2cd   : > { %v1682_v4 = vmul.f32 %v8879_v36, %v8035_v0  ;;  %v1401_v25 = vadd.f32 %v1330_v32, %v1157_v9  ;;  %v1574_v43 = vsel %vm950_vm1, %v1572_v23, %v1573_v18  ;;  %v1762_v2 = vmul.f32 %v8880_v49, %v8028_v48 }
 0x2ce   : > { %v1402_v60 = vadd.f32 %v1332_v62, %v1158_v54  ;;  %v1576_v29 = vsel %vm950_vm1, %v1573_v18, %v1575_v20  ;;  %v1763_v33 = vmul.f32 %v8880_v49, %v8035_v0  ;;  %v1764_v44 = vmul.f32 %v8880_v49, %v8037_v1  ;;  %v2274_v20 = vld [vmem:[%s6063_s23 + $0xbc] sm:$0x1] }
 0x2cf   : > { %v2006_v13 = vmul.f32 %v8012_v47, %v8028_v48  ;;  %v8113_v9 = vpop.f32.mrb[12].mxu0  ;;  %v1645_v54 = vadd.f32 %v1574_v43, %v1401_v25  ;;  %v1884_v57 = vrot.slane %v1762_v2, 1  ;;  %v2007_v17 = vmul.f32 %v8012_v47, %v8035_v0 }
 0x2d0   : > { %8897 = vst [vmem:[#allocation43_spill] sm:$0xff] %v8113_v9  ;;  %v1646_v41 = vadd.f32 %v1576_v29, %v1402_v60  ;;  %v8117_v15 = vpop.f32.mrb[13].mxu0  ;;  %v1885_v18 = vrot.slane %v1763_v33, 1  ;;  %v1887_v23 = vrot.slane %v1764_v44, 1  ;;  %v2008_v32 = vmul.f32 %v8012_v47, %v8037_v1 }
 0x2d1   : > { %8898 = vst [vmem:[#allocation44_spill] sm:$0xff] %v8117_v15  ;;  %v2128_v62 = vrot.slane %v2006_v13, 2  ;;  %v8122_v38 = vpop.f32.mrb[14].mxu0  ;;  %v1713_v53 = vadd.f32 %v1681_v12, %v1645_v54  ;;  %v2129_v9 = vrot.slane %v2007_v17, 2  ;;  %v8124_v25 = vunpack.c.l.bf16 %v2272_v7 }
 0x2d2   : > { %8899 = vst [vmem:[#allocation45_spill] sm:$0xff] %v8122_v38  ;;  %v1714_v19 = vadd.f32 %v1682_v4, %v1646_v41  ;;  %v8126_v60 = vpop.f32.mrb[15].mxu0  ;;  %v1886_v43 = vsel %vm705_vm0, %v1884_v57, %v1885_v18  ;;  %v1888_v2 = vsel %vm705_vm0, %v1885_v18, %v1887_v23  ;;  %v2131_v29 = vrot.slane %v2008_v32, 2 }
 0x2d3   : > { %8900 = vst [vmem:[#allocation46_spill] sm:$0xff] %v8126_v60  ;;  %v8130_v33 = vunpack.c.h.bf16 %v2272_v7  ;;  %v1957_v44 = vadd.f32 %v1886_v43, %v1713_v53  ;;  %v2130_v13 = vsel %vm950_vm1, %v2128_v62, %v2129_v9  ;;  %v8133_v40 = vunpack.c.l.bf16 %v2274_v20 }
 0x2d4   : > { %v1958_v15 = vadd.f32 %v1888_v2, %v1714_v19  ;;  %v2132_v12 = vsel %vm950_vm1, %v2129_v9, %v2131_v29  ;;  %v2365_v4 = vmul.f32 %v6596_v30, %v7791_v56  ;;  %v2366_v54 = vmul.f32 %v6596_v30, %v7795_v3 }
 0x2d5   : > { %v2446_v41 = vmul.f32 %v6594_v34, %v7791_v56  ;;  %v2201_v57 = vadd.f32 %v2130_v13, %v1957_v44  ;;  %v2447_v53 = vmul.f32 %v6594_v34, %v7795_v3  ;;  %v2448_v19 = vmul.f32 %v6594_v34, %v7798_v37 }
 0x2d6   : > { %v2202_v7 = vadd.f32 %v2132_v12, %v1958_v15  ;;  %v2690_v9 = vmul.f32 %v6634_v22, %v7791_v56  ;;  %v2691_v18 = vmul.f32 %v6634_v22, %v7795_v3  ;;  %v2692_v23 = vmul.f32 %v6634_v22, %v7798_v37 }
 0x2d7   : > { %v2568_v17 = vrot.slane %v2446_v41, 1  ;;  %v2569_v62 = vrot.slane %v2447_v53, 1  ;;  %v2571_v20 = vrot.slane %v2448_v19, 1  ;;  %v2921_v15 = vmul.f32 %v7861_v45, %v6659_v58 }
 0x2d8   : > { %v2220_v32 = vpack.c.bf16 %v2202_v7, %v2201_v57  ;;  %v2812_v43 = vrot.slane %v2690_v9, 2  ;;  %v2813_v2 = vrot.slane %v2691_v18, 2  ;;  %v2815_v29 = vrot.slane %v2692_v23, 2 }
 0x2d9   : > { %v2922_v44 = vmul.f32 %v7864_v21, %v6659_v58  ;;  %v2570_v56 = vsel %vm705_vm0, %v2568_v17, %v2569_v62  ;;  %v2572_v3 = vsel %vm705_vm0, %v2569_v62, %v2571_v20  ;;  %v3002_v37 = vmul.f32 %v7861_v45, %v6636_v26 }
 0x2da   : > { %5289 = vmatmul.mubr.msk.bf16.gmra.mrb[24].mxu0 %vm4035_vm2, %v2220_v32  ;;  %v3003_v13 = vmul.f32 %v7864_v21, %v6636_v26  ;;  %v2641_v12 = vadd.f32 %v2570_v56, %v2365_v4  ;;  %v2642_v41 = vadd.f32 %v2572_v3, %v2366_v54  ;;  %v2814_v57 = vsel %vm950_vm1, %v2812_v43, %v2813_v2 }
 0x2db   : > { %v2816_v7 = vsel %vm950_vm1, %v2813_v2, %v2815_v29  ;;  %v3004_v53 = vmul.f32 %v6636_v26, %v7866_v14  ;;  %v3124_v19 = vrot.slane %v3002_v37, 1  ;;  %v3246_v17 = vmul.f32 %v7861_v45, %v6661_v27 }
 0x2dc   : > { %v3125_v9 = vrot.slane %v3003_v13, 1  ;;  %v2885_v18 = vadd.f32 %v2814_v57, %v2641_v12  ;;  %v2886_v23 = vadd.f32 %v2816_v7, %v2642_v41  ;;  %v3247_v32 = vmul.f32 %v7864_v21, %v6661_v27 }
 0x2dd   : > { %v3248_v4 = vmul.f32 %v6661_v27, %v7866_v14  ;;  %v3127_v62 = vrot.slane %v3004_v53, 1  ;;  %v3368_v20 = vrot.slane %v3246_v17, 2  ;;  %v3477_v43 = vmul.f32 %v6681_v24, %v8124_v25 }
 0x2de   : > { %v3126_v54 = vsel %vm705_vm0, %v3124_v19, %v3125_v9  ;;  %v2953_v2 = vadd.f32 %v2921_v15, %v2885_v18  ;;  %v2954_v29 = vadd.f32 %v2922_v44, %v2886_v23  ;;  %v3369_v56 = vrot.slane %v3247_v32, 2  ;;  %v5187_v44 = vld [vmem:[%s6063_s23 + $0xc0] sm:$0xff]  }
 0x2df   : > { %v3371_v3 = vrot.slane %v3248_v4, 2  ;;  %v3128_v37 = vsel %vm705_vm0, %v3125_v9, %v3127_v62  ;;  %v3478_v13 = vmul.f32 %v6681_v24, %v8130_v33  ;;  %v3558_v12 = vmul.f32 %v6679_v8, %v8124_v25 }
 0x2e0   : > { %v3559_v41 = vmul.f32 %v6679_v8, %v8130_v33  ;;  %v3197_v57 = vadd.f32 %v3126_v54, %v2953_v2  ;;  %v3198_v7 = vadd.f32 %v3128_v37, %v2954_v29  ;;  %v3370_v53 = vsel %vm950_vm1, %v3368_v20, %v3369_v56  ;;  %v2277_v20 = vld [vmem:[%s6063_s23 + $0xc8] sm:$0x1] }
 0x2e1   : > { %v3372_v15 = vsel %vm950_vm1, %v3369_v56, %v3371_v3  ;;  %v3560_v19 = vmul.f32 %v6679_v8, %v8133_v40  ;;  %v3680_v9 = vrot.slane %v3558_v12, 1  ;;  %v3802_v18 = vmul.f32 %v6696_v46, %v8124_v25  ;;  %v8190_v23 = vpop.f32.mrb[12].mxu1 }
 0x2e2   : > { %v3681_v17 = vrot.slane %v3559_v41, 1  ;;  %8901 = vst [vmem:[#allocation47_spill] sm:$0xff] %v8190_v23  ;;  %v3441_v32 = vadd.f32 %v3370_v53, %v3197_v57  ;;  %v3442_v4 = vadd.f32 %v3372_v15, %v3198_v7  ;;  %v3803_v54 = vmul.f32 %v6696_v46, %v8130_v33  ;;  %v8197_v2 = vpop.f32.mrb[13].mxu1 }
 0x2e3   : > { %v3804_v62 = vmul.f32 %v6696_v46, %v8133_v40  ;;  %8902 = vst [vmem:[#allocation48_spill] sm:$0xff] %v8197_v2  ;;  %v3683_v56 = vrot.slane %v3560_v19, 1  ;;  %v3924_v3 = vrot.slane %v3802_v18, 2  ;;  %v8200_v37 = vunpack.c.l.bf16 %v5187_v44  ;;  %v8202_v12 = vpop.f32.mrb[14].mxu1 }
 0x2e4   : > { %v3682_v29 = vsel %vm705_vm0, %v3680_v9, %v3681_v17  ;;  %8903 = vst [vmem:[#allocation49_spill] sm:$0xff] %v8202_v12  ;;  %v3509_v41 = vadd.f32 %v3477_v43, %v3441_v32  ;;  %v3510_v57 = vadd.f32 %v3478_v13, %v3442_v4  ;;  %v3925_v7 = vrot.slane %v3803_v54, 2  ;;  %v8204_v15 = vpop.f32.mrb[15].mxu1 }
 0x2e5   : > { %v3927_v53 = vrot.slane %v3804_v62, 2  ;;  %8904 = vst [vmem:[#allocation50_spill] sm:$0xff] %v8204_v15  ;;  %v3684_v60 = vsel %vm705_vm0, %v3681_v17, %v3683_v56  ;;  %v8207_v38 = vunpack.c.h.bf16 %v5187_v44  ;;  %v8209_v23 = vunpack.c.l.bf16 %v2277_v20 }
 0x2e6   : > { %v2367_v19 = vmul.f32 %v7861_v45, %v6596_v30  ;;  %v3753_v9 = vadd.f32 %v3682_v29, %v3509_v41  ;;  %v3754_v18 = vadd.f32 %v3684_v60, %v3510_v57  ;;  %v3926_v2 = vsel %vm950_vm1, %v3924_v3, %v3925_v7 }
 0x2e7   : > { %v3928_v43 = vsel %vm950_vm1, %v3925_v7, %v3927_v53  ;;  %v2368_v13 = vmul.f32 %v7864_v21, %v6596_v30  ;;  %v2449_v32 = vmul.f32 %v7861_v45, %v6594_v34  ;;  %v2450_v44 = vmul.f32 %v7864_v21, %v6594_v34 }
 0x2e8   : > { %v2451_v17 = vmul.f32 %v6594_v34, %v7866_v14  ;;  %v3997_v4 = vadd.f32 %v3926_v2, %v3753_v9  ;;  %v3998_v54 = vadd.f32 %v3928_v43, %v3754_v18  ;;  %v2693_v60 = vmul.f32 %v7861_v45, %v6634_v22 }
 0x2e9   : > { %v2694_v62 = vmul.f32 %v7864_v21, %v6634_v22  ;;  %v2573_v20 = vrot.slane %v2449_v32, 1  ;;  %v2574_v29 = vrot.slane %v2450_v44, 1  ;;  %v2695_v3 = vmul.f32 %v6634_v22, %v7866_v14 }
 0x2ea   : > { %v2576_v56 = vrot.slane %v2451_v17, 1  ;;  %v4016_v41 = vpack.c.bf16 %v3998_v54, %v3997_v4  ;;  %v2817_v57 = vrot.slane %v2693_v60, 2  ;;  %v2923_v53 = vmul.f32 %v6659_v58, %v8124_v25 }
 0x2eb   : > { %v2818_v7 = vrot.slane %v2694_v62, 2  ;;  %v2575_v2 = vsel %vm705_vm0, %v2573_v20, %v2574_v29  ;;  %v2820_v45 = vrot.slane %v2695_v3, 2  ;;  %v2924_v21 = vmul.f32 %v6659_v58, %v8130_v33 }
 0x2ec   : > { %v2577_v9 = vsel %vm705_vm0, %v2574_v29, %v2576_v56  ;;  %5253 = vmatmul.mubr.msk.bf16.gmra.mrb[24].mxu1 %vm4035_vm2, %v4016_v41  ;;  %v2643_v18 = vadd.f32 %v2575_v2, %v2367_v19  ;;  %v3005_v32 = vmul.f32 %v6636_v26, %v8124_v25  ;;  %v3006_v17 = vmul.f32 %v6636_v26, %v8130_v33 }
 0x2ed   : > { %v2644_v43 = vadd.f32 %v2577_v9, %v2368_v13  ;;  %v2819_v14 = vsel %vm950_vm1, %v2817_v57, %v2818_v7  ;;  %v2821_v44 = vsel %vm950_vm1, %v2818_v7, %v2820_v45  ;;  %v3007_v4 = vmul.f32 %v6636_v26, %v8133_v40 }
 0x2ee   : > { %v3249_v54 = vmul.f32 %v6661_v27, %v8124_v25  ;;  %v2887_v60 = vadd.f32 %v2819_v14, %v2643_v18  ;;  %v3129_v19 = vrot.slane %v3005_v32, 1  ;;  %v3250_v13 = vmul.f32 %v6661_v27, %v8130_v33 }
 0x2ef   : > { %v2888_v62 = vadd.f32 %v2821_v44, %v2644_v43  ;;  %v3130_v20 = vrot.slane %v3006_v17, 1  ;;  %v3132_v29 = vrot.slane %v3007_v4, 1  ;;  %v3251_v56 = vmul.f32 %v6661_v27, %v8133_v40 }
 0x2f0   : > { %v3373_v3 = vrot.slane %v3249_v54, 2  ;;  %v2955_v41 = vadd.f32 %v2923_v53, %v2887_v60  ;;  %v3374_v7 = vrot.slane %v3250_v13, 2  ;;  %v3479_v2 = vmul.f32 %v8200_v37, %v6681_v24  ;;  %v5179_v60 = vld [vmem:[%s6056_s8 + $0xc0] sm:$0xff]  }
 0x2f1   : > { %v2956_v57 = vadd.f32 %v2924_v21, %v2888_v62  ;;  %v3131_v9 = vsel %vm705_vm0, %v3129_v19, %v3130_v20  ;;  %v3133_v45 = vsel %vm705_vm0, %v3130_v20, %v3132_v29  ;;  %v3376_v18 = vrot.slane %v3251_v56, 2 }
 0x2f2   : > { %v3480_v43 = vmul.f32 %v8207_v38, %v6681_v24  ;;  %v3199_v14 = vadd.f32 %v3131_v9, %v2955_v41  ;;  %v3375_v44 = vsel %vm950_vm1, %v3373_v3, %v3374_v7  ;;  %v3561_v53 = vmul.f32 %v8200_v37, %v6679_v8 }
 0x2f3   : > { %v3200_v32 = vadd.f32 %v3133_v45, %v2956_v57  ;;  %v3377_v21 = vsel %vm950_vm1, %v3374_v7, %v3376_v18  ;;  %v3562_v17 = vmul.f32 %v8207_v38, %v6679_v8  ;;  %v3563_v4 = vmul.f32 %v6679_v8, %v8209_v23  ;;  %v479_v57 = vld [vmem:[%s6056_s8 + $0xc8] sm:$0x1] }
 0x2f4   : > { %v3805_v54 = vmul.f32 %v8200_v37, %v6696_v46  ;;  %v3443_v62 = vadd.f32 %v3375_v44, %v3199_v14  ;;  %v3685_v13 = vrot.slane %v3561_v53, 1  ;;  %v3806_v20 = vmul.f32 %v8207_v38, %v6696_v46 }
 0x2f5   : > { %v3444_v19 = vadd.f32 %v3377_v21, %v3200_v32  ;;  %v3686_v29 = vrot.slane %v3562_v17, 1  ;;  %v3688_v56 = vrot.slane %v3563_v4, 1  ;;  %v3807_v3 = vmul.f32 %v6696_v46, %v8209_v23 }
 0x2f6   : > { %v3929_v41 = vrot.slane %v3805_v54, 2  ;;  %v3511_v7 = vadd.f32 %v3479_v2, %v3443_v62  ;;  %v3930_v45 = vrot.slane %v3806_v20, 2  ;;  %v8272_v18 = vunpack.c.l.bf16 %v5179_v60 }
 0x2f7   : > { %v3512_v9 = vadd.f32 %v3480_v43, %v3444_v19  ;;  %v3687_v15 = vsel %vm705_vm0, %v3685_v13, %v3686_v29  ;;  %v3689_v14 = vsel %vm705_vm0, %v3686_v29, %v3688_v56  ;;  %v3932_v32 = vrot.slane %v3807_v3, 2 }
 0x2f8   : > { %v8276_v44 = vunpack.c.h.bf16 %v5179_v60  ;;  %v3755_v53 = vadd.f32 %v3687_v15, %v3511_v7  ;;  %v3931_v17 = vsel %vm950_vm1, %v3929_v41, %v3930_v45  ;;  %v8279_v4 = vunpack.c.l.bf16 %v479_v57 }
 0x2f9   : > { %v3756_v21 = vadd.f32 %v3689_v14, %v3512_v9  ;;  %v3933_v54 = vsel %vm950_vm1, %v3930_v45, %v3932_v32  ;;  %v569_v2 = vmul.f32 %v7929_v5, %v8868_v61  ;;  %v570_v43 = vmul.f32 %v7933_v55, %v8868_v61 }
 0x2fa   : > { %v651_v62 = vmul.f32 %v7929_v5, %v8871_v63  ;;  %v3999_v19 = vadd.f32 %v3931_v17, %v3755_v53  ;;  %v652_v15 = vmul.f32 %v7933_v55, %v8871_v63  ;;  %v653_v13 = vmul.f32 %v8871_v63, %v7936_v39 }
 0x2fb   : > { %v4000_v60 = vadd.f32 %v3933_v54, %v3756_v21  ;;  %v896_v29 = vmul.f32 %v7929_v5, %v8873_v52  ;;  %v897_v56 = vmul.f32 %v7933_v55, %v8873_v52  ;;  %v898_v3 = vmul.f32 %v8873_v52, %v7936_v39 }
 0x2fc   : > { %v776_v20 = vrot.slane %v651_v62, 1  ;;  %v777_v57 = vrot.slane %v652_v15, 1  ;;  %v779_v7 = vrot.slane %v653_v13, 1  ;;  %v1127_v9 = vmul.f32 %v8875_v10, %v8028_v48 }
 0x2fd   : > { %v4017_v41 = vpack.c.bf16 %v4000_v60, %v3999_v19  ;;  %v1021_v45 = vrot.slane %v896_v29, 2  ;;  %v1022_v14 = vrot.slane %v897_v56, 2  ;;  %v1024_v32 = vrot.slane %v898_v3, 2 }
 0x2fe   : > { %v1128_v53 = vmul.f32 %v8875_v10, %v8035_v0  ;;  %v778_v5 = vsel %vm705_vm0, %v776_v20, %v777_v57  ;;  %v780_v55 = vsel %vm705_vm0, %v777_v57, %v779_v7  ;;  %v1209_v39 = vmul.f32 %v8877_v11, %v8028_v48 }
 0x2ff   : > { %5256 = vmatprep.mubr.msk.bf16.mxu1 %vm4035_vm2, %v4017_v41  ;;  %v1210_v21 = vmul.f32 %v8877_v11, %v8035_v0  ;;  %v846_v17 = vadd.f32 %v778_v5, %v569_v2  ;;  %v847_v54 = vadd.f32 %v780_v55, %v570_v43  ;;  %v1023_v62 = vsel %vm950_vm1, %v1021_v45, %v1022_v14 }
 0x300   : > { %v1025_v19 = vsel %vm950_vm1, %v1022_v14, %v1024_v32  ;;  %v1211_v60 = vmul.f32 %v8877_v11, %v8037_v1  ;;  %v1333_v15 = vrot.slane %v1209_v39, 1  ;;  %v1453_v20 = vmul.f32 %v8878_v51, %v8028_v48 }
 0x301   : > { %v1334_v13 = vrot.slane %v1210_v21, 1  ;;  %v1091_v29 = vadd.f32 %v1023_v62, %v846_v17  ;;  %v1092_v56 = vadd.f32 %v1025_v19, %v847_v54  ;;  %v1454_v3 = vmul.f32 %v8878_v51, %v8035_v0 }
 0x302   : > { %v1455_v2 = vmul.f32 %v8878_v51, %v8037_v1  ;;  %v1336_v41 = vrot.slane %v1211_v60, 1  ;;  %v1577_v57 = vrot.slane %v1453_v20, 2  ;;  %v1683_v7 = vmul.f32 %v8272_v18, %v8879_v36 }
 0x303   : > { %v1335_v43 = vsel %vm705_vm0, %v1333_v15, %v1334_v13  ;;  %v1159_v45 = vadd.f32 %v1127_v9, %v1091_v29  ;;  %v1160_v14 = vadd.f32 %v1128_v53, %v1092_v56  ;;  %v1578_v32 = vrot.slane %v1454_v3, 2  ;;  %v480_v53 = vld [vmem:[%s6056_s8 + $0xcc] sm:$0xff]  }
 0x304   : > { %v1580_v5 = vrot.slane %v1455_v2, 2  ;;  %v1337_v55 = vsel %vm705_vm0, %v1334_v13, %v1336_v41  ;;  %v1684_v39 = vmul.f32 %v8276_v44, %v8879_v36  ;;  %v1765_v21 = vmul.f32 %v8272_v18, %v8880_v49 }
 0x305   : > { %v1766_v17 = vmul.f32 %v8276_v44, %v8880_v49  ;;  %v1403_v54 = vadd.f32 %v1335_v43, %v1159_v45  ;;  %v1404_v62 = vadd.f32 %v1337_v55, %v1160_v14  ;;  %v1579_v19 = vsel %vm950_vm1, %v1577_v57, %v1578_v32  ;;  %v8341_v43 = vld [vmem:[%s6056_s8 + $0xd4] sm:$0x1] }
 0x306   : > { %v1581_v9 = vsel %vm950_vm1, %v1578_v32, %v1580_v5  ;;  %v1767_v60 = vmul.f32 %v8880_v49, %v8279_v4  ;;  %v1889_v15 = vrot.slane %v1765_v21, 1  ;;  %v2009_v20 = vmul.f32 %v8012_v47, %v8272_v18 }
 0x307   : > { %v1890_v13 = vrot.slane %v1766_v17, 1  ;;  %v1647_v29 = vadd.f32 %v1579_v19, %v1403_v54  ;;  %v1648_v56 = vadd.f32 %v1581_v9, %v1404_v62  ;;  %v2010_v3 = vmul.f32 %v8012_v47, %v8276_v44 }
 0x308   : > { %v2011_v2 = vmul.f32 %v8012_v47, %v8279_v4  ;;  %v1892_v57 = vrot.slane %v1767_v60, 1  ;;  %v2133_v45 = vrot.slane %v2009_v20, 2  ;;  %v8344_v14 = vunpack.c.l.bf16 %v480_v53 }
 0x309   : > { %v1891_v41 = vsel %vm705_vm0, %v1889_v15, %v1890_v13  ;;  %v1715_v32 = vadd.f32 %v1683_v7, %v1647_v29  ;;  %v1716_v5 = vadd.f32 %v1684_v39, %v1648_v56  ;;  %v2134_v55 = vrot.slane %v2010_v3, 2 }
 0x30a   : > { %v2136_v21 = vrot.slane %v2011_v2, 2  ;;  %v1893_v17 = vsel %vm705_vm0, %v1890_v13, %v1892_v57  ;;  %v8347_v54 = vunpack.c.h.bf16 %v480_v53  ;;  %v536_v62 = vunpack.c.l.bf16 %v8341_v43 }
 0x30b   : > { %v571_v19 = vmul.f32 %v8868_v61, %v8028_v48  ;;  %v1959_v9 = vadd.f32 %v1891_v41, %v1715_v32  ;;  %v1960_v12 = vadd.f32 %v1893_v17, %v1716_v5  ;;  %v2135_v60 = vsel %vm950_vm1, %v2133_v45, %v2134_v55 }
 0x30c   : > { %v2137_v15 = vsel %vm950_vm1, %v2134_v55, %v2136_v21  ;;  %v572_v7 = vmul.f32 %v8868_v61, %v8035_v0  ;;  %v654_v39 = vmul.f32 %v8871_v63, %v8028_v48  ;;  %v655_v53 = vmul.f32 %v8871_v63, %v8035_v0 }
 0x30d   : > { %v656_v13 = vmul.f32 %v8871_v63, %v8037_v1  ;;  %v2203_v20 = vadd.f32 %v2135_v60, %v1959_v9  ;;  %v2204_v29 = vadd.f32 %v2137_v15, %v1960_v12  ;;  %v899_v56 = vmul.f32 %v8873_v52, %v8028_v48 }
 0x30e   : > { %v900_v3 = vmul.f32 %v8873_v52, %v8035_v0  ;;  %v781_v2 = vrot.slane %v654_v39, 1  ;;  %v782_v41 = vrot.slane %v655_v53, 1  ;;  %v901_v57 = vmul.f32 %v8873_v52, %v8037_v1 }
 0x30f   : > { %v784_v61 = vrot.slane %v656_v13, 1  ;;  %v2221_v45 = vpack.c.bf16 %v2204_v29, %v2203_v20  ;;  %v1026_v32 = vrot.slane %v899_v56, 2  ;;  %v1129_v63 = vmul.f32 %v8272_v18, %v8875_v10 }
 0x310   : > { %v1027_v5 = vrot.slane %v900_v3, 2  ;;  %v783_v12 = vsel %vm705_vm0, %v781_v2, %v782_v41  ;;  %v1029_v48 = vrot.slane %v901_v57, 2  ;;  %v1130_v0 = vmul.f32 %v8276_v44, %v8875_v10 }
 0x311   : > { %v785_v55 = vsel %vm705_vm0, %v782_v41, %v784_v61  ;;  %5292 = vmatprep.mubr.msk.bf16.mxu0 %vm4035_vm2, %v2221_v45  ;;  %v848_v21 = vadd.f32 %v783_v12, %v571_v19  ;;  %v1212_v1 = vmul.f32 %v8272_v18, %v8877_v11  ;;  %v1213_v60 = vmul.f32 %v8276_v44, %v8877_v11 }
 0x312   : > { %v849_v17 = vadd.f32 %v785_v55, %v572_v7  ;;  %v1028_v52 = vsel %vm950_vm1, %v1026_v32, %v1027_v5  ;;  %v1030_v9 = vsel %vm950_vm1, %v1027_v5, %v1029_v48  ;;  %v1214_v15 = vmul.f32 %v8877_v11, %v8279_v4  ;;  %v2278_v55 = vld [vmem:[%s6063_s23 + $0xcc] sm:$0xff]  }
 0x313   : > { %v1456_v10 = vmul.f32 %v8272_v18, %v8878_v51  ;;  %v1093_v39 = vadd.f32 %v1028_v52, %v848_v21  ;;  %v1338_v19 = vrot.slane %v1212_v1, 1  ;;  %v1457_v7 = vmul.f32 %v8276_v44, %v8878_v51 }
 0x314   : > { %v1094_v53 = vadd.f32 %v1030_v9, %v849_v17  ;;  %v1339_v13 = vrot.slane %v1213_v60, 1  ;;  %v1341_v20 = vrot.slane %v1214_v15, 1  ;;  %v1458_v29 = vmul.f32 %v8878_v51, %v8279_v4 }
 0x315   : > { %v1582_v56 = vrot.slane %v1456_v10, 2  ;;  %v1161_v3 = vadd.f32 %v1129_v63, %v1093_v39  ;;  %v1583_v41 = vrot.slane %v1457_v7, 2  ;;  %v1685_v11 = vmul.f32 %v8879_v36, %v8344_v14  ;;  %v8417_v10 = vld [vmem:[%s6063_s23 + $0xd4] sm:$0x1] }
 0x316   : > { %v1162_v2 = vadd.f32 %v1130_v0, %v1094_v53  ;;  %v1340_v18 = vsel %vm705_vm0, %v1338_v19, %v1339_v13  ;;  %v1342_v61 = vsel %vm705_vm0, %v1339_v13, %v1341_v20  ;;  %v1585_v57 = vrot.slane %v1458_v29, 2 }
 0x317   : > { %v1686_v44 = vmul.f32 %v8879_v36, %v8347_v54  ;;  %v1405_v45 = vadd.f32 %v1340_v18, %v1161_v3  ;;  %v1584_v51 = vsel %vm950_vm1, %v1582_v56, %v1583_v41  ;;  %v1768_v4 = vmul.f32 %v8880_v49, %v8344_v14 }
 0x318   : > { %v1406_v32 = vadd.f32 %v1342_v61, %v1162_v2  ;;  %v1586_v5 = vsel %vm950_vm1, %v1583_v41, %v1585_v57  ;;  %v1769_v63 = vmul.f32 %v8880_v49, %v8347_v54  ;;  %v1770_v12 = vmul.f32 %v8880_v49, %v536_v62 }
 0x319   : > { %v2012_v36 = vmul.f32 %v8012_v47, %v8344_v14  ;;  %v8407_v48 = vpop.f32.mrb[16].mxu0  ;;  %v1649_v0 = vadd.f32 %v1584_v51, %v1405_v45  ;;  %v1894_v17 = vrot.slane %v1768_v4, 1  ;;  %v2013_v52 = vmul.f32 %v8012_v47, %v8347_v54 }
 0x31a   : > { %v1650_v21 = vadd.f32 %v1586_v5, %v1406_v32  ;;  %v8411_v1 = vpop.f32.mrb[17].mxu0  ;;  %v1895_v9 = vrot.slane %v1769_v63, 1  ;;  %v1897_v60 = vrot.slane %v1770_v12, 1  ;;  %v2014_v49 = vmul.f32 %v8012_v47, %v536_v62 }
 0x31b   : > { %v2138_v15 = vrot.slane %v2012_v36, 2  ;;  %v8419_v14 = vpop.f32.mrb[18].mxu0  ;;  %v1717_v39 = vadd.f32 %v1685_v11, %v1649_v0  ;;  %v2139_v19 = vrot.slane %v2013_v52, 2  ;;  %v8421_v7 = vunpack.c.l.bf16 %v2278_v55 }
 0x31c   : > { %v1718_v53 = vadd.f32 %v1686_v44, %v1650_v21  ;;  %v8423_v13 = vpop.f32.mrb[19].mxu0  ;;  %v1896_v54 = vsel %vm705_vm0, %v1894_v17, %v1895_v9  ;;  %v1898_v20 = vsel %vm705_vm0, %v1895_v9, %v1897_v60  ;;  %v2141_v29 = vrot.slane %v2014_v49, 2 }
 0x31d   : > { %v8427_v43 = vunpack.c.h.bf16 %v2278_v55  ;;  %v1961_v47 = vadd.f32 %v1896_v54, %v1717_v39  ;;  %v2140_v56 = vsel %vm950_vm1, %v2138_v15, %v2139_v19  ;;  %v2334_v3 = vunpack.c.l.bf16 %v8417_v10 }
 0x31e   : > { %v1962_v62 = vadd.f32 %v1898_v20, %v1718_v53  ;;  %v2142_v2 = vsel %vm950_vm1, %v2139_v19, %v2141_v29  ;;  %v2369_v41 = vmul.f32 %v6596_v30, %v8124_v25  ;;  %v2370_v11 = vmul.f32 %v6596_v30, %v8130_v33 }
 0x31f   : > { %v2452_v18 = vmul.f32 %v6594_v34, %v8124_v25  ;;  %v2205_v61 = vadd.f32 %v2140_v56, %v1961_v47  ;;  %v2453_v44 = vmul.f32 %v6594_v34, %v8130_v33  ;;  %v2454_v45 = vmul.f32 %v6594_v34, %v8133_v40 }
 0x320   : > { %v2206_v57 = vadd.f32 %v2142_v2, %v1962_v62  ;;  %v2696_v51 = vmul.f32 %v6634_v22, %v8124_v25  ;;  %v2697_v4 = vmul.f32 %v6634_v22, %v8130_v33  ;;  %v2698_v30 = vmul.f32 %v6634_v22, %v8133_v40 }
 0x321   : > { %v2578_v32 = vrot.slane %v2452_v18, 1  ;;  %v2579_v63 = vrot.slane %v2453_v44, 1  ;;  %v2581_v12 = vrot.slane %v2454_v45, 1  ;;  %v2925_v36 = vmul.f32 %v8200_v37, %v6659_v58 }
 0x322   : > { %v2222_v5 = vpack.c.bf16 %v2206_v57, %v2205_v61  ;;  %v2822_v55 = vrot.slane %v2696_v51, 2  ;;  %v2823_v0 = vrot.slane %v2697_v4, 2  ;;  %v2825_v21 = vrot.slane %v2698_v30, 2 }
 0x323   : > { %v2926_v34 = vmul.f32 %v8207_v38, %v6659_v58  ;;  %v2580_v25 = vsel %vm705_vm0, %v2578_v32, %v2579_v63  ;;  %v2582_v33 = vsel %vm705_vm0, %v2579_v63, %v2581_v12  ;;  %v3008_v22 = vmul.f32 %v8200_v37, %v6636_v26  ;;  %v8489_v12 = vld [vmem:[#allocation11] ss:$0 sm:$0xff] }
 0x324   : > { %5293 = vmatmul.mubr.msk.bf16.gmra.mrb[28].mxu0 %vm4035_vm2, %v2222_v5  ;;  %v3009_v40 = vmul.f32 %v8207_v38, %v6636_v26  ;;  %v2645_v17 = vadd.f32 %v2580_v25, %v2369_v41  ;;  %v2646_v52 = vadd.f32 %v2582_v33, %v2370_v11  ;;  %v2824_v9 = vsel %vm950_vm1, %v2822_v55, %v2823_v0 }
 0x325   : > { %v2826_v60 = vsel %vm950_vm1, %v2823_v0, %v2825_v21  ;;  %v3010_v58 = vmul.f32 %v6636_v26, %v8209_v23  ;;  %v3134_v49 = vrot.slane %v3008_v22, 1  ;;  %v3252_v10 = vmul.f32 %v8200_v37, %v6661_v27 }
 0x326   : > { %v3135_v15 = vrot.slane %v3009_v40, 1  ;;  %v2889_v39 = vadd.f32 %v2824_v9, %v2645_v17  ;;  %v2890_v53 = vadd.f32 %v2826_v60, %v2646_v52  ;;  %v3253_v19 = vmul.f32 %v8207_v38, %v6661_v27 }
 0x327   : > { %v3254_v54 = vmul.f32 %v6661_v27, %v8209_v23  ;;  %v3137_v29 = vrot.slane %v3010_v58, 1  ;;  %v3378_v47 = vrot.slane %v3252_v10, 2  ;;  %v3481_v26 = vmul.f32 %v6681_v24, %v8421_v7 }
 0x328   : > { %v3136_v20 = vsel %vm705_vm0, %v3134_v49, %v3135_v15  ;;  %v2957_v62 = vadd.f32 %v2925_v36, %v2889_v39  ;;  %v2958_v56 = vadd.f32 %v2926_v34, %v2890_v53  ;;  %v3379_v2 = vrot.slane %v3253_v19, 2  ;;  %v8905_v39 = vld [vmem:[#allocation41_spill] sm:$0xff]  ;;  %v8906_v53 = vld [vmem:[#allocation40_spill] sm:$0xff] }
 0x329   : > { %v3381_v41 = vrot.slane %v3254_v54, 2  ;;  %v3138_v37 = vsel %vm705_vm0, %v3135_v15, %v3137_v29  ;;  %v3482_v11 = vmul.f32 %v6681_v24, %v8427_v43  ;;  %v3564_v38 = vmul.f32 %v6679_v8, %v8421_v7  ;;  %v8908_v19 = vld [vmem:[#allocation28_spill] sm:$0xff] }
 0x32a   : > { %v3565_v27 = vmul.f32 %v6679_v8, %v8427_v43  ;;  %v3201_v23 = vadd.f32 %v3136_v20, %v2957_v62  ;;  %v3202_v18 = vadd.f32 %v3138_v37, %v2958_v56  ;;  %v3380_v61 = vsel %vm950_vm1, %v3378_v47, %v3379_v2  ;;  %v8909_v56 = vld [vmem:[#allocation37_spill] sm:$0xff] }
 0x32b   : > { %v3382_v57 = vsel %vm950_vm1, %v3379_v2, %v3381_v41  ;;  %v3566_v44 = vmul.f32 %v6679_v8, %v2334_v3  ;;  %v3690_v45 = vrot.slane %v3564_v38, 1  ;;  %v3808_v51 = vmul.f32 %v6696_v46, %v8421_v7  ;;  %v8484_v24 = vpop.f32.mrb[16].mxu1  ;;  %v8910_v2 = vld [vmem:[#allocation36_spill] sm:$0xff] }
 0x32c   : > { %v3691_v32 = vrot.slane %v3565_v27, 1  ;;  %v3445_v4 = vadd.f32 %v3380_v61, %v3201_v23  ;;  %v3446_v30 = vadd.f32 %v3382_v57, %v3202_v18  ;;  %v3809_v5 = vmul.f32 %v6696_v46, %v8427_v43  ;;  %v8491_v36 = vpop.f32.mrb[17].mxu1  ;;  %v8911_v27 = vld [vmem:[#allocation29_spill] sm:$0xff]  ;;  %v8912_v23 = vld [vmem:[#allocation27_spill] sm:$0xff] }
 0x32d   : > { %v3810_v63 = vmul.f32 %v6696_v46, %v2334_v3  ;;  %v3693_v55 = vrot.slane %v3566_v44, 1  ;;  %v3934_v0 = vrot.slane %v3808_v51, 2  ;;  %v4348_v7 = vadd.f32 %v7972_v35, %v7974_v59  ;;  %v8496_v21 = vpop.f32.mrb[18].mxu1 }
 0x32e   : > { %v3692_v8 = vsel %vm705_vm0, %v3690_v45, %v3691_v32  ;;  %v3513_v34 = vadd.f32 %v3481_v26, %v3445_v4  ;;  %v3514_v25 = vadd.f32 %v3482_v11, %v3446_v30  ;;  %v3935_v33 = vrot.slane %v3809_v5, 2  ;;  %v8498_v43 = vpop.f32.mrb[19].mxu1  ;;  %v8913_v45 = vld [vmem:[#allocation31_spill] sm:$0xff] }
 0x32f   : > { %v3937_v22 = vrot.slane %v3810_v63, 2  ;;  %v3694_v46 = vsel %vm705_vm0, %v3691_v32, %v3693_v55  ;;  %v4475_v3 = vadd.f32 %v8489_v12, %v4348_v7  ;;  %v4340_v40 = vadd.f32 %v7980_v50, %v7982_v42  ;;  %v8907_v42 = vld [vmem:[#allocation35_spill] sm:$0xff]  ;;  %v8914_v32 = vld [vmem:[#allocation38_spill] sm:$0xff] }
 0x330   : > { %v3757_v17 = vadd.f32 %v3692_v8, %v3513_v34  ;;  %v3758_v52 = vadd.f32 %v3694_v46, %v3514_v25  ;;  %v3936_v35 = vsel %vm950_vm1, %v3934_v0, %v3935_v33  ;;  %v4351_v58 = vadd.f32 %v7987_v31, %v7989_v28 }
 0x331   : > { %v3938_v59 = vsel %vm950_vm1, %v3935_v33, %v3937_v22  ;;  %v4507_v9 = vmax.f32 %v4475_v3, 0.0  ;;  %v4473_v60 = vadd.f32 %v8489_v12, %v4340_v40  ;;  %v4343_v49 = vadd.f32 %v7991_v6, %v7993_v16  ;;  %v8915_v33 = vld [vmem:[#allocation30_spill] sm:$0xff]  ;;  %v8916_v22 = vld [vmem:[#allocation39_spill] sm:$0xff]  ;;  %v8917_v3 = vld [vmem:[#allocation33_spill] sm:$0xff] }
 0x332   : > { %v4001_v15 = vadd.f32 %v3936_v35, %v3757_v17  ;;  %v4002_v10 = vadd.f32 %v3938_v59, %v3758_v52  ;;  %v4364_v50 = vadd.f32 %v8906_v53, %v8905_v39  ;;  %v4356_v54 = vadd.f32 %v8908_v19, %v8907_v42  ;;  %v8918_v40 = vld [vmem:[#allocation32_spill] sm:$0xff]  ;;  %v8921_v42 = vld [vmem:[#allocation47_spill] sm:$0xff] }
 0x333   : > { %v5069_v20 = vpack.c.bf16 %v4507_v9, %v4507_v9  ;;  %v4505_v29 = vmax.f32 %v4473_v60, 0.0  ;;  %v4476_v47 = vadd.f32 %v8489_v12, %v4351_v58  ;;  %v4474_v62 = vadd.f32 %v8489_v12, %v4343_v49  ;;  %v8920_v60 = vld [vmem:[#allocation34_spill] sm:$0xff]  ;;  %v8922_v19 = vld [vmem:[#allocation43_spill] sm:$0xff] }
 0x334   : > { %v4018_v26 = vpack.c.bf16 %v4002_v10, %v4001_v15  ;;  %v4479_v31 = vadd.f32 %v8489_v12, %v4364_v50  ;;  %v4477_v28 = vadd.f32 %v8489_v12, %v4356_v54  ;;  %v4367_v41 = vadd.f32 %v8910_v2, %v8909_v56 }
 0x335   : > { %4739 = vst.msk [vmem:[%s8520_s3 + $0x8] sm:$0xf] %vm4736_vm3, %v5069_v20  ;;  %v5067_v6 = vpack.c.bf16 %v4505_v29, %v4505_v29  ;;  %v4508_v16 = vmax.f32 %v4476_v47, 0.0  ;;  %v4506_v37 = vmax.f32 %v4474_v62, 0.0  ;;  %v4359_v18 = vadd.f32 %v8912_v23, %v8911_v27  ;;  %v8923_v20 = vld [vmem:[#allocation48_spill] sm:$0xff]  ;;  %v8927_v23 = vld [vmem:[#allocation50_spill] sm:$0xff] }
 0x336   : > { %5257 = vmatmul.mubr.msk.bf16.gmra.mrb[28].mxu1 %vm4035_vm2, %v4018_v26  ;;  %v4511_v11 = vmax.f32 %v4479_v31, 0.0  ;;  %v4509_v38 = vmax.f32 %v4477_v28, 0.0  ;;  %v4540_v61 = vsel %vm4035_vm2, %v4507_v9, 0.0  ;;  %v4480_v44 = vadd.f32 %v8489_v12, %v4367_v41  ;;  %v8919_v9 = vld [vmem:[#allocation42_spill] sm:$0xff] }
 0x337   : > { %4737 = vst.msk [vmem:[%s8520_s3] sm:$0xf] %vm4736_vm3, %v5067_v6  ;;  %v5070_v57 = vpack.c.bf16 %v4508_v16, %v4508_v16  ;;  %v4380_v51 = vadd.f32 %v8914_v32, %v8913_v45  ;;  %v4537_v4 = vsel %vm4035_vm2, %v4505_v29, 0.0  ;;  %v4538_v30 = vsel %vm4035_vm2, %v4506_v37, 0.0  ;;  %v8924_v29 = vld [vmem:[#allocation44_spill] sm:$0xff] }
 0x338   : > { %v5068_v5 = vpack.c.bf16 %v4506_v37, %v4506_v37  ;;  %v5073_v63 = vpack.c.bf16 %v4511_v11, %v4511_v11  ;;  %v4542_v8 = vsel %vm4035_vm2, %v4508_v16, 0.0  ;;  %v4539_v55 = vadd.f32 %v4538_v30, %v4537_v4  ;;  %v8925_v37 = vld [vmem:[#allocation49_spill] sm:$0xff] }
 0x339   : > { %4740 = vst.msk [vmem:[%s8520_s3 + $0xc] sm:$0xf] %vm4736_vm3, %v5070_v57  ;;  %v5071_v0 = vpack.c.bf16 %v4509_v38, %v4509_v38  ;;  %v4512_v7 = vmax.f32 %v4480_v44, 0.0  ;;  %v4478_v34 = vadd.f32 %v8489_v12, %v4359_v18  ;;  %v4483_v25 = vadd.f32 %v8489_v12, %v4380_v51  ;;  %v8928_v18 = vld [vmem:[#allocation46_spill] sm:$0xff] }
 0x33a   : > { %4738 = vst.msk [vmem:[%s8520_s3 + $0x4] sm:$0xf] %vm4736_vm3, %v5068_v5  ;;  %4743 = vst.msk [vmem:[%s8520_s3 + $0x18] sm:$0xf] %vm4736_vm3, %v5073_v63  ;;  %v4372_v46 = vadd.f32 %v8916_v22, %v8915_v33  ;;  %v4383_v17 = vadd.f32 %v8918_v40, %v8917_v3  ;;  %v4541_v52 = vadd.f32 %v4540_v61, %v4539_v55  ;;  %v4544_v35 = vsel %vm4035_vm2, %v4509_v38, 0.0  ;;  %v8926_v38 = vld [vmem:[#allocation45_spill] sm:$0xff] }
 0x33b   : > { %4741 = vst.msk [vmem:[%s8520_s3 + $0x10] sm:$0xf] %vm4736_vm3, %v5071_v0  ;;  %v5074_v59 = vpack.c.bf16 %v4512_v7, %v4512_v7  ;;  %v4375_v58 = vadd.f32 %v8920_v60, %v8919_v9  ;;  %v4510_v49 = vmax.f32 %v4478_v34, 0.0  ;;  %v4515_v15 = vmax.f32 %v4483_v25, 0.0 }
 0x33c   : > { %v4481_v10 = vadd.f32 %v8489_v12, %v4372_v46  ;;  %v4484_v39 = vadd.f32 %v8489_v12, %v4383_v17  ;;  %v4543_v53 = vadd.f32 %v4542_v8, %v4541_v52  ;;  %v4396_v54 = vadd.f32 %v8922_v19, %v8921_v42 }
 0x33d   : > { %4744 = vst.msk [vmem:[%s8520_s3 + $0x1c] sm:$0xf] %vm4736_vm3, %v5074_v59  ;;  %v4482_v50 = vadd.f32 %v8489_v12, %v4375_v58  ;;  %v4388_v47 = vadd.f32 %v8924_v29, %v8923_v20  ;;  %v4546_v26 = vsel %vm4035_vm2, %v4510_v49, 0.0  ;;  %v5072_v62 = vpack.c.bf16 %v4510_v49, %v4510_v49 }
 0x33e   : > { %v5077_v31 = vpack.c.bf16 %v4515_v15, %v4515_v15  ;;  %v4545_v28 = vadd.f32 %v4544_v35, %v4543_v53  ;;  %v4513_v6 = vmax.f32 %v4481_v10, 0.0  ;;  %v4516_v16 = vmax.f32 %v4484_v39, 0.0 }
 0x33f   : > { %v4514_v56 = vmax.f32 %v4482_v50, 0.0  ;;  %4742 = vst.msk [vmem:[%s8520_s3 + $0x14] sm:$0xf] %vm4736_vm3, %v5072_v62  ;;  %v4487_v2 = vadd.f32 %v8489_v12, %v4396_v54  ;;  %v4485_v41 = vadd.f32 %v8489_v12, %v4388_v47  ;;  %v4399_v27 = vadd.f32 %v8926_v38, %v8925_v37 }
 0x340   : > { %4747 = vst.msk [vmem:[%s8520_s3 + $0x28] sm:$0xf] %vm4736_vm3, %v5077_v31  ;;  %v4391_v61 = vadd.f32 %v8928_v18, %v8927_v23  ;;  %v4548_v57 = vsel %vm4035_vm2, %v4511_v11, 0.0  ;;  %v4547_v44 = vadd.f32 %v4546_v26, %v4545_v28  ;;  %v5075_v45 = vpack.c.bf16 %v4513_v6, %v4513_v6 }
 0x341   : > { %v4550_v32 = vsel %vm4035_vm2, %v4512_v7, 0.0  ;;  %v5078_v51 = vpack.c.bf16 %v4516_v16, %v4516_v16  ;;  %v5076_v4 = vpack.c.bf16 %v4514_v56, %v4514_v56  ;;  %v4519_v30 = vmax.f32 %v4487_v2, 0.0 }
 0x342   : > { %v4549_v5 = vadd.f32 %v4548_v57, %v4547_v44  ;;  %4745 = vst.msk [vmem:[%s8520_s3 + $0x20] sm:$0xf] %vm4736_vm3, %v5075_v45  ;;  %v4517_v63 = vmax.f32 %v4485_v41, 0.0  ;;  %v4488_v8 = vadd.f32 %v8489_v12, %v4399_v27  ;;  %v4486_v55 = vadd.f32 %v8489_v12, %v4391_v61 }
 0x343   : > { %v4552_v0 = vsel %vm4035_vm2, %v4513_v6, 0.0  ;;  %4748 = vst.msk [vmem:[%s8520_s3 + $0x2c] sm:$0xf] %vm4736_vm3, %v5078_v51  ;;  %4746 = vst.msk [vmem:[%s8520_s3 + $0x24] sm:$0xf] %vm4736_vm3, %v5076_v4  ;;  %v5081_v11 = vpack.c.bf16 %v4519_v30, %v4519_v30  ;;  %v4412_v7 = vadd.f32 %v8407_v48, %v8484_v24  ;;  %v4404_v34 = vadd.f32 %v8411_v1, %v8491_v36 }
 0x344   : > { %v4551_v25 = vadd.f32 %v4550_v32, %v4549_v5  ;;  %v4554_v33 = vsel %vm4035_vm2, %v4514_v56, 0.0  ;;  %v5079_v22 = vpack.c.bf16 %v4517_v63, %v4517_v63  ;;  %v4520_v46 = vmax.f32 %v4488_v8, 0.0 }
 0x345   : > { %4751 = vst.msk [vmem:[%s8520_s3 + $0x38] sm:$0xf] %vm4736_vm3, %v5081_v11  ;;  %v4518_v3 = vmax.f32 %v4486_v55, 0.0  ;;  %v4491_v40 = vadd.f32 %v8489_v12, %v4412_v7  ;;  %v4489_v17 = vadd.f32 %v8489_v12, %v4404_v34  ;;  %v4415_v48 = vadd.f32 %v8419_v14, %v8496_v21 }
 0x346   : > { %v4553_v24 = vadd.f32 %v4552_v0, %v4551_v25  ;;  %4749 = vst.msk [vmem:[%s8520_s3 + $0x30] sm:$0xf] %vm4736_vm3, %v5079_v22  ;;  %v5082_v1 = vpack.c.bf16 %v4520_v46, %v4520_v46  ;;  %v4407_v36 = vadd.f32 %v8423_v13, %v8498_v43  ;;  %v4556_v14 = vsel %vm4035_vm2, %v4515_v15, 0.0 }
 0x347   : > { %v5080_v52 = vpack.c.bf16 %v4518_v3, %v4518_v3  ;;  %v4523_v35 = vmax.f32 %v4491_v40, 0.0  ;;  %v4521_v59 = vmax.f32 %v4489_v17, 0.0  ;;  %v4492_v60 = vadd.f32 %v8489_v12, %v4415_v48 }
 0x348   : > { %v4555_v9 = vadd.f32 %v4554_v33, %v4553_v24  ;;  %4752 = vst.msk [vmem:[%s8520_s3 + $0x3c] sm:$0xf] %vm4736_vm3, %v5082_v1  ;;  %v4490_v58 = vadd.f32 %v8489_v12, %v4407_v36  ;;  %v4558_v39 = vsel %vm4035_vm2, %v4516_v16, 0.0  ;;  %v4560_v53 = vsel %vm4035_vm2, %v4517_v63, 0.0 }
 0x349   : > { %4750 = vst.msk [vmem:[%s8520_s3 + $0x34] sm:$0xf] %vm4736_vm3, %v5080_v52  ;;  %v5085_v21 = vpack.c.bf16 %v4523_v35, %v4523_v35  ;;  %v5083_v13 = vpack.c.bf16 %v4521_v59, %v4521_v59  ;;  %v4524_v49 = vmax.f32 %v4492_v60, 0.0  ;;  %v4562_v15 = vsel %vm4035_vm2, %v4518_v3, 0.0 }
 0x34a   : > { %v4557_v43 = vadd.f32 %v4556_v14, %v4555_v9  ;;  %v4522_v10 = vmax.f32 %v4490_v58, 0.0  ;;  %v4564_v29 = vsel %vm4035_vm2, %v4519_v30, 0.0  ;;  %v4566_v26 = vsel %vm4035_vm2, %v4520_v46, 0.0 }
 0x34b   : > { %4755 = vst.msk [vmem:[%s8520_s3 + $0x48] sm:$0xf] %vm4736_vm3, %v5085_v21  ;;  %4753 = vst.msk [vmem:[%s8520_s3 + $0x40] sm:$0xf] %vm4736_vm3, %v5083_v13  ;;  %v5086_v42 = vpack.c.bf16 %v4524_v49, %v4524_v49  ;;  %v4568_v62 = vsel %vm4035_vm2, %v4521_v59, 0.0  ;;  %v4572_v56 = vsel %vm4035_vm2, %v4523_v35, 0.0 }
 0x34c   : > { %v4559_v50 = vadd.f32 %v4558_v39, %v4557_v43  ;;  %v5084_v19 = vpack.c.bf16 %v4522_v10, %v4522_v10  ;;  %v4570_v28 = vsel %vm4035_vm2, %v4522_v10, 0.0  ;;  %v4574_v41 = vsel %vm4035_vm2, %v4524_v49, 0.0 }
 0x34d   : > { %4756 = vst.msk [vmem:[%s8520_s3 + $0x4c] sm:$0xf] %vm4736_vm3, %v5086_v42 }
 0x34e   : > { %v4561_v54 = vadd.f32 %v4560_v53, %v4559_v50  ;;  %4754 = vst.msk [vmem:[%s8520_s3 + $0x44] sm:$0xf] %vm4736_vm3, %v5084_v19 }
 0x350   : > { %v4563_v20 = vadd.f32 %v4562_v15, %v4561_v54 }
 0x352   : > { %v4565_v47 = vadd.f32 %v4564_v29, %v4563_v20 }
 0x354   : > { %v4567_v31 = vadd.f32 %v4566_v26, %v4565_v47 }
 0x356   : > { %v4569_v6 = vadd.f32 %v4568_v62, %v4567_v31 }
 0x358   : > { %v4571_v16 = vadd.f32 %v4570_v28, %v4569_v6 }
 0x35a   : > { %v4573_v2 = vadd.f32 %v4572_v56, %v4571_v16 }
 0x35c   : > { %v4575_v37 = vadd.f32 %v4574_v41, %v4573_v2 }
 0x363   : > { %v5286_v38 = vpop.f32.mrb[20].mxu0 }
 0x364   : > { %v4419_v27 = vpop.f32.mrb[21].mxu0 }
 0x365   : > { %v5287_v23 = vpop.f32.mrb[22].mxu0 }
 0x366   : > { %v4422_v18 = vpop.f32.mrb[23].mxu0 }
 0x375   : > { %v5250_v61 = vpop.f32.mrb[20].mxu1 }
 0x376   : > { %v4428_v57 = vadd.f32 %v5286_v38, %v5250_v61  ;;  %v4198_v44 = vpop.f32.mrb[21].mxu1 }
 0x377   : > { %v4420_v45 = vadd.f32 %v4419_v27, %v4198_v44  ;;  %v5251_v32 = vpop.f32.mrb[22].mxu1 }
 0x378   : > { %v4495_v51 = vadd.f32 %v8489_v12, %v4428_v57  ;;  %v4431_v4 = vadd.f32 %v5287_v23, %v5251_v32  ;;  %v4201_v30 = vpop.f32.mrb[23].mxu1 }
 0x379   : > { %v4493_v5 = vadd.f32 %v8489_v12, %v4420_v45  ;;  %v4423_v63 = vadd.f32 %v4422_v18, %v4201_v30 }
 0x37a   : > { %v4527_v8 = vmax.f32 %v4495_v51, 0.0  ;;  %v4496_v55 = vadd.f32 %v8489_v12, %v4431_v4 }
 0x37b   : > { %v4525_v0 = vmax.f32 %v4493_v5, 0.0  ;;  %v4494_v11 = vadd.f32 %v8489_v12, %v4423_v63 }
 0x37c   : > { %v5089_v7 = vpack.c.bf16 %v4527_v8, %v4527_v8  ;;  %v4528_v34 = vmax.f32 %v4496_v55, 0.0  ;;  %v4580_v24 = vsel %vm4035_vm2, %v4527_v8, 0.0 }
 0x37d   : > { %v4576_v25 = vsel %vm4035_vm2, %v4525_v0, 0.0  ;;  %v5087_v33 = vpack.c.bf16 %v4525_v0, %v4525_v0  ;;  %v4526_v22 = vmax.f32 %v4494_v11, 0.0 }
 0x37e   : > { %4759 = vst.msk [vmem:[%s8520_s3 + $0x58] sm:$0xf] %vm4736_vm3, %v5089_v7  ;;  %v4577_v46 = vadd.f32 %v4576_v25, %v4575_v37  ;;  %v5090_v3 = vpack.c.bf16 %v4528_v34, %v4528_v34  ;;  %v4582_v36 = vsel %vm4035_vm2, %v4528_v34, 0.0 }
 0x37f   : > { %4757 = vst.msk [vmem:[%s8520_s3 + $0x50] sm:$0xf] %vm4736_vm3, %v5087_v33  ;;  %v4578_v40 = vsel %vm4035_vm2, %v4526_v22, 0.0  ;;  %v5088_v17 = vpack.c.bf16 %v4526_v22, %v4526_v22 }
 0x380   : > { %4760 = vst.msk [vmem:[%s8520_s3 + $0x5c] sm:$0xf] %vm4736_vm3, %v5090_v3  ;;  %v4579_v48 = vadd.f32 %v4578_v40, %v4577_v46 }
 0x381   : > { %4758 = vst.msk [vmem:[%s8520_s3 + $0x54] sm:$0xf] %vm4736_vm3, %v5088_v17 }
 0x382   : > { %v4581_v1 = vadd.f32 %v4580_v24, %v4579_v48 }
 0x384   : > { %v4583_v52 = vadd.f32 %v4582_v36, %v4581_v1 }
 0x3ad   : > { %v5290_v35 = vpop.f32.mrb[24].mxu0 }
 0x3ae   : > { %v4435_v59 = vpop.f32.mrb[25].mxu0 }
 0x3af   : > { %v5291_v9 = vpop.f32.mrb[26].mxu0 }
 0x3b0   : > { %v4438_v60 = vpop.f32.mrb[27].mxu0 }
 0x3bf   : > { %v5254_v58 = vpop.f32.mrb[24].mxu1 }
 0x3c0   : > { %v4444_v14 = vadd.f32 %v5290_v35, %v5254_v58  ;;  %v4214_v21 = vpop.f32.mrb[25].mxu1 }
 0x3c1   : > { %v4436_v13 = vadd.f32 %v4435_v59, %v4214_v21  ;;  %v5255_v43 = vpop.f32.mrb[26].mxu1 }
 0x3c2   : > { %v4499_v49 = vadd.f32 %v8489_v12, %v4444_v14  ;;  %v4447_v10 = vadd.f32 %v5291_v9, %v5255_v43  ;;  %v4217_v39 = vpop.f32.mrb[27].mxu1 }
 0x3c3   : > { %v4497_v53 = vadd.f32 %v8489_v12, %v4436_v13  ;;  %v4439_v50 = vadd.f32 %v4438_v60, %v4217_v39 }
 0x3c4   : > { %v4531_v42 = vmax.f32 %v4499_v49, 0.0  ;;  %v4500_v15 = vadd.f32 %v8489_v12, %v4447_v10 }
 0x3c5   : > { %v4529_v19 = vmax.f32 %v4497_v53, 0.0  ;;  %v4498_v54 = vadd.f32 %v8489_v12, %v4439_v50 }
 0x3c6   : > { %v5093_v20 = vpack.c.bf16 %v4531_v42, %v4531_v42  ;;  %v4532_v29 = vmax.f32 %v4500_v15, 0.0  ;;  %v4588_v2 = vsel %vm4035_vm2, %v4531_v42, 0.0 }
 0x3c7   : > { %v4584_v47 = vsel %vm4035_vm2, %v4529_v19, 0.0  ;;  %v5091_v26 = vpack.c.bf16 %v4529_v19, %v4529_v19  ;;  %v4530_v62 = vmax.f32 %v4498_v54, 0.0 }
 0x3c8   : > { %4763 = vst.msk [vmem:[%s8520_s3 + $0x68] sm:$0xf] %vm4736_vm3, %v5093_v20  ;;  %v4585_v31 = vadd.f32 %v4584_v47, %v4583_v52  ;;  %v5094_v28 = vpack.c.bf16 %v4532_v29, %v4532_v29  ;;  %v4590_v37 = vsel %vm4035_vm2, %v4532_v29, 0.0 }
 0x3c9   : > { %4761 = vst.msk [vmem:[%s8520_s3 + $0x60] sm:$0xf] %vm4736_vm3, %v5091_v26  ;;  %v4586_v6 = vsel %vm4035_vm2, %v4530_v62, 0.0  ;;  %v5092_v16 = vpack.c.bf16 %v4530_v62, %v4530_v62 }
 0x3ca   : > { %4764 = vst.msk [vmem:[%s8520_s3 + $0x6c] sm:$0xf] %vm4736_vm3, %v5094_v28  ;;  %v4587_v56 = vadd.f32 %v4586_v6, %v4585_v31 }
 0x3cb   : > { %4762 = vst.msk [vmem:[%s8520_s3 + $0x64] sm:$0xf] %vm4736_vm3, %v5092_v16 }
 0x3cc   : > { %v4589_v41 = vadd.f32 %v4588_v2, %v4587_v56 }
 0x3ce   : > { %v4591_v38 = vadd.f32 %v4590_v37, %v4589_v41 }
 0x3f7   : > { %v5294_v27 = vpop.f32.mrb[28].mxu0 }
 0x3f8   : > { %v4451_v23 = vpop.f32.mrb[29].mxu0 }
 0x3f9   : > { %v5295_v18 = vpop.f32.mrb[30].mxu0 }
 0x3fa   : > { %v4454_v61 = vpop.f32.mrb[31].mxu0 }
 0x409   : > { %v5258_v57 = vpop.f32.mrb[28].mxu1 }
 0x40a   : > { %v4460_v44 = vadd.f32 %v5294_v27, %v5258_v57  ;;  %v4230_v45 = vpop.f32.mrb[29].mxu1 }
 0x40b   : > { %v4452_v32 = vadd.f32 %v4451_v23, %v4230_v45  ;;  %v5259_v51 = vpop.f32.mrb[30].mxu1 }
 0x40c   : > { %v4503_v4 = vadd.f32 %v8489_v12, %v4460_v44  ;;  %v4463_v30 = vadd.f32 %v5295_v18, %v5259_v51  ;;  %v4233_v5 = vpop.f32.mrb[31].mxu1 }
 0x40d   : > { %v4501_v63 = vadd.f32 %v8489_v12, %v4452_v32  ;;  %v4455_v8 = vadd.f32 %v4454_v61, %v4233_v5 }
 0x40e   : > { %v4535_v55 = vmax.f32 %v4503_v4, 0.0  ;;  %v4504_v0 = vadd.f32 %v8489_v12, %v4463_v30 }
 0x40f   : > { %v4533_v11 = vmax.f32 %v4501_v63, 0.0  ;;  %v4502_v7 = vadd.f32 %v8489_v12, %v4455_v8 }
 0x410   : > { %v5097_v34 = vpack.c.bf16 %v4535_v55, %v4535_v55  ;;  %v4536_v25 = vmax.f32 %v4504_v0, 0.0  ;;  %v4596_v24 = vsel %vm4035_vm2, %v4535_v55, 0.0 }
 0x411   : > { %v4592_v33 = vsel %vm4035_vm2, %v4533_v11, 0.0  ;;  %v5095_v22 = vpack.c.bf16 %v4533_v11, %v4533_v11  ;;  %v4534_v46 = vmax.f32 %v4502_v7, 0.0 }
 0x412   : > { %4767 = vst.msk [vmem:[%s8520_s3 + $0x78] sm:$0xf] %vm4736_vm3, %v5097_v34  ;;  %v4593_v3 = vadd.f32 %v4592_v33, %v4591_v38  ;;  %v5098_v40 = vpack.c.bf16 %v4536_v25, %v4536_v25 }
 0x413   : > { %4765 = vst.msk [vmem:[%s8520_s3 + $0x70] sm:$0xf] %vm4736_vm3, %v5095_v22  ;;  %v4594_v12 = vsel %vm4035_vm2, %v4534_v46, 0.0  ;;  %v5096_v17 = vpack.c.bf16 %v4534_v46, %v4534_v46 }
 0x414   : > { %4768 = vst.msk [vmem:[%s8520_s3 + $0x7c] sm:$0xf] %vm4736_vm3, %v5098_v40  ;;  %v4595_v48 = vadd.f32 %v4594_v12, %v4593_v3 }
 0x415   : > { %4766 = vst.msk [vmem:[%s8520_s3 + $0x74] sm:$0xf] %vm4736_vm3, %v5096_v17 }
 0x416   : > { %v4597_v1 = vadd.f32 %v4596_v24, %v4595_v48 }
 0x417   : > { %5626 = shalt.err (!%p5623_p5)
}
 0x418   : > { %s5627_s18 = scalar_lea.hbm %s8669_s26, 2048  ;;  %s5631_s16 = scalar_lea.hbm %s8929_s14, 4096 }
 0x419   : > { %p5628_p8 = scmp.ne.s32.totalorder %s8669_s26, %s5627_s18  ;;  %p5632_p11 = scmp.lt.u32.totalorder %s8669_s26, %s8929_s14 }
 0x41a   : > { %p5633_p13 = scmp.lt.u32.totalorder %s5631_s16, %s5627_s18  ;;  %p5635_p7 = scmp.lt.u32.totalorder %s5627_s18, %s8669_s26 }
 0x41b   : > { %p5629_p1 = pnand %p5628_p8, %p8930_p12 }
 0x41c   : > { %p5634_p3 = por %p5633_p13, %p5632_p11 }
 0x41d   : > { %p5630_p0 = pneg %p5629_p1 }
 0x41e   : > { %p5636_p2 = por %p5635_p7, %p5634_p3 }
 0x420   : > { %p5637_p6 = pnand %p5636_p2, %p5630_p0 }
 0x422   : > { %5640 = shalt.err (!%p5637_p6)
}
 0x423   : > { %s5737_s1 = smov 64   ;;  %s5738_s17 = smov 4   ;;  %v4598_v36 = vsel %vm4035_vm2, %v4536_v25, 0.0  ;;  %vm4606_vm4 = vcmask 253952  }
 0x424   : > { %5351 = dma.vmem_to_hbm [thread:$0]  (%p8930_p12), %s8671_s19, 2048, %s8669_s26, %s4770_s20, %s5737_s1, %s5737_s1, %s5738_s17   ;;  %v4599_v52 = vadd.f32 %v4598_v36, %v4597_v1 }
 0x425   : > { %s5063_s12 = sshll.u32 %s5801_s28, 4  ;;  %s425_s30 = scalar_lea.vmem [#allocation14], %s6052_s22 }
 0x426   : > { %v4600_v35 = vrot.slane %v4599_v52, 4  ;;  %s4803_s3 = sshll.u32 %s425_s30, 4  ;;  %s8931_s24 = sld [smem:[#allocation54_spill]]  ;;  %s8713_s3 = int_to_ptr.vmem [resolvable:$true] %s4803_s3 }
 0x427   : > { %s4775_s19 = scalar_lea.sflag [#allocation15], %s6052_s22  ;;  %s5641_s26 = scalar_lea.vmem %s8713_s3, 16 }
 0x428   : > { %v4601_v59 = vadd.f32 %v4600_v35, %v4599_v52  ;;  %p5642_p9 = scmp.ne.s32.totalorder %s8713_s3, %s5641_s26  ;;  %s5739_s28 = smov [#allocation14]  }
 0x429   : > { %s5645_s20 = sshll.u32 %s5739_s28, 4  ;;  %s5646_s20 = int_to_ptr.vmem [resolvable:$false] %s5645_s20 }
 0x42a   : > { %v4602_v9 = vrot.slane %v4601_v59, 2  ;;  %p5643_p10 = pnand %p5642_p9, %p8930_p12  ;;  %s5647_s7 = scalar_lea.vmem %s5646_s20, 32 }
 0x42b   : > { %p5648_p5 = scmp.lt.s32.totalorder %s8713_s3, %s5646_s20  ;;  %p5649_p8 = scmp.lt.s32.totalorder %s5647_s7, %s5641_s26 }
 0x42c   : > { %v4603_v60 = vadd.f32 %v4602_v9, %v4601_v59  ;;  %s8932_s9 = smov %s8931_s24  ;;  %s8711_s6 = scalar_lea.hbm %s8931_s24, %s5063_s12 }
 0x42d   : > { %p5644_p4 = pneg %p5643_p10  ;;  %p5650_p1 = por %p5649_p8, %p5648_p5 }
 0x42e   : > { %v4604_v58 = vrot.slane %v4603_v60, 1 }
 0x42f   : > { %p5651_p0 = pnand %p5650_p1, %p5644_p4 }
 0x430   : > { %v4605_v14 = vadd.f32 %v4604_v58, %v4603_v60 }
 0x432   : > { %4607 = vst.msk [vmem:[%s425_s30] sm:$0x1] %vm4606_vm4, %v4605_v14 }
 0x433   : > { %5654 = shalt.err (!%p5651_p0)
}
 0x434   : > { %s5655_s22 = scalar_lea.hbm %s8711_s6, 16  ;;  %s5659_s21 = scalar_lea.hbm %s8932_s9, 32 }
 0x435   : > { %p5656_p11 = scmp.ne.s32.totalorder %s8711_s6, %s5655_s22  ;;  %p5660_p7 = scmp.lt.u32.totalorder %s8711_s6, %s8932_s9 }
 0x436   : > { %p5661_p2 = scmp.lt.u32.totalorder %s5659_s21, %s5655_s22  ;;  %p5663_p9 = scmp.lt.u32.totalorder %s5655_s22, %s8711_s6 }
 0x437   : > { %p5657_p13 = pnand %p5656_p11, %p8930_p12 }
 0x438   : > { %p5662_p6 = por %p5661_p2, %p5660_p7 }
 0x439   : > { %p5658_p3 = pneg %p5657_p13 }
 0x43a   : > { %p5664_p10 = por %p5663_p9, %p5662_p6 }
 0x43c   : > { %p5665_p4 = pnand %p5664_p10, %p5658_p3 }
 0x43e   : > { %5668 = shalt.err (!%p5665_p4)
}
 0x43f   : > { %5352 = dma.vmem_to_hbm [thread:$0]  (%p8930_p12), %s8713_s3, 16, %s8711_s6, %s4775_s19  }
 0x440 PF: > { %s8933_s15 = sld [smem:[#allocation22_spill]]  ;;  %s8934_s23 = sld [smem:[#allocation26_spill]] }
 0x441   : > { %p8936_p8 = scmp.ge.s32.totalorder %s5723_s27, 2 }
 0x446   : > { %s4815_s1 = sand.u32 1, %s8933_s15   ;;  %p8935_p5 = scmp.ne.s32.totalorder %s8934_s23, 0 }
 0x447   : > { %s4816_s17 = scalar_lea.sflag [#allocation4], %s4815_s1 }
 0x448   : > { %p5376_p1 = pnand %p8936_p8, %p8935_p5 }
 0x44a   : > { %5702 = dma.done.wait (!%p5376_p1), %s4816_s17, 2048  }
 0x44b   : > { %5704 = vsyncadd (!%p5376_p1), %s4816_s17, 4294965248  ;;  %s4825_s12 = scalar_lea.sflag [#allocation15], %s4815_s1 }
 0x44c   : > { %5706 = dma.done.wait (!%p5376_p1), %s4825_s12, 16  }
 0x44d   : > { %5708 = vsyncadd (!%p5376_p1), %s4825_s12, 4294967280  ;;  %s8937_s27 = sld [smem:[#allocation24_spill]]  ;;  %s8938_s13 = sld [smem:[#allocation23_spill]] }
 0x44e   : > { %s8939_s26 = sld [smem:[#allocation25_spill]]  ;;  %s8940_s24 = smov %s5715_s25 }
 0x453   : > { %p29_p12 = scmp.ge.s32.totalorder %s8937_s27, 4   ;;  %s8941_s25 = smov %s8938_s13 }
 0x455   :  { %31 = sbr.rel (!%p29_p12) target bundleno = 16 (0x10), region = 142 }
 0x45c   :  { %4829 = vsyncpa [#allocation3], 1 }
 0x45d   :  { %4831 = vsyncpa [#allocation3 + $0x1], 1 }
 0x45e   :  { %4832 = vsyncpa [#allocation6], 1 }
 0x45f   :  { %4834 = vsyncpa [#allocation6 + $0x1], 1 }
 0x460   :  { %4835 = vsyncpa [#allocation9], 1 }
 0x461   :  { %4836 = vsyncpa [#allocation12], 1 }
 0x462   :  { %4837 = vsyncpa [#allocation4], 1 }
 0x463   :  { %4839 = vsyncpa [#allocation4 + $0x1], 1 }
 0x464   :  { %4840 = vsyncpa [#allocation15], 1 }
 0x465   :  { %4842 = vsyncpa [#allocation15 + $0x1], 1 }

</bundles_post_ra>
